<compile_context>
chip_gen: v7x
topology: tpu7x:2x2x1
jax: 0.10.0
libtpu: 0.0.40
codegen_flags: <defaults>
</compile_context>

<pallas_src>
import functools

import jax
import jax.numpy as jnp
from jax.experimental import pallas as pl
from jax.experimental.pallas import tpu as pltpu


# ------------------------------------------------------------------ embd kernel (single conv)
def _masked_conv_relu_kernel(x_ref, w_ref, b_ref, m_ref, o_ref, *, k, t):
    """x_ref: (1, T+2*pad, Cin) bf16; w_ref: (K, Cin, Cout) bf16; b_ref: (1, Cout) f32;
    m_ref: (1, T, 1) f32; o_ref: (1, T, Cout) bf16."""
    xv = x_ref[0]                                      # (T+2*pad, Cin)
    cout = w_ref.shape[-1]
    acc = jnp.zeros((t, cout), jnp.float32)
    for kk in range(k):                                # static unroll over taps
        acc = acc + jnp.dot(xv[kk:kk + t], w_ref[kk],
                            preferred_element_type=jnp.float32)
    out = jnp.maximum((acc + b_ref[0]) * m_ref[0], 0.0)   # bias -> mask -> ReLU
    o_ref[0] = out.astype(o_ref.dtype)


def masked_conv_relu(x, w, b, mask):
    """MaskedConv1D(stride=1, pad=K//2) -> *mask -> ReLU.  x bf16 (B,T,Cin) -> bf16 (B,T,Cout)."""
    B, T, Cin = x.shape
    K, _, Cout = w.shape
    assert K % 2 == 1
    pad = K // 2
    x_pad = jnp.pad(x, ((0, 0), (pad, pad), (0, 0)))
    b2 = b.reshape(1, Cout).astype(jnp.float32)

    kernel = functools.partial(_masked_conv_relu_kernel, k=K, t=T)
    return pl.pallas_call(
        kernel,
        out_shape=jax.ShapeDtypeStruct((B, T, Cout), jnp.bfloat16),
        grid=(B,),
        in_specs=[
            pl.BlockSpec((1, T + 2 * pad, Cin), lambda bb: (bb, 0, 0)),
            pl.BlockSpec((K, Cin, Cout), lambda bb: (0, 0, 0)),
            pl.BlockSpec((1, Cout), lambda bb: (0, 0)),
            pl.BlockSpec((1, T, 1), lambda bb: (bb, 0, 0)),
        ],
        out_specs=pl.BlockSpec((1, T, Cout), lambda bb: (bb, 0, 0)),
        compiler_params=pltpu.CompilerParams(dimension_semantics=("parallel",)),
    )(x_pad, w, b2, mask)


# ------------------------------------------------------------------ fused ConvBlock kernel
def _conv_block_kernel(*refs, stride, tout, cin, width, cout):
    """One full ConvBlock per batch element; the conv1 intermediate lives in VMEM scratch."""
    if stride == 1:
        x_ref, w1_ref, b1_ref, w2_ref, b2_ref, m_ref, o_ref, zbuf = refs
    else:
        (x_ref, w1a_ref, w1b_ref, b1_ref, wd_ref, bd_ref,
         w2_ref, b2_ref, m_ref, o_ref, zbuf) = refs

    mask = m_ref[0]                                    # (tout, 1) f32, output resolution
    xv = x_ref[0]                                      # s=1: (tout+2, cin) ; s=2: (tout+1, 2*cin)

    # ---- conv1 (K=3, pad=1, stride s) + bias + mask + ReLU ------------------------------
    if stride == 1:
        acc1 = jnp.zeros((tout, width), jnp.float32)
        for k in range(3):                             # taps via sublane-shifted slices
            acc1 = acc1 + jnp.dot(xv[k:k + tout], w1_ref[k],
                                  preferred_element_type=jnp.float32)
    else:
        # even/odd packed rows: P[u] = [x_pad[2u], x_pad[2u+1]]
        # taps 0 & 1 fused into one 2*cin-contraction matmul; tap 2 = even rows shifted by 1
        acc1 = jnp.dot(xv[0:tout], w1a_ref[...], preferred_element_type=jnp.float32)
        acc1 = acc1 + jnp.dot(xv[1:tout + 1, 0:cin], w1b_ref[...],
                              preferred_element_type=jnp.float32)
    z = jnp.maximum((acc1 + b1_ref[0]) * mask, 0.0)    # (tout, width) f32

    # stage conv1 output into a zero-padded VMEM buffer (halo rows for conv2)
    zbuf[0:1, :] = jnp.zeros((1, width), zbuf.dtype)
    zbuf[tout + 1:tout + 2, :] = jnp.zeros((1, width), zbuf.dtype)
    zbuf[1:tout + 1, :] = z.astype(zbuf.dtype)

    # ---- identity path (VMEM resident, no extra HBM pass over x) ------------------------
    if stride == 1:
        identity = xv[1:tout + 1].astype(jnp.float32)                 # raw x
    else:
        idn = jnp.dot(xv[0:tout, cin:2 * cin], wd_ref[...],            # x[2u] = odd lanes
                      preferred_element_type=jnp.float32)
        identity = (idn + bd_ref[0]) * mask                            # masked 1x1 downsample

    # ---- conv2 (K=3, pad=1, stride 1) + bias + mask + residual + ReLU --------------------
    acc2 = jnp.zeros((tout, cout), jnp.float32)
    for k in range(3):
        acc2 = acc2 + jnp.dot(zbuf[k:k + tout, :], w2_ref[k],
                              preferred_element_type=jnp.float32)
    out = jnp.maximum((acc2 + b2_ref[0]) * mask + identity, 0.0)
    o_ref[0] = out.astype(o_ref.dtype)


def conv_block_fused(blk, x, mask, stride):
    """ConvBlock as ONE pallas_call. x bf16 (B, s*Tout, C), mask f32 (B, s*Tout, 1)."""
    B, Tres, C = x.shape
    assert Tres % stride == 0
    Tout = Tres // stride
    width = blk["w1"].shape[-1]
    Cout = blk["w2"].shape[-1]

    out_mask = mask[:, ::stride, :] if stride > 1 else mask           # nearest interpolate
    x_pad = jnp.pad(x, ((0, 0), (1, 1), (0, 0)))                      # K=3, pad=1
    b1 = blk["b1"].reshape(1, width).astype(jnp.float32)
    b2 = blk["b2"].reshape(1, Cout).astype(jnp.float32)

    if stride == 1:
        args = [x_pad, blk["w1"], b1, blk["w2"], b2, out_mask]
        in_specs = [
            pl.BlockSpec((1, Tout + 2, C), lambda b: (b, 0, 0)),
            pl.BlockSpec((3, C, width), lambda b: (0, 0, 0)),
            pl.BlockSpec((1, width), lambda b: (0, 0)),
            pl.BlockSpec((3, width, Cout), lambda b: (0, 0, 0)),
            pl.BlockSpec((1, Cout), lambda b: (0, 0)),
            pl.BlockSpec((1, Tout, 1), lambda b: (b, 0, 0)),
        ]
    else:
        # even/odd pack is a FREE contiguous reshape (no HBM duplication, no strided gather)
        x_eo = x_pad.reshape(B, Tout + 1, 2 * C)
        w1a = blk["w1"][0:2].reshape(2 * C, width)                    # taps 0,1 stacked
        w1b = blk["w1"][2]
        wd = blk["wd"][0]                                             # (C, Cout)
        bd = blk["bd"].reshape(1, Cout).astype(jnp.float32)
        args = [x_eo, w1a, w1b, b1, wd, bd, blk["w2"], b2, out_mask]
        in_specs = [
            pl.BlockSpec((1, Tout + 1, 2 * C), lambda b: (b, 0, 0)),
            pl.BlockSpec((2 * C, width), lambda b: (0, 0)),
            pl.BlockSpec((C, width), lambda b: (0, 0)),
            pl.BlockSpec((1, width), lambda b: (0, 0)),
            pl.BlockSpec((C, Cout), lambda b: (0, 0)),
            pl.BlockSpec((1, Cout), lambda b: (0, 0)),
            pl.BlockSpec((3, width, Cout), lambda b: (0, 0, 0)),
            pl.BlockSpec((1, Cout), lambda b: (0, 0)),
            pl.BlockSpec((1, Tout, 1), lambda b: (b, 0, 0)),
        ]

    kernel = functools.partial(_conv_block_kernel, stride=stride, tout=Tout,
                               cin=C, width=width, cout=Cout)
    out = pl.pallas_call(
        kernel,
        out_shape=jax.ShapeDtypeStruct((B, Tout, Cout), jnp.bfloat16),
        grid=(B,),
        in_specs=in_specs,
        out_specs=pl.BlockSpec((1, Tout, Cout), lambda b: (b, 0, 0)),
        scratch_shapes=[pltpu.VMEM((Tout + 2, width), jnp.bfloat16)],
        compiler_params=pltpu.CompilerParams(dimension_semantics=("parallel",)),
    )(*args)
    return out, out_mask


# ------------------------------------------------------------------ full backbone forward
def conv_backbone_forward(params, x, mask, scale_factor=2):
    """x: (B, T, n_in) f32, mask: (B, T, 1) f32 {0,1}. Returns (feats bf16, bool masks)."""
    x = x.astype(jnp.bfloat16)
    mask = mask.astype(jnp.float32)
    for (w, b) in params["embd"]:
        x = masked_conv_relu(x, w, b, mask)            # Identity norm (with_ln=False) + ReLU
    for blk in params["stem"]:
        x, mask = conv_block_fused(blk, x, mask, stride=1)
    out_feats, out_masks = (x,), (mask,)
    for blk in params["branch"]:
        x, mask = conv_block_fused(blk, x, mask, stride=scale_factor)
        out_feats += (x,)
        out_masks += (mask,)
    return out_feats, tuple(m.astype(jnp.bool_) for m in out_masks)


# ------------------------------------------------------------------ params
def init_params(key, n_in, n_embd, n_embd_ks, arch=(2, 2, 5), expansion=2):
    def nxt():
        nonlocal key
        key, sub = jax.random.split(key)
        return sub

    def conv_p(k, cin, cout, w_scale=0.05, b_scale=0.05):
        w = (jax.random.normal(nxt(), (k, cin, cout), jnp.float32) * w_scale).astype(jnp.bfloat16)
        b = jax.random.normal(nxt(), (cout,), jnp.float32) * b_scale
        return w, b

    params = {"embd": [], "stem": [], "branch": []}
    for idx in range(arch[0]):
        cin = n_in if idx == 0 else n_embd
        params["embd"].append(conv_p(n_embd_ks, cin, n_embd))
    width = n_embd * expansion
    for _ in range(arch[1]):
        w1, b1 = conv_p(3, n_embd, width)
        w2, b2 = conv_p(3, width, n_embd)
        params["stem"].append({"w1": w1, "b1": b1, "w2": w2, "b2": b2})
    for _ in range(arch[2]):
        w1, b1 = conv_p(3, n_embd, width)
        w2, b2 = conv_p(3, width, n_embd)
        wd, bd = conv_p(1, n_embd, n_embd)
        params["branch"].append({"w1": w1, "b1": b1, "w2": w2, "b2": b2,
                                 "wd": wd, "bd": bd})
    return params


# ------------------------------------------------------------------ pure-JAX reference
# (same bf16 rounding points as the kernels so the check is tight)
def _ref_masked_conv_relu(x, w, b, mask, k):
    B, T, _ = x.shape
    pad = k // 2
    xp = jnp.pad(x.astype(jnp.float32), ((0, 0), (pad, pad), (0, 0)))
    wf = w.astype(jnp.float32)
    acc = jnp.zeros((B, T, w.shape[-1]), jnp.float32)
    for kk in range(k):
        acc = acc + jnp.einsum("bti,io->bto", xp[:, kk:kk + T], wf[kk])
    return jnp.maximum((acc + b) * mask, 0.0).astype(jnp.bfloat16)


def _ref_conv_block(blk, x, mask, stride):
    B, Tres, C = x.shape
    Tout = Tres // stride
    width = blk["w1"].shape[-1]
    Cout = blk["w2"].shape[-1]
    out_mask = mask[:, ::stride, :] if stride > 1 else mask
    xf = x.astype(jnp.float32)
    xp = jnp.pad(xf, ((0, 0), (1, 1), (0, 0)))
    w1 = blk["w1"].astype(jnp.float32)
    acc1 = jnp.zeros((B, Tout, width), jnp.float32)
    for kk in range(3):
        acc1 = acc1 + jnp.einsum("bti,io->bto", xp[:, kk:kk + stride * Tout:stride], w1[kk])
    z = jnp.maximum((acc1 + blk["b1"]) * out_mask, 0.0).astype(jnp.bfloat16)

    if stride > 1:
        idn = jnp.einsum("bti,io->bto", xf[:, ::stride], blk["wd"][0].astype(jnp.float32))
        identity = (idn + blk["bd"]) * out_mask
    else:
        identity = xf

    zp = jnp.pad(z.astype(jnp.float32), ((0, 0), (1, 1), (0, 0)))
    w2 = blk["w2"].astype(jnp.float32)
    acc2 = jnp.zeros((B, Tout, Cout), jnp.float32)
    for kk in range(3):
        acc2 = acc2 + jnp.einsum("bti,io->bto", zp[:, kk:kk + Tout], w2[kk])
    out = jnp.maximum((acc2 + blk["b2"]) * out_mask + identity, 0.0).astype(jnp.bfloat16)
    return out, out_mask


def _ref_backbone(params, x, mask, scale_factor=2):
    x = x.astype(jnp.bfloat16)
    mask = mask.astype(jnp.float32)
    for (w, b) in params["embd"]:
        x = _ref_masked_conv_relu(x, w, b, mask, w.shape[0])
    for blk in params["stem"]:
        x, mask = _ref_conv_block(blk, x, mask, 1)
    feats, masks = (x,), (mask,)
    for blk in params["branch"]:
        x, mask = _ref_conv_block(blk, x, mask, scale_factor)
        feats += (x,)
        masks += (mask,)
    return feats, tuple(m.astype(jnp.bool_) for m in masks)


# ------------------------------------------------------------------ main
if __name__ == "__main__":
    B, n_in, T = 2, 4, 64                 # T divisible by 2**arch[2] = 32
    n_embd, n_embd_ks = 128, 3            # 128 -> lane-dense stores / >=128 contractions
    arch, scale_factor = (2, 2, 5), 2

    key = jax.random.PRNGKey(0)
    kx, kp = jax.random.split(key)

    # PyTorch-convention inputs: x (B, C, T), mask (B, 1, T) bool
    x_nct = jax.random.normal(kx, (B, n_in, T), jnp.float32)
    lengths = jnp.array([T, 40], jnp.int32)
    mask_b1t = (jnp.arange(T)[None, :] < lengths[:, None])[:, None, :]

    # kernel layout: (B, T, C) / (B, T, 1)
    x = jnp.transpose(x_nct, (0, 2, 1))
    mask = jnp.transpose(mask_b1t, (0, 2, 1)).astype(jnp.float32)

    params = init_params(kp, n_in, n_embd, n_embd_ks, arch)

    fwd = jax.jit(functools.partial(conv_backbone_forward, scale_factor=scale_factor))
    out_feats, out_masks = fwd(params, x, mask)
    jax.block_until_ready(out_feats)
    jax.block_until_ready(out_masks)

    # verify against pure-JAX reference (same bf16 rounding points)
    ref_feats, ref_masks = _ref_backbone(params, x, mask, scale_factor)
    assert len(out_feats) == 1 + arch[2] and len(out_masks) == 1 + arch[2]
    for lvl, (got, ref) in enumerate(zip(out_feats, ref_feats)):
        t_lvl = T // (scale_factor ** lvl)
        assert got.shape == (B, t_lvl, n_embd), got.shape
        g = got.astype(jnp.float32)
        r = ref.astype(jnp.float32)
        assert jnp.allclose(g, r, atol=2e-2, rtol=2e-2), f"feat mismatch at level {lvl}"
        assert out_masks[lvl].shape == (B, t_lvl, 1)
        assert jnp.array_equal(out_masks[lvl], ref_masks[lvl]), f"mask mismatch at level {lvl}"

    print("KERNEL_OK")
</pallas_src>

<mosaic_0001>
module attributes {stable_mosaic.version = 11 : i64} {
  func.func @_conv_block_kernel(%arg0: i32, %arg1: memref<1x66x128xbf16, #tpu.memory_space<vmem>>, %arg2: memref<3x128x256xbf16, #tpu.memory_space<vmem>>, %arg3: memref<1x256xf32, #tpu.memory_space<vmem>>, %arg4: memref<3x256x128xbf16, #tpu.memory_space<vmem>>, %arg5: memref<1x128xf32, #tpu.memory_space<vmem>>, %arg6: memref<1x64x1xf32, #tpu.memory_space<vmem>>, %arg7: memref<1x64x128xbf16, #tpu.memory_space<vmem>>, %arg8: memref<66x256xbf16, #tpu.memory_space<vmem>>) attributes {dimension_semantics = [#tpu.dimension_semantics<parallel>], iteration_bounds = array<i64: 2>, scalar_prefetch = 0 : i64, scratch_operands = 1 : i64, tpu.core_type = #tpu.core_type<tc>, window_params = [{transform_indices = @transform_0, window_bounds = array<i64: 1, 66, 128>}, {pipeline_mode = #tpu.pipeline_mode<synchronous>, transform_indices = @transform_1, window_bounds = array<i64: 3, 128, 256>}, {pipeline_mode = #tpu.pipeline_mode<synchronous>, transform_indices = @transform_2, window_bounds = array<i64: 1, 256>}, {pipeline_mode = #tpu.pipeline_mode<synchronous>, transform_indices = @transform_3, window_bounds = array<i64: 3, 256, 128>}, {pipeline_mode = #tpu.pipeline_mode<synchronous>, transform_indices = @transform_4, window_bounds = array<i64: 1, 128>}, {transform_indices = @transform_5, window_bounds = array<i64: 1, 64, 1>}, {transform_indices = @transform_6, window_bounds = array<i64: 1, 64, 128>}]} {
    %c0 = arith.constant 0 : index
    %c0_0 = arith.constant 0 : index
    %c0_1 = arith.constant 0 : index
    %0 = vector.load %arg6[%c0, %c0_0, %c0_1] : memref<1x64x1xf32, #tpu.memory_space<vmem>>, vector<1x64x1xf32>
    %1 = vector.shape_cast %0 : vector<1x64x1xf32> to vector<64x1xf32>
    %c0_2 = arith.constant 0 : index
    %c0_3 = arith.constant 0 : index
    %c0_4 = arith.constant 0 : index
    %2 = vector.load %arg1[%c0_2, %c0_3, %c0_4] : memref<1x66x128xbf16, #tpu.memory_space<vmem>>, vector<1x66x128xbf16>
    %3 = vector.shape_cast %2 : vector<1x66x128xbf16> to vector<66x128xbf16>
    %cst = arith.constant 0.000000e+00 : f32
    %4 = vector.broadcast %cst : f32 to vector<64x256xf32>
    %5 = vector.extract_strided_slice %3 {offsets = [0, 0], sizes = [64, 128], strides = [1, 1]} : vector<66x128xbf16> to vector<64x128xbf16>
    %c0_5 = arith.constant 0 : index
    %c0_6 = arith.constant 0 : index
    %c0_7 = arith.constant 0 : index
    %6 = vector.load %arg2[%c0_5, %c0_6, %c0_7] : memref<3x128x256xbf16, #tpu.memory_space<vmem>>, vector<1x128x256xbf16>
    %7 = vector.shape_cast %6 : vector<1x128x256xbf16> to vector<128x256xbf16>
    %cst_8 = arith.constant dense<0.000000e+00> : vector<64x256xf32>
    %8 = tpu.matmul %5, %7, %cst_8 {dimension_numbers = #tpu.dot_dimension_numbers<[1], [0], [0], [1], [0, 0, 1, 1], [], []>} : vector<64x128xbf16>, vector<128x256xbf16>, vector<64x256xf32> -> vector<64x256xf32>
    %9 = arith.addf %4, %8 : vector<64x256xf32>
    %10 = vector.extract_strided_slice %3 {offsets = [1, 0], sizes = [64, 128], strides = [1, 1]} : vector<66x128xbf16> to vector<64x128xbf16>
    %c1 = arith.constant 1 : index
    %c0_9 = arith.constant 0 : index
    %c0_10 = arith.constant 0 : index
    %11 = vector.load %arg2[%c1, %c0_9, %c0_10] : memref<3x128x256xbf16, #tpu.memory_space<vmem>>, vector<1x128x256xbf16>
    %12 = vector.shape_cast %11 : vector<1x128x256xbf16> to vector<128x256xbf16>
    %cst_11 = arith.constant dense<0.000000e+00> : vector<64x256xf32>
    %13 = tpu.matmul %10, %12, %cst_11 {dimension_numbers = #tpu.dot_dimension_numbers<[1], [0], [0], [1], [0, 0, 1, 1], [], []>} : vector<64x128xbf16>, vector<128x256xbf16>, vector<64x256xf32> -> vector<64x256xf32>
    %14 = arith.addf %9, %13 : vector<64x256xf32>
    %15 = vector.extract_strided_slice %3 {offsets = [2, 0], sizes = [64, 128], strides = [1, 1]} : vector<66x128xbf16> to vector<64x128xbf16>
    %c2 = arith.constant 2 : index
    %c0_12 = arith.constant 0 : index
    %c0_13 = arith.constant 0 : index
    %16 = vector.load %arg2[%c2, %c0_12, %c0_13] : memref<3x128x256xbf16, #tpu.memory_space<vmem>>, vector<1x128x256xbf16>
    %17 = vector.shape_cast %16 : vector<1x128x256xbf16> to vector<128x256xbf16>
    %cst_14 = arith.constant dense<0.000000e+00> : vector<64x256xf32>
    %18 = tpu.matmul %15, %17, %cst_14 {dimension_numbers = #tpu.dot_dimension_numbers<[1], [0], [0], [1], [0, 0, 1, 1], [], []>} : vector<64x128xbf16>, vector<128x256xbf16>, vector<64x256xf32> -> vector<64x256xf32>
    %19 = arith.addf %14, %18 : vector<64x256xf32>
    %c0_15 = arith.constant 0 : index
    %c0_16 = arith.constant 0 : index
    %20 = vector.load %arg3[%c0_15, %c0_16] : memref<1x256xf32, #tpu.memory_space<vmem>>, vector<1x256xf32>
    %21 = vector.shape_cast %20 : vector<1x256xf32> to vector<256xf32>
    %22 = vector.shape_cast %21 : vector<256xf32> to vector<1x256xf32>
    %23 = vector.broadcast %22 : vector<1x256xf32> to vector<64x256xf32>
    %24 = arith.addf %19, %23 : vector<64x256xf32>
    %25 = vector.broadcast %1 : vector<64x1xf32> to vector<64x256xf32>
    %26 = arith.mulf %24, %25 : vector<64x256xf32>
    %cst_17 = arith.constant 0.000000e+00 : f32
    %27 = vector.broadcast %cst_17 : f32 to vector<64x256xf32>
    %28 = arith.maximumf %26, %27 : vector<64x256xf32>
    %cst_18 = arith.constant 0.000000e+00 : bf16
    %29 = vector.broadcast %cst_18 : bf16 to vector<1x256xbf16>
    %c0_19 = arith.constant 0 : index
    %c0_20 = arith.constant 0 : index
    %30 = vector.load %arg8[%c0_19, %c0_20] : memref<66x256xbf16, #tpu.memory_space<vmem>>, vector<1x256xbf16>
    tpu.vector_store %arg8[%c0_19, %c0_20], %29 {strides = array<i32>} : memref<66x256xbf16, #tpu.memory_space<vmem>>, vector<1x256xbf16>,
    %cst_21 = arith.constant 0.000000e+00 : bf16
    %31 = vector.broadcast %cst_21 : bf16 to vector<1x256xbf16>
    %c65 = arith.constant 65 : index
    %c0_22 = arith.constant 0 : index
    %32 = vector.load %arg8[%c65, %c0_22] : memref<66x256xbf16, #tpu.memory_space<vmem>>, vector<1x256xbf16>
    tpu.vector_store %arg8[%c65, %c0_22], %31 {strides = array<i32>} : memref<66x256xbf16, #tpu.memory_space<vmem>>, vector<1x256xbf16>,
    %33 = arith.truncf %28 : vector<64x256xf32> to vector<64x256xbf16>
    %c1_23 = arith.constant 1 : index
    %c0_24 = arith.constant 0 : index
    %34 = vector.load %arg8[%c1_23, %c0_24] : memref<66x256xbf16, #tpu.memory_space<vmem>>, vector<64x256xbf16>
    tpu.vector_store %arg8[%c1_23, %c0_24], %33 {strides = array<i32>} : memref<66x256xbf16, #tpu.memory_space<vmem>>, vector<64x256xbf16>,
    %35 = vector.extract_strided_slice %3 {offsets = [1, 0], sizes = [64, 128], strides = [1, 1]} : vector<66x128xbf16> to vector<64x128xbf16>
    %36 = arith.extf %35 : vector<64x128xbf16> to vector<64x128xf32>
    %cst_25 = arith.constant 0.000000e+00 : f32
    %37 = vector.broadcast %cst_25 : f32 to vector<64x128xf32>
    %c0_26 = arith.constant 0 : index
    %c0_27 = arith.constant 0 : index
    %38 = vector.load %arg8[%c0_26, %c0_27] : memref<66x256xbf16, #tpu.memory_space<vmem>>, vector<64x256xbf16>
    %c0_28 = arith.constant 0 : index
    %c0_29 = arith.constant 0 : index
    %c0_30 = arith.constant 0 : index
    %39 = vector.load %arg4[%c0_28, %c0_29, %c0_30] : memref<3x256x128xbf16, #tpu.memory_space<vmem>>, vector<1x256x128xbf16>
    %40 = vector.shape_cast %39 : vector<1x256x128xbf16> to vector<256x128xbf16>
    %cst_31 = arith.constant dense<0.000000e+00> : vector<64x128xf32>
    %41 = tpu.matmul %38, %40, %cst_31 {dimension_numbers = #tpu.dot_dimension_numbers<[1], [0], [0], [1], [0, 0, 1, 1], [], []>} : vector<64x256xbf16>, vector<256x128xbf16>, vector<64x128xf32> -> vector<64x128xf32>
    %42 = arith.addf %37, %41 : vector<64x128xf32>
    %c1_32 = arith.constant 1 : index
    %c0_33 = arith.constant 0 : index
    %43 = vector.load %arg8[%c1_32, %c0_33] : memref<66x256xbf16, #tpu.memory_space<vmem>>, vector<64x256xbf16>
    %c1_34 = arith.constant 1 : index
    %c0_35 = arith.constant 0 : index
    %c0_36 = arith.constant 0 : index
    %44 = vector.load %arg4[%c1_34, %c0_35, %c0_36] : memref<3x256x128xbf16, #tpu.memory_space<vmem>>, vector<1x256x128xbf16>
    %45 = vector.shape_cast %44 : vector<1x256x128xbf16> to vector<256x128xbf16>
    %cst_37 = arith.constant dense<0.000000e+00> : vector<64x128xf32>
    %46 = tpu.matmul %43, %45, %cst_37 {dimension_numbers = #tpu.dot_dimension_numbers<[1], [0], [0], [1], [0, 0, 1, 1], [], []>} : vector<64x256xbf16>, vector<256x128xbf16>, vector<64x128xf32> -> vector<64x128xf32>
    %47 = arith.addf %42, %46 : vector<64x128xf32>
    %c2_38 = arith.constant 2 : index
    %c0_39 = arith.constant 0 : index
    %48 = vector.load %arg8[%c2_38, %c0_39] : memref<66x256xbf16, #tpu.memory_space<vmem>>, vector<64x256xbf16>
    %c2_40 = arith.constant 2 : index
    %c0_41 = arith.constant 0 : index
    %c0_42 = arith.constant 0 : index
    %49 = vector.load %arg4[%c2_40, %c0_41, %c0_42] : memref<3x256x128xbf16, #tpu.memory_space<vmem>>, vector<1x256x128xbf16>
    %50 = vector.shape_cast %49 : vector<1x256x128xbf16> to vector<256x128xbf16>
    %cst_43 = arith.constant dense<0.000000e+00> : vector<64x128xf32>
    %51 = tpu.matmul %48, %50, %cst_43 {dimension_numbers = #tpu.dot_dimension_numbers<[1], [0], [0], [1], [0, 0, 1, 1], [], []>} : vector<64x256xbf16>, vector<256x128xbf16>, vector<64x128xf32> -> vector<64x128xf32>
    %52 = arith.addf %47, %51 : vector<64x128xf32>
    %c0_44 = arith.constant 0 : index
    %c0_45 = arith.constant 0 : index
    %53 = vector.load %arg5[%c0_44, %c0_45] : memref<1x128xf32, #tpu.memory_space<vmem>>, vector<1x128xf32>
    %54 = vector.shape_cast %53 : vector<1x128xf32> to vector<128xf32>
    %55 = vector.shape_cast %54 : vector<128xf32> to vector<1x128xf32>
    %56 = vector.broadcast %55 : vector<1x128xf32> to vector<64x128xf32>
    %57 = arith.addf %52, %56 : vector<64x128xf32>
    %58 = vector.broadcast %1 : vector<64x1xf32> to vector<64x128xf32>
    %59 = arith.mulf %57, %58 : vector<64x128xf32>
    %60 = arith.addf %59, %36 : vector<64x128xf32>
    %cst_46 = arith.constant 0.000000e+00 : f32
    %61 = vector.broadcast %cst_46 : f32 to vector<64x128xf32>
    %62 = arith.maximumf %60, %61 : vector<64x128xf32>
    %63 = arith.truncf %62 : vector<64x128xf32> to vector<64x128xbf16>
    %c0_47 = arith.constant 0 : index
    %c0_48 = arith.constant 0 : index
    %c0_49 = arith.constant 0 : index
    %64 = vector.load %arg7[%c0_47, %c0_48, %c0_49] : memref<1x64x128xbf16, #tpu.memory_space<vmem>>, vector<1x64x128xbf16>
    %65 = vector.shape_cast %64 : vector<1x64x128xbf16> to vector<64x128xbf16>
    %66 = vector.shape_cast %63 : vector<64x128xbf16> to vector<1x64x128xbf16>
    tpu.vector_store %arg7[%c0_47, %c0_48, %c0_49], %66 {strides = array<i32>} : memref<1x64x128xbf16, #tpu.memory_space<vmem>>, vector<1x64x128xbf16>,
    return
  }
  func.func @transform_0(%arg0: i32) -> (i32, i32, i32) {
    %c0_i32 = arith.constant 0 : i32
    %c0_i32_0 = arith.constant 0 : i32
    %c0_i32_1 = arith.constant 0 : i32
    return %arg0, %c0_i32, %c0_i32_0 : i32, i32, i32
  }
  func.func @transform_1(%arg0: i32) -> (i32, i32, i32) {
    %c0_i32 = arith.constant 0 : i32
    %c0_i32_0 = arith.constant 0 : i32
    %c0_i32_1 = arith.constant 0 : i32
    %c0_i32_2 = arith.constant 0 : i32
    return %c0_i32, %c0_i32_0, %c0_i32_1 : i32, i32, i32
  }
  func.func @transform_2(%arg0: i32) -> (i32, i32) {
    %c0_i32 = arith.constant 0 : i32
    %c0_i32_0 = arith.constant 0 : i32
    %c0_i32_1 = arith.constant 0 : i32
    return %c0_i32, %c0_i32_0 : i32, i32
  }
  func.func @transform_3(%arg0: i32) -> (i32, i32, i32) {
    %c0_i32 = arith.constant 0 : i32
    %c0_i32_0 = arith.constant 0 : i32
    %c0_i32_1 = arith.constant 0 : i32
    %c0_i32_2 = arith.constant 0 : i32
    return %c0_i32, %c0_i32_0, %c0_i32_1 : i32, i32, i32
  }
  func.func @transform_4(%arg0: i32) -> (i32, i32) {
    %c0_i32 = arith.constant 0 : i32
    %c0_i32_0 = arith.constant 0 : i32
    %c0_i32_1 = arith.constant 0 : i32
    return %c0_i32, %c0_i32_0 : i32, i32
  }
  func.func @transform_5(%arg0: i32) -> (i32, i32, i32) {
    %c0_i32 = arith.constant 0 : i32
    %c0_i32_0 = arith.constant 0 : i32
    %c0_i32_1 = arith.constant 0 : i32
    return %arg0, %c0_i32, %c0_i32_0 : i32, i32, i32
  }
  func.func @transform_6(%arg0: i32) -> (i32, i32, i32) {
    %c0_i32 = arith.constant 0 : i32
    %c0_i32_0 = arith.constant 0 : i32
    %c0_i32_1 = arith.constant 0 : i32
    return %arg0, %c0_i32, %c0_i32_0 : i32, i32, i32
  }
}

module attributes {stable_mosaic.version = 11 : i64} {
  func.func @_masked_conv_relu_kernel(%arg0: i32, %arg1: memref<1x66x4xbf16, #tpu.memory_space<vmem>>, %arg2: memref<3x4x128xbf16, #tpu.memory_space<vmem>>, %arg3: memref<1x128xf32, #tpu.memory_space<vmem>>, %arg4: memref<1x64x1xf32, #tpu.memory_space<vmem>>, %arg5: memref<1x64x128xbf16, #tpu.memory_space<vmem>>) attributes {dimension_semantics = [#tpu.dimension_semantics<parallel>], iteration_bounds = array<i64: 2>, scalar_prefetch = 0 : i64, scratch_operands = 0 : i64, tpu.core_type = #tpu.core_type<tc>, window_params = [{transform_indices = @transform_0, window_bounds = array<i64: 1, 66, 4>}, {pipeline_mode = #tpu.pipeline_mode<synchronous>, transform_indices = @transform_1, window_bounds = array<i64: 3, 4, 128>}, {pipeline_mode = #tpu.pipeline_mode<synchronous>, transform_indices = @transform_2, window_bounds = array<i64: 1, 128>}, {transform_indices = @transform_3, window_bounds = array<i64: 1, 64, 1>}, {transform_indices = @transform_4, window_bounds = array<i64: 1, 64, 128>}]} {
    %c0 = arith.constant 0 : index
    %c0_0 = arith.constant 0 : index
    %c0_1 = arith.constant 0 : index
    %0 = vector.load %arg1[%c0, %c0_0, %c0_1] : memref<1x66x4xbf16, #tpu.memory_space<vmem>>, vector<1x66x4xbf16>
    %1 = vector.shape_cast %0 : vector<1x66x4xbf16> to vector<66x4xbf16>
    %cst = arith.constant 0.000000e+00 : f32
    %2 = vector.broadcast %cst : f32 to vector<64x128xf32>
    %3 = vector.extract_strided_slice %1 {offsets = [0, 0], sizes = [64, 4], strides = [1, 1]} : vector<66x4xbf16> to vector<64x4xbf16>
    %c0_2 = arith.constant 0 : index
    %c0_3 = arith.constant 0 : index
    %c0_4 = arith.constant 0 : index
    %4 = vector.load %arg2[%c0_2, %c0_3, %c0_4] : memref<3x4x128xbf16, #tpu.memory_space<vmem>>, vector<1x4x128xbf16>
    %5 = vector.shape_cast %4 : vector<1x4x128xbf16> to vector<4x128xbf16>
    %cst_5 = arith.constant dense<0.000000e+00> : vector<64x128xf32>
    %6 = tpu.matmul %3, %5, %cst_5 {dimension_numbers = #tpu.dot_dimension_numbers<[1], [0], [0], [1], [0, 0, 1, 1], [], []>} : vector<64x4xbf16>, vector<4x128xbf16>, vector<64x128xf32> -> vector<64x128xf32>
    %7 = arith.addf %2, %6 : vector<64x128xf32>
    %8 = vector.extract_strided_slice %1 {offsets = [1, 0], sizes = [64, 4], strides = [1, 1]} : vector<66x4xbf16> to vector<64x4xbf16>
    %c1 = arith.constant 1 : index
    %c0_6 = arith.constant 0 : index
    %c0_7 = arith.constant 0 : index
    %9 = vector.load %arg2[%c1, %c0_6, %c0_7] : memref<3x4x128xbf16, #tpu.memory_space<vmem>>, vector<1x4x128xbf16>
    %10 = vector.shape_cast %9 : vector<1x4x128xbf16> to vector<4x128xbf16>
    %cst_8 = arith.constant dense<0.000000e+00> : vector<64x128xf32>
    %11 = tpu.matmul %8, %10, %cst_8 {dimension_numbers = #tpu.dot_dimension_numbers<[1], [0], [0], [1], [0, 0, 1, 1], [], []>} : vector<64x4xbf16>, vector<4x128xbf16>, vector<64x128xf32> -> vector<64x128xf32>
    %12 = arith.addf %7, %11 : vector<64x128xf32>
    %13 = vector.extract_strided_slice %1 {offsets = [2, 0], sizes = [64, 4], strides = [1, 1]} : vector<66x4xbf16> to vector<64x4xbf16>
    %c2 = arith.constant 2 : index
    %c0_9 = arith.constant 0 : index
    %c0_10 = arith.constant 0 : index
    %14 = vector.load %arg2[%c2, %c0_9, %c0_10] : memref<3x4x128xbf16, #tpu.memory_space<vmem>>, vector<1x4x128xbf16>
    %15 = vector.shape_cast %14 : vector<1x4x128xbf16> to vector<4x128xbf16>
    %cst_11 = arith.constant dense<0.000000e+00> : vector<64x128xf32>
    %16 = tpu.matmul %13, %15, %cst_11 {dimension_numbers = #tpu.dot_dimension_numbers<[1], [0], [0], [1], [0, 0, 1, 1], [], []>} : vector<64x4xbf16>, vector<4x128xbf16>, vector<64x128xf32> -> vector<64x128xf32>
    %17 = arith.addf %12, %16 : vector<64x128xf32>
    %c0_12 = arith.constant 0 : index
    %c0_13 = arith.constant 0 : index
    %18 = vector.load %arg3[%c0_12, %c0_13] : memref<1x128xf32, #tpu.memory_space<vmem>>, vector<1x128xf32>
    %19 = vector.shape_cast %18 : vector<1x128xf32> to vector<128xf32>
    %20 = vector.shape_cast %19 : vector<128xf32> to vector<1x128xf32>
    %21 = vector.broadcast %20 : vector<1x128xf32> to vector<64x128xf32>
    %22 = arith.addf %17, %21 : vector<64x128xf32>
    %c0_14 = arith.constant 0 : index
    %c0_15 = arith.constant 0 : index
    %c0_16 = arith.constant 0 : index
    %23 = vector.load %arg4[%c0_14, %c0_15, %c0_16] : memref<1x64x1xf32, #tpu.memory_space<vmem>>, vector<1x64x1xf32>
    %24 = vector.shape_cast %23 : vector<1x64x1xf32> to vector<64x1xf32>
    %25 = vector.broadcast %24 : vector<64x1xf32> to vector<64x128xf32>
    %26 = arith.mulf %22, %25 : vector<64x128xf32>
    %cst_17 = arith.constant 0.000000e+00 : f32
    %27 = vector.broadcast %cst_17 : f32 to vector<64x128xf32>
    %28 = arith.maximumf %26, %27 : vector<64x128xf32>
    %29 = arith.truncf %28 : vector<64x128xf32> to vector<64x128xbf16>
    %c0_18 = arith.constant 0 : index
    %c0_19 = arith.constant 0 : index
    %c0_20 = arith.constant 0 : index
    %30 = vector.load %arg5[%c0_18, %c0_19, %c0_20] : memref<1x64x128xbf16, #tpu.memory_space<vmem>>, vector<1x64x128xbf16>
    %31 = vector.shape_cast %30 : vector<1x64x128xbf16> to vector<64x128xbf16>
    %32 = vector.shape_cast %29 : vector<64x128xbf16> to vector<1x64x128xbf16>
    tpu.vector_store %arg5[%c0_18, %c0_19, %c0_20], %32 {strides = array<i32>} : memref<1x64x128xbf16, #tpu.memory_space<vmem>>, vector<1x64x128xbf16>,
    return
  }
  func.func @transform_0(%arg0: i32) -> (i32, i32, i32) {
    %c0_i32 = arith.constant 0 : i32
    %c0_i32_0 = arith.constant 0 : i32
    %c0_i32_1 = arith.constant 0 : i32
    return %arg0, %c0_i32, %c0_i32_0 : i32, i32, i32
  }
  func.func @transform_1(%arg0: i32) -> (i32, i32, i32) {
    %c0_i32 = arith.constant 0 : i32
    %c0_i32_0 = arith.constant 0 : i32
    %c0_i32_1 = arith.constant 0 : i32
    %c0_i32_2 = arith.constant 0 : i32
    return %c0_i32, %c0_i32_0, %c0_i32_1 : i32, i32, i32
  }
  func.func @transform_2(%arg0: i32) -> (i32, i32) {
    %c0_i32 = arith.constant 0 : i32
    %c0_i32_0 = arith.constant 0 : i32
    %c0_i32_1 = arith.constant 0 : i32
    return %c0_i32, %c0_i32_0 : i32, i32
  }
  func.func @transform_3(%arg0: i32) -> (i32, i32, i32) {
    %c0_i32 = arith.constant 0 : i32
    %c0_i32_0 = arith.constant 0 : i32
    %c0_i32_1 = arith.constant 0 : i32
    return %arg0, %c0_i32, %c0_i32_0 : i32, i32, i32
  }
  func.func @transform_4(%arg0: i32) -> (i32, i32, i32) {
    %c0_i32 = arith.constant 0 : i32
    %c0_i32_0 = arith.constant 0 : i32
    %c0_i32_1 = arith.constant 0 : i32
    return %arg0, %c0_i32, %c0_i32_0 : i32, i32, i32
  }
}

module attributes {stable_mosaic.version = 11 : i64} {
  func.func @_masked_conv_relu_kernel(%arg0: i32, %arg1: memref<1x66x128xbf16, #tpu.memory_space<vmem>>, %arg2: memref<3x128x128xbf16, #tpu.memory_space<vmem>>, %arg3: memref<1x128xf32, #tpu.memory_space<vmem>>, %arg4: memref<1x64x1xf32, #tpu.memory_space<vmem>>, %arg5: memref<1x64x128xbf16, #tpu.memory_space<vmem>>) attributes {dimension_semantics = [#tpu.dimension_semantics<parallel>], iteration_bounds = array<i64: 2>, scalar_prefetch = 0 : i64, scratch_operands = 0 : i64, tpu.core_type = #tpu.core_type<tc>, window_params = [{transform_indices = @transform_0, window_bounds = array<i64: 1, 66, 128>}, {pipeline_mode = #tpu.pipeline_mode<synchronous>, transform_indices = @transform_1, window_bounds = array<i64: 3, 128, 128>}, {pipeline_mode = #tpu.pipeline_mode<synchronous>, transform_indices = @transform_2, window_bounds = array<i64: 1, 128>}, {transform_indices = @transform_3, window_bounds = array<i64: 1, 64, 1>}, {transform_indices = @transform_4, window_bounds = array<i64: 1, 64, 128>}]} {
    %c0 = arith.constant 0 : index
    %c0_0 = arith.constant 0 : index
    %c0_1 = arith.constant 0 : index
    %0 = vector.load %arg1[%c0, %c0_0, %c0_1] : memref<1x66x128xbf16, #tpu.memory_space<vmem>>, vector<1x66x128xbf16>
    %1 = vector.shape_cast %0 : vector<1x66x128xbf16> to vector<66x128xbf16>
    %cst = arith.constant 0.000000e+00 : f32
    %2 = vector.broadcast %cst : f32 to vector<64x128xf32>
    %3 = vector.extract_strided_slice %1 {offsets = [0, 0], sizes = [64, 128], strides = [1, 1]} : vector<66x128xbf16> to vector<64x128xbf16>
    %c0_2 = arith.constant 0 : index
    %c0_3 = arith.constant 0 : index
    %c0_4 = arith.constant 0 : index
    %4 = vector.load %arg2[%c0_2, %c0_3, %c0_4] : memref<3x128x128xbf16, #tpu.memory_space<vmem>>, vector<1x128x128xbf16>
    %5 = vector.shape_cast %4 : vector<1x128x128xbf16> to vector<128x128xbf16>
    %cst_5 = arith.constant dense<0.000000e+00> : vector<64x128xf32>
    %6 = tpu.matmul %3, %5, %cst_5 {dimension_numbers = #tpu.dot_dimension_numbers<[1], [0], [0], [1], [0, 0, 1, 1], [], []>} : vector<64x128xbf16>, vector<128x128xbf16>, vector<64x128xf32> -> vector<64x128xf32>
    %7 = arith.addf %2, %6 : vector<64x128xf32>
    %8 = vector.extract_strided_slice %1 {offsets = [1, 0], sizes = [64, 128], strides = [1, 1]} : vector<66x128xbf16> to vector<64x128xbf16>
    %c1 = arith.constant 1 : index
    %c0_6 = arith.constant 0 : index
    %c0_7 = arith.constant 0 : index
    %9 = vector.load %arg2[%c1, %c0_6, %c0_7] : memref<3x128x128xbf16, #tpu.memory_space<vmem>>, vector<1x128x128xbf16>
    %10 = vector.shape_cast %9 : vector<1x128x128xbf16> to vector<128x128xbf16>
    %cst_8 = arith.constant dense<0.000000e+00> : vector<64x128xf32>
    %11 = tpu.matmul %8, %10, %cst_8 {dimension_numbers = #tpu.dot_dimension_numbers<[1], [0], [0], [1], [0, 0, 1, 1], [], []>} : vector<64x128xbf16>, vector<128x128xbf16>, vector<64x128xf32> -> vector<64x128xf32>
    %12 = arith.addf %7, %11 : vector<64x128xf32>
    %13 = vector.extract_strided_slice %1 {offsets = [2, 0], sizes = [64, 128], strides = [1, 1]} : vector<66x128xbf16> to vector<64x128xbf16>
    %c2 = arith.constant 2 : index
    %c0_9 = arith.constant 0 : index
    %c0_10 = arith.constant 0 : index
    %14 = vector.load %arg2[%c2, %c0_9, %c0_10] : memref<3x128x128xbf16, #tpu.memory_space<vmem>>, vector<1x128x128xbf16>
    %15 = vector.shape_cast %14 : vector<1x128x128xbf16> to vector<128x128xbf16>
    %cst_11 = arith.constant dense<0.000000e+00> : vector<64x128xf32>
    %16 = tpu.matmul %13, %15, %cst_11 {dimension_numbers = #tpu.dot_dimension_numbers<[1], [0], [0], [1], [0, 0, 1, 1], [], []>} : vector<64x128xbf16>, vector<128x128xbf16>, vector<64x128xf32> -> vector<64x128xf32>
    %17 = arith.addf %12, %16 : vector<64x128xf32>
    %c0_12 = arith.constant 0 : index
    %c0_13 = arith.constant 0 : index
    %18 = vector.load %arg3[%c0_12, %c0_13] : memref<1x128xf32, #tpu.memory_space<vmem>>, vector<1x128xf32>
    %19 = vector.shape_cast %18 : vector<1x128xf32> to vector<128xf32>
    %20 = vector.shape_cast %19 : vector<128xf32> to vector<1x128xf32>
    %21 = vector.broadcast %20 : vector<1x128xf32> to vector<64x128xf32>
    %22 = arith.addf %17, %21 : vector<64x128xf32>
    %c0_14 = arith.constant 0 : index
    %c0_15 = arith.constant 0 : index
    %c0_16 = arith.constant 0 : index
    %23 = vector.load %arg4[%c0_14, %c0_15, %c0_16] : memref<1x64x1xf32, #tpu.memory_space<vmem>>, vector<1x64x1xf32>
    %24 = vector.shape_cast %23 : vector<1x64x1xf32> to vector<64x1xf32>
    %25 = vector.broadcast %24 : vector<64x1xf32> to vector<64x128xf32>
    %26 = arith.mulf %22, %25 : vector<64x128xf32>
    %cst_17 = arith.constant 0.000000e+00 : f32
    %27 = vector.broadcast %cst_17 : f32 to vector<64x128xf32>
    %28 = arith.maximumf %26, %27 : vector<64x128xf32>
    %29 = arith.truncf %28 : vector<64x128xf32> to vector<64x128xbf16>
    %c0_18 = arith.constant 0 : index
    %c0_19 = arith.constant 0 : index
    %c0_20 = arith.constant 0 : index
    %30 = vector.load %arg5[%c0_18, %c0_19, %c0_20] : memref<1x64x128xbf16, #tpu.memory_space<vmem>>, vector<1x64x128xbf16>
    %31 = vector.shape_cast %30 : vector<1x64x128xbf16> to vector<64x128xbf16>
    %32 = vector.shape_cast %29 : vector<64x128xbf16> to vector<1x64x128xbf16>
    tpu.vector_store %arg5[%c0_18, %c0_19, %c0_20], %32 {strides = array<i32>} : memref<1x64x128xbf16, #tpu.memory_space<vmem>>, vector<1x64x128xbf16>,
    return
  }
  func.func @transform_0(%arg0: i32) -> (i32, i32, i32) {
    %c0_i32 = arith.constant 0 : i32
    %c0_i32_0 = arith.constant 0 : i32
    %c0_i32_1 = arith.constant 0 : i32
    return %arg0, %c0_i32, %c0_i32_0 : i32, i32, i32
  }
  func.func @transform_1(%arg0: i32) -> (i32, i32, i32) {
    %c0_i32 = arith.constant 0 : i32
    %c0_i32_0 = arith.constant 0 : i32
    %c0_i32_1 = arith.constant 0 : i32
    %c0_i32_2 = arith.constant 0 : i32
    return %c0_i32, %c0_i32_0, %c0_i32_1 : i32, i32, i32
  }
  func.func @transform_2(%arg0: i32) -> (i32, i32) {
    %c0_i32 = arith.constant 0 : i32
    %c0_i32_0 = arith.constant 0 : i32
    %c0_i32_1 = arith.constant 0 : i32
    return %c0_i32, %c0_i32_0 : i32, i32
  }
  func.func @transform_3(%arg0: i32) -> (i32, i32, i32) {
    %c0_i32 = arith.constant 0 : i32
    %c0_i32_0 = arith.constant 0 : i32
    %c0_i32_1 = arith.constant 0 : i32
    return %arg0, %c0_i32, %c0_i32_0 : i32, i32, i32
  }
  func.func @transform_4(%arg0: i32) -> (i32, i32, i32) {
    %c0_i32 = arith.constant 0 : i32
    %c0_i32_0 = arith.constant 0 : i32
    %c0_i32_1 = arith.constant 0 : i32
    return %arg0, %c0_i32, %c0_i32_0 : i32, i32, i32
  }
}

module attributes {stable_mosaic.version = 11 : i64} {
  func.func @_conv_block_kernel(%arg0: i32, %arg1: memref<1x33x256xbf16, #tpu.memory_space<vmem>>, %arg2: memref<256x256xbf16, #tpu.memory_space<vmem>>, %arg3: memref<128x256xbf16, #tpu.memory_space<vmem>>, %arg4: memref<1x256xf32, #tpu.memory_space<vmem>>, %arg5: memref<128x128xbf16, #tpu.memory_space<vmem>>, %arg6: memref<1x128xf32, #tpu.memory_space<vmem>>, %arg7: memref<3x256x128xbf16, #tpu.memory_space<vmem>>, %arg8: memref<1x128xf32, #tpu.memory_space<vmem>>, %arg9: memref<1x32x1xf32, #tpu.memory_space<vmem>>, %arg10: memref<1x32x128xbf16, #tpu.memory_space<vmem>>, %arg11: memref<34x256xbf16, #tpu.memory_space<vmem>>) attributes {dimension_semantics = [#tpu.dimension_semantics<parallel>], iteration_bounds = array<i64: 2>, scalar_prefetch = 0 : i64, scratch_operands = 1 : i64, tpu.core_type = #tpu.core_type<tc>, window_params = [{transform_indices = @transform_0, window_bounds = array<i64: 1, 33, 256>}, {pipeline_mode = #tpu.pipeline_mode<synchronous>, transform_indices = @transform_1, window_bounds = array<i64: 256, 256>}, {pipeline_mode = #tpu.pipeline_mode<synchronous>, transform_indices = @transform_2, window_bounds = array<i64: 128, 256>}, {pipeline_mode = #tpu.pipeline_mode<synchronous>, transform_indices = @transform_3, window_bounds = array<i64: 1, 256>}, {pipeline_mode = #tpu.pipeline_mode<synchronous>, transform_indices = @transform_4, window_bounds = array<i64: 128, 128>}, {pipeline_mode = #tpu.pipeline_mode<synchronous>, transform_indices = @transform_5, window_bounds = array<i64: 1, 128>}, {pipeline_mode = #tpu.pipeline_mode<synchronous>, transform_indices = @transform_6, window_bounds = array<i64: 3, 256, 128>}, {pipeline_mode = #tpu.pipeline_mode<synchronous>, transform_indices = @transform_7, window_bounds = array<i64: 1, 128>}, {transform_indices = @transform_8, window_bounds = array<i64: 1, 32, 1>}, {transform_indices = @transform_9, window_bounds = array<i64: 1, 32, 128>}]} {
    %c0 = arith.constant 0 : index
    %c0_0 = arith.constant 0 : index
    %c0_1 = arith.constant 0 : index
    %0 = vector.load %arg9[%c0, %c0_0, %c0_1] : memref<1x32x1xf32, #tpu.memory_space<vmem>>, vector<1x32x1xf32>
    %1 = vector.shape_cast %0 : vector<1x32x1xf32> to vector<32x1xf32>
    %c0_2 = arith.constant 0 : index
    %c0_3 = arith.constant 0 : index
    %c0_4 = arith.constant 0 : index
    %2 = vector.load %arg1[%c0_2, %c0_3, %c0_4] : memref<1x33x256xbf16, #tpu.memory_space<vmem>>, vector<1x33x256xbf16>
    %3 = vector.shape_cast %2 : vector<1x33x256xbf16> to vector<33x256xbf16>
    %4 = vector.extract_strided_slice %3 {offsets = [0, 0], sizes = [32, 256], strides = [1, 1]} : vector<33x256xbf16> to vector<32x256xbf16>
    %c0_5 = arith.constant 0 : index
    %c0_6 = arith.constant 0 : index
    %5 = vector.load %arg2[%c0_5, %c0_6] : memref<256x256xbf16, #tpu.memory_space<vmem>>, vector<256x256xbf16>
    %cst = arith.constant dense<0.000000e+00> : vector<32x256xf32>
    %6 = tpu.matmul %4, %5, %cst {dimension_numbers = #tpu.dot_dimension_numbers<[1], [0], [0], [1], [0, 0, 1, 1], [], []>} : vector<32x256xbf16>, vector<256x256xbf16>, vector<32x256xf32> -> vector<32x256xf32>
    %7 = vector.extract_strided_slice %3 {offsets = [1, 0], sizes = [32, 128], strides = [1, 1]} : vector<33x256xbf16> to vector<32x128xbf16>
    %c0_7 = arith.constant 0 : index
    %c0_8 = arith.constant 0 : index
    %8 = vector.load %arg3[%c0_7, %c0_8] : memref<128x256xbf16, #tpu.memory_space<vmem>>, vector<128x256xbf16>
    %cst_9 = arith.constant dense<0.000000e+00> : vector<32x256xf32>
    %9 = tpu.matmul %7, %8, %cst_9 {dimension_numbers = #tpu.dot_dimension_numbers<[1], [0], [0], [1], [0, 0, 1, 1], [], []>} : vector<32x128xbf16>, vector<128x256xbf16>, vector<32x256xf32> -> vector<32x256xf32>
    %10 = arith.addf %6, %9 : vector<32x256xf32>
    %c0_10 = arith.constant 0 : index
    %c0_11 = arith.constant 0 : index
    %11 = vector.load %arg4[%c0_10, %c0_11] : memref<1x256xf32, #tpu.memory_space<vmem>>, vector<1x256xf32>
    %12 = vector.shape_cast %11 : vector<1x256xf32> to vector<256xf32>
    %13 = vector.shape_cast %12 : vector<256xf32> to vector<1x256xf32>
    %14 = vector.broadcast %13 : vector<1x256xf32> to vector<32x256xf32>
    %15 = arith.addf %10, %14 : vector<32x256xf32>
    %16 = vector.broadcast %1 : vector<32x1xf32> to vector<32x256xf32>
    %17 = arith.mulf %15, %16 : vector<32x256xf32>
    %cst_12 = arith.constant 0.000000e+00 : f32
    %18 = vector.broadcast %cst_12 : f32 to vector<32x256xf32>
    %19 = arith.maximumf %17, %18 : vector<32x256xf32>
    %cst_13 = arith.constant 0.000000e+00 : bf16
    %20 = vector.broadcast %cst_13 : bf16 to vector<1x256xbf16>
    %c0_14 = arith.constant 0 : index
    %c0_15 = arith.constant 0 : index
    %21 = vector.load %arg11[%c0_14, %c0_15] : memref<34x256xbf16, #tpu.memory_space<vmem>>, vector<1x256xbf16>
    tpu.vector_store %arg11[%c0_14, %c0_15], %20 {strides = array<i32>} : memref<34x256xbf16, #tpu.memory_space<vmem>>, vector<1x256xbf16>,
    %cst_16 = arith.constant 0.000000e+00 : bf16
    %22 = vector.broadcast %cst_16 : bf16 to vector<1x256xbf16>
    %c33 = arith.constant 33 : index
    %c0_17 = arith.constant 0 : index
    %23 = vector.load %arg11[%c33, %c0_17] : memref<34x256xbf16, #tpu.memory_space<vmem>>, vector<1x256xbf16>
    tpu.vector_store %arg11[%c33, %c0_17], %22 {strides = array<i32>} : memref<34x256xbf16, #tpu.memory_space<vmem>>, vector<1x256xbf16>,
    %24 = arith.truncf %19 : vector<32x256xf32> to vector<32x256xbf16>
    %c1 = arith.constant 1 : index
    %c0_18 = arith.constant 0 : index
    %25 = vector.load %arg11[%c1, %c0_18] : memref<34x256xbf16, #tpu.memory_space<vmem>>, vector<32x256xbf16>
    tpu.vector_store %arg11[%c1, %c0_18], %24 {strides = array<i32>} : memref<34x256xbf16, #tpu.memory_space<vmem>>, vector<32x256xbf16>,
    %26 = vector.extract_strided_slice %3 {offsets = [0, 128], sizes = [32, 128], strides = [1, 1]} : vector<33x256xbf16> to vector<32x128xbf16>
    %c0_19 = arith.constant 0 : index
    %c0_20 = arith.constant 0 : index
    %27 = vector.load %arg5[%c0_19, %c0_20] : memref<128x128xbf16, #tpu.memory_space<vmem>>, vector<128x128xbf16>
    %cst_21 = arith.constant dense<0.000000e+00> : vector<32x128xf32>
    %28 = tpu.matmul %26, %27, %cst_21 {dimension_numbers = #tpu.dot_dimension_numbers<[1], [0], [0], [1], [0, 0, 1, 1], [], []>} : vector<32x128xbf16>, vector<128x128xbf16>, vector<32x128xf32> -> vector<32x128xf32>
    %c0_22 = arith.constant 0 : index
    %c0_23 = arith.constant 0 : index
    %29 = vector.load %arg6[%c0_22, %c0_23] : memref<1x128xf32, #tpu.memory_space<vmem>>, vector<1x128xf32>
    %30 = vector.shape_cast %29 : vector<1x128xf32> to vector<128xf32>
    %31 = vector.shape_cast %30 : vector<128xf32> to vector<1x128xf32>
    %32 = vector.broadcast %31 : vector<1x128xf32> to vector<32x128xf32>
    %33 = arith.addf %28, %32 : vector<32x128xf32>
    %34 = vector.broadcast %1 : vector<32x1xf32> to vector<32x128xf32>
    %35 = arith.mulf %33, %34 : vector<32x128xf32>
    %cst_24 = arith.constant 0.000000e+00 : f32
    %36 = vector.broadcast %cst_24 : f32 to vector<32x128xf32>
    %c0_25 = arith.constant 0 : index
    %c0_26 = arith.constant 0 : index
    %37 = vector.load %arg11[%c0_25, %c0_26] : memref<34x256xbf16, #tpu.memory_space<vmem>>, vector<32x256xbf16>
    %c0_27 = arith.constant 0 : index
    %c0_28 = arith.constant 0 : index
    %c0_29 = arith.constant 0 : index
    %38 = vector.load %arg7[%c0_27, %c0_28, %c0_29] : memref<3x256x128xbf16, #tpu.memory_space<vmem>>, vector<1x256x128xbf16>
    %39 = vector.shape_cast %38 : vector<1x256x128xbf16> to vector<256x128xbf16>
    %cst_30 = arith.constant dense<0.000000e+00> : vector<32x128xf32>
    %40 = tpu.matmul %37, %39, %cst_30 {dimension_numbers = #tpu.dot_dimension_numbers<[1], [0], [0], [1], [0, 0, 1, 1], [], []>} : vector<32x256xbf16>, vector<256x128xbf16>, vector<32x128xf32> -> vector<32x128xf32>
    %41 = arith.addf %36, %40 : vector<32x128xf32>
    %c1_31 = arith.constant 1 : index
    %c0_32 = arith.constant 0 : index
    %42 = vector.load %arg11[%c1_31, %c0_32] : memref<34x256xbf16, #tpu.memory_space<vmem>>, vector<32x256xbf16>
    %c1_33 = arith.constant 1 : index
    %c0_34 = arith.constant 0 : index
    %c0_35 = arith.constant 0 : index
    %43 = vector.load %arg7[%c1_33, %c0_34, %c0_35] : memref<3x256x128xbf16, #tpu.memory_space<vmem>>, vector<1x256x128xbf16>
    %44 = vector.shape_cast %43 : vector<1x256x128xbf16> to vector<256x128xbf16>
    %cst_36 = arith.constant dense<0.000000e+00> : vector<32x128xf32>
    %45 = tpu.matmul %42, %44, %cst_36 {dimension_numbers = #tpu.dot_dimension_numbers<[1], [0], [0], [1], [0, 0, 1, 1], [], []>} : vector<32x256xbf16>, vector<256x128xbf16>, vector<32x128xf32> -> vector<32x128xf32>
    %46 = arith.addf %41, %45 : vector<32x128xf32>
    %c2 = arith.constant 2 : index
    %c0_37 = arith.constant 0 : index
    %47 = vector.load %arg11[%c2, %c0_37] : memref<34x256xbf16, #tpu.memory_space<vmem>>, vector<32x256xbf16>
    %c2_38 = arith.constant 2 : index
    %c0_39 = arith.constant 0 : index
    %c0_40 = arith.constant 0 : index
    %48 = vector.load %arg7[%c2_38, %c0_39, %c0_40] : memref<3x256x128xbf16, #tpu.memory_space<vmem>>, vector<1x256x128xbf16>
    %49 = vector.shape_cast %48 : vector<1x256x128xbf16> to vector<256x128xbf16>
    %cst_41 = arith.constant dense<0.000000e+00> : vector<32x128xf32>
    %50 = tpu.matmul %47, %49, %cst_41 {dimension_numbers = #tpu.dot_dimension_numbers<[1], [0], [0], [1], [0, 0, 1, 1], [], []>} : vector<32x256xbf16>, vector<256x128xbf16>, vector<32x128xf32> -> vector<32x128xf32>
    %51 = arith.addf %46, %50 : vector<32x128xf32>
    %c0_42 = arith.constant 0 : index
    %c0_43 = arith.constant 0 : index
    %52 = vector.load %arg8[%c0_42, %c0_43] : memref<1x128xf32, #tpu.memory_space<vmem>>, vector<1x128xf32>
    %53 = vector.shape_cast %52 : vector<1x128xf32> to vector<128xf32>
    %54 = vector.shape_cast %53 : vector<128xf32> to vector<1x128xf32>
    %55 = vector.broadcast %54 : vector<1x128xf32> to vector<32x128xf32>
    %56 = arith.addf %51, %55 : vector<32x128xf32>
    %57 = vector.broadcast %1 : vector<32x1xf32> to vector<32x128xf32>
    %58 = arith.mulf %56, %57 : vector<32x128xf32>
    %59 = arith.addf %58, %35 : vector<32x128xf32>
    %cst_44 = arith.constant 0.000000e+00 : f32
    %60 = vector.broadcast %cst_44 : f32 to vector<32x128xf32>
    %61 = arith.maximumf %59, %60 : vector<32x128xf32>
    %62 = arith.truncf %61 : vector<32x128xf32> to vector<32x128xbf16>
    %c0_45 = arith.constant 0 : index
    %c0_46 = arith.constant 0 : index
    %c0_47 = arith.constant 0 : index
    %63 = vector.load %arg10[%c0_45, %c0_46, %c0_47] : memref<1x32x128xbf16, #tpu.memory_space<vmem>>, vector<1x32x128xbf16>
    %64 = vector.shape_cast %63 : vector<1x32x128xbf16> to vector<32x128xbf16>
    %65 = vector.shape_cast %62 : vector<32x128xbf16> to vector<1x32x128xbf16>
    tpu.vector_store %arg10[%c0_45, %c0_46, %c0_47], %65 {strides = array<i32>} : memref<1x32x128xbf16, #tpu.memory_space<vmem>>, vector<1x32x128xbf16>,
    return
  }
  func.func @transform_0(%arg0: i32) -> (i32, i32, i32) {
    %c0_i32 = arith.constant 0 : i32
    %c0_i32_0 = arith.constant 0 : i32
    %c0_i32_1 = arith.constant 0 : i32
    return %arg0, %c0_i32, %c0_i32_0 : i32, i32, i32
  }
  func.func @transform_1(%arg0: i32) -> (i32, i32) {
    %c0_i32 = arith.constant 0 : i32
    %c0_i32_0 = arith.constant 0 : i32
    %c0_i32_1 = arith.constant 0 : i32
    return %c0_i32, %c0_i32_0 : i32, i32
  }
  func.func @transform_2(%arg0: i32) -> (i32, i32) {
    %c0_i32 = arith.constant 0 : i32
    %c0_i32_0 = arith.constant 0 : i32
    %c0_i32_1 = arith.constant 0 : i32
    return %c0_i32, %c0_i32_0 : i32, i32
  }
  func.func @transform_3(%arg0: i32) -> (i32, i32) {
    %c0_i32 = arith.constant 0 : i32
    %c0_i32_0 = arith.constant 0 : i32
    %c0_i32_1 = arith.constant 0 : i32
    return %c0_i32, %c0_i32_0 : i32, i32
  }
  func.func @transform_4(%arg0: i32) -> (i32, i32) {
    %c0_i32 = arith.constant 0 : i32
    %c0_i32_0 = arith.constant 0 : i32
    %c0_i32_1 = arith.constant 0 : i32
    return %c0_i32, %c0_i32_0 : i32, i32
  }
  func.func @transform_5(%arg0: i32) -> (i32, i32) {
    %c0_i32 = arith.constant 0 : i32
    %c0_i32_0 = arith.constant 0 : i32
    %c0_i32_1 = arith.constant 0 : i32
    return %c0_i32, %c0_i32_0 : i32, i32
  }
  func.func @transform_6(%arg0: i32) -> (i32, i32, i32) {
    %c0_i32 = arith.constant 0 : i32
    %c0_i32_0 = arith.constant 0 : i32
    %c0_i32_1 = arith.constant 0 : i32
    %c0_i32_2 = arith.constant 0 : i32
    return %c0_i32, %c0_i32_0, %c0_i32_1 : i32, i32, i32
  }
  func.func @transform_7(%arg0: i32) -> (i32, i32) {
    %c0_i32 = arith.constant 0 : i32
    %c0_i32_0 = arith.constant 0 : i32
    %c0_i32_1 = arith.constant 0 : i32
    return %c0_i32, %c0_i32_0 : i32, i32
  }
  func.func @transform_8(%arg0: i32) -> (i32, i32, i32) {
    %c0_i32 = arith.constant 0 : i32
    %c0_i32_0 = arith.constant 0 : i32
    %c0_i32_1 = arith.constant 0 : i32
    return %arg0, %c0_i32, %c0_i32_0 : i32, i32, i32
  }
  func.func @transform_9(%arg0: i32) -> (i32, i32, i32) {
    %c0_i32 = arith.constant 0 : i32
    %c0_i32_0 = arith.constant 0 : i32
    %c0_i32_1 = arith.constant 0 : i32
    return %arg0, %c0_i32, %c0_i32_0 : i32, i32, i32
  }
}

module attributes {stable_mosaic.version = 11 : i64} {
  func.func @_conv_block_kernel(%arg0: i32, %arg1: memref<1x17x256xbf16, #tpu.memory_space<vmem>>, %arg2: memref<256x256xbf16, #tpu.memory_space<vmem>>, %arg3: memref<128x256xbf16, #tpu.memory_space<vmem>>, %arg4: memref<1x256xf32, #tpu.memory_space<vmem>>, %arg5: memref<128x128xbf16, #tpu.memory_space<vmem>>, %arg6: memref<1x128xf32, #tpu.memory_space<vmem>>, %arg7: memref<3x256x128xbf16, #tpu.memory_space<vmem>>, %arg8: memref<1x128xf32, #tpu.memory_space<vmem>>, %arg9: memref<1x16x1xf32, #tpu.memory_space<vmem>>, %arg10: memref<1x16x128xbf16, #tpu.memory_space<vmem>>, %arg11: memref<18x256xbf16, #tpu.memory_space<vmem>>) attributes {dimension_semantics = [#tpu.dimension_semantics<parallel>], iteration_bounds = array<i64: 2>, scalar_prefetch = 0 : i64, scratch_operands = 1 : i64, tpu.core_type = #tpu.core_type<tc>, window_params = [{transform_indices = @transform_0, window_bounds = array<i64: 1, 17, 256>}, {pipeline_mode = #tpu.pipeline_mode<synchronous>, transform_indices = @transform_1, window_bounds = array<i64: 256, 256>}, {pipeline_mode = #tpu.pipeline_mode<synchronous>, transform_indices = @transform_2, window_bounds = array<i64: 128, 256>}, {pipeline_mode = #tpu.pipeline_mode<synchronous>, transform_indices = @transform_3, window_bounds = array<i64: 1, 256>}, {pipeline_mode = #tpu.pipeline_mode<synchronous>, transform_indices = @transform_4, window_bounds = array<i64: 128, 128>}, {pipeline_mode = #tpu.pipeline_mode<synchronous>, transform_indices = @transform_5, window_bounds = array<i64: 1, 128>}, {pipeline_mode = #tpu.pipeline_mode<synchronous>, transform_indices = @transform_6, window_bounds = array<i64: 3, 256, 128>}, {pipeline_mode = #tpu.pipeline_mode<synchronous>, transform_indices = @transform_7, window_bounds = array<i64: 1, 128>}, {transform_indices = @transform_8, window_bounds = array<i64: 1, 16, 1>}, {transform_indices = @transform_9, window_bounds = array<i64: 1, 16, 128>}]} {
    %c0 = arith.constant 0 : index
    %c0_0 = arith.constant 0 : index
    %c0_1 = arith.constant 0 : index
    %0 = vector.load %arg9[%c0, %c0_0, %c0_1] : memref<1x16x1xf32, #tpu.memory_space<vmem>>, vector<1x16x1xf32>
    %1 = vector.shape_cast %0 : vector<1x16x1xf32> to vector<16x1xf32>
    %c0_2 = arith.constant 0 : index
    %c0_3 = arith.constant 0 : index
    %c0_4 = arith.constant 0 : index
    %2 = vector.load %arg1[%c0_2, %c0_3, %c0_4] : memref<1x17x256xbf16, #tpu.memory_space<vmem>>, vector<1x17x256xbf16>
    %3 = vector.shape_cast %2 : vector<1x17x256xbf16> to vector<17x256xbf16>
    %4 = vector.extract_strided_slice %3 {offsets = [0, 0], sizes = [16, 256], strides = [1, 1]} : vector<17x256xbf16> to vector<16x256xbf16>
    %c0_5 = arith.constant 0 : index
    %c0_6 = arith.constant 0 : index
    %5 = vector.load %arg2[%c0_5, %c0_6] : memref<256x256xbf16, #tpu.memory_space<vmem>>, vector<256x256xbf16>
    %cst = arith.constant dense<0.000000e+00> : vector<16x256xf32>
    %6 = tpu.matmul %4, %5, %cst {dimension_numbers = #tpu.dot_dimension_numbers<[1], [0], [0], [1], [0, 0, 1, 1], [], []>} : vector<16x256xbf16>, vector<256x256xbf16>, vector<16x256xf32> -> vector<16x256xf32>
    %7 = vector.extract_strided_slice %3 {offsets = [1, 0], sizes = [16, 128], strides = [1, 1]} : vector<17x256xbf16> to vector<16x128xbf16>
    %c0_7 = arith.constant 0 : index
    %c0_8 = arith.constant 0 : index
    %8 = vector.load %arg3[%c0_7, %c0_8] : memref<128x256xbf16, #tpu.memory_space<vmem>>, vector<128x256xbf16>
    %cst_9 = arith.constant dense<0.000000e+00> : vector<16x256xf32>
    %9 = tpu.matmul %7, %8, %cst_9 {dimension_numbers = #tpu.dot_dimension_numbers<[1], [0], [0], [1], [0, 0, 1, 1], [], []>} : vector<16x128xbf16>, vector<128x256xbf16>, vector<16x256xf32> -> vector<16x256xf32>
    %10 = arith.addf %6, %9 : vector<16x256xf32>
    %c0_10 = arith.constant 0 : index
    %c0_11 = arith.constant 0 : index
    %11 = vector.load %arg4[%c0_10, %c0_11] : memref<1x256xf32, #tpu.memory_space<vmem>>, vector<1x256xf32>
    %12 = vector.shape_cast %11 : vector<1x256xf32> to vector<256xf32>
    %13 = vector.shape_cast %12 : vector<256xf32> to vector<1x256xf32>
    %14 = vector.broadcast %13 : vector<1x256xf32> to vector<16x256xf32>
    %15 = arith.addf %10, %14 : vector<16x256xf32>
    %16 = vector.broadcast %1 : vector<16x1xf32> to vector<16x256xf32>
    %17 = arith.mulf %15, %16 : vector<16x256xf32>
    %cst_12 = arith.constant 0.000000e+00 : f32
    %18 = vector.broadcast %cst_12 : f32 to vector<16x256xf32>
    %19 = arith.maximumf %17, %18 : vector<16x256xf32>
    %cst_13 = arith.constant 0.000000e+00 : bf16
    %20 = vector.broadcast %cst_13 : bf16 to vector<1x256xbf16>
    %c0_14 = arith.constant 0 : index
    %c0_15 = arith.constant 0 : index
    %21 = vector.load %arg11[%c0_14, %c0_15] : memref<18x256xbf16, #tpu.memory_space<vmem>>, vector<1x256xbf16>
    tpu.vector_store %arg11[%c0_14, %c0_15], %20 {strides = array<i32>} : memref<18x256xbf16, #tpu.memory_space<vmem>>, vector<1x256xbf16>,
    %cst_16 = arith.constant 0.000000e+00 : bf16
    %22 = vector.broadcast %cst_16 : bf16 to vector<1x256xbf16>
    %c17 = arith.constant 17 : index
    %c0_17 = arith.constant 0 : index
    %23 = vector.load %arg11[%c17, %c0_17] : memref<18x256xbf16, #tpu.memory_space<vmem>>, vector<1x256xbf16>
    tpu.vector_store %arg11[%c17, %c0_17], %22 {strides = array<i32>} : memref<18x256xbf16, #tpu.memory_space<vmem>>, vector<1x256xbf16>,
    %24 = arith.truncf %19 : vector<16x256xf32> to vector<16x256xbf16>
    %c1 = arith.constant 1 : index
    %c0_18 = arith.constant 0 : index
    %25 = vector.load %arg11[%c1, %c0_18] : memref<18x256xbf16, #tpu.memory_space<vmem>>, vector<16x256xbf16>
    tpu.vector_store %arg11[%c1, %c0_18], %24 {strides = array<i32>} : memref<18x256xbf16, #tpu.memory_space<vmem>>, vector<16x256xbf16>,
    %26 = vector.extract_strided_slice %3 {offsets = [0, 128], sizes = [16, 128], strides = [1, 1]} : vector<17x256xbf16> to vector<16x128xbf16>
    %c0_19 = arith.constant 0 : index
    %c0_20 = arith.constant 0 : index
    %27 = vector.load %arg5[%c0_19, %c0_20] : memref<128x128xbf16, #tpu.memory_space<vmem>>, vector<128x128xbf16>
    %cst_21 = arith.constant dense<0.000000e+00> : vector<16x128xf32>
    %28 = tpu.matmul %26, %27, %cst_21 {dimension_numbers = #tpu.dot_dimension_numbers<[1], [0], [0], [1], [0, 0, 1, 1], [], []>} : vector<16x128xbf16>, vector<128x128xbf16>, vector<16x128xf32> -> vector<16x128xf32>
    %c0_22 = arith.constant 0 : index
    %c0_23 = arith.constant 0 : index
    %29 = vector.load %arg6[%c0_22, %c0_23] : memref<1x128xf32, #tpu.memory_space<vmem>>, vector<1x128xf32>
    %30 = vector.shape_cast %29 : vector<1x128xf32> to vector<128xf32>
    %31 = vector.shape_cast %30 : vector<128xf32> to vector<1x128xf32>
    %32 = vector.broadcast %31 : vector<1x128xf32> to vector<16x128xf32>
    %33 = arith.addf %28, %32 : vector<16x128xf32>
    %34 = vector.broadcast %1 : vector<16x1xf32> to vector<16x128xf32>
    %35 = arith.mulf %33, %34 : vector<16x128xf32>
    %cst_24 = arith.constant 0.000000e+00 : f32
    %36 = vector.broadcast %cst_24 : f32 to vector<16x128xf32>
    %c0_25 = arith.constant 0 : index
    %c0_26 = arith.constant 0 : index
    %37 = vector.load %arg11[%c0_25, %c0_26] : memref<18x256xbf16, #tpu.memory_space<vmem>>, vector<16x256xbf16>
    %c0_27 = arith.constant 0 : index
    %c0_28 = arith.constant 0 : index
    %c0_29 = arith.constant 0 : index
    %38 = vector.load %arg7[%c0_27, %c0_28, %c0_29] : memref<3x256x128xbf16, #tpu.memory_space<vmem>>, vector<1x256x128xbf16>
    %39 = vector.shape_cast %38 : vector<1x256x128xbf16> to vector<256x128xbf16>
    %cst_30 = arith.constant dense<0.000000e+00> : vector<16x128xf32>
    %40 = tpu.matmul %37, %39, %cst_30 {dimension_numbers = #tpu.dot_dimension_numbers<[1], [0], [0], [1], [0, 0, 1, 1], [], []>} : vector<16x256xbf16>, vector<256x128xbf16>, vector<16x128xf32> -> vector<16x128xf32>
    %41 = arith.addf %36, %40 : vector<16x128xf32>
    %c1_31 = arith.constant 1 : index
    %c0_32 = arith.constant 0 : index
    %42 = vector.load %arg11[%c1_31, %c0_32] : memref<18x256xbf16, #tpu.memory_space<vmem>>, vector<16x256xbf16>
    %c1_33 = arith.constant 1 : index
    %c0_34 = arith.constant 0 : index
    %c0_35 = arith.constant 0 : index
    %43 = vector.load %arg7[%c1_33, %c0_34, %c0_35] : memref<3x256x128xbf16, #tpu.memory_space<vmem>>, vector<1x256x128xbf16>
    %44 = vector.shape_cast %43 : vector<1x256x128xbf16> to vector<256x128xbf16>
    %cst_36 = arith.constant dense<0.000000e+00> : vector<16x128xf32>
    %45 = tpu.matmul %42, %44, %cst_36 {dimension_numbers = #tpu.dot_dimension_numbers<[1], [0], [0], [1], [0, 0, 1, 1], [], []>} : vector<16x256xbf16>, vector<256x128xbf16>, vector<16x128xf32> -> vector<16x128xf32>
    %46 = arith.addf %41, %45 : vector<16x128xf32>
    %c2 = arith.constant 2 : index
    %c0_37 = arith.constant 0 : index
    %47 = vector.load %arg11[%c2, %c0_37] : memref<18x256xbf16, #tpu.memory_space<vmem>>, vector<16x256xbf16>
    %c2_38 = arith.constant 2 : index
    %c0_39 = arith.constant 0 : index
    %c0_40 = arith.constant 0 : index
    %48 = vector.load %arg7[%c2_38, %c0_39, %c0_40] : memref<3x256x128xbf16, #tpu.memory_space<vmem>>, vector<1x256x128xbf16>
    %49 = vector.shape_cast %48 : vector<1x256x128xbf16> to vector<256x128xbf16>
    %cst_41 = arith.constant dense<0.000000e+00> : vector<16x128xf32>
    %50 = tpu.matmul %47, %49, %cst_41 {dimension_numbers = #tpu.dot_dimension_numbers<[1], [0], [0], [1], [0, 0, 1, 1], [], []>} : vector<16x256xbf16>, vector<256x128xbf16>, vector<16x128xf32> -> vector<16x128xf32>
    %51 = arith.addf %46, %50 : vector<16x128xf32>
    %c0_42 = arith.constant 0 : index
    %c0_43 = arith.constant 0 : index
    %52 = vector.load %arg8[%c0_42, %c0_43] : memref<1x128xf32, #tpu.memory_space<vmem>>, vector<1x128xf32>
    %53 = vector.shape_cast %52 : vector<1x128xf32> to vector<128xf32>
    %54 = vector.shape_cast %53 : vector<128xf32> to vector<1x128xf32>
    %55 = vector.broadcast %54 : vector<1x128xf32> to vector<16x128xf32>
    %56 = arith.addf %51, %55 : vector<16x128xf32>
    %57 = vector.broadcast %1 : vector<16x1xf32> to vector<16x128xf32>
    %58 = arith.mulf %56, %57 : vector<16x128xf32>
    %59 = arith.addf %58, %35 : vector<16x128xf32>
    %cst_44 = arith.constant 0.000000e+00 : f32
    %60 = vector.broadcast %cst_44 : f32 to vector<16x128xf32>
    %61 = arith.maximumf %59, %60 : vector<16x128xf32>
    %62 = arith.truncf %61 : vector<16x128xf32> to vector<16x128xbf16>
    %c0_45 = arith.constant 0 : index
    %c0_46 = arith.constant 0 : index
    %c0_47 = arith.constant 0 : index
    %63 = vector.load %arg10[%c0_45, %c0_46, %c0_47] : memref<1x16x128xbf16, #tpu.memory_space<vmem>>, vector<1x16x128xbf16>
    %64 = vector.shape_cast %63 : vector<1x16x128xbf16> to vector<16x128xbf16>
    %65 = vector.shape_cast %62 : vector<16x128xbf16> to vector<1x16x128xbf16>
    tpu.vector_store %arg10[%c0_45, %c0_46, %c0_47], %65 {strides = array<i32>} : memref<1x16x128xbf16, #tpu.memory_space<vmem>>, vector<1x16x128xbf16>,
    return
  }
  func.func @transform_0(%arg0: i32) -> (i32, i32, i32) {
    %c0_i32 = arith.constant 0 : i32
    %c0_i32_0 = arith.constant 0 : i32
    %c0_i32_1 = arith.constant 0 : i32
    return %arg0, %c0_i32, %c0_i32_0 : i32, i32, i32
  }
  func.func @transform_1(%arg0: i32) -> (i32, i32) {
    %c0_i32 = arith.constant 0 : i32
    %c0_i32_0 = arith.constant 0 : i32
    %c0_i32_1 = arith.constant 0 : i32
    return %c0_i32, %c0_i32_0 : i32, i32
  }
  func.func @transform_2(%arg0: i32) -> (i32, i32) {
    %c0_i32 = arith.constant 0 : i32
    %c0_i32_0 = arith.constant 0 : i32
    %c0_i32_1 = arith.constant 0 : i32
    return %c0_i32, %c0_i32_0 : i32, i32
  }
  func.func @transform_3(%arg0: i32) -> (i32, i32) {
    %c0_i32 = arith.constant 0 : i32
    %c0_i32_0 = arith.constant 0 : i32
    %c0_i32_1 = arith.constant 0 : i32
    return %c0_i32, %c0_i32_0 : i32, i32
  }
  func.func @transform_4(%arg0: i32) -> (i32, i32) {
    %c0_i32 = arith.constant 0 : i32
    %c0_i32_0 = arith.constant 0 : i32
    %c0_i32_1 = arith.constant 0 : i32
    return %c0_i32, %c0_i32_0 : i32, i32
  }
  func.func @transform_5(%arg0: i32) -> (i32, i32) {
    %c0_i32 = arith.constant 0 : i32
    %c0_i32_0 = arith.constant 0 : i32
    %c0_i32_1 = arith.constant 0 : i32
    return %c0_i32, %c0_i32_0 : i32, i32
  }
  func.func @transform_6(%arg0: i32) -> (i32, i32, i32) {
    %c0_i32 = arith.constant 0 : i32
    %c0_i32_0 = arith.constant 0 : i32
    %c0_i32_1 = arith.constant 0 : i32
    %c0_i32_2 = arith.constant 0 : i32
    return %c0_i32, %c0_i32_0, %c0_i32_1 : i32, i32, i32
  }
  func.func @transform_7(%arg0: i32) -> (i32, i32) {
    %c0_i32 = arith.constant 0 : i32
    %c0_i32_0 = arith.constant 0 : i32
    %c0_i32_1 = arith.constant 0 : i32
    return %c0_i32, %c0_i32_0 : i32, i32
  }
  func.func @transform_8(%arg0: i32) -> (i32, i32, i32) {
    %c0_i32 = arith.constant 0 : i32
    %c0_i32_0 = arith.constant 0 : i32
    %c0_i32_1 = arith.constant 0 : i32
    return %arg0, %c0_i32, %c0_i32_0 : i32, i32, i32
  }
  func.func @transform_9(%arg0: i32) -> (i32, i32, i32) {
    %c0_i32 = arith.constant 0 : i32
    %c0_i32_0 = arith.constant 0 : i32
    %c0_i32_1 = arith.constant 0 : i32
    return %arg0, %c0_i32, %c0_i32_0 : i32, i32, i32
  }
}

module attributes {stable_mosaic.version = 11 : i64} {
  func.func @_conv_block_kernel(%arg0: i32, %arg1: memref<1x9x256xbf16, #tpu.memory_space<vmem>>, %arg2: memref<256x256xbf16, #tpu.memory_space<vmem>>, %arg3: memref<128x256xbf16, #tpu.memory_space<vmem>>, %arg4: memref<1x256xf32, #tpu.memory_space<vmem>>, %arg5: memref<128x128xbf16, #tpu.memory_space<vmem>>, %arg6: memref<1x128xf32, #tpu.memory_space<vmem>>, %arg7: memref<3x256x128xbf16, #tpu.memory_space<vmem>>, %arg8: memref<1x128xf32, #tpu.memory_space<vmem>>, %arg9: memref<1x8x1xf32, #tpu.memory_space<vmem>>, %arg10: memref<1x8x128xbf16, #tpu.memory_space<vmem>>, %arg11: memref<10x256xbf16, #tpu.memory_space<vmem>>) attributes {dimension_semantics = [#tpu.dimension_semantics<parallel>], iteration_bounds = array<i64: 2>, scalar_prefetch = 0 : i64, scratch_operands = 1 : i64, tpu.core_type = #tpu.core_type<tc>, window_params = [{transform_indices = @transform_0, window_bounds = array<i64: 1, 9, 256>}, {pipeline_mode = #tpu.pipeline_mode<synchronous>, transform_indices = @transform_1, window_bounds = array<i64: 256, 256>}, {pipeline_mode = #tpu.pipeline_mode<synchronous>, transform_indices = @transform_2, window_bounds = array<i64: 128, 256>}, {pipeline_mode = #tpu.pipeline_mode<synchronous>, transform_indices = @transform_3, window_bounds = array<i64: 1, 256>}, {pipeline_mode = #tpu.pipeline_mode<synchronous>, transform_indices = @transform_4, window_bounds = array<i64: 128, 128>}, {pipeline_mode = #tpu.pipeline_mode<synchronous>, transform_indices = @transform_5, window_bounds = array<i64: 1, 128>}, {pipeline_mode = #tpu.pipeline_mode<synchronous>, transform_indices = @transform_6, window_bounds = array<i64: 3, 256, 128>}, {pipeline_mode = #tpu.pipeline_mode<synchronous>, transform_indices = @transform_7, window_bounds = array<i64: 1, 128>}, {transform_indices = @transform_8, window_bounds = array<i64: 1, 8, 1>}, {transform_indices = @transform_9, window_bounds = array<i64: 1, 8, 128>}]} {
    %c0 = arith.constant 0 : index
    %c0_0 = arith.constant 0 : index
    %c0_1 = arith.constant 0 : index
    %0 = vector.load %arg9[%c0, %c0_0, %c0_1] : memref<1x8x1xf32, #tpu.memory_space<vmem>>, vector<1x8x1xf32>
    %1 = vector.shape_cast %0 : vector<1x8x1xf32> to vector<8x1xf32>
    %c0_2 = arith.constant 0 : index
    %c0_3 = arith.constant 0 : index
    %c0_4 = arith.constant 0 : index
    %2 = vector.load %arg1[%c0_2, %c0_3, %c0_4] : memref<1x9x256xbf16, #tpu.memory_space<vmem>>, vector<1x9x256xbf16>
    %3 = vector.shape_cast %2 : vector<1x9x256xbf16> to vector<9x256xbf16>
    %4 = vector.extract_strided_slice %3 {offsets = [0, 0], sizes = [8, 256], strides = [1, 1]} : vector<9x256xbf16> to vector<8x256xbf16>
    %c0_5 = arith.constant 0 : index
    %c0_6 = arith.constant 0 : index
    %5 = vector.load %arg2[%c0_5, %c0_6] : memref<256x256xbf16, #tpu.memory_space<vmem>>, vector<256x256xbf16>
    %cst = arith.constant dense<0.000000e+00> : vector<8x256xf32>
    %6 = tpu.matmul %4, %5, %cst {dimension_numbers = #tpu.dot_dimension_numbers<[1], [0], [0], [1], [0, 0, 1, 1], [], []>} : vector<8x256xbf16>, vector<256x256xbf16>, vector<8x256xf32> -> vector<8x256xf32>
    %7 = vector.extract_strided_slice %3 {offsets = [1, 0], sizes = [8, 128], strides = [1, 1]} : vector<9x256xbf16> to vector<8x128xbf16>
    %c0_7 = arith.constant 0 : index
    %c0_8 = arith.constant 0 : index
    %8 = vector.load %arg3[%c0_7, %c0_8] : memref<128x256xbf16, #tpu.memory_space<vmem>>, vector<128x256xbf16>
    %cst_9 = arith.constant dense<0.000000e+00> : vector<8x256xf32>
    %9 = tpu.matmul %7, %8, %cst_9 {dimension_numbers = #tpu.dot_dimension_numbers<[1], [0], [0], [1], [0, 0, 1, 1], [], []>} : vector<8x128xbf16>, vector<128x256xbf16>, vector<8x256xf32> -> vector<8x256xf32>
    %10 = arith.addf %6, %9 : vector<8x256xf32>
    %c0_10 = arith.constant 0 : index
    %c0_11 = arith.constant 0 : index
    %11 = vector.load %arg4[%c0_10, %c0_11] : memref<1x256xf32, #tpu.memory_space<vmem>>, vector<1x256xf32>
    %12 = vector.shape_cast %11 : vector<1x256xf32> to vector<256xf32>
    %13 = vector.shape_cast %12 : vector<256xf32> to vector<1x256xf32>
    %14 = vector.broadcast %13 : vector<1x256xf32> to vector<8x256xf32>
    %15 = arith.addf %10, %14 : vector<8x256xf32>
    %16 = vector.broadcast %1 : vector<8x1xf32> to vector<8x256xf32>
    %17 = arith.mulf %15, %16 : vector<8x256xf32>
    %cst_12 = arith.constant 0.000000e+00 : f32
    %18 = vector.broadcast %cst_12 : f32 to vector<8x256xf32>
    %19 = arith.maximumf %17, %18 : vector<8x256xf32>
    %cst_13 = arith.constant 0.000000e+00 : bf16
    %20 = vector.broadcast %cst_13 : bf16 to vector<1x256xbf16>
    %c0_14 = arith.constant 0 : index
    %c0_15 = arith.constant 0 : index
    %21 = vector.load %arg11[%c0_14, %c0_15] : memref<10x256xbf16, #tpu.memory_space<vmem>>, vector<1x256xbf16>
    tpu.vector_store %arg11[%c0_14, %c0_15], %20 {strides = array<i32>} : memref<10x256xbf16, #tpu.memory_space<vmem>>, vector<1x256xbf16>,
    %cst_16 = arith.constant 0.000000e+00 : bf16
    %22 = vector.broadcast %cst_16 : bf16 to vector<1x256xbf16>
    %c9 = arith.constant 9 : index
    %c0_17 = arith.constant 0 : index
    %23 = vector.load %arg11[%c9, %c0_17] : memref<10x256xbf16, #tpu.memory_space<vmem>>, vector<1x256xbf16>
    tpu.vector_store %arg11[%c9, %c0_17], %22 {strides = array<i32>} : memref<10x256xbf16, #tpu.memory_space<vmem>>, vector<1x256xbf16>,
    %24 = arith.truncf %19 : vector<8x256xf32> to vector<8x256xbf16>
    %c1 = arith.constant 1 : index
    %c0_18 = arith.constant 0 : index
    %25 = vector.load %arg11[%c1, %c0_18] : memref<10x256xbf16, #tpu.memory_space<vmem>>, vector<8x256xbf16>
    tpu.vector_store %arg11[%c1, %c0_18], %24 {strides = array<i32>} : memref<10x256xbf16, #tpu.memory_space<vmem>>, vector<8x256xbf16>,
    %26 = vector.extract_strided_slice %3 {offsets = [0, 128], sizes = [8, 128], strides = [1, 1]} : vector<9x256xbf16> to vector<8x128xbf16>
    %c0_19 = arith.constant 0 : index
    %c0_20 = arith.constant 0 : index
    %27 = vector.load %arg5[%c0_19, %c0_20] : memref<128x128xbf16, #tpu.memory_space<vmem>>, vector<128x128xbf16>
    %cst_21 = arith.constant dense<0.000000e+00> : vector<8x128xf32>
    %28 = tpu.matmul %26, %27, %cst_21 {dimension_numbers = #tpu.dot_dimension_numbers<[1], [0], [0], [1], [0, 0, 1, 1], [], []>} : vector<8x128xbf16>, vector<128x128xbf16>, vector<8x128xf32> -> vector<8x128xf32>
    %c0_22 = arith.constant 0 : index
    %c0_23 = arith.constant 0 : index
    %29 = vector.load %arg6[%c0_22, %c0_23] : memref<1x128xf32, #tpu.memory_space<vmem>>, vector<1x128xf32>
    %30 = vector.shape_cast %29 : vector<1x128xf32> to vector<128xf32>
    %31 = vector.shape_cast %30 : vector<128xf32> to vector<1x128xf32>
    %32 = vector.broadcast %31 : vector<1x128xf32> to vector<8x128xf32>
    %33 = arith.addf %28, %32 : vector<8x128xf32>
    %34 = vector.broadcast %1 : vector<8x1xf32> to vector<8x128xf32>
    %35 = arith.mulf %33, %34 : vector<8x128xf32>
    %cst_24 = arith.constant 0.000000e+00 : f32
    %36 = vector.broadcast %cst_24 : f32 to vector<8x128xf32>
    %c0_25 = arith.constant 0 : index
    %c0_26 = arith.constant 0 : index
    %37 = vector.load %arg11[%c0_25, %c0_26] : memref<10x256xbf16, #tpu.memory_space<vmem>>, vector<8x256xbf16>
    %c0_27 = arith.constant 0 : index
    %c0_28 = arith.constant 0 : index
    %c0_29 = arith.constant 0 : index
    %38 = vector.load %arg7[%c0_27, %c0_28, %c0_29] : memref<3x256x128xbf16, #tpu.memory_space<vmem>>, vector<1x256x128xbf16>
    %39 = vector.shape_cast %38 : vector<1x256x128xbf16> to vector<256x128xbf16>
    %cst_30 = arith.constant dense<0.000000e+00> : vector<8x128xf32>
    %40 = tpu.matmul %37, %39, %cst_30 {dimension_numbers = #tpu.dot_dimension_numbers<[1], [0], [0], [1], [0, 0, 1, 1], [], []>} : vector<8x256xbf16>, vector<256x128xbf16>, vector<8x128xf32> -> vector<8x128xf32>
    %41 = arith.addf %36, %40 : vector<8x128xf32>
    %c1_31 = arith.constant 1 : index
    %c0_32 = arith.constant 0 : index
    %42 = vector.load %arg11[%c1_31, %c0_32] : memref<10x256xbf16, #tpu.memory_space<vmem>>, vector<8x256xbf16>
    %c1_33 = arith.constant 1 : index
    %c0_34 = arith.constant 0 : index
    %c0_35 = arith.constant 0 : index
    %43 = vector.load %arg7[%c1_33, %c0_34, %c0_35] : memref<3x256x128xbf16, #tpu.memory_space<vmem>>, vector<1x256x128xbf16>
    %44 = vector.shape_cast %43 : vector<1x256x128xbf16> to vector<256x128xbf16>
    %cst_36 = arith.constant dense<0.000000e+00> : vector<8x128xf32>
    %45 = tpu.matmul %42, %44, %cst_36 {dimension_numbers = #tpu.dot_dimension_numbers<[1], [0], [0], [1], [0, 0, 1, 1], [], []>} : vector<8x256xbf16>, vector<256x128xbf16>, vector<8x128xf32> -> vector<8x128xf32>
    %46 = arith.addf %41, %45 : vector<8x128xf32>
    %c2 = arith.constant 2 : index
    %c0_37 = arith.constant 0 : index
    %47 = vector.load %arg11[%c2, %c0_37] : memref<10x256xbf16, #tpu.memory_space<vmem>>, vector<8x256xbf16>
    %c2_38 = arith.constant 2 : index
    %c0_39 = arith.constant 0 : index
    %c0_40 = arith.constant 0 : index
    %48 = vector.load %arg7[%c2_38, %c0_39, %c0_40] : memref<3x256x128xbf16, #tpu.memory_space<vmem>>, vector<1x256x128xbf16>
    %49 = vector.shape_cast %48 : vector<1x256x128xbf16> to vector<256x128xbf16>
    %cst_41 = arith.constant dense<0.000000e+00> : vector<8x128xf32>
    %50 = tpu.matmul %47, %49, %cst_41 {dimension_numbers = #tpu.dot_dimension_numbers<[1], [0], [0], [1], [0, 0, 1, 1], [], []>} : vector<8x256xbf16>, vector<256x128xbf16>, vector<8x128xf32> -> vector<8x128xf32>
    %51 = arith.addf %46, %50 : vector<8x128xf32>
    %c0_42 = arith.constant 0 : index
    %c0_43 = arith.constant 0 : index
    %52 = vector.load %arg8[%c0_42, %c0_43] : memref<1x128xf32, #tpu.memory_space<vmem>>, vector<1x128xf32>
    %53 = vector.shape_cast %52 : vector<1x128xf32> to vector<128xf32>
    %54 = vector.shape_cast %53 : vector<128xf32> to vector<1x128xf32>
    %55 = vector.broadcast %54 : vector<1x128xf32> to vector<8x128xf32>
    %56 = arith.addf %51, %55 : vector<8x128xf32>
    %57 = vector.broadcast %1 : vector<8x1xf32> to vector<8x128xf32>
    %58 = arith.mulf %56, %57 : vector<8x128xf32>
    %59 = arith.addf %58, %35 : vector<8x128xf32>
    %cst_44 = arith.constant 0.000000e+00 : f32
    %60 = vector.broadcast %cst_44 : f32 to vector<8x128xf32>
    %61 = arith.maximumf %59, %60 : vector<8x128xf32>
    %62 = arith.truncf %61 : vector<8x128xf32> to vector<8x128xbf16>
    %c0_45 = arith.constant 0 : index
    %c0_46 = arith.constant 0 : index
    %c0_47 = arith.constant 0 : index
    %63 = vector.load %arg10[%c0_45, %c0_46, %c0_47] : memref<1x8x128xbf16, #tpu.memory_space<vmem>>, vector<1x8x128xbf16>
    %64 = vector.shape_cast %63 : vector<1x8x128xbf16> to vector<8x128xbf16>
    %65 = vector.shape_cast %62 : vector<8x128xbf16> to vector<1x8x128xbf16>
    tpu.vector_store %arg10[%c0_45, %c0_46, %c0_47], %65 {strides = array<i32>} : memref<1x8x128xbf16, #tpu.memory_space<vmem>>, vector<1x8x128xbf16>,
    return
  }
  func.func @transform_0(%arg0: i32) -> (i32, i32, i32) {
    %c0_i32 = arith.constant 0 : i32
    %c0_i32_0 = arith.constant 0 : i32
    %c0_i32_1 = arith.constant 0 : i32
    return %arg0, %c0_i32, %c0_i32_0 : i32, i32, i32
  }
  func.func @transform_1(%arg0: i32) -> (i32, i32) {
    %c0_i32 = arith.constant 0 : i32
    %c0_i32_0 = arith.constant 0 : i32
    %c0_i32_1 = arith.constant 0 : i32
    return %c0_i32, %c0_i32_0 : i32, i32
  }
  func.func @transform_2(%arg0: i32) -> (i32, i32) {
    %c0_i32 = arith.constant 0 : i32
    %c0_i32_0 = arith.constant 0 : i32
    %c0_i32_1 = arith.constant 0 : i32
    return %c0_i32, %c0_i32_0 : i32, i32
  }
  func.func @transform_3(%arg0: i32) -> (i32, i32) {
    %c0_i32 = arith.constant 0 : i32
    %c0_i32_0 = arith.constant 0 : i32
    %c0_i32_1 = arith.constant 0 : i32
    return %c0_i32, %c0_i32_0 : i32, i32
  }
  func.func @transform_4(%arg0: i32) -> (i32, i32) {
    %c0_i32 = arith.constant 0 : i32
    %c0_i32_0 = arith.constant 0 : i32
    %c0_i32_1 = arith.constant 0 : i32
    return %c0_i32, %c0_i32_0 : i32, i32
  }
  func.func @transform_5(%arg0: i32) -> (i32, i32) {
    %c0_i32 = arith.constant 0 : i32
    %c0_i32_0 = arith.constant 0 : i32
    %c0_i32_1 = arith.constant 0 : i32
    return %c0_i32, %c0_i32_0 : i32, i32
  }
  func.func @transform_6(%arg0: i32) -> (i32, i32, i32) {
    %c0_i32 = arith.constant 0 : i32
    %c0_i32_0 = arith.constant 0 : i32
    %c0_i32_1 = arith.constant 0 : i32
    %c0_i32_2 = arith.constant 0 : i32
    return %c0_i32, %c0_i32_0, %c0_i32_1 : i32, i32, i32
  }
  func.func @transform_7(%arg0: i32) -> (i32, i32) {
    %c0_i32 = arith.constant 0 : i32
    %c0_i32_0 = arith.constant 0 : i32
    %c0_i32_1 = arith.constant 0 : i32
    return %c0_i32, %c0_i32_0 : i32, i32
  }
  func.func @transform_8(%arg0: i32) -> (i32, i32, i32) {
    %c0_i32 = arith.constant 0 : i32
    %c0_i32_0 = arith.constant 0 : i32
    %c0_i32_1 = arith.constant 0 : i32
    return %arg0, %c0_i32, %c0_i32_0 : i32, i32, i32
  }
  func.func @transform_9(%arg0: i32) -> (i32, i32, i32) {
    %c0_i32 = arith.constant 0 : i32
    %c0_i32_0 = arith.constant 0 : i32
    %c0_i32_1 = arith.constant 0 : i32
    return %arg0, %c0_i32, %c0_i32_0 : i32, i32, i32
  }
}

module attributes {stable_mosaic.version = 11 : i64} {
  func.func @_conv_block_kernel(%arg0: i32, %arg1: memref<1x5x256xbf16, #tpu.memory_space<vmem>>, %arg2: memref<256x256xbf16, #tpu.memory_space<vmem>>, %arg3: memref<128x256xbf16, #tpu.memory_space<vmem>>, %arg4: memref<1x256xf32, #tpu.memory_space<vmem>>, %arg5: memref<128x128xbf16, #tpu.memory_space<vmem>>, %arg6: memref<1x128xf32, #tpu.memory_space<vmem>>, %arg7: memref<3x256x128xbf16, #tpu.memory_space<vmem>>, %arg8: memref<1x128xf32, #tpu.memory_space<vmem>>, %arg9: memref<1x4x1xf32, #tpu.memory_space<vmem>>, %arg10: memref<1x4x128xbf16, #tpu.memory_space<vmem>>, %arg11: memref<6x256xbf16, #tpu.memory_space<vmem>>) attributes {dimension_semantics = [#tpu.dimension_semantics<parallel>], iteration_bounds = array<i64: 2>, scalar_prefetch = 0 : i64, scratch_operands = 1 : i64, tpu.core_type = #tpu.core_type<tc>, window_params = [{transform_indices = @transform_0, window_bounds = array<i64: 1, 5, 256>}, {pipeline_mode = #tpu.pipeline_mode<synchronous>, transform_indices = @transform_1, window_bounds = array<i64: 256, 256>}, {pipeline_mode = #tpu.pipeline_mode<synchronous>, transform_indices = @transform_2, window_bounds = array<i64: 128, 256>}, {pipeline_mode = #tpu.pipeline_mode<synchronous>, transform_indices = @transform_3, window_bounds = array<i64: 1, 256>}, {pipeline_mode = #tpu.pipeline_mode<synchronous>, transform_indices = @transform_4, window_bounds = array<i64: 128, 128>}, {pipeline_mode = #tpu.pipeline_mode<synchronous>, transform_indices = @transform_5, window_bounds = array<i64: 1, 128>}, {pipeline_mode = #tpu.pipeline_mode<synchronous>, transform_indices = @transform_6, window_bounds = array<i64: 3, 256, 128>}, {pipeline_mode = #tpu.pipeline_mode<synchronous>, transform_indices = @transform_7, window_bounds = array<i64: 1, 128>}, {transform_indices = @transform_8, window_bounds = array<i64: 1, 4, 1>}, {transform_indices = @transform_9, window_bounds = array<i64: 1, 4, 128>}]} {
    %c0 = arith.constant 0 : index
    %c0_0 = arith.constant 0 : index
    %c0_1 = arith.constant 0 : index
    %0 = vector.load %arg9[%c0, %c0_0, %c0_1] : memref<1x4x1xf32, #tpu.memory_space<vmem>>, vector<1x4x1xf32>
    %1 = vector.shape_cast %0 : vector<1x4x1xf32> to vector<4x1xf32>
    %c0_2 = arith.constant 0 : index
    %c0_3 = arith.constant 0 : index
    %c0_4 = arith.constant 0 : index
    %2 = vector.load %arg1[%c0_2, %c0_3, %c0_4] : memref<1x5x256xbf16, #tpu.memory_space<vmem>>, vector<1x5x256xbf16>
    %3 = vector.shape_cast %2 : vector<1x5x256xbf16> to vector<5x256xbf16>
    %4 = vector.extract_strided_slice %3 {offsets = [0, 0], sizes = [4, 256], strides = [1, 1]} : vector<5x256xbf16> to vector<4x256xbf16>
    %c0_5 = arith.constant 0 : index
    %c0_6 = arith.constant 0 : index
    %5 = vector.load %arg2[%c0_5, %c0_6] : memref<256x256xbf16, #tpu.memory_space<vmem>>, vector<256x256xbf16>
    %cst = arith.constant dense<0.000000e+00> : vector<4x256xf32>
    %6 = tpu.matmul %4, %5, %cst {dimension_numbers = #tpu.dot_dimension_numbers<[1], [0], [0], [1], [0, 0, 1, 1], [], []>} : vector<4x256xbf16>, vector<256x256xbf16>, vector<4x256xf32> -> vector<4x256xf32>
    %7 = vector.extract_strided_slice %3 {offsets = [1, 0], sizes = [4, 128], strides = [1, 1]} : vector<5x256xbf16> to vector<4x128xbf16>
    %c0_7 = arith.constant 0 : index
    %c0_8 = arith.constant 0 : index
    %8 = vector.load %arg3[%c0_7, %c0_8] : memref<128x256xbf16, #tpu.memory_space<vmem>>, vector<128x256xbf16>
    %cst_9 = arith.constant dense<0.000000e+00> : vector<4x256xf32>
    %9 = tpu.matmul %7, %8, %cst_9 {dimension_numbers = #tpu.dot_dimension_numbers<[1], [0], [0], [1], [0, 0, 1, 1], [], []>} : vector<4x128xbf16>, vector<128x256xbf16>, vector<4x256xf32> -> vector<4x256xf32>
    %10 = arith.addf %6, %9 : vector<4x256xf32>
    %c0_10 = arith.constant 0 : index
    %c0_11 = arith.constant 0 : index
    %11 = vector.load %arg4[%c0_10, %c0_11] : memref<1x256xf32, #tpu.memory_space<vmem>>, vector<1x256xf32>
    %12 = vector.shape_cast %11 : vector<1x256xf32> to vector<256xf32>
    %13 = vector.shape_cast %12 : vector<256xf32> to vector<1x256xf32>
    %14 = vector.broadcast %13 : vector<1x256xf32> to vector<4x256xf32>
    %15 = arith.addf %10, %14 : vector<4x256xf32>
    %16 = vector.broadcast %1 : vector<4x1xf32> to vector<4x256xf32>
    %17 = arith.mulf %15, %16 : vector<4x256xf32>
    %cst_12 = arith.constant 0.000000e+00 : f32
    %18 = vector.broadcast %cst_12 : f32 to vector<4x256xf32>
    %19 = arith.maximumf %17, %18 : vector<4x256xf32>
    %cst_13 = arith.constant 0.000000e+00 : bf16
    %20 = vector.broadcast %cst_13 : bf16 to vector<1x256xbf16>
    %c0_14 = arith.constant 0 : index
    %c0_15 = arith.constant 0 : index
    %21 = vector.load %arg11[%c0_14, %c0_15] : memref<6x256xbf16, #tpu.memory_space<vmem>>, vector<1x256xbf16>
    tpu.vector_store %arg11[%c0_14, %c0_15], %20 {strides = array<i32>} : memref<6x256xbf16, #tpu.memory_space<vmem>>, vector<1x256xbf16>,
    %cst_16 = arith.constant 0.000000e+00 : bf16
    %22 = vector.broadcast %cst_16 : bf16 to vector<1x256xbf16>
    %c5 = arith.constant 5 : index
    %c0_17 = arith.constant 0 : index
    %23 = vector.load %arg11[%c5, %c0_17] : memref<6x256xbf16, #tpu.memory_space<vmem>>, vector<1x256xbf16>
    tpu.vector_store %arg11[%c5, %c0_17], %22 {strides = array<i32>} : memref<6x256xbf16, #tpu.memory_space<vmem>>, vector<1x256xbf16>,
    %24 = arith.truncf %19 : vector<4x256xf32> to vector<4x256xbf16>
    %c1 = arith.constant 1 : index
    %c0_18 = arith.constant 0 : index
    %25 = vector.load %arg11[%c1, %c0_18] : memref<6x256xbf16, #tpu.memory_space<vmem>>, vector<4x256xbf16>
    tpu.vector_store %arg11[%c1, %c0_18], %24 {strides = array<i32>} : memref<6x256xbf16, #tpu.memory_space<vmem>>, vector<4x256xbf16>,
    %26 = vector.extract_strided_slice %3 {offsets = [0, 128], sizes = [4, 128], strides = [1, 1]} : vector<5x256xbf16> to vector<4x128xbf16>
    %c0_19 = arith.constant 0 : index
    %c0_20 = arith.constant 0 : index
    %27 = vector.load %arg5[%c0_19, %c0_20] : memref<128x128xbf16, #tpu.memory_space<vmem>>, vector<128x128xbf16>
    %cst_21 = arith.constant dense<0.000000e+00> : vector<4x128xf32>
    %28 = tpu.matmul %26, %27, %cst_21 {dimension_numbers = #tpu.dot_dimension_numbers<[1], [0], [0], [1], [0, 0, 1, 1], [], []>} : vector<4x128xbf16>, vector<128x128xbf16>, vector<4x128xf32> -> vector<4x128xf32>
    %c0_22 = arith.constant 0 : index
    %c0_23 = arith.constant 0 : index
    %29 = vector.load %arg6[%c0_22, %c0_23] : memref<1x128xf32, #tpu.memory_space<vmem>>, vector<1x128xf32>
    %30 = vector.shape_cast %29 : vector<1x128xf32> to vector<128xf32>
    %31 = vector.shape_cast %30 : vector<128xf32> to vector<1x128xf32>
    %32 = vector.broadcast %31 : vector<1x128xf32> to vector<4x128xf32>
    %33 = arith.addf %28, %32 : vector<4x128xf32>
    %34 = vector.broadcast %1 : vector<4x1xf32> to vector<4x128xf32>
    %35 = arith.mulf %33, %34 : vector<4x128xf32>
    %cst_24 = arith.constant 0.000000e+00 : f32
    %36 = vector.broadcast %cst_24 : f32 to vector<4x128xf32>
    %c0_25 = arith.constant 0 : index
    %c0_26 = arith.constant 0 : index
    %37 = vector.load %arg11[%c0_25, %c0_26] : memref<6x256xbf16, #tpu.memory_space<vmem>>, vector<4x256xbf16>
    %c0_27 = arith.constant 0 : index
    %c0_28 = arith.constant 0 : index
    %c0_29 = arith.constant 0 : index
    %38 = vector.load %arg7[%c0_27, %c0_28, %c0_29] : memref<3x256x128xbf16, #tpu.memory_space<vmem>>, vector<1x256x128xbf16>
    %39 = vector.shape_cast %38 : vector<1x256x128xbf16> to vector<256x128xbf16>
    %cst_30 = arith.constant dense<0.000000e+00> : vector<4x128xf32>
    %40 = tpu.matmul %37, %39, %cst_30 {dimension_numbers = #tpu.dot_dimension_numbers<[1], [0], [0], [1], [0, 0, 1, 1], [], []>} : vector<4x256xbf16>, vector<256x128xbf16>, vector<4x128xf32> -> vector<4x128xf32>
    %41 = arith.addf %36, %40 : vector<4x128xf32>
    %c1_31 = arith.constant 1 : index
    %c0_32 = arith.constant 0 : index
    %42 = vector.load %arg11[%c1_31, %c0_32] : memref<6x256xbf16, #tpu.memory_space<vmem>>, vector<4x256xbf16>
    %c1_33 = arith.constant 1 : index
    %c0_34 = arith.constant 0 : index
    %c0_35 = arith.constant 0 : index
    %43 = vector.load %arg7[%c1_33, %c0_34, %c0_35] : memref<3x256x128xbf16, #tpu.memory_space<vmem>>, vector<1x256x128xbf16>
    %44 = vector.shape_cast %43 : vector<1x256x128xbf16> to vector<256x128xbf16>
    %cst_36 = arith.constant dense<0.000000e+00> : vector<4x128xf32>
    %45 = tpu.matmul %42, %44, %cst_36 {dimension_numbers = #tpu.dot_dimension_numbers<[1], [0], [0], [1], [0, 0, 1, 1], [], []>} : vector<4x256xbf16>, vector<256x128xbf16>, vector<4x128xf32> -> vector<4x128xf32>
    %46 = arith.addf %41, %45 : vector<4x128xf32>
    %c2 = arith.constant 2 : index
    %c0_37 = arith.constant 0 : index
    %47 = vector.load %arg11[%c2, %c0_37] : memref<6x256xbf16, #tpu.memory_space<vmem>>, vector<4x256xbf16>
    %c2_38 = arith.constant 2 : index
    %c0_39 = arith.constant 0 : index
    %c0_40 = arith.constant 0 : index
    %48 = vector.load %arg7[%c2_38, %c0_39, %c0_40] : memref<3x256x128xbf16, #tpu.memory_space<vmem>>, vector<1x256x128xbf16>
    %49 = vector.shape_cast %48 : vector<1x256x128xbf16> to vector<256x128xbf16>
    %cst_41 = arith.constant dense<0.000000e+00> : vector<4x128xf32>
    %50 = tpu.matmul %47, %49, %cst_41 {dimension_numbers = #tpu.dot_dimension_numbers<[1], [0], [0], [1], [0, 0, 1, 1], [], []>} : vector<4x256xbf16>, vector<256x128xbf16>, vector<4x128xf32> -> vector<4x128xf32>
    %51 = arith.addf %46, %50 : vector<4x128xf32>
    %c0_42 = arith.constant 0 : index
    %c0_43 = arith.constant 0 : index
    %52 = vector.load %arg8[%c0_42, %c0_43] : memref<1x128xf32, #tpu.memory_space<vmem>>, vector<1x128xf32>
    %53 = vector.shape_cast %52 : vector<1x128xf32> to vector<128xf32>
    %54 = vector.shape_cast %53 : vector<128xf32> to vector<1x128xf32>
    %55 = vector.broadcast %54 : vector<1x128xf32> to vector<4x128xf32>
    %56 = arith.addf %51, %55 : vector<4x128xf32>
    %57 = vector.broadcast %1 : vector<4x1xf32> to vector<4x128xf32>
    %58 = arith.mulf %56, %57 : vector<4x128xf32>
    %59 = arith.addf %58, %35 : vector<4x128xf32>
    %cst_44 = arith.constant 0.000000e+00 : f32
    %60 = vector.broadcast %cst_44 : f32 to vector<4x128xf32>
    %61 = arith.maximumf %59, %60 : vector<4x128xf32>
    %62 = arith.truncf %61 : vector<4x128xf32> to vector<4x128xbf16>
    %c0_45 = arith.constant 0 : index
    %c0_46 = arith.constant 0 : index
    %c0_47 = arith.constant 0 : index
    %63 = vector.load %arg10[%c0_45, %c0_46, %c0_47] : memref<1x4x128xbf16, #tpu.memory_space<vmem>>, vector<1x4x128xbf16>
    %64 = vector.shape_cast %63 : vector<1x4x128xbf16> to vector<4x128xbf16>
    %65 = vector.shape_cast %62 : vector<4x128xbf16> to vector<1x4x128xbf16>
    tpu.vector_store %arg10[%c0_45, %c0_46, %c0_47], %65 {strides = array<i32>} : memref<1x4x128xbf16, #tpu.memory_space<vmem>>, vector<1x4x128xbf16>,
    return
  }
  func.func @transform_0(%arg0: i32) -> (i32, i32, i32) {
    %c0_i32 = arith.constant 0 : i32
    %c0_i32_0 = arith.constant 0 : i32
    %c0_i32_1 = arith.constant 0 : i32
    return %arg0, %c0_i32, %c0_i32_0 : i32, i32, i32
  }
  func.func @transform_1(%arg0: i32) -> (i32, i32) {
    %c0_i32 = arith.constant 0 : i32
    %c0_i32_0 = arith.constant 0 : i32
    %c0_i32_1 = arith.constant 0 : i32
    return %c0_i32, %c0_i32_0 : i32, i32
  }
  func.func @transform_2(%arg0: i32) -> (i32, i32) {
    %c0_i32 = arith.constant 0 : i32
    %c0_i32_0 = arith.constant 0 : i32
    %c0_i32_1 = arith.constant 0 : i32
    return %c0_i32, %c0_i32_0 : i32, i32
  }
  func.func @transform_3(%arg0: i32) -> (i32, i32) {
    %c0_i32 = arith.constant 0 : i32
    %c0_i32_0 = arith.constant 0 : i32
    %c0_i32_1 = arith.constant 0 : i32
    return %c0_i32, %c0_i32_0 : i32, i32
  }
  func.func @transform_4(%arg0: i32) -> (i32, i32) {
    %c0_i32 = arith.constant 0 : i32
    %c0_i32_0 = arith.constant 0 : i32
    %c0_i32_1 = arith.constant 0 : i32
    return %c0_i32, %c0_i32_0 : i32, i32
  }
  func.func @transform_5(%arg0: i32) -> (i32, i32) {
    %c0_i32 = arith.constant 0 : i32
    %c0_i32_0 = arith.constant 0 : i32
    %c0_i32_1 = arith.constant 0 : i32
    return %c0_i32, %c0_i32_0 : i32, i32
  }
  func.func @transform_6(%arg0: i32) -> (i32, i32, i32) {
    %c0_i32 = arith.constant 0 : i32
    %c0_i32_0 = arith.constant 0 : i32
    %c0_i32_1 = arith.constant 0 : i32
    %c0_i32_2 = arith.constant 0 : i32
    return %c0_i32, %c0_i32_0, %c0_i32_1 : i32, i32, i32
  }
  func.func @transform_7(%arg0: i32) -> (i32, i32) {
    %c0_i32 = arith.constant 0 : i32
    %c0_i32_0 = arith.constant 0 : i32
    %c0_i32_1 = arith.constant 0 : i32
    return %c0_i32, %c0_i32_0 : i32, i32
  }
  func.func @transform_8(%arg0: i32) -> (i32, i32, i32) {
    %c0_i32 = arith.constant 0 : i32
    %c0_i32_0 = arith.constant 0 : i32
    %c0_i32_1 = arith.constant 0 : i32
    return %arg0, %c0_i32, %c0_i32_0 : i32, i32, i32
  }
  func.func @transform_9(%arg0: i32) -> (i32, i32, i32) {
    %c0_i32 = arith.constant 0 : i32
    %c0_i32_0 = arith.constant 0 : i32
    %c0_i32_1 = arith.constant 0 : i32
    return %arg0, %c0_i32, %c0_i32_0 : i32, i32, i32
  }
}

module attributes {stable_mosaic.version = 11 : i64} {
  func.func @_conv_block_kernel(%arg0: i32, %arg1: memref<1x3x256xbf16, #tpu.memory_space<vmem>>, %arg2: memref<256x256xbf16, #tpu.memory_space<vmem>>, %arg3: memref<128x256xbf16, #tpu.memory_space<vmem>>, %arg4: memref<1x256xf32, #tpu.memory_space<vmem>>, %arg5: memref<128x128xbf16, #tpu.memory_space<vmem>>, %arg6: memref<1x128xf32, #tpu.memory_space<vmem>>, %arg7: memref<3x256x128xbf16, #tpu.memory_space<vmem>>, %arg8: memref<1x128xf32, #tpu.memory_space<vmem>>, %arg9: memref<1x2x1xf32, #tpu.memory_space<vmem>>, %arg10: memref<1x2x128xbf16, #tpu.memory_space<vmem>>, %arg11: memref<4x256xbf16, #tpu.memory_space<vmem>>) attributes {dimension_semantics = [#tpu.dimension_semantics<parallel>], iteration_bounds = array<i64: 2>, scalar_prefetch = 0 : i64, scratch_operands = 1 : i64, tpu.core_type = #tpu.core_type<tc>, window_params = [{transform_indices = @transform_0, window_bounds = array<i64: 1, 3, 256>}, {pipeline_mode = #tpu.pipeline_mode<synchronous>, transform_indices = @transform_1, window_bounds = array<i64: 256, 256>}, {pipeline_mode = #tpu.pipeline_mode<synchronous>, transform_indices = @transform_2, window_bounds = array<i64: 128, 256>}, {pipeline_mode = #tpu.pipeline_mode<synchronous>, transform_indices = @transform_3, window_bounds = array<i64: 1, 256>}, {pipeline_mode = #tpu.pipeline_mode<synchronous>, transform_indices = @transform_4, window_bounds = array<i64: 128, 128>}, {pipeline_mode = #tpu.pipeline_mode<synchronous>, transform_indices = @transform_5, window_bounds = array<i64: 1, 128>}, {pipeline_mode = #tpu.pipeline_mode<synchronous>, transform_indices = @transform_6, window_bounds = array<i64: 3, 256, 128>}, {pipeline_mode = #tpu.pipeline_mode<synchronous>, transform_indices = @transform_7, window_bounds = array<i64: 1, 128>}, {transform_indices = @transform_8, window_bounds = array<i64: 1, 2, 1>}, {transform_indices = @transform_9, window_bounds = array<i64: 1, 2, 128>}]} {
    %c0 = arith.constant 0 : index
    %c0_0 = arith.constant 0 : index
    %c0_1 = arith.constant 0 : index
    %0 = vector.load %arg9[%c0, %c0_0, %c0_1] : memref<1x2x1xf32, #tpu.memory_space<vmem>>, vector<1x2x1xf32>
    %1 = vector.shape_cast %0 : vector<1x2x1xf32> to vector<2x1xf32>
    %c0_2 = arith.constant 0 : index
    %c0_3 = arith.constant 0 : index
    %c0_4 = arith.constant 0 : index
    %2 = vector.load %arg1[%c0_2, %c0_3, %c0_4] : memref<1x3x256xbf16, #tpu.memory_space<vmem>>, vector<1x3x256xbf16>
    %3 = vector.shape_cast %2 : vector<1x3x256xbf16> to vector<3x256xbf16>
    %4 = vector.extract_strided_slice %3 {offsets = [0, 0], sizes = [2, 256], strides = [1, 1]} : vector<3x256xbf16> to vector<2x256xbf16>
    %c0_5 = arith.constant 0 : index
    %c0_6 = arith.constant 0 : index
    %5 = vector.load %arg2[%c0_5, %c0_6] : memref<256x256xbf16, #tpu.memory_space<vmem>>, vector<256x256xbf16>
    %cst = arith.constant dense<0.000000e+00> : vector<2x256xf32>
    %6 = tpu.matmul %4, %5, %cst {dimension_numbers = #tpu.dot_dimension_numbers<[1], [0], [0], [1], [0, 0, 1, 1], [], []>} : vector<2x256xbf16>, vector<256x256xbf16>, vector<2x256xf32> -> vector<2x256xf32>
    %7 = vector.extract_strided_slice %3 {offsets = [1, 0], sizes = [2, 128], strides = [1, 1]} : vector<3x256xbf16> to vector<2x128xbf16>
    %c0_7 = arith.constant 0 : index
    %c0_8 = arith.constant 0 : index
    %8 = vector.load %arg3[%c0_7, %c0_8] : memref<128x256xbf16, #tpu.memory_space<vmem>>, vector<128x256xbf16>
    %cst_9 = arith.constant dense<0.000000e+00> : vector<2x256xf32>
    %9 = tpu.matmul %7, %8, %cst_9 {dimension_numbers = #tpu.dot_dimension_numbers<[1], [0], [0], [1], [0, 0, 1, 1], [], []>} : vector<2x128xbf16>, vector<128x256xbf16>, vector<2x256xf32> -> vector<2x256xf32>
    %10 = arith.addf %6, %9 : vector<2x256xf32>
    %c0_10 = arith.constant 0 : index
    %c0_11 = arith.constant 0 : index
    %11 = vector.load %arg4[%c0_10, %c0_11] : memref<1x256xf32, #tpu.memory_space<vmem>>, vector<1x256xf32>
    %12 = vector.shape_cast %11 : vector<1x256xf32> to vector<256xf32>
    %13 = vector.shape_cast %12 : vector<256xf32> to vector<1x256xf32>
    %14 = vector.broadcast %13 : vector<1x256xf32> to vector<2x256xf32>
    %15 = arith.addf %10, %14 : vector<2x256xf32>
    %16 = vector.broadcast %1 : vector<2x1xf32> to vector<2x256xf32>
    %17 = arith.mulf %15, %16 : vector<2x256xf32>
    %cst_12 = arith.constant 0.000000e+00 : f32
    %18 = vector.broadcast %cst_12 : f32 to vector<2x256xf32>
    %19 = arith.maximumf %17, %18 : vector<2x256xf32>
    %cst_13 = arith.constant 0.000000e+00 : bf16
    %20 = vector.broadcast %cst_13 : bf16 to vector<1x256xbf16>
    %c0_14 = arith.constant 0 : index
    %c0_15 = arith.constant 0 : index
    %21 = vector.load %arg11[%c0_14, %c0_15] : memref<4x256xbf16, #tpu.memory_space<vmem>>, vector<1x256xbf16>
    tpu.vector_store %arg11[%c0_14, %c0_15], %20 {strides = array<i32>} : memref<4x256xbf16, #tpu.memory_space<vmem>>, vector<1x256xbf16>,
    %cst_16 = arith.constant 0.000000e+00 : bf16
    %22 = vector.broadcast %cst_16 : bf16 to vector<1x256xbf16>
    %c3 = arith.constant 3 : index
    %c0_17 = arith.constant 0 : index
    %23 = vector.load %arg11[%c3, %c0_17] : memref<4x256xbf16, #tpu.memory_space<vmem>>, vector<1x256xbf16>
    tpu.vector_store %arg11[%c3, %c0_17], %22 {strides = array<i32>} : memref<4x256xbf16, #tpu.memory_space<vmem>>, vector<1x256xbf16>,
    %24 = arith.truncf %19 : vector<2x256xf32> to vector<2x256xbf16>
    %c1 = arith.constant 1 : index
    %c0_18 = arith.constant 0 : index
    %25 = vector.load %arg11[%c1, %c0_18] : memref<4x256xbf16, #tpu.memory_space<vmem>>, vector<2x256xbf16>
    tpu.vector_store %arg11[%c1, %c0_18], %24 {strides = array<i32>} : memref<4x256xbf16, #tpu.memory_space<vmem>>, vector<2x256xbf16>,
    %26 = vector.extract_strided_slice %3 {offsets = [0, 128], sizes = [2, 128], strides = [1, 1]} : vector<3x256xbf16> to vector<2x128xbf16>
    %c0_19 = arith.constant 0 : index
    %c0_20 = arith.constant 0 : index
    %27 = vector.load %arg5[%c0_19, %c0_20] : memref<128x128xbf16, #tpu.memory_space<vmem>>, vector<128x128xbf16>
    %cst_21 = arith.constant dense<0.000000e+00> : vector<2x128xf32>
    %28 = tpu.matmul %26, %27, %cst_21 {dimension_numbers = #tpu.dot_dimension_numbers<[1], [0], [0], [1], [0, 0, 1, 1], [], []>} : vector<2x128xbf16>, vector<128x128xbf16>, vector<2x128xf32> -> vector<2x128xf32>
    %c0_22 = arith.constant 0 : index
    %c0_23 = arith.constant 0 : index
    %29 = vector.load %arg6[%c0_22, %c0_23] : memref<1x128xf32, #tpu.memory_space<vmem>>, vector<1x128xf32>
    %30 = vector.shape_cast %29 : vector<1x128xf32> to vector<128xf32>
    %31 = vector.shape_cast %30 : vector<128xf32> to vector<1x128xf32>
    %32 = vector.broadcast %31 : vector<1x128xf32> to vector<2x128xf32>
    %33 = arith.addf %28, %32 : vector<2x128xf32>
    %34 = vector.broadcast %1 : vector<2x1xf32> to vector<2x128xf32>
    %35 = arith.mulf %33, %34 : vector<2x128xf32>
    %cst_24 = arith.constant 0.000000e+00 : f32
    %36 = vector.broadcast %cst_24 : f32 to vector<2x128xf32>
    %c0_25 = arith.constant 0 : index
    %c0_26 = arith.constant 0 : index
    %37 = vector.load %arg11[%c0_25, %c0_26] : memref<4x256xbf16, #tpu.memory_space<vmem>>, vector<2x256xbf16>
    %c0_27 = arith.constant 0 : index
    %c0_28 = arith.constant 0 : index
    %c0_29 = arith.constant 0 : index
    %38 = vector.load %arg7[%c0_27, %c0_28, %c0_29] : memref<3x256x128xbf16, #tpu.memory_space<vmem>>, vector<1x256x128xbf16>
    %39 = vector.shape_cast %38 : vector<1x256x128xbf16> to vector<256x128xbf16>
    %cst_30 = arith.constant dense<0.000000e+00> : vector<2x128xf32>
    %40 = tpu.matmul %37, %39, %cst_30 {dimension_numbers = #tpu.dot_dimension_numbers<[1], [0], [0], [1], [0, 0, 1, 1], [], []>} : vector<2x256xbf16>, vector<256x128xbf16>, vector<2x128xf32> -> vector<2x128xf32>
    %41 = arith.addf %36, %40 : vector<2x128xf32>
    %c1_31 = arith.constant 1 : index
    %c0_32 = arith.constant 0 : index
    %42 = vector.load %arg11[%c1_31, %c0_32] : memref<4x256xbf16, #tpu.memory_space<vmem>>, vector<2x256xbf16>
    %c1_33 = arith.constant 1 : index
    %c0_34 = arith.constant 0 : index
    %c0_35 = arith.constant 0 : index
    %43 = vector.load %arg7[%c1_33, %c0_34, %c0_35] : memref<3x256x128xbf16, #tpu.memory_space<vmem>>, vector<1x256x128xbf16>
    %44 = vector.shape_cast %43 : vector<1x256x128xbf16> to vector<256x128xbf16>
    %cst_36 = arith.constant dense<0.000000e+00> : vector<2x128xf32>
    %45 = tpu.matmul %42, %44, %cst_36 {dimension_numbers = #tpu.dot_dimension_numbers<[1], [0], [0], [1], [0, 0, 1, 1], [], []>} : vector<2x256xbf16>, vector<256x128xbf16>, vector<2x128xf32> -> vector<2x128xf32>
    %46 = arith.addf %41, %45 : vector<2x128xf32>
    %c2 = arith.constant 2 : index
    %c0_37 = arith.constant 0 : index
    %47 = vector.load %arg11[%c2, %c0_37] : memref<4x256xbf16, #tpu.memory_space<vmem>>, vector<2x256xbf16>
    %c2_38 = arith.constant 2 : index
    %c0_39 = arith.constant 0 : index
    %c0_40 = arith.constant 0 : index
    %48 = vector.load %arg7[%c2_38, %c0_39, %c0_40] : memref<3x256x128xbf16, #tpu.memory_space<vmem>>, vector<1x256x128xbf16>
    %49 = vector.shape_cast %48 : vector<1x256x128xbf16> to vector<256x128xbf16>
    %cst_41 = arith.constant dense<0.000000e+00> : vector<2x128xf32>
    %50 = tpu.matmul %47, %49, %cst_41 {dimension_numbers = #tpu.dot_dimension_numbers<[1], [0], [0], [1], [0, 0, 1, 1], [], []>} : vector<2x256xbf16>, vector<256x128xbf16>, vector<2x128xf32> -> vector<2x128xf32>
    %51 = arith.addf %46, %50 : vector<2x128xf32>
    %c0_42 = arith.constant 0 : index
    %c0_43 = arith.constant 0 : index
    %52 = vector.load %arg8[%c0_42, %c0_43] : memref<1x128xf32, #tpu.memory_space<vmem>>, vector<1x128xf32>
    %53 = vector.shape_cast %52 : vector<1x128xf32> to vector<128xf32>
    %54 = vector.shape_cast %53 : vector<128xf32> to vector<1x128xf32>
    %55 = vector.broadcast %54 : vector<1x128xf32> to vector<2x128xf32>
    %56 = arith.addf %51, %55 : vector<2x128xf32>
    %57 = vector.broadcast %1 : vector<2x1xf32> to vector<2x128xf32>
    %58 = arith.mulf %56, %57 : vector<2x128xf32>
    %59 = arith.addf %58, %35 : vector<2x128xf32>
    %cst_44 = arith.constant 0.000000e+00 : f32
    %60 = vector.broadcast %cst_44 : f32 to vector<2x128xf32>
    %61 = arith.maximumf %59, %60 : vector<2x128xf32>
    %62 = arith.truncf %61 : vector<2x128xf32> to vector<2x128xbf16>
    %c0_45 = arith.constant 0 : index
    %c0_46 = arith.constant 0 : index
    %c0_47 = arith.constant 0 : index
    %63 = vector.load %arg10[%c0_45, %c0_46, %c0_47] : memref<1x2x128xbf16, #tpu.memory_space<vmem>>, vector<1x2x128xbf16>
    %64 = vector.shape_cast %63 : vector<1x2x128xbf16> to vector<2x128xbf16>
    %65 = vector.shape_cast %62 : vector<2x128xbf16> to vector<1x2x128xbf16>
    tpu.vector_store %arg10[%c0_45, %c0_46, %c0_47], %65 {strides = array<i32>} : memref<1x2x128xbf16, #tpu.memory_space<vmem>>, vector<1x2x128xbf16>,
    return
  }
  func.func @transform_0(%arg0: i32) -> (i32, i32, i32) {
    %c0_i32 = arith.constant 0 : i32
    %c0_i32_0 = arith.constant 0 : i32
    %c0_i32_1 = arith.constant 0 : i32
    return %arg0, %c0_i32, %c0_i32_0 : i32, i32, i32
  }
  func.func @transform_1(%arg0: i32) -> (i32, i32) {
    %c0_i32 = arith.constant 0 : i32
    %c0_i32_0 = arith.constant 0 : i32
    %c0_i32_1 = arith.constant 0 : i32
    return %c0_i32, %c0_i32_0 : i32, i32
  }
  func.func @transform_2(%arg0: i32) -> (i32, i32) {
    %c0_i32 = arith.constant 0 : i32
    %c0_i32_0 = arith.constant 0 : i32
    %c0_i32_1 = arith.constant 0 : i32
    return %c0_i32, %c0_i32_0 : i32, i32
  }
  func.func @transform_3(%arg0: i32) -> (i32, i32) {
    %c0_i32 = arith.constant 0 : i32
    %c0_i32_0 = arith.constant 0 : i32
    %c0_i32_1 = arith.constant 0 : i32
    return %c0_i32, %c0_i32_0 : i32, i32
  }
  func.func @transform_4(%arg0: i32) -> (i32, i32) {
    %c0_i32 = arith.constant 0 : i32
    %c0_i32_0 = arith.constant 0 : i32
    %c0_i32_1 = arith.constant 0 : i32
    return %c0_i32, %c0_i32_0 : i32, i32
  }
  func.func @transform_5(%arg0: i32) -> (i32, i32) {
    %c0_i32 = arith.constant 0 : i32
    %c0_i32_0 = arith.constant 0 : i32
    %c0_i32_1 = arith.constant 0 : i32
    return %c0_i32, %c0_i32_0 : i32, i32
  }
  func.func @transform_6(%arg0: i32) -> (i32, i32, i32) {
    %c0_i32 = arith.constant 0 : i32
    %c0_i32_0 = arith.constant 0 : i32
    %c0_i32_1 = arith.constant 0 : i32
    %c0_i32_2 = arith.constant 0 : i32
    return %c0_i32, %c0_i32_0, %c0_i32_1 : i32, i32, i32
  }
  func.func @transform_7(%arg0: i32) -> (i32, i32) {
    %c0_i32 = arith.constant 0 : i32
    %c0_i32_0 = arith.constant 0 : i32
    %c0_i32_1 = arith.constant 0 : i32
    return %c0_i32, %c0_i32_0 : i32, i32
  }
  func.func @transform_8(%arg0: i32) -> (i32, i32, i32) {
    %c0_i32 = arith.constant 0 : i32
    %c0_i32_0 = arith.constant 0 : i32
    %c0_i32_1 = arith.constant 0 : i32
    return %arg0, %c0_i32, %c0_i32_0 : i32, i32, i32
  }
  func.func @transform_9(%arg0: i32) -> (i32, i32, i32) {
    %c0_i32 = arith.constant 0 : i32
    %c0_i32_0 = arith.constant 0 : i32
    %c0_i32_1 = arith.constant 0 : i32
    return %arg0, %c0_i32, %c0_i32_0 : i32, i32, i32
  }
}

</mosaic_0001>

<bundles_post_ra>
// kernel: conv_backbone_forward.9
= control target key start
LH: loop header
LB: loop body
LE: loop exit
PB: predicated region body
PF: predicated region fallthrough
CT: control target
= control target key end

     0   :  { %s926_s15 = smov 0   ;;  %s1017_s0 = inlined_call_operand.vmem [shape: bf16[2,66,4], index: 0, kind: input, shape index: {}]   ;;  %s1018_s1 = inlined_call_operand.vmem [shape: bf16[3,4,128], index: 1, kind: input, shape index: {}]   ;;  %s1019_s2 = inlined_call_operand.vmem [shape: f32[1,128], index: 2, kind: input, shape index: {}]   ;;  %s1020_s3 = inlined_call_operand.vmem [shape: f32[2,64,1], index: 3, kind: input, shape index: {}]   ;;  %s1021_s4 = inlined_call_operand.vmem [shape: bf16[2,64,128], index: 4, kind: output, shape index: {}]  }
   0x1 LB: > { %s735_s16 = sadd.s32 4294967295, %s898_s15   ;;  %p739_p0 = scmp.ge.s32.totalorder %s898_s15, 1  ;;  %s898_s15 = sphi %s926_s15, %s14_s15  }
   0x2   : > { %p172_p1 = scmp.lt.s32.totalorder %s898_s15, 3 }
   0x4   : > { %p173_p2 = pnand %p739_p0, %p172_p1 }
   0x5   : > { %v228_v0 = vld [vmem:[%s1018_s1] sm:$0x3] (!%p173_p2)  ;;  %vm304_vm0 = vcmask (!%p173_p2), 1041408   ;;  %p203_p3 = scmp.lt.s32.totalorder (!%p173_p2), %s735_s16, 1  ;;  %v745_v2 = vld [vmem:[%s1018_s1 + $0x2] sm:$0x3] (!%p173_p2) }
   0x6   : > { %176 = sbr.rel (%p173_p2) target bundleno = 272 (0x110), region = 36  ;;  %872 = vmatprep.subr.msk.bf16.mxu0 (!%p173_p2), %vm304_vm0, %v228_v0  ;;  %v939_v1 = vsel (!%p173_p2), %vm304_vm0, %v228_v0, 0  ;;  %871 = vmatprep.subr.msk.bf16.mxu1 (!%p173_p2), %vm304_vm0, %v745_v2  ;;  %v306_v3 = vsel (!%p173_p2), %vm304_vm0, %v745_v2, 0  ;;  %v759_v4 = vld [vmem:[%s1018_s1 + $0x4] sm:$0x3] (!%p173_p2)  ;;  %v900_v5 = vmov (!%p173_p2), 0  }
   0x7   : > { %834 = vmatpush3.bf16.msra.mxu0 (!%p173_p2), %v939_v1  ;;  %824 = vmatpush3.bf16.msra.mxu1 (!%p173_p2), %v306_v3  ;;  %vm291_vm1 = vcmask (!%p173_p2), 31744   ;;  %vm254_vm2 = vsmask.f32 (!%p173_p2), 7424  ;;  %vm451_vm3 = vcmask (!%p173_p2), 1046528   ;;  %v474_v11 = vsel (!%p173_p2), %vm304_vm0, %v759_v4, 0 }
   0x8   : > { %874 = vmatprep.subr.msk.bf16.mxu0 (!%p173_p2), %vm304_vm0, %v759_v4  ;;  %873 = vmatprep.subr.msk.bf16.mxu1 (!%p173_p2), %vm304_vm0, %v228_v0  ;;  %v764_v57 = vld [vmem:[%s1019_s2] ss:$0 sm:$0xff] (!%p173_p2) }
   0x9   : > { %886 = vset.pattern.permute.xlu1 (!%p173_p2), %v900_v5  ;;  %885 = vset.pattern.permute.xlu0 (!%p173_p2), %v900_v5 }
   0xd   : > { %s1023_s16 = smov (!%p203_p3, %s735_s16), 1 }
   0xe   : > { %s875_s23 = smul.u32 36, %s1023_s16  ;;  %s775_s24 = sshll.u32 %s1023_s16, 6 }
   0xf   : > { %s959_s27 = scalar_lea.vmem %s1020_s3, %s775_s24  ;;  %s776_s7 = sshll.u32 %s1023_s16, 5 }
  0x10   : > { %s964_s30 = scalar_lea.vmem %s1017_s0, %s875_s23  ;;  %v566_v6 = vld [vmem:[%s959_s27 + $0x10] sm:$0xff]  ;;  %v564_v7 = vld [vmem:[%s959_s27] sm:$0xff]  ;;  %v567_v8 = vld [vmem:[%s959_s27 + $0x18] sm:$0xff]  ;;  %s1008_s10 = scalar_lea.vmem %s1021_s4, %s776_s7 }
  0x11   : > { %v887_v9 = vld [vmem:[%s964_s30] sm:$0xff]   ;;  %584 = vperm.xlu1 %886, %v566_v6   ;;  %574 = vperm.xlu0 %885, %v564_v7   ;;  %v888_v10 = vld [vmem:[%s964_s30 + $0x8] sm:$0xff]   ;;  %v889_v16 = vld [vmem:[%s964_s30 + $0x10] sm:$0xff]  }
  0x12   : > { %835 = vmatprep.mubr.msk.bf16.mxu0 %vm291_vm1, %v887_v9  ;;  %v256_v12 = vshrl.u32 %v887_v9, 16  ;;  %v258_v13 = vshll.u32 %v887_v9, 16  ;;  %v263_v14 = vshll.u32 %v888_v10, 16  ;;  %v267_v15 = vshrl.u32 %v888_v10, 16  ;;  %v890_v19 = vld [vmem:[%s964_s30 + $0x18] sm:$0xff]   ;;  %v565_v21 = vld [vmem:[%s959_s27 + $0x8] sm:$0xff] }
  0x13   : > { %836 = vmatmul.mubr.msk.bf16.vlgmr.msra.gmra.mrb[0].mxu0 %vm291_vm1, %v888_v10  ;;  %v452_v17 = vrot.slane %v887_v9, 1  ;;  %v453_v18 = vrot.slane %v888_v10, 1  ;;  %v271_v23 = vshll.u32 %v889_v16, 16  ;;  %v569_v25 = vld [vmem:[%s959_s27 + $0x28] sm:$0xff]  ;;  %v275_v27 = vshrl.u32 %v889_v16, 16  ;;  %v568_v33 = vld [vmem:[%s959_s27 + $0x20] sm:$0xff] }
  0x14   : > { %v260_v20 = vrot.slane %v258_v13, 1  ;;  %844 = vmatpush3.bf16.msra.mxu0 %v474_v11  ;;  %v265_v22 = vrot.slane %v263_v14, 1  ;;  %v279_v28 = vshll.u32 %v890_v19, 16  ;;  %v891_v29 = vld [vmem:[%s964_s30 + $0x20] ss:$0 sps:$4 sm:$0x11]  }
  0x15   : > { %589 = vperm.xlu1 %886, %v567_v8   ;;  %v454_v24 = vsel %vm451_vm3, %v452_v17, %v453_v18  ;;  %579 = vperm.xlu0 %885, %v565_v21   ;;  %v273_v31 = vrot.slane %v271_v23, 1  ;;  %v283_v32 = vshrl.u32 %v890_v19, 16  ;;  %v455_v35 = vrot.slane %v889_v16, 1  ;;  %v571_v41 = vld [vmem:[%s959_s27 + $0x38] sm:$0xff]  ;;  %v570_v42 = vld [vmem:[%s959_s27 + $0x30] sm:$0xff] }
  0x16   : > { %v261_v26 = vor.u32 %v260_v20, %v256_v12  ;;  %845 = vmatprep.mubr.msk.bf16.mxu0 %vm291_vm1, %v454_v24  ;;  %v269_v30 = vor.u32 %v267_v15, %v265_v22  ;;  %v281_v36 = vrot.slane %v279_v28, 1  ;;  %v287_v37 = vshll.u32 %v891_v29, 16 }
  0x17   : > { %v277_v39 = vor.u32 %v275_v27, %v273_v31  ;;  %v457_v40 = vrot.slane %v890_v19, 1  ;;  %v456_v46 = vsel %vm451_vm3, %v453_v18, %v455_v35  ;;  %v459_v49 = vrot.slane %v891_v29, 1 }
  0x18   : > { %v266_v34 = vsel %vm254_vm2, %v261_v26, %v265_v22  ;;  %v274_v38 = vsel %vm254_vm2, %v269_v30, %v273_v31  ;;  %v285_v44 = vor.u32 %v283_v32, %v281_v36  ;;  %v289_v45 = vrot.slane %v287_v37, 1 }
  0x19   : > { %599 = vperm.xlu1 %886, %v569_v25   ;;  %825 = vmatprep.mubr.msk.bf16.mxu1 %vm291_vm1, %v266_v34  ;;  %v282_v43 = vsel %vm254_vm2, %v277_v39, %v281_v36  ;;  %v458_v47 = vsel %vm451_vm3, %v455_v35, %v457_v40  ;;  %v460_v50 = vsel %vm451_vm3, %v457_v40, %v459_v49 }
  0x1a   : > { %594 = vperm.xlu0 %885, %v568_v33   ;;  %826 = vmatmul.mubr.msk.bf16.vlgmr.msra.gmra.mrb[0].mxu1 %vm291_vm1, %v274_v38  ;;  %v290_v48 = vsel %vm254_vm2, %v285_v44, %v289_v45 }
  0x1b   : > { %854 = vmatpush3.bf16.msra.mxu1 %v939_v1  ;;  %829 = vmatprep.mubr.msk.bf16.mxu1 %vm291_vm1, %v282_v43 }
  0x1d   : > { %609 = vperm.xlu1 %886, %v571_v41  }
  0x1e   : > { %604 = vperm.xlu0 %885, %v570_v42  }
  0x1f   : > { %846 = vmatmul.mubr.msk.bf16.vlgmr.msra.gmra.mrb[0].mxu0 %vm291_vm1, %v456_v46 }
  0x20   : > { %849 = vmatprep.mubr.msk.bf16.mxu0 %vm291_vm1, %v458_v47 }
  0x22   : > { %830 = vmatmul.mubr.msk.bf16.gmra.mrb[4].mxu1 %vm291_vm1, %v290_v48 }
  0x23   : > { %839 = vmatprep.mubr.msk.bf16.mxu1 %vm291_vm1, %v889_v16 }
  0x27   : > { %850 = vmatmul.mubr.msk.bf16.gmra.mrb[4].mxu0 %vm291_vm1, %v460_v50 }
  0x2e   : > { %840 = vmatmul.mubr.msk.bf16.vlgmr.msra.gmra.mrb[4].mxu1 %vm291_vm1, %v890_v19 }
  0x90   : > { %v585_v55 = vpop.permute.xlu1 %584  ;;  %v575_v58 = vpop.permute.xlu0 %574 }
  0x94   : > { %v590_v7 = vpop.permute.xlu1 %589  ;;  %v580_v9 = vpop.permute.xlu0 %579 }
  0x98   : > { %v600_v23 = vpop.permute.xlu1 %599 }
  0x99   : > { %v595_v22 = vpop.permute.xlu0 %594 }
  0x9c   : > { %v610_v37 = vpop.permute.xlu1 %609 }
  0x9d   : > { %v605_v32 = vpop.permute.xlu0 %604 }
  0xed   : > { %v827_v51 = vpop.f32.mrb[0].mxu1 }
  0xee   : > { %v342_v52 = vpop.f32.mrb[1].mxu1 }
  0xef   : > { %v828_v53 = vpop.f32.mrb[2].mxu1 }
  0xf0   : > { %v345_v54 = vpop.f32.mrb[3].mxu1 }
  0xf2   : > { %v847_v56 = vpop.f32.mrb[0].mxu0 }
  0xf3   : > { %v855_v59 = vadd.f32 %v847_v56, %v827_v51  ;;  %v510_v60 = vpop.f32.mrb[1].mxu0 }
  0xf4   : > { %v856_v61 = vadd.f32 %v510_v60, %v342_v52  ;;  %v848_v62 = vpop.f32.mrb[2].mxu0 }
  0xf5   : > { %v558_v63 = vadd.f32 %v855_v59, %v764_v57  ;;  %v857_v0 = vadd.f32 %v848_v62, %v828_v53  ;;  %v513_v1 = vpop.f32.mrb[3].mxu0 }
  0xf6   : > { %v556_v2 = vadd.f32 %v856_v61, %v764_v57  ;;  %v858_v3 = vadd.f32 %v513_v1, %v345_v54 }
  0xf7   : > { %v614_v4 = vmul.f32 %v585_v55, %v558_v63  ;;  %v559_v5 = vadd.f32 %v857_v0, %v764_v57 }
  0xf8   : > { %v612_v6 = vmul.f32 %v575_v58, %v556_v2  ;;  %v557_v8 = vadd.f32 %v858_v3, %v764_v57 }
  0xf9   : > { %v615_v10 = vmul.f32 %v590_v7, %v559_v5  ;;  %v622_v13 = vmax.f32 %v614_v4, 0.0 }
  0xfa   : > { %v613_v11 = vmul.f32 %v580_v9, %v557_v8  ;;  %v851_v12 = vpop.f32.mrb[4].mxu0  ;;  %v620_v16 = vmax.f32 %v612_v6, 0.0 }
  0xfb   : > { %v623_v14 = vmax.f32 %v615_v10, 0.0  ;;  %v526_v15 = vpop.f32.mrb[5].mxu0 }
  0xfc   : > { %v621_v17 = vmax.f32 %v613_v11, 0.0  ;;  %v852_v18 = vpop.f32.mrb[6].mxu0 }
  0xfd   : > { %v793_v19 = vpack.c.bf16 %v623_v14, %v622_v13  ;;  %v529_v20 = vpop.f32.mrb[7].mxu0 }
  0xfe   : > { %v788_v21 = vpack.c.bf16 %v621_v17, %v620_v16 }
  0xff   : > { %805 = vst [vmem:[%s1008_s10 + $0x8] sm:$0xff] %v793_v19  }
 0x100   : > { %789 = vst [vmem:[%s1008_s10] sm:$0xff] %v788_v21  }
 0x101   : > { %v841_v24 = vpop.f32.mrb[4].mxu1 }
 0x102   : > { %v859_v25 = vadd.f32 %v851_v12, %v841_v24  ;;  %v434_v26 = vpop.f32.mrb[5].mxu1 }
 0x103   : > { %v860_v27 = vadd.f32 %v526_v15, %v434_v26  ;;  %v842_v28 = vpop.f32.mrb[6].mxu1 }
 0x104   : > { %v562_v29 = vadd.f32 %v859_v25, %v764_v57  ;;  %v861_v30 = vadd.f32 %v852_v18, %v842_v28  ;;  %v437_v31 = vpop.f32.mrb[7].mxu1 }
 0x105   : > { %v560_v33 = vadd.f32 %v860_v27, %v764_v57  ;;  %v862_v34 = vadd.f32 %v529_v20, %v437_v31 }
 0x106   : > { %v618_v35 = vmul.f32 %v605_v32, %v562_v29  ;;  %v563_v36 = vadd.f32 %v861_v30, %v764_v57 }
 0x107   : > { %v616_v38 = vmul.f32 %v595_v22, %v560_v33  ;;  %v561_v39 = vadd.f32 %v862_v34, %v764_v57 }
 0x108   : > { %v619_v40 = vmul.f32 %v610_v37, %v563_v36  ;;  %v626_v42 = vmax.f32 %v618_v35, 0.0 }
 0x109   : > { %v617_v41 = vmul.f32 %v600_v23, %v561_v39  ;;  %v624_v44 = vmax.f32 %v616_v38, 0.0 }
 0x10a   : > { %v627_v43 = vmax.f32 %v619_v40, 0.0 }
 0x10b   : > { %v625_v45 = vmax.f32 %v617_v41, 0.0 }
 0x10c   : > { %v803_v46 = vpack.c.bf16 %v627_v43, %v626_v42 }
 0x10d   : > { %v798_v47 = vpack.c.bf16 %v625_v45, %v624_v44 }
 0x10e   : > { %807 = vst [vmem:[%s1008_s10 + $0x18] sm:$0xff] %v803_v46  }
 0x10f   : > { %806 = vst [vmem:[%s1008_s10 + $0x10] sm:$0xff] %v798_v47  }
 0x110 PF: > { %s14_s15 = sadd.s32 1, %s898_s15  }
 0x111   : > { %p11_p4 = scmp.ge.s32.totalorder %s14_s15, 4  }
 0x113   :  { %13 = sbr.rel (!%p11_p4) target bundleno = 1 (0x1), region = 71 }

// kernel: conv_backbone_forward.10
= control target key start
LH: loop header
LB: loop body
LE: loop exit
PB: predicated region body
PF: predicated region fallthrough
CT: control target
= control target key end

     0   :  { %s1223_s15 = smov 0   ;;  %s1376_s0 = inlined_call_operand.vmem [shape: bf16[2,66,128], index: 0, kind: input, shape index: {}]   ;;  %s1377_s1 = inlined_call_operand.vmem [shape: bf16[3,128,128], index: 1, kind: input, shape index: {}]   ;;  %s1378_s2 = inlined_call_operand.vmem [shape: f32[1,128], index: 2, kind: input, shape index: {}]   ;;  %s1379_s3 = inlined_call_operand.vmem [shape: f32[2,64,1], index: 3, kind: input, shape index: {}]   ;;  %s1380_s4 = inlined_call_operand.vmem [shape: bf16[2,64,128], index: 4, kind: output, shape index: {}]  }
   0x1 LB: > { %s893_s16 = sadd.s32 4294967295, %s1195_s15   ;;  %p897_p0 = scmp.ge.s32.totalorder %s1195_s15, 1  ;;  %s1195_s15 = sphi %s1223_s15, %s14_s15  }
   0x2   : > { %p172_p1 = scmp.lt.s32.totalorder %s1195_s15, 3 }
   0x4   : > { %p173_p2 = pnand %p897_p0, %p172_p1 }
   0x5   : > { %v1160_v0 = vld [vmem:[%s1377_s1 + $0x40] sm:$0xff] (!%p173_p2)   ;;  %v1162_v2 = vld [vmem:[%s1377_s1 + $0x48] sm:$0xff] (!%p173_p2)   ;;  %p203_p3 = scmp.lt.s32.totalorder (!%p173_p2), %s893_s16, 1  ;;  %v1164_v4 = vld [vmem:[%s1377_s1 + $0x50] sm:$0xff] (!%p173_p2)   ;;  %v1197_v6 = vmov (!%p173_p2), 0   ;;  %vm572_vm1 = vcmask (!%p173_p2), 1046528  }
   0x6   : > { %176 = sbr.rel (%p173_p2) target bundleno = 297 (0x129), region = 36  ;;  %v1161_v1 = vld [vmem:[%s1377_s1] sm:$0xff] (!%p173_p2)   ;;  %1044 = vmatprep.subr.bf16.mxu1 (!%p173_p2), %v1160_v0  ;;  %v1163_v3 = vld [vmem:[%s1377_s1 + $0x8] sm:$0xff] (!%p173_p2)   ;;  %v1165_v5 = vld [vmem:[%s1377_s1 + $0x10] sm:$0xff] (!%p173_p2)   ;;  %1159 = vset.pattern.permute.xlu1 (!%p173_p2), %v1197_v6  ;;  %vm284_vm0 = vsmask.f32 (!%p173_p2), 7424 }
   0x7   : > { %1068 = vmatprep.subr.bf16.mxu0 (!%p173_p2), %v1161_v1  ;;  %1045 = vmatpush3.bf16.msra.mxu1 (!%p173_p2), %v1160_v0  ;;  %v1166_v7 = vld [vmem:[%s1377_s1 + $0x58] sm:$0xff] (!%p173_p2)   ;;  %v1168_v9 = vld [vmem:[%s1377_s1 + $0x60] sm:$0xff] (!%p173_p2)   ;;  %v1170_v11 = vld [vmem:[%s1377_s1 + $0x68] sm:$0xff] (!%p173_p2)  }
   0x8   : > { %1069 = vmatpush3.bf16.msra.mxu0 (!%p173_p2), %v1161_v1  ;;  %1046 = vmatprep.subr.bf16.mxu1 (!%p173_p2), %v1162_v2  ;;  %v1167_v8 = vld [vmem:[%s1377_s1 + $0x18] sm:$0xff] (!%p173_p2)   ;;  %v1169_v10 = vld [vmem:[%s1377_s1 + $0x20] sm:$0xff] (!%p173_p2)   ;;  %v1171_v12 = vld [vmem:[%s1377_s1 + $0x28] sm:$0xff] (!%p173_p2)  }
   0x9   : > { %1070 = vmatprep.subr.bf16.mxu0 (!%p173_p2), %v1163_v3  ;;  %1158 = vset.pattern.permute.xlu0 (!%p173_p2), %v1197_v6  ;;  %v1172_v16 = vld [vmem:[%s1377_s1 + $0x70] sm:$0xff] (!%p173_p2)   ;;  %v1174_v23 = vld [vmem:[%s1377_s1 + $0x78] sm:$0xff] (!%p173_p2)   ;;  %v1179_v33 = vld [vmem:[%s1377_s1 + $0x80] sm:$0xff] (!%p173_p2)  }
   0xa   : > { %v1173_v20 = vld [vmem:[%s1377_s1 + $0x30] sm:$0xff] (!%p173_p2)   ;;  %v1175_v27 = vld [vmem:[%s1377_s1 + $0x38] sm:$0xff] (!%p173_p2)   ;;  %v1180_v43 = vld [vmem:[%s1377_s1 + $0x88] sm:$0xff] (!%p173_p2)  }
   0xb   : > { %1047 = vmatpush3.bf16.msra.mxu1 (!%p173_p2), %v1162_v2  ;;  %v1181_v48 = vld [vmem:[%s1377_s1 + $0x90] sm:$0xff] (!%p173_p2)   ;;  %v1182_v56 = vld [vmem:[%s1377_s1 + $0x98] sm:$0xff] (!%p173_p2)   ;;  %v1183_v60 = vld [vmem:[%s1377_s1 + $0xa0] sm:$0xff] (!%p173_p2)  }
   0xc   : > { %1071 = vmatpush3.bf16.msra.mxu0 (!%p173_p2), %v1163_v3  ;;  %1048 = vmatprep.subr.bf16.mxu1 (!%p173_p2), %v1164_v4  ;;  %v1185_v63 = vld [vmem:[%s1377_s1 + $0xa8] sm:$0xff] (!%p173_p2)   ;;  %v1187_v0 = vld [vmem:[%s1377_s1 + $0xb0] sm:$0xff] (!%p173_p2)   ;;  %v1188_v1 = vld [vmem:[%s1377_s1 + $0xb8] sm:$0xff] (!%p173_p2)  }
   0xd   : > { %s1382_s16 = smov (!%p203_p3, %s893_s16), 1  ;;  %1072 = vmatprep.subr.bf16.mxu0 %v1165_v5 }
   0xe   : > { %s1148_s7 = smul.u32 36, %s1382_s16  ;;  %s975_s29 = sshll.u32 %s1382_s16, 6 }
   0xf   : > { %1049 = vmatpush3.bf16.msra.mxu1 %v1164_v4  ;;  %s1318_s8 = scalar_lea.vmem %s1379_s3, %s975_s29  ;;  %s976_s27 = sshll.u32 %s1382_s16, 5 }
  0x10   : > { %1073 = vmatpush3.bf16.msra.mxu0 %v1165_v5  ;;  %1050 = vmatprep.subr.bf16.mxu1 %v1166_v7  ;;  %s1270_s18 = scalar_lea.vmem %s1376_s0, %s1148_s7  ;;  %v724_v38 = vld [vmem:[%s1318_s8 + $0x10] sm:$0xff]  ;;  %v722_v39 = vld [vmem:[%s1318_s8] sm:$0xff]  ;;  %v725_v47 = vld [vmem:[%s1318_s8 + $0x18] sm:$0xff]  ;;  %s217_s30 = scalar_lea.vmem %s1380_s4, %s976_s27 }
  0x11   : > { %1074 = vmatprep.subr.bf16.mxu0 %v1167_v8  ;;  %v1276_v13 = vld [vmem:[%s1270_s18] sm:$0xff]   ;;  %v1279_v14 = vld [vmem:[%s1270_s18 + $0x8] sm:$0xff]   ;;  %v1282_v15 = vld [vmem:[%s1270_s18 + $0x10] sm:$0xff]   ;;  %742 = vperm.xlu1 %1159, %v724_v38  }
  0x12   : > { %v286_v17 = vshrl.u32 %v1276_v13, 16  ;;  %v288_v18 = vshll.u32 %v1276_v13, 16  ;;  %v293_v19 = vshll.u32 %v1279_v14, 16  ;;  %1084 = vmatprep.mubr.bf16.mxu0 %v1276_v13  ;;  %v297_v24 = vshrl.u32 %v1279_v14, 16  ;;  %v1305_v29 = vld [vmem:[%s1270_s18 + $0x18] sm:$0xff]   ;;  %732 = vperm.xlu0 %1158, %v722_v39   ;;  %v723_v49 = vld [vmem:[%s1318_s8 + $0x8] sm:$0xff] }
  0x13   : > { %1051 = vmatpush3.bf16.msra.mxu1 %v1166_v7  ;;  %v301_v25 = vshll.u32 %v1282_v15, 16  ;;  %v305_v30 = vshrl.u32 %v1282_v15, 16  ;;  %v309_v34 = vshll.u32 %v1305_v29, 16  ;;  %v1313_v35 = vld [vmem:[%s1270_s18 + $0x20] ss:$0 sps:$4 sm:$0x11]  }
  0x14   : > { %1075 = vmatpush3.bf16.msra.mxu0 %v1167_v8  ;;  %1052 = vmatprep.subr.bf16.mxu1 %v1168_v9  ;;  %v290_v21 = vrot.slane %v288_v18, 1  ;;  %v295_v22 = vrot.slane %v293_v19, 1  ;;  %v313_v41 = vshrl.u32 %v1305_v29, 16  ;;  %v317_v42 = vshll.u32 %v1313_v35, 16  ;;  %v727_v55 = vld [vmem:[%s1318_s8 + $0x28] sm:$0xff]  ;;  %v726_v59 = vld [vmem:[%s1318_s8 + $0x20] sm:$0xff] }
  0x15   : > { %1076 = vmatprep.subr.bf16.mxu0 %v1169_v10  ;;  %v303_v32 = vrot.slane %v301_v25, 1  ;;  %v311_v37 = vrot.slane %v309_v34, 1  ;;  %v573_v50 = vrot.slane %v1276_v13, 1  ;;  %v574_v51 = vrot.slane %v1279_v14, 1  ;;  %747 = vperm.xlu1 %1159, %v725_v47   ;;  %v729_v61 = vld [vmem:[%s1318_s8 + $0x38] sm:$0xff]  ;;  %v728_v62 = vld [vmem:[%s1318_s8 + $0x30] sm:$0xff] }
  0x16   : > { %v291_v26 = vor.u32 %v290_v21, %v286_v17  ;;  %v299_v31 = vor.u32 %v297_v24, %v295_v22  ;;  %v319_v46 = vrot.slane %v317_v42, 1  ;;  %v576_v53 = vrot.slane %v1282_v15, 1  ;;  %737 = vperm.xlu0 %1158, %v723_v49  }
  0x17   : > { %1053 = vmatpush3.bf16.msra.mxu1 %v1168_v9  ;;  %v307_v36 = vor.u32 %v305_v30, %v303_v32  ;;  %v315_v45 = vor.u32 %v313_v41, %v311_v37  ;;  %v578_v54 = vrot.slane %v1305_v29, 1  ;;  %v575_v57 = vsel %vm572_vm1, %v573_v50, %v574_v51 }
  0x18   : > { %1077 = vmatpush3.bf16.msra.mxu0 %v1169_v10  ;;  %1054 = vmatprep.subr.bf16.mxu1 %v1170_v11  ;;  %v296_v28 = vsel %vm284_vm0, %v291_v26, %v295_v22  ;;  %v304_v40 = vsel %vm284_vm0, %v299_v31, %v303_v32  ;;  %v580_v2 = vrot.slane %v1313_v35, 1  ;;  %v577_v4 = vsel %vm572_vm1, %v574_v51, %v576_v53 }
  0x19   : > { %1078 = vmatprep.subr.bf16.mxu0 %v1171_v12  ;;  %1060 = vmatprep.mubr.bf16.mxu1 %v296_v28  ;;  %v312_v44 = vsel %vm284_vm0, %v307_v36, %v311_v37  ;;  %v320_v52 = vsel %vm284_vm0, %v315_v45, %v319_v46  ;;  %v579_v58 = vsel %vm572_vm1, %v576_v53, %v578_v54 }
  0x1a   : > { %757 = vperm.xlu1 %1159, %v727_v55   ;;  %752 = vperm.xlu0 %1158, %v726_v59   ;;  %v581_v3 = vsel %vm572_vm1, %v578_v54, %v580_v2 }
  0x1b   : > { %1055 = vmatpush3.bf16.msra.mxu1 %v1170_v11 }
  0x1c   : > { %1079 = vmatpush3.bf16.msra.mxu0 %v1171_v12  ;;  %1056 = vmatprep.subr.bf16.mxu1 %v1172_v16 }
  0x1d   : > { %1080 = vmatprep.subr.bf16.mxu0 %v1173_v20 }
  0x1e   : > { %767 = vperm.xlu1 %1159, %v729_v61   ;;  %762 = vperm.xlu0 %1158, %v728_v62  }
  0x1f   : > { %1057 = vmatpush3.bf16.msra.mxu1 %v1172_v16 }
  0x20   : > { %1081 = vmatpush3.bf16.msra.mxu0 %v1173_v20  ;;  %1058 = vmatprep.subr.bf16.mxu1 %v1174_v23 }
  0x21   : > { %1082 = vmatprep.subr.bf16.mxu0 %v1175_v27 }
  0x23   : > { %1059 = vmatpush3.bf16.msra.mxu1 %v1174_v23 }
  0x24   : > { %1083 = vmatpush3.bf16.msra.mxu0 %v1175_v27  ;;  %1116 = vmatprep.subr.bf16.mxu1 %v1179_v33  ;;  %v964_v27 = vld [vmem:[%s1378_s2] ss:$0 sm:$0xff] }
  0x25   : > { %1092 = vmatprep.subr.bf16.mxu0 %v1179_v33 }
  0x26   : > { %1061 = vmatmul.mubr.bf16.vlgmr.msra.gmra.mrb[0].mxu1 %v304_v40 }
  0x27   : > { %1085 = vmatmul.mubr.bf16.vlgmr.msra.gmra.mrb[0].mxu0 %v1279_v14  ;;  %1124 = vmatpush3.bf16.msra.mxu1 %v1179_v33 }
  0x28   : > { %1093 = vmatpush3.bf16.msra.mxu0 %v1179_v33  ;;  %1117 = vmatprep.subr.bf16.mxu1 %v1180_v43 }
  0x29   : > { %1094 = vmatprep.subr.bf16.mxu0 %v1180_v43  ;;  %1064 = vmatprep.mubr.bf16.mxu1 %v312_v44 }
  0x2a   : > { %1088 = vmatprep.mubr.bf16.mxu0 %v1282_v15 }
  0x2b   : > { %1125 = vmatpush3.bf16.msra.mxu1 %v1180_v43 }
  0x2c   : > { %1095 = vmatpush3.bf16.msra.mxu0 %v1180_v43  ;;  %1118 = vmatprep.subr.bf16.mxu1 %v1181_v48 }
  0x2d   : > { %1096 = vmatprep.subr.bf16.mxu0 %v1181_v48 }
  0x2e   : > { %1065 = vmatmul.mubr.bf16.gmra.mrb[4].mxu1 %v320_v52 }
  0x2f   : > { %1126 = vmatpush3.bf16.msra.mxu1 %v1181_v48  ;;  %1089 = vmatmul.mubr.bf16.gmra.mrb[4].mxu0 %v1305_v29 }
  0x30   : > { %1097 = vmatpush3.bf16.msra.mxu0 %v1181_v48  ;;  %1119 = vmatprep.subr.bf16.mxu1 %v1182_v56 }
  0x31   : > { %1098 = vmatprep.subr.bf16.mxu0 %v1182_v56  ;;  %1108 = vmatprep.mubr.bf16.mxu0 %v575_v57 }
  0x32   : > { %1112 = vmatprep.mubr.bf16.mxu1 %v579_v58 }
  0x33   : > { %1127 = vmatpush3.bf16.msra.mxu1 %v1182_v56 }
  0x34   : > { %1099 = vmatpush3.bf16.msra.mxu0 %v1182_v56  ;;  %1120 = vmatprep.subr.bf16.mxu1 %v1183_v60 }
  0x35   : > { %1100 = vmatprep.subr.bf16.mxu0 %v1183_v60 }
  0x37   : > { %1128 = vmatpush3.bf16.msra.mxu1 %v1183_v60 }
  0x38   : > { %1101 = vmatpush3.bf16.msra.mxu0 %v1183_v60  ;;  %1121 = vmatprep.subr.bf16.mxu1 %v1185_v63 }
  0x39   : > { %1102 = vmatprep.subr.bf16.mxu0 %v1185_v63 }
  0x3b   : > { %1129 = vmatpush3.bf16.msra.mxu1 %v1185_v63 }
  0x3c   : > { %1103 = vmatpush3.bf16.msra.mxu0 %v1185_v63  ;;  %1122 = vmatprep.subr.bf16.mxu1 %v1187_v0 }
  0x3d   : > { %1104 = vmatprep.subr.bf16.mxu0 %v1187_v0 }
  0x3f   : > { %1130 = vmatpush3.bf16.msra.mxu1 %v1187_v0 }
  0x40   : > { %1105 = vmatpush3.bf16.msra.mxu0 %v1187_v0  ;;  %1123 = vmatprep.subr.bf16.mxu1 %v1188_v1 }
  0x41   : > { %1106 = vmatprep.subr.bf16.mxu0 %v1188_v1 }
  0x43   : > { %1131 = vmatpush3.bf16.msra.mxu1 %v1188_v1 }
  0x44   : > { %1107 = vmatpush3.bf16.msra.mxu0 %v1188_v1 }
  0x46   : > { %1113 = vmatmul.mubr.bf16.vlgmr.msra.gmra.mrb[8].mxu1 %v581_v3 }
  0x47   : > { %1109 = vmatmul.mubr.bf16.vlgmr.msra.gmra.mrb[0].mxu0 %v577_v4 }
  0x90   : > { %v743_v22 = vpop.permute.xlu1 %742 }
  0x91   : > { %v733_v21 = vpop.permute.xlu0 %732 }
  0x94   : > { %v748_v24 = vpop.permute.xlu1 %747 }
  0x95   : > { %v738_v23 = vpop.permute.xlu0 %737 }
  0x99   : > { %v753_v25 = vpop.permute.xlu0 %752  ;;  %v758_v26 = vpop.permute.xlu1 %757 }
  0x9d   : > { %v763_v41 = vpop.permute.xlu0 %762  ;;  %v768_v51 = vpop.permute.xlu1 %767 }
  0xf9   : > { %v1062_v5 = vpop.f32.mrb[0].mxu1 }
  0xfa   : > { %v407_v6 = vpop.f32.mrb[1].mxu1 }
  0xfb   : > { %v1063_v7 = vpop.f32.mrb[2].mxu1 }
  0xfc   : > { %v410_v8 = vpop.f32.mrb[3].mxu1 }
 0x101   : > { %v1066_v9 = vpop.f32.mrb[4].mxu1 }
 0x102   : > { %v1090_v10 = vpop.f32.mrb[4].mxu0  ;;  %v423_v11 = vpop.f32.mrb[5].mxu1 }
 0x103   : > { %v549_v12 = vadd.f32 %v1090_v10, %v1066_v9  ;;  %v540_v13 = vpop.f32.mrb[5].mxu0  ;;  %v1067_v14 = vpop.f32.mrb[6].mxu1 }
 0x104   : > { %v541_v15 = vadd.f32 %v540_v13, %v423_v11  ;;  %v1091_v16 = vpop.f32.mrb[6].mxu0  ;;  %v426_v17 = vpop.f32.mrb[7].mxu1 }
 0x105   : > { %v552_v18 = vadd.f32 %v1091_v16, %v1067_v14  ;;  %v543_v19 = vpop.f32.mrb[7].mxu0 }
 0x106   : > { %v544_v20 = vadd.f32 %v543_v19, %v426_v17 }
 0x119   : > { %v1114_v28 = vpop.f32.mrb[8].mxu1 }
 0x11a   : > { %v1110_v29 = vpop.f32.mrb[0].mxu0  ;;  %v705_v30 = vadd.f32 %v1114_v28, %v549_v12  ;;  %v684_v31 = vpop.f32.mrb[9].mxu1 }
 0x11b   : > { %v1132_v32 = vadd.f32 %v1110_v29, %v1062_v5  ;;  %v668_v33 = vpop.f32.mrb[1].mxu0  ;;  %v703_v34 = vadd.f32 %v684_v31, %v541_v15  ;;  %v1115_v35 = vpop.f32.mrb[10].mxu1 }
 0x11c   : > { %v720_v36 = vadd.f32 %v964_v27, %v705_v30  ;;  %v1133_v37 = vadd.f32 %v668_v33, %v407_v6  ;;  %v1111_v38 = vpop.f32.mrb[2].mxu0  ;;  %v706_v39 = vadd.f32 %v1115_v35, %v552_v18  ;;  %v687_v40 = vpop.f32.mrb[11].mxu1 }
 0x11d   : > { %v716_v42 = vadd.f32 %v1132_v32, %v964_v27  ;;  %v718_v43 = vadd.f32 %v964_v27, %v703_v34  ;;  %v1134_v44 = vadd.f32 %v1111_v38, %v1063_v7  ;;  %v671_v45 = vpop.f32.mrb[3].mxu0  ;;  %v704_v46 = vadd.f32 %v687_v40, %v544_v20 }
 0x11e   : > { %v776_v47 = vmul.f32 %v763_v41, %v720_v36  ;;  %v714_v48 = vadd.f32 %v1133_v37, %v964_v27  ;;  %v721_v49 = vadd.f32 %v964_v27, %v706_v39  ;;  %v1135_v50 = vadd.f32 %v671_v45, %v410_v8 }
 0x11f   : > { %v772_v52 = vmul.f32 %v743_v22, %v716_v42  ;;  %v774_v53 = vmul.f32 %v753_v25, %v718_v43  ;;  %v717_v54 = vadd.f32 %v1134_v44, %v964_v27  ;;  %v719_v55 = vadd.f32 %v964_v27, %v704_v46 }
 0x120   : > { %v770_v56 = vmul.f32 %v733_v21, %v714_v48  ;;  %v777_v57 = vmul.f32 %v768_v51, %v721_v49  ;;  %v715_v58 = vadd.f32 %v1135_v50, %v964_v27  ;;  %v784_v61 = vmax.f32 %v776_v47, 0.0 }
 0x121   : > { %v773_v59 = vmul.f32 %v748_v24, %v717_v54  ;;  %v775_v60 = vmul.f32 %v758_v26, %v719_v55  ;;  %v780_v0 = vmax.f32 %v772_v52, 0.0  ;;  %v782_v1 = vmax.f32 %v774_v53, 0.0 }
 0x122   : > { %v785_v62 = vmax.f32 %v777_v57, 0.0  ;;  %v771_v63 = vmul.f32 %v738_v23, %v715_v58  ;;  %v778_v4 = vmax.f32 %v770_v56, 0.0 }
 0x123   : > { %v781_v2 = vmax.f32 %v773_v59, 0.0  ;;  %v783_v3 = vmax.f32 %v775_v60, 0.0 }
 0x124   : > { %v1003_v5 = vpack.c.bf16 %v785_v62, %v784_v61  ;;  %v779_v6 = vmax.f32 %v771_v63, 0.0 }
 0x125   : > { %v993_v7 = vpack.c.bf16 %v781_v2, %v780_v0  ;;  %v998_v8 = vpack.c.bf16 %v783_v3, %v782_v1 }
 0x126   : > { %1007 = vst [vmem:[%s217_s30 + $0x18] sm:$0xff] %v1003_v5   ;;  %v988_v9 = vpack.c.bf16 %v779_v6, %v778_v4 }
 0x127   : > { %1005 = vst [vmem:[%s217_s30 + $0x8] sm:$0xff] %v993_v7   ;;  %1006 = vst [vmem:[%s217_s30 + $0x10] sm:$0xff] %v998_v8  }
 0x128   : > { %989 = vst [vmem:[%s217_s30] sm:$0xff] %v988_v9  }
 0x129 PF: > { %s14_s15 = sadd.s32 1, %s1195_s15  }
 0x12a   : > { %p11_p4 = scmp.ge.s32.totalorder %s14_s15, 4  }
 0x12c   :  { %13 = sbr.rel (!%p11_p4) target bundleno = 1 (0x1), region = 71 }

// kernel: conv_backbone_forward.11
= control target key start
LH: loop header
LB: loop body
LE: loop exit
PB: predicated region body
PF: predicated region fallthrough
CT: control target
= control target key end

     0   :  { %s2723_s21 = smov 0   ;;  %s3375_s0 = inlined_call_operand.vmem [shape: bf16[2,66,128], index: 0, kind: input, shape index: {}]   ;;  %s3376_s1 = inlined_call_operand.vmem [shape: bf16[3,128,256], index: 1, kind: input, shape index: {}]   ;;  %s3377_s2 = inlined_call_operand.vmem [shape: f32[1,256], index: 2, kind: input, shape index: {}]   ;;  %s3378_s3 = inlined_call_operand.vmem [shape: bf16[3,256,128], index: 3, kind: input, shape index: {}]   ;;  %s3379_s4 = inlined_call_operand.vmem [shape: f32[1,128], index: 4, kind: input, shape index: {}]   ;;  %s3380_s5 = inlined_call_operand.vmem [shape: f32[2,64,1], index: 5, kind: input, shape index: {}]   ;;  %s3381_s6 = inlined_call_operand.vmem [shape: bf16[2,64,128], index: 6, kind: output, shape index: {}]  }
   0x1 LB: > { %s2100_s22 = sadd.s32 4294967295, %s2685_s21   ;;  %p2104_p0 = scmp.ge.s32.totalorder %s2685_s21, 1  ;;  %s2685_s21 = sphi %s2723_s21, %s16_s21  }
   0x2   : > { %p222_p1 = scmp.lt.s32.totalorder %s2685_s21, 3 }
   0x4   : > { %p223_p2 = pnand %p2104_p0, %p222_p1 }
   0x5   : > { %v2543_v0 = vld [vmem:[%s3376_s1 + $0x84] ss:$8 sps:$4 sm:$0xff] (!%p223_p2)   ;;  %p257_p3 = scmp.lt.s32.totalorder (!%p223_p2), %s2100_s22, 1  ;;  %v2545_v1 = vld [vmem:[%s3376_s1 + $0x80] ss:$8 sps:$4 sm:$0xff] (!%p223_p2)   ;;  %v2687_v2 = vmov (!%p223_p2), 0  }
   0x6   : > { %226 = sbr.rel (%p223_p2) target bundleno = 672 (0x2a0), region = 44  ;;  %499 = vmatprep.mubr.bf16.mxu0 (!%p223_p2), %v2687_v2  ;;  %2541 = vset.pattern.permute.xlu0 (!%p223_p2), %v2687_v2  ;;  %v2546_v3 = vld [vmem:[%s3376_s1 + $0x94] ss:$8 sps:$4 sm:$0xff] (!%p223_p2)   ;;  %v2548_v4 = vld [vmem:[%s3376_s1 + $0x90] ss:$8 sps:$4 sm:$0xff] (!%p223_p2)   ;;  %vm714_vm0 = vcmask (!%p223_p2), 1046528  }
   0x7   : > { %467 = vmatprep.subr.bf16.mxu0 (!%p223_p2), %v2543_v0  ;;  %2542 = vset.pattern.permute.xlu1 (!%p223_p2), %v2687_v2  ;;  %v2549_v5 = vld [vmem:[%s3376_s1 + $0xa4] ss:$8 sps:$4 sm:$0xff] (!%p223_p2)   ;;  %v2551_v6 = vld [vmem:[%s3376_s1 + $0xa0] ss:$8 sps:$4 sm:$0xff] (!%p223_p2)   ;;  %v2552_v7 = vld [vmem:[%s3376_s1 + $0xb4] ss:$8 sps:$4 sm:$0xff] (!%p223_p2)  }
   0x8   : > { %468 = vmatpush1.bf16.msra.mxu0 (!%p223_p2), %v2545_v1  ;;  %v2554_v8 = vld [vmem:[%s3376_s1 + $0xb0] ss:$8 sps:$4 sm:$0xff] (!%p223_p2)   ;;  %v2555_v9 = vld [vmem:[%s3376_s1 + $0xc4] ss:$8 sps:$4 sm:$0xff] (!%p223_p2)   ;;  %v2557_v11 = vld [vmem:[%s3376_s1 + $0xc0] ss:$8 sps:$4 sm:$0xff] (!%p223_p2)  }
   0x9   : > { %469 = vmatprep.subr.bf16.mxu0 (!%p223_p2), %v2546_v3  ;;  %v2558_v13 = vld [vmem:[%s3376_s1 + $0xd4] ss:$8 sps:$4 sm:$0xff] (!%p223_p2)   ;;  %v2560_v15 = vld [vmem:[%s3376_s1 + $0xd0] ss:$8 sps:$4 sm:$0xff] (!%p223_p2)   ;;  %v2561_v17 = vld [vmem:[%s3376_s1 + $0xe4] ss:$8 sps:$4 sm:$0xff] (!%p223_p2)  }
   0xa   : > { %v2563_v19 = vld [vmem:[%s3376_s1 + $0xe0] ss:$8 sps:$4 sm:$0xff] (!%p223_p2)   ;;  %v2564_v20 = vld [vmem:[%s3376_s1 + $0xf4] ss:$8 sps:$4 sm:$0xff] (!%p223_p2)   ;;  %v2566_v28 = vld [vmem:[%s3376_s1 + $0xf0] ss:$8 sps:$4 sm:$0xff] (!%p223_p2)  }
   0xb   : > { %vm346_vm1 = vsmask.f32 (!%p223_p2), 7424  ;;  %v2571_v31 = vld [vmem:[%s3376_s1 + $0x4] ss:$8 sps:$4 sm:$0xff] (!%p223_p2)   ;;  %v2569_v33 = vld [vmem:[%s3376_s1] ss:$8 sps:$4 sm:$0xff] (!%p223_p2)  }
   0xc   : > { %470 = vmatpush1.bf16.msra.mxu0 (!%p223_p2), %v2548_v4  ;;  %v2574_v38 = vld [vmem:[%s3376_s1 + $0x14] ss:$8 sps:$4 sm:$0xff] (!%p223_p2)   ;;  %v2572_v41 = vld [vmem:[%s3376_s1 + $0x10] ss:$8 sps:$4 sm:$0xff] (!%p223_p2)   ;;  %v2578_v46 = vld [vmem:[%s3376_s1 + $0x24] ss:$8 sps:$4 sm:$0xff] (!%p223_p2)  }
   0xd   : > { %s3393_s22 = smov (!%p257_p3, %s2100_s22), 1  ;;  %471 = vmatprep.subr.bf16.mxu0 %v2549_v5  ;;  %v2576_v52 = vld [vmem:[%s3376_s1 + $0x20] ss:$8 sps:$4 sm:$0xff]   ;;  %v2581_v54 = vld [vmem:[%s3376_s1 + $0x34] ss:$8 sps:$4 sm:$0xff]   ;;  %vm997_vm2 = vcmask 1040384  }
   0xe   : > { %s2531_s9 = smul.u32 36, %s3393_s22  ;;  %s2338_s13 = sshll.u32 %s3393_s22, 6  ;;  %v2579_v57 = vld [vmem:[%s3376_s1 + $0x30] ss:$8 sps:$4 sm:$0xff]   ;;  %v2585_v59 = vld [vmem:[%s3376_s1 + $0x44] ss:$8 sps:$4 sm:$0xff]  }
   0xf   : > { %s2825_s23 = scalar_lea.vmem %s3380_s5, %s2338_s13  ;;  %v2583_v62 = vld [vmem:[%s3376_s1 + $0x40] ss:$8 sps:$4 sm:$0xff]   ;;  %v2588_v63 = vld [vmem:[%s3376_s1 + $0x54] ss:$8 sps:$4 sm:$0xff]   ;;  %v2586_v1 = vld [vmem:[%s3376_s1 + $0x50] ss:$8 sps:$4 sm:$0xff]  }
  0x10   : > { %s2761_s16 = scalar_lea.vmem %s3375_s0, %s2531_s9  ;;  %472 = vmatpush1.bf16.msra.mxu0 %v2551_v6  ;;  %v273_v40 = vld [vmem:[%s2825_s23] sm:$0xff]  ;;  %v275_v43 = vld [vmem:[%s2825_s23 + $0x10] sm:$0xff]  ;;  %v274_v49 = vld [vmem:[%s2825_s23 + $0x8] sm:$0xff]  ;;  %vm998_vm3 = vsmask.f32 256  ;;  %vm1000_vm4 = vcmask 1044484  }
  0x11   : > { %473 = vmatprep.subr.bf16.mxu0 %v2552_v7  ;;  %v2770_v10 = vld [vmem:[%s2761_s16] sm:$0xff]   ;;  %v2776_v12 = vld [vmem:[%s2761_s16 + $0x8] sm:$0xff]   ;;  %v2804_v25 = vld [vmem:[%s2761_s16 + $0x10] sm:$0xff]   ;;  %927 = vperm.xlu0 %2541, %v273_v40   ;;  %vm1001_vm5 = vsmask.f32 4352  ;;  %vm1137_vm14 = vcmask 1043456  }
  0x12   : > { %v715_v14 = vrot.slane %v2770_v10, 1  ;;  %v350_v16 = vshll.u32 %v2770_v10, 16  ;;  %v716_v18 = vrot.slane %v2776_v12, 1  ;;  %v348_v22 = vshrl.u32 %v2770_v10, 16  ;;  %v2807_v26 = vld [vmem:[%s2761_s16 + $0x18] sm:$0xff]   ;;  %937 = vperm.xlu1 %2542, %v275_v43   ;;  %v277_v53 = vld [vmem:[%s2825_s23 + $0x20] sm:$0xff]  ;;  %vm2966_vm6 = vmand %vm997_vm2, %vm998_vm3 }
  0x13   : > { %v355_v24 = vshll.u32 %v2776_v12, 16  ;;  %v289_v27 = vld [vmem:[%s2761_s16 + $0x20] sm:$0x1]  ;;  %v359_v35 = vshrl.u32 %v2776_v12, 16  ;;  %v363_v36 = vshll.u32 %v2804_v25, 16  ;;  %v371_v37 = vshll.u32 %v2807_v26, 16  ;;  %vm2971_vm7 = vmand %vm1000_vm4, %vm1001_vm5 }
  0x14   : > { %474 = vmatpush1.bf16.msra.mxu0 %v2554_v8  ;;  %v2799_v21 = vsel %vm714_vm0, %v715_v14, %v716_v18  ;;  %v352_v23 = vrot.slane %v350_v16, 1  ;;  %v2817_v32 = vcombine.low %v289_v27, %v289_v27  ;;  %v367_v42 = vshrl.u32 %v2804_v25, 16  ;;  %v276_v51 = vld [vmem:[%s2825_s23 + $0x18] sm:$0xff]  ;;  %v278_v56 = vld [vmem:[%s2825_s23 + $0x28] sm:$0xff]  ;;  %v279_v58 = vld [vmem:[%s2825_s23 + $0x30] sm:$0xff]  ;;  %s2339_s13 = sshll.u32 %s3393_s22, 5 }
  0x15   : > { %475 = vmatprep.subr.bf16.mxu0 %v2555_v9  ;;  %v357_v30 = vrot.slane %v355_v24, 1  ;;  %v365_v45 = vrot.slane %v363_v36, 1  ;;  %v373_v47 = vrot.slane %v371_v37, 1  ;;  %v375_v48 = vshrl.u32 %v2807_v26, 16  ;;  %932 = vperm.xlu0 %2541, %v274_v49   ;;  %v280_v61 = vld [vmem:[%s2825_s23 + $0x38] sm:$0xff]  ;;  %vm1003_vm8 = vmor %vm2971_vm7, %vm2966_vm6  ;;  %v2631_v49 = vld [vmem:[%s3378_s3 + $0xa8] sm:$0xff]   ;;  %s3343_s17 = scalar_lea.vmem %s3381_s6, %s2339_s13 }
  0x16   : > { %v353_v29 = vor.u32 %v352_v23, %v348_v22  ;;  %v379_v39 = vshll.u32 %v2817_v32, 16  ;;  %942 = vperm.xlu1 %2542, %v276_v51   ;;  %v2592_v3 = vld [vmem:[%s3376_s1 + $0x64] ss:$8 sps:$4 sm:$0xff]   ;;  %v2590_v5 = vld [vmem:[%s3376_s1 + $0x60] ss:$8 sps:$4 sm:$0xff]   ;;  %vm1139_vm15 = vcmask 1047556  }
  0x17   : > { %v361_v44 = vor.u32 %v359_v35, %v357_v30  ;;  %v369_v60 = vor.u32 %v367_v42, %v365_v45  ;;  %v377_v4 = vor.u32 %v375_v48, %v373_v47  ;;  %v2595_v6 = vld [vmem:[%s3376_s1 + $0x74] ss:$8 sps:$4 sm:$0xff]   ;;  %v2593_v8 = vld [vmem:[%s3376_s1 + $0x70] ss:$8 sps:$4 sm:$0xff]   ;;  %v2598_v9 = vld [vmem:[%s3376_s1 + $0x104] ss:$8 sps:$4 sm:$0xff]  }
  0x18   : > { %476 = vmatpush1.bf16.msra.mxu0 %v2557_v11  ;;  %v358_v34 = vsel %vm346_vm1, %v353_v29, %v357_v30  ;;  %v381_v50 = vrot.slane %v379_v39, 1  ;;  %v2596_v11 = vld [vmem:[%s3376_s1 + $0x100] ss:$8 sps:$4 sm:$0xff]   ;;  %v2599_v14 = vld [vmem:[%s3376_s1 + $0x110] ss:$8 sps:$4 sm:$0xff]   ;;  %v718_v30 = vrot.slane %v2804_v25, 1 }
  0x19   : > { %477 = vmatprep.subr.bf16.mxu0 %v2558_v13  ;;  %v366_v55 = vsel %vm346_vm1, %v361_v44, %v365_v45  ;;  %947 = vperm.xlu0 %2541, %v277_v53   ;;  %v374_v0 = vsel %vm346_vm1, %v369_v60, %v373_v47  ;;  %v2601_v13 = vld [vmem:[%s3376_s1 + $0x114] ss:$8 sps:$4 sm:$0xff]   ;;  %v2602_v16 = vld [vmem:[%s3376_s1 + $0x120] ss:$8 sps:$4 sm:$0xff]   ;;  %v2611_v23 = vld [vmem:[%s3376_s1 + $0x150] ss:$8 sps:$4 sm:$0xff]  }
  0x1a   : > { %952 = vperm.xlu1 %2542, %v278_v56   ;;  %v382_v7 = vsel %vm346_vm1, %v377_v4, %v381_v50  ;;  %v2613_v22 = vld [vmem:[%s3376_s1 + $0x154] ss:$8 sps:$4 sm:$0xff]   ;;  %v2616_v24 = vld [vmem:[%s3376_s1 + $0x164] ss:$8 sps:$4 sm:$0xff]   ;;  %v2614_v27 = vld [vmem:[%s3376_s1 + $0x160] ss:$8 sps:$4 sm:$0xff]  }
  0x1b   : > { %v2617_v29 = vld [vmem:[%s3376_s1 + $0x170] ss:$8 sps:$4 sm:$0xff]   ;;  %vm1007_vm9 = vsmask.f32 7938  ;;  %vm1009_vm11 = vsmask.f32 7954 }
  0x1c   : > { %478 = vmatpush1.bf16.msra.mxu0 %v2560_v15  ;;  %v2604_v15 = vld [vmem:[%s3376_s1 + $0x124] ss:$8 sps:$4 sm:$0xff]   ;;  %vm1008_vm10 = vmand %vm997_vm2, %vm1007_vm9  ;;  %v2624_v39 = vld [vmem:[%s3378_s3 + $0xd0] sm:$0xff]  }
  0x1d   : > { %479 = vmatprep.subr.bf16.mxu0 %v2561_v17  ;;  %957 = vperm.xlu0 %2541, %v279_v58   ;;  %v2607_v17 = vld [vmem:[%s3376_s1 + $0x134] ss:$8 sps:$4 sm:$0xff]   ;;  %v1012_v37 = vld [vmem:[#allocation2 + $0x40] sm:$0x11]  ;;  %vm1010_vm12 = vmand %vm1000_vm4, %vm1009_vm11 }
  0x1e   : > { %962 = vperm.xlu1 %2542, %v280_v61   ;;  %vm1011_vm13 = vmor %vm1010_vm12, %vm1008_vm10  ;;  %v2626_v43 = vld [vmem:[%s3378_s3 + $0xd8] sm:$0xff]   ;;  %v2629_v47 = vld [vmem:[%s3378_s3 + $0xa0] sm:$0xff]  }
  0x1f   : > { %v1013_v40 = vsel %vm1011_vm13, 0, %v1012_v37  ;;  %vm3000_vm2 = vmand %vm1137_vm14, %vm1007_vm9  ;;  %v2627_v45 = vld [vmem:[%s3378_s3 + $0x98] sm:$0xff]   ;;  %v2630_v48 = vld [vmem:[%s3378_s3 + $0xe8] sm:$0xff]   ;;  %vm1055_vm9 = vsmask.f32 4368 }
  0x20   : > { %480 = vmatpush1.bf16.msra.mxu0 %v2563_v19  ;;  %v2610_v19 = vld [vmem:[%s3376_s1 + $0x144] ss:$8 sps:$4 sm:$0xff]   ;;  %1014 = vst [vmem:[#allocation2 + $0x40] sm:$0x11] %v1013_v40  ;;  %vm3008_vm4 = vmand %vm1139_vm15, %vm1009_vm11  ;;  %v2632_v50 = vld [vmem:[%s3378_s3 + $0xf0] sm:$0xff]  }
  0x21   : > { %481 = vmatprep.subr.bf16.mxu0 %v2564_v20  ;;  %v2608_v20 = vld [vmem:[%s3376_s1 + $0x140] ss:$8 sps:$4 sm:$0xff]   ;;  %vm1141_vm5 = vmor %vm3008_vm4, %vm3000_vm2  ;;  %v2633_v51 = vld [vmem:[%s3378_s3 + $0xb0] sm:$0xff]  }
  0x22   : > { %v2635_v53 = vld [vmem:[%s3378_s3 + $0xb8] sm:$0xff]   ;;  %v897_v58 = vld [vmem:[%s3377_s2] sm:$0x3]  ;;  %vm3078_vm10 = vmor %vm998_vm3, %vm1055_vm9 }
  0x24   : > { %482 = vmatpush1.bf16.msra.mxu0 %v2566_v28  ;;  %v2619_v28 = vld [vmem:[%s3376_s1 + $0x174] ss:$8 sps:$4 sm:$0xff]  }
  0x25   : > { %624 = vmatprep.subr.bf16.mxu0 %v2571_v31  ;;  %v719_v31 = vsel %vm714_vm0, %v716_v18, %v718_v30  ;;  %v2621_v18 = vld [vmem:[%s3378_s3 + $0x80] sm:$0xff]  }
  0x27   : > { %500 = vmatmul.mubr.bf16.vlgmr.msra.gmra.mrb[0].mxu0 %v358_v34 }
  0x28   : > { %625 = vmatpush1.bf16.msra.mxu0 %v2569_v33  ;;  %509 = vmatprep.mubr.bf16.mxu0 %v2687_v2  ;;  %v720_v33 = vrot.slane %v2807_v26, 1 }
  0x29   : > { %626 = vmatprep.subr.bf16.mxu0 %v2574_v38  ;;  %v2623_v38 = vld [vmem:[%s3378_s3 + $0x88] sm:$0xff]  }
  0x2a   : > { %v721_v34 = vsel %vm714_vm0, %v718_v30, %v720_v33 }
  0x2c   : > { %627 = vmatpush1.bf16.msra.mxu0 %v2572_v41  ;;  %v2625_v41 = vld [vmem:[%s3378_s3 + $0x90] sm:$0xff]  }
  0x2d   : > { %628 = vmatprep.subr.bf16.mxu0 %v2578_v46  ;;  %v2628_v46 = vld [vmem:[%s3378_s3 + $0xe0] sm:$0xff]  }
  0x2f   : > { %510 = vmatmul.mubr.bf16.gmra.mrb[4].mxu0 %v366_v55  ;;  %v899_v55 = vlaneseq }
  0x30   : > { %629 = vmatpush1.bf16.msra.mxu0 %v2576_v52  ;;  %519 = vmatprep.mubr.bf16.mxu0 %v2687_v2  ;;  %v2634_v52 = vld [vmem:[%s3378_s3 + $0xf8] sm:$0xff]  }
  0x31   : > { %630 = vmatprep.subr.bf16.mxu0 %v2581_v54  ;;  %v2636_v54 = vld [vmem:[%s3378_s3 + $0x40] sm:$0xff]   ;;  %v900_v56 = vshrl.u32 %v899_v55, 7 }
  0x34   : > { %631 = vmatpush1.bf16.msra.mxu0 %v2579_v57  ;;  %v901_v57 = vsub.s32 0, %v900_v56 }
  0x35   : > { %632 = vmatprep.subr.bf16.mxu0 %v2585_v59  ;;  %v905_v59 = vsub.s32 1, %v900_v56 }
  0x36   : > { %v3049_v60 = vrot.slane %v897_v58, %v901_v57 }
  0x37   : > { %520 = vmatmul.mubr.bf16.gmra.mrb[8].mxu0 %v374_v0 }
  0x38   : > { %633 = vmatpush1.bf16.msra.mxu0 %v2583_v62  ;;  %529 = vmatprep.mubr.bf16.mxu0 %v2687_v2  ;;  %v3053_v62 = vrot.slane %v897_v58, %v905_v59 }
  0x39   : > { %634 = vmatprep.subr.bf16.mxu0 %v2588_v63 }
  0x3c   : > { %635 = vmatpush1.bf16.msra.mxu0 %v2586_v1 }
  0x3d   : > { %636 = vmatprep.subr.bf16.mxu0 %v2592_v3 }
  0x3f   : > { %530 = vmatmul.mubr.bf16.gmra.mrb[12].mxu0 %v382_v7 }
  0x40   : > { %637 = vmatpush1.bf16.msra.mxu0 %v2590_v5  ;;  %656 = vmatprep.mubr.bf16.mxu0 %v2687_v2 }
  0x41   : > { %638 = vmatprep.subr.bf16.mxu0 %v2595_v6 }
  0x44   : > { %639 = vmatpush1.bf16.msra.mxu0 %v2593_v8 }
  0x45   : > { %808 = vmatprep.subr.bf16.mxu0 %v2598_v9 }
  0x47   : > { %657 = vmatmul.mubr.bf16.vlgmr.msra.gmra.mrb[0].mxu0 %v2770_v10  ;;  %v2605_v10 = vld [vmem:[%s3376_s1 + $0x130] ss:$8 sps:$4 sm:$0xff]  }
  0x48   : > { %809 = vmatpush1.bf16.msra.mxu0 %v2596_v11  ;;  %666 = vmatprep.mubr.bf16.mxu0 %v2687_v2 }
  0x49   : > { %810 = vmatprep.subr.bf16.mxu0 %v2601_v13 }
  0x4c   : > { %811 = vmatpush1.bf16.msra.mxu0 %v2599_v14 }
  0x4d   : > { %812 = vmatprep.subr.bf16.mxu0 %v2604_v15 }
  0x4f   : > { %667 = vmatmul.mubr.bf16.gmra.mrb[4].mxu0 %v2776_v12  ;;  %v2620_v12 = vld [vmem:[%s3378_s3 + $0xc0] sm:$0xff]  }
  0x50   : > { %813 = vmatpush1.bf16.msra.mxu0 %v2602_v16  ;;  %676 = vmatprep.mubr.bf16.mxu0 %v2687_v2 }
  0x51   : > { %814 = vmatprep.subr.bf16.mxu0 %v2607_v17  ;;  %2379 = vmatprep.subr.bf16.mxu1 %v2620_v12 }
  0x52   : > { %2380 = vmatpush3.bf16.msra.mxu1 %v2621_v18 }
  0x54   : > { %815 = vmatpush1.bf16.msra.mxu0 %v2605_v10 }
  0x55   : > { %816 = vmatprep.subr.bf16.mxu0 %v2610_v19 }
  0x57   : > { %677 = vmatmul.mubr.bf16.gmra.mrb[8].mxu0 %v2804_v25 }
  0x58   : > { %817 = vmatpush1.bf16.msra.mxu0 %v2608_v20  ;;  %686 = vmatprep.mubr.bf16.mxu0 %v2687_v2 }
  0x59   : > { %818 = vmatprep.subr.bf16.mxu0 %v2613_v22 }
  0x5c   : > { %819 = vmatpush1.bf16.msra.mxu0 %v2611_v23 }
  0x5d   : > { %820 = vmatprep.subr.bf16.mxu0 %v2616_v24 }
  0x5f   : > { %687 = vmatmul.mubr.bf16.gmra.mrb[12].mxu0 %v2807_v26  ;;  %v1004_v26 = vld [vmem:[#allocation2] sm:$0x11] }
  0x60   : > { %821 = vmatpush1.bf16.msra.mxu0 %v2614_v27  ;;  %840 = vmatprep.mubr.bf16.mxu0 %v2687_v2  ;;  %v1005_v36 = vsel %vm1003_vm8, 0, %v1004_v26 }
  0x61   : > { %822 = vmatprep.subr.bf16.mxu0 %v2619_v28  ;;  %1006 = vst [vmem:[#allocation2] sm:$0x11] %v1005_v36 }
  0x64   : > { %823 = vmatpush1.bf16.msra.mxu0 %v2617_v29 }
  0x67   : > { %841 = vmatmul.mubr.bf16.vlgmr.msra.gmra.mrb[0].mxu0 %v2799_v21  ;;  %v722_v21 = vrot.slane %v2817_v32, 1  ;;  %v2622_v32 = vld [vmem:[%s3378_s3 + $0xc8] sm:$0xff]  }
  0x68   : > { %850 = vmatprep.mubr.bf16.mxu0 %v2687_v2  ;;  %2381 = vmatprep.subr.bf16.mxu1 %v2622_v32  ;;  %v1142_v32 = vld [vmem:[#allocation2] sm:$0xff] }
  0x69   : > { %v723_v35 = vsel %vm714_vm0, %v720_v33, %v722_v21  ;;  %2382 = vmatpush3.bf16.msra.mxu1 %v2623_v38 }
  0x6a   : > { %2383 = vmatprep.subr.bf16.mxu1 %v2624_v39 }
  0x6d   : > { %2384 = vmatpush3.bf16.msra.mxu1 %v2625_v41 }
  0x6e   : > { %2385 = vmatprep.subr.bf16.mxu1 %v2626_v43 }
  0x6f   : > { %851 = vmatmul.mubr.bf16.gmra.mrb[4].mxu0 %v719_v31 }
  0x70   : > { %860 = vmatprep.mubr.bf16.mxu0 %v2687_v2 }
  0x71   : > { %2386 = vmatpush3.bf16.msra.mxu1 %v2627_v45 }
  0x72   : > { %2387 = vmatprep.subr.bf16.mxu1 %v2628_v46 }
  0x75   : > { %2388 = vmatpush3.bf16.msra.mxu1 %v2629_v47 }
  0x76   : > { %2389 = vmatprep.subr.bf16.mxu1 %v2630_v48 }
  0x77   : > { %861 = vmatmul.mubr.bf16.gmra.mrb[8].mxu0 %v721_v34 }
  0x78   : > { %870 = vmatprep.mubr.bf16.mxu0 %v2687_v2  ;;  %v2641_v2 = vld [vmem:[%s3378_s3 + $0x10] sm:$0xff]  }
  0x79   : > { %2390 = vmatpush3.bf16.msra.mxu1 %v2631_v49 }
  0x7a   : > { %2391 = vmatprep.subr.bf16.mxu1 %v2632_v50 }
  0x7d   : > { %2392 = vmatpush3.bf16.msra.mxu1 %v2633_v51 }
  0x7e   : > { %2393 = vmatprep.subr.bf16.mxu1 %v2634_v52 }
  0x7f   : > { %871 = vmatmul.mubr.bf16.gmra.mrb[12].mxu0 %v723_v35 }
  0x81   : > { %2394 = vmatpush3.bf16.msra.mxu1 %v2635_v53 }
  0x82   : > { %2419 = vmatprep.subr.bf16.mxu1 %v2636_v54 }
  0x90   : > { %v3051_v61 = vpop.permute.xlu0 %927 }
  0x91   : > { %v3064_v15 = vpop.permute.xlu1 %937 }
  0x94   : > { %v3059_v8 = vpop.permute.xlu0 %932 }
  0x95   : > { %v3071_v12 = vpop.permute.xlu1 %942 }
  0x98   : > { %v3093_v57 = vpop.permute.xlu0 %947 }
 0x13a   : > { %v842_v63 = vpop.f32.mrb[0].mxu0 }
 0x13b   : > { %v909_v0 = vadd.f32 %v3049_v60, %v842_v63  ;;  %v844_v1 = vpop.f32.mrb[1].mxu0 }
 0x13c   : > { %v910_v3 = vadd.f32 %v3053_v62, %v844_v1  ;;  %v846_v4 = vpop.f32.mrb[2].mxu0 }
 0x13d   : > { %v965_v5 = vmul.f32 %v3051_v61, %v909_v0  ;;  %v911_v6 = vadd.f32 %v3049_v60, %v846_v4  ;;  %v848_v7 = vpop.f32.mrb[3].mxu0 }
 0x13e   : > { %v966_v9 = vmul.f32 %v3051_v61, %v910_v3  ;;  %v912_v11 = vadd.f32 %v3053_v62, %v848_v7 }
 0x13f   : > { %v981_v13 = vmax.f32 %v965_v5, 0.0  ;;  %v967_v14 = vmul.f32 %v3059_v8, %v911_v6  ;;  %v3101_v5 = vpop.permute.xlu1 %952 }
 0x140   : > { %v982_v16 = vmax.f32 %v966_v9, 0.0  ;;  %v968_v17 = vmul.f32 %v3059_v8, %v912_v11 }
 0x141   : > { %v983_v10 = vmax.f32 %v967_v14, 0.0 }
 0x142   : > { %v2340_v19 = vpack.c.bf16 %v982_v16, %v981_v13  ;;  %v984_v20 = vmax.f32 %v968_v17, 0.0  ;;  %v852_v22 = vpop.f32.mrb[4].mxu0 }
 0x143   : > { %v913_v23 = vadd.f32 %v3049_v60, %v852_v22  ;;  %v854_v24 = vpop.f32.mrb[5].mxu0 }
 0x144   : > { %v1058_v27 = vshrl.u32 %v2340_v19, 16  ;;  %v2341_v28 = vpack.c.bf16 %v984_v20, %v983_v10  ;;  %v914_v29 = vadd.f32 %v3053_v62, %v854_v24  ;;  %v856_v30 = vpop.f32.mrb[6].mxu0  ;;  %v1061_v35 = vshll.u32 %v2340_v19, 16 }
 0x145   : > { %v969_v31 = vmul.f32 %v3064_v15, %v913_v23  ;;  %v915_v33 = vadd.f32 %v3049_v60, %v856_v30  ;;  %v858_v34 = vpop.f32.mrb[7].mxu0 }
 0x146   : > { %v1060_v21 = vrot.slane %v1058_v27, 7  ;;  %v1066_v18 = vshrl.u32 %v2341_v28, 16  ;;  %v970_v26 = vmul.f32 %v3064_v15, %v914_v29  ;;  %v916_v38 = vadd.f32 %v3053_v62, %v858_v34 }
 0x147   : > { %v985_v36 = vmax.f32 %v969_v31, 0.0  ;;  %v971_v37 = vmul.f32 %v3071_v12, %v915_v33  ;;  %v1069_v41 = vshll.u32 %v2341_v28, 16 }
 0x148   : > { %v1063_v39 = vor.u32 %v1061_v35, %v1060_v21  ;;  %v1068_v40 = vrot.slane %v1066_v18, 7  ;;  %v986_v43 = vmax.f32 %v970_v26, 0.0  ;;  %v972_v47 = vmul.f32 %v3071_v12, %v916_v38 }
 0x149   : > { %v987_v46 = vmax.f32 %v971_v37, 0.0  ;;  %v1064_v48 = vrot.slane %v1060_v21, 4 }
 0x14a   : > { %v1143_v49 = vsel %vm1141_vm5, %v1063_v39, %v1142_v32  ;;  %v1071_v50 = vor.u32 %v1069_v41, %v1068_v40  ;;  %v2342_v51 = vpack.c.bf16 %v986_v43, %v985_v36  ;;  %v862_v52 = vpop.f32.mrb[8].mxu0  ;;  %v988_v53 = vmax.f32 %v972_v47, 0.0  ;;  %v3115_v32 = vpop.permute.xlu0 %957 }
 0x14b   : > { %1144 = vst [vmem:[#allocation2] sm:$0xff] %v1143_v49  ;;  %v917_v54 = vadd.f32 %v3049_v60, %v862_v52  ;;  %v864_v55 = vpop.f32.mrb[9].mxu0  ;;  %v1073_v17 = vrot.slane %v1068_v40, 4 }
 0x14c   : > { %v3091_v56 = vsel %vm3078_vm10, %v1064_v48, %v1071_v50  ;;  %v1075_v58 = vshrl.u32 %v2342_v51, 16  ;;  %v1078_v44 = vshll.u32 %v2342_v51, 16  ;;  %v918_v42 = vadd.f32 %v3053_v62, %v864_v55  ;;  %v866_v59 = vpop.f32.mrb[10].mxu0 }
 0x14d   : > { %v2343_v63 = vpack.c.bf16 %v988_v53, %v987_v46  ;;  %v973_v0 = vmul.f32 %v3093_v57, %v917_v54  ;;  %v919_v1 = vadd.f32 %v3049_v60, %v866_v59  ;;  %v868_v3 = vpop.f32.mrb[11].mxu0  ;;  %v3099_v4 = vcombine.high %v1143_v49, %v3091_v56 }
 0x14e   : > { %v1077_v6 = vrot.slane %v1075_v58, 7  ;;  %v974_v7 = vmul.f32 %v3093_v57, %v918_v42  ;;  %v920_v9 = vadd.f32 %v3053_v62, %v868_v3  ;;  %v3106_v11 = vcombine.low %v1143_v49, %v3091_v56  ;;  %v3122_v49 = vpop.permute.xlu1 %962 }
 0x14f   : > { %v1084_v13 = vshrl.u32 %v2343_v63, 16  ;;  %v989_v14 = vmax.f32 %v973_v0, 0.0  ;;  %v975_v16 = vmul.f32 %v3101_v5, %v919_v1  ;;  %v1087_v23 = vshll.u32 %v2343_v63, 16 }
 0x150   : > { %v1080_v10 = vor.u32 %v1078_v44, %v1077_v6  ;;  %v990_v19 = vmax.f32 %v974_v7, 0.0  ;;  %v976_v20 = vmul.f32 %v3101_v5, %v920_v9  ;;  %v1290_v27 = vshll.u32 %v3099_v4, 16 }
 0x151   : > { %v1086_v22 = vrot.slane %v1084_v13, 7  ;;  %v991_v24 = vmax.f32 %v975_v16, 0.0  ;;  %v1082_v29 = vrot.slane %v1077_v6, 4  ;;  %v1288_v18 = vshrl.u32 %v3099_v4, 16 }
 0x152   : > { %v1081_v28 = vsel %vm3078_vm10, %v1073_v17, %v1080_v10  ;;  %v2344_v30 = vpack.c.bf16 %v990_v19, %v989_v14  ;;  %v992_v31 = vmax.f32 %v976_v20, 0.0  ;;  %v872_v33 = vpop.f32.mrb[12].mxu0  ;;  %v1292_v26 = vrot.slane %v1290_v27, 1 }
 0x153   : > { %v1089_v34 = vor.u32 %v1087_v23, %v1086_v22  ;;  %v921_v21 = vadd.f32 %v3049_v60, %v872_v33  ;;  %v874_v35 = vpop.f32.mrb[13].mxu0  ;;  %v1091_v36 = vrot.slane %v1086_v22, 4  ;;  %v1278_v17 = vshll.u32 %v3106_v11, 16 }
 0x154   : > { %v1093_v37 = vshrl.u32 %v2344_v30, 16  ;;  %v2345_v38 = vpack.c.bf16 %v992_v31, %v991_v24  ;;  %v922_v39 = vadd.f32 %v3053_v62, %v874_v35  ;;  %v876_v40 = vpop.f32.mrb[14].mxu0  ;;  %v1096_v43 = vshll.u32 %v2344_v30, 16 }
 0x155   : > { %v1090_v41 = vsel %vm3078_vm10, %v1082_v29, %v1089_v34  ;;  %v977_v46 = vmul.f32 %v3115_v32, %v921_v21  ;;  %v923_v47 = vadd.f32 %v3049_v60, %v876_v40  ;;  %v878_v48 = vpop.f32.mrb[15].mxu0  ;;  %v1293_v53 = vor.u32 %v1292_v26, %v1288_v18  ;;  %v2637_v26 = vld [vmem:[%s3378_s3] sm:$0xff]  }
 0x156   : > { %v1095_v50 = vrot.slane %v1093_v37, 7  ;;  %v1102_v51 = vshrl.u32 %v2345_v38, 16  ;;  %v978_v52 = vmul.f32 %v3115_v32, %v922_v39  ;;  %v924_v58 = vadd.f32 %v3053_v62, %v878_v48 }
 0x157   : > { %v993_v54 = vmax.f32 %v977_v46, 0.0  ;;  %v979_v55 = vmul.f32 %v3122_v49, %v923_v47  ;;  %v3127_v44 = vcombine.high %v1081_v28, %v1090_v41  ;;  %v1105_v63 = vshll.u32 %v2345_v38, 16  ;;  %v2638_v38 = vld [vmem:[%s3378_s3 + $0x48] sm:$0xff]  }
 0x158   : > { %v1098_v42 = vor.u32 %v1096_v43, %v1095_v50  ;;  %v1104_v59 = vrot.slane %v1102_v51, 7  ;;  %v994_v0 = vmax.f32 %v978_v52, 0.0  ;;  %v980_v1 = vmul.f32 %v3122_v49, %v924_v58  ;;  %v1685_v43 = vld [vmem:[#allocation2] sm:$0xee]  ;;  %v1152_v52 = vld [vmem:[#allocation2 + $0x40] sm:$0x11] }
 0x159   : > { %v995_v60 = vmax.f32 %v979_v55, 0.0  ;;  %v1295_v3 = vshll.u32 %v3127_v44, 16  ;;  %v3131_v6 = vcombine.low %v1081_v28, %v1090_v41  ;;  %v1100_v9 = vrot.slane %v1095_v50, 4 }
 0x15a   : > { %v1099_v7 = vsel %vm3078_vm10, %v1091_v36, %v1098_v42  ;;  %v1107_v13 = vor.u32 %v1105_v63, %v1104_v59  ;;  %v2346_v14 = vpack.c.bf16 %v994_v0, %v993_v54  ;;  %v996_v62 = vmax.f32 %v980_v1, 0.0 }
 0x15b   : > { %v1297_v16 = vrot.slane %v1295_v3, 1  ;;  %v1283_v10 = vshll.u32 %v3131_v6, 16  ;;  %v1276_v22 = vshrl.u32 %v3106_v11, 16  ;;  %v1307_v23 = vshrl.u32 %v3127_v44, 16  ;;  %v2640_v3 = vld [vmem:[%s3378_s3 + $0x50] sm:$0xff]  }
 0x15c   : > { %v1108_v19 = vsel %vm3078_vm10, %v1100_v9, %v1107_v13  ;;  %v1111_v20 = vshrl.u32 %v2346_v14, 16  ;;  %v2347_v24 = vpack.c.bf16 %v996_v62, %v995_v60  ;;  %v1280_v28 = vrot.slane %v1278_v17, 1 }
 0x15d   : > { %v1298_v27 = vsel %vm346_vm1, %v1293_v53, %v1297_v16  ;;  %v1285_v29 = vrot.slane %v1283_v10, 1  ;;  %v1114_v31 = vshll.u32 %v2346_v14, 16  ;;  %v3142_v33 = vcombine.high %v1099_v7, %v1108_v19 }
 0x15e   : > { %v1113_v30 = vrot.slane %v1111_v20, 7  ;;  %1483 = vmatprep.mubr.bf16.mxu1 %v1298_v27  ;;  %v3144_v34 = vcombine.low %v1099_v7, %v1108_v19  ;;  %v1109_v21 = vrot.slane %v1104_v59, 4  ;;  %v1120_v35 = vshrl.u32 %v2347_v24, 16  ;;  %v2639_v59 = vld [vmem:[%s3378_s3 + $0x8] sm:$0xff]   ;;  %v2642_v20 = vld [vmem:[%s3378_s3 + $0x58] sm:$0xff]  }
 0x15f   : > { %v1281_v18 = vor.u32 %v1280_v28, %v1276_v22  ;;  %v1309_v36 = vor.u32 %v1307_v23, %v1297_v16  ;;  %v1311_v39 = vshll.u32 %v3142_v33, 16  ;;  %v1299_v40 = vshrl.u32 %v3131_v6, 16 }
 0x160   : > { %v1116_v37 = vor.u32 %v1114_v31, %v1113_v30  ;;  %v1303_v41 = vshll.u32 %v3144_v34, 16  ;;  %v1118_v46 = vrot.slane %v1113_v30, 4  ;;  %v1122_v47 = vrot.slane %v1120_v35, 7 }
 0x161   : > { %v1123_v48 = vshll.u32 %v2347_v24, 16  ;;  %v1286_v50 = vsel %vm346_vm1, %v1281_v18, %v1285_v29  ;;  %v1313_v53 = vrot.slane %v1311_v39, 1  ;;  %v1301_v54 = vor.u32 %v1299_v40, %v1285_v29  ;;  %v2644_v39 = vld [vmem:[%s3378_s3 + $0x60] sm:$0xff]  }
 0x162   : > { %v1117_v51 = vsel %vm3078_vm10, %v1109_v21, %v1116_v37  ;;  %1484 = vmatmul.mubr.bf16.vlgmr.msra.gmra.mrb[0].mxu1 %v1286_v50  ;;  %v1305_v55 = vrot.slane %v1303_v41, 1  ;;  %v1127_v42 = vrot.slane %v1122_v47, 4  ;;  %v2309_v63 = vcombine.low %v1685_v43, %v3091_v56  ;;  %v2646_v50 = vld [vmem:[%s3378_s3 + $0x20] sm:$0xff]  }
 0x163   : > { %v1125_v58 = vor.u32 %v1123_v48, %v1122_v47  ;;  %2420 = vmatpush3.bf16.msra.mxu1 %v2637_v26  ;;  %v2310_v0 = vcombine.high %v1685_v43, %v3091_v56  ;;  %v1314_v60 = vsel %vm346_vm1, %v1309_v36, %v1313_v53  ;;  %v1323_v56 = vshrl.u32 %v3142_v33, 16  ;;  %v2643_v36 = vld [vmem:[%s3378_s3 + $0x18] sm:$0xff]  }
 0x164   : > { %2421 = vmatprep.subr.bf16.mxu1 %v2638_v38  ;;  %v1306_v1 = vsel %vm346_vm1, %v1301_v54, %v1305_v55  ;;  %v1153_v9 = vsel %vm1003_vm8, %v1127_v42, %v1152_v52  ;;  %1491 = vmatprep.mubr.bf16.mxu1 %v1314_v60  ;;  %v1315_v13 = vshrl.u32 %v3144_v34, 16  ;;  %v1728_v16 = vrot.slane %v3127_v44, 1  ;;  %v2647_v52 = vld [vmem:[%s3378_s3 + $0x68] sm:$0xff]  }
 0x165   : > { %v1126_v7 = vsel %vm3078_vm10, %v1118_v46, %v1125_v58  ;;  %1154 = vst [vmem:[#allocation2 + $0x40] sm:$0x11] %v1153_v9  ;;  %v1725_v45 = vrot.slane %v3131_v6, 1  ;;  %v1724_v25 = vrot.slane %v2309_v63, 1  ;;  %v1727_v17 = vrot.slane %v2310_v0, 1  ;;  %v2648_v0 = vld [vmem:[%s3378_s3 + $0x28] sm:$0xff]  }
 0x166   : > { %v3177_v14 = vcombine.high %v1117_v51, %v1126_v7  ;;  %v3179_v62 = vcombine.low %v1117_v51, %v1126_v7  ;;  %v1732_v10 = vrot.slane %v3142_v33, 1  ;;  %v1730_v19 = vrot.slane %v3144_v34, 1  ;;  %v2650_v7 = vld [vmem:[%s3378_s3 + $0x70] sm:$0xff]  }
 0x167   : > { %2422 = vmatpush3.bf16.msra.mxu1 %v2639_v59  ;;  %v1325_v22 = vor.u32 %v1323_v56, %v1313_v53  ;;  %v1317_v24 = vor.u32 %v1315_v13, %v1305_v55  ;;  %v3194_v28 = vsel %vm714_vm0, %v1727_v17, %v1728_v16  ;;  %v3197_v29 = vsel %vm714_vm0, %v1724_v25, %v1725_v45  ;;  %v2651_v13 = vld [vmem:[%s3378_s3 + $0x30] sm:$0xff]   ;;  %v2655_v25 = vld [vmem:[%s3378_s3 + $0x100] sm:$0xff]   ;;  %v2656_v17 = vld [vmem:[%s3378_s3 + $0x148] sm:$0xff]  }
 0x168   : > { %2423 = vmatprep.subr.bf16.mxu1 %v2640_v3  ;;  %v1327_v23 = vshll.u32 %v3177_v14, 16  ;;  %v1319_v27 = vshll.u32 %v3179_v62, 16  ;;  %v3200_v30 = vsel %vm714_vm0, %v1728_v16, %v1732_v10  ;;  %v3203_v31 = vsel %vm714_vm0, %v1725_v45, %v1730_v19  ;;  %v2652_v16 = vld [vmem:[%s3378_s3 + $0x78] sm:$0xff]  }
 0x169   : > { %v1736_v18 = vrot.slane %v3177_v14, 1  ;;  %v1734_v26 = vrot.slane %v3179_v62, 1  ;;  %v1339_v48 = vshrl.u32 %v3177_v14, 16  ;;  %v1331_v60 = vshrl.u32 %v3179_v62, 16  ;;  %v2653_v45 = vld [vmem:[%s3378_s3 + $0x38] sm:$0xff]  }
 0x16a   : > { %1492 = vmatmul.mubr.bf16.gmra.mrb[4].mxu1 %v1306_v1  ;;  %v1329_v21 = vrot.slane %v1327_v23, 1  ;;  %v1321_v35 = vrot.slane %v1319_v27, 1  ;;  %v2666_v23 = vld [vmem:[%s3378_s3 + $0x170] sm:$0xff]  }
 0x16b   : > { %2424 = vmatpush3.bf16.msra.mxu1 %v2641_v2  ;;  %v3216_v41 = vsel %vm714_vm0, %v1732_v10, %v1736_v18  ;;  %v3219_v43 = vsel %vm714_vm0, %v1730_v19, %v1734_v26  ;;  %v2654_v2 = vld [vmem:[%s3378_s3 + $0x140] sm:$0xff]   ;;  %v2658_v10 = vld [vmem:[%s3378_s3 + $0x150] sm:$0xff]  }
 0x16c   : > { %2425 = vmatprep.subr.bf16.mxu1 %v2642_v20  ;;  %v1330_v37 = vsel %vm346_vm1, %v1325_v22, %v1329_v21  ;;  %v1322_v38 = vsel %vm346_vm1, %v1317_v24, %v1321_v35  ;;  %v1204_v40 = vld [vmem:[#allocation2 + $0x40] sm:$0x11]  ;;  %v1341_v58 = vor.u32 %v1339_v48, %v1329_v21  ;;  %v1333_v9 = vor.u32 %v1331_v60, %v1321_v35  ;;  %v2659_v19 = vld [vmem:[%s3378_s3 + $0x110] sm:$0xff]  }
 0x16d   : > { %1499 = vmatprep.mubr.bf16.mxu1 %v1330_v37  ;;  %v2244_v46 = vcombine.high %v1204_v40, %v1204_v40  ;;  %v2243_v47 = vcombine.low %v1204_v40, %v1204_v40  ;;  %v2662_v20 = vld [vmem:[%s3378_s3 + $0x160] sm:$0xff]   ;;  %v2667_v24 = vld [vmem:[%s3378_s3 + $0x130] sm:$0xff]  }
 0x16e   : > { %v2663_v22 = vld [vmem:[%s3378_s3 + $0x120] sm:$0xff]  }
 0x16f   : > { %2426 = vmatpush3.bf16.msra.mxu1 %v2643_v36  ;;  %v1343_v51 = vshll.u32 %v2244_v46, 16  ;;  %v1335_v53 = vshll.u32 %v2243_v47, 16  ;;  %v1740_v54 = vrot.slane %v2244_v46, 1  ;;  %v1738_v55 = vrot.slane %v2243_v47, 1 }
 0x170   : > { %2427 = vmatprep.subr.bf16.mxu1 %v2644_v39 }
 0x171   : > { %v1345_v42 = vrot.slane %v1343_v51, 1  ;;  %v3229_v59 = vsel %vm714_vm0, %v1736_v18, %v1740_v54  ;;  %v3232_v63 = vsel %vm714_vm0, %v1734_v26, %v1738_v55  ;;  %v1337_v1 = vrot.slane %v1335_v53, 1 }
 0x172   : > { %1500 = vmatmul.mubr.bf16.gmra.mrb[8].mxu1 %v1322_v38 }
 0x173   : > { %2428 = vmatpush3.bf16.msra.mxu1 %v2646_v50  ;;  %v1346_v3 = vsel %vm346_vm1, %v1341_v58, %v1345_v42  ;;  %v1338_v56 = vsel %vm346_vm1, %v1333_v9, %v1337_v1 }
 0x174   : > { %2429 = vmatprep.subr.bf16.mxu1 %v2647_v52  ;;  %1507 = vmatprep.mubr.bf16.mxu1 %v1346_v3 }
 0x177   : > { %2430 = vmatpush3.bf16.msra.mxu1 %v2648_v0 }
 0x178   : > { %2431 = vmatprep.subr.bf16.mxu1 %v2650_v7 }
 0x17a   : > { %1508 = vmatmul.mubr.bf16.gmra.mrb[12].mxu1 %v1338_v56 }
 0x17b   : > { %2432 = vmatpush3.bf16.msra.mxu1 %v2651_v13  ;;  %1652 = vmatprep.mubr.bf16.mxu1 %v3099_v4  ;;  %v2657_v4 = vld [vmem:[%s3378_s3 + $0x108] sm:$0xff]  }
 0x17c   : > { %2433 = vmatprep.subr.bf16.mxu1 %v2652_v16 }
 0x17f   : > { %2434 = vmatpush3.bf16.msra.mxu1 %v2653_v45 }
 0x180   : > { %2459 = vmatprep.subr.bf16.mxu1 %v2654_v2 }
 0x182   : > { %1653 = vmatmul.mubr.bf16.vlgmr.msra.gmra.mrb[16].mxu1 %v3106_v11  ;;  %v2660_v11 = vld [vmem:[%s3378_s3 + $0x158] sm:$0xff]  }
 0x183   : > { %1660 = vmatprep.mubr.bf16.mxu1 %v3127_v44  ;;  %2460 = vmatpush3.bf16.msra.mxu1 %v2655_v25  ;;  %v2661_v44 = vld [vmem:[%s3378_s3 + $0x118] sm:$0xff]  }
 0x184   : > { %2461 = vmatprep.subr.bf16.mxu1 %v2656_v17 }
 0x187   : > { %2462 = vmatpush3.bf16.msra.mxu1 %v2657_v4 }
 0x188   : > { %2463 = vmatprep.subr.bf16.mxu1 %v2658_v10 }
 0x18a   : > { %1661 = vmatmul.mubr.bf16.gmra.mrb[20].mxu1 %v3131_v6  ;;  %v2664_v6 = vld [vmem:[%s3378_s3 + $0x168] sm:$0xff]  }
 0x18b   : > { %1668 = vmatprep.mubr.bf16.mxu1 %v3142_v33  ;;  %2464 = vmatpush3.bf16.msra.mxu1 %v2659_v19  ;;  %v2665_v33 = vld [vmem:[%s3378_s3 + $0x128] sm:$0xff]  }
 0x18c   : > { %2465 = vmatprep.subr.bf16.mxu1 %v2660_v11 }
 0x18f   : > { %2466 = vmatpush3.bf16.msra.mxu1 %v2661_v44 }
 0x190   : > { %2467 = vmatprep.subr.bf16.mxu1 %v2662_v20 }
 0x192   : > { %1669 = vmatmul.mubr.bf16.gmra.mrb[24].mxu1 %v3144_v34  ;;  %v2668_v34 = vld [vmem:[%s3378_s3 + $0x178] sm:$0xff]  }
 0x193   : > { %1676 = vmatprep.mubr.bf16.mxu1 %v3177_v14  ;;  %2468 = vmatpush3.bf16.msra.mxu1 %v2663_v22  ;;  %v2669_v14 = vld [vmem:[%s3378_s3 + $0x138] sm:$0xff]  }
 0x194   : > { %2469 = vmatprep.subr.bf16.mxu1 %v2664_v6 }
 0x197   : > { %2470 = vmatpush3.bf16.msra.mxu1 %v2665_v33 }
 0x198   : > { %2471 = vmatprep.subr.bf16.mxu1 %v2666_v23 }
 0x19a   : > { %1677 = vmatmul.mubr.bf16.gmra.mrb[28].mxu1 %v3179_v62 }
 0x19b   : > { %2472 = vmatpush3.bf16.msra.mxu1 %v2667_v24  ;;  %1878 = vmatprep.mubr.bf16.mxu1 %v3194_v28 }
 0x19c   : > { %2473 = vmatprep.subr.bf16.mxu1 %v2668_v34 }
 0x19f   : > { %2474 = vmatpush3.bf16.msra.mxu1 %v2669_v14 }
 0x1a2   : > { %1879 = vmatmul.mubr.bf16.vlgmr.msra.gmra.mrb[32].mxu1 %v3197_v29 }
 0x1a3   : > { %1886 = vmatprep.mubr.bf16.mxu1 %v3200_v30 }
 0x1aa   : > { %1887 = vmatmul.mubr.bf16.gmra.mrb[36].mxu1 %v3203_v31 }
 0x1ab   : > { %1894 = vmatprep.mubr.bf16.mxu1 %v3216_v41 }
 0x1b2   : > { %1895 = vmatmul.mubr.bf16.gmra.mrb[40].mxu1 %v3219_v43 }
 0x1b3   : > { %1902 = vmatprep.mubr.bf16.mxu1 %v3229_v59 }
 0x1ba   : > { %1903 = vmatmul.mubr.bf16.gmra.mrb[44].mxu1 %v3232_v63 }
 0x235   : > { %v2395_v62 = vpop.f32.mrb[0].mxu1 }
 0x236   : > { %v2396_v27 = vpop.f32.mrb[1].mxu1 }
 0x237   : > { %v2397_v28 = vadd.f32 %v2396_v27, %v2395_v62  ;;  %v2398_v21 = vpop.f32.mrb[2].mxu1  ;;  %v2674_v62 = vld [vmem:[%s2761_s16] sm:$0xff]  }
 0x238   : > { %v2399_v35 = vpop.f32.mrb[3].mxu1  ;;  %v1155_v27 = vunpack.c.l.bf16 %v2674_v62 }
 0x239   : > { %v2400_v18 = vadd.f32 %v2399_v35, %v2398_v21 }
 0x23d   : > { %v2401_v26 = vpop.f32.mrb[4].mxu1 }
 0x23e   : > { %v2402_v29 = vpop.f32.mrb[5].mxu1 }
 0x23f   : > { %v2403_v36 = vadd.f32 %v2402_v29, %v2401_v26  ;;  %v2404_v30 = vpop.f32.mrb[6].mxu1 }
 0x240   : > { %v2405_v37 = vpop.f32.mrb[7].mxu1 }
 0x241   : > { %v2406_v31 = vadd.f32 %v2405_v37, %v2404_v30  ;;  %v3329_v30 = vld [vmem:[%s3379_s4] ss:$0 sm:$0xff]  ;;  %v1952_v37 = vrot.slane %v1155_v27, 1 }
 0x245   : > { %v2407_v38 = vpop.f32.mrb[8].mxu1 }
 0x246   : > { %v2408_v39 = vpop.f32.mrb[9].mxu1 }
 0x247   : > { %v2409_v40 = vadd.f32 %v2408_v39, %v2407_v38  ;;  %v2410_v41 = vpop.f32.mrb[10].mxu1 }
 0x248   : > { %v2411_v43 = vpop.f32.mrb[11].mxu1 }
 0x249   : > { %v2412_v46 = vadd.f32 %v2411_v43, %v2410_v41 }
 0x24d   : > { %v2413_v47 = vpop.f32.mrb[12].mxu1 }
 0x24e   : > { %v2414_v48 = vpop.f32.mrb[13].mxu1 }
 0x24f   : > { %v2415_v50 = vadd.f32 %v2414_v48, %v2413_v47  ;;  %v2416_v51 = vpop.f32.mrb[14].mxu1 }
 0x250   : > { %v2417_v52 = vpop.f32.mrb[15].mxu1 }
 0x251   : > { %v2418_v53 = vadd.f32 %v2417_v52, %v2416_v51 }
 0x255   : > { %v2435_v54 = vpop.f32.mrb[16].mxu1 }
 0x256   : > { %v2436_v55 = vpop.f32.mrb[17].mxu1 }
 0x257   : > { %v2437_v58 = vadd.f32 %v2436_v55, %v2435_v54  ;;  %v2438_v42 = vpop.f32.mrb[18].mxu1  ;;  %v2676_v55 = vld [vmem:[%s2761_s16 + $0x10] sm:$0xff]  }
 0x258   : > { %v2439_v59 = vpop.f32.mrb[19].mxu1 }
 0x259   : > { %v1655_v63 = vadd.f32 %v2437_v58, %v2397_v28  ;;  %v2440_v0 = vadd.f32 %v2439_v59, %v2438_v42  ;;  %v1156_v28 = vunpack.c.h.bf16 %v2674_v62  ;;  %v1159_v58 = vunpack.c.l.bf16 %v2676_v55 }
 0x25b   : > { %v1658_v60 = vadd.f32 %v2440_v0, %v2400_v18  ;;  %v2675_v18 = vld [vmem:[%s2761_s16 + $0x8] sm:$0xff]  }
 0x25c   : > { %v1157_v26 = vunpack.c.l.bf16 %v2675_v18  ;;  %v1158_v48 = vunpack.c.h.bf16 %v2675_v18 }
 0x25d   : > { %v2441_v1 = vpop.f32.mrb[20].mxu1 }
 0x25e   : > { %v2442_v3 = vpop.f32.mrb[21].mxu1  ;;  %v1955_v41 = vrot.slane %v1157_v26, 1 }
 0x25f   : > { %v2443_v7 = vadd.f32 %v2442_v3, %v2441_v1  ;;  %v2444_v9 = vpop.f32.mrb[22].mxu1 }
 0x260   : > { %v2445_v56 = vpop.f32.mrb[23].mxu1 }
 0x261   : > { %v1663_v13 = vadd.f32 %v2443_v7, %v2403_v36  ;;  %v2446_v16 = vadd.f32 %v2445_v56, %v2444_v9  ;;  %v1959_v9 = vrot.slane %v1159_v58, 1 }
 0x263   : > { %v1666_v45 = vadd.f32 %v2446_v16, %v2406_v31  ;;  %v1953_v31 = vrot.slane %v1156_v28, 1 }
 0x265   : > { %v2447_v2 = vpop.f32.mrb[24].mxu1  ;;  %v1954_v47 = vsel %vm714_vm0, %v1952_v37, %v1953_v31 }
 0x266   : > { %v2448_v25 = vpop.f32.mrb[25].mxu1 }
 0x267   : > { %v2449_v17 = vadd.f32 %v2448_v25, %v2447_v2  ;;  %v2450_v4 = vpop.f32.mrb[26].mxu1 }
 0x268   : > { %v2451_v10 = vpop.f32.mrb[27].mxu1 }
 0x269   : > { %v3316_v19 = vadd.f32 %v2449_v17, %v2409_v40  ;;  %v2452_v11 = vadd.f32 %v2451_v10, %v2450_v4  ;;  %v1160_v17 = vunpack.c.h.bf16 %v2676_v55 }
 0x26b   : > { %v3318_v44 = vadd.f32 %v2452_v11, %v2412_v46  ;;  %v1961_v27 = vrot.slane %v1160_v17, 1 }
 0x26d   : > { %v2453_v20 = vpop.f32.mrb[28].mxu1 }
 0x26e   : > { %v2454_v22 = vpop.f32.mrb[29].mxu1 }
 0x26f   : > { %v2455_v6 = vadd.f32 %v2454_v22, %v2453_v20  ;;  %v2456_v33 = vpop.f32.mrb[30].mxu1 }
 0x270   : > { %v2457_v23 = vpop.f32.mrb[31].mxu1 }
 0x271   : > { %v3320_v24 = vadd.f32 %v2455_v6, %v2415_v50  ;;  %v2458_v34 = vadd.f32 %v2457_v23, %v2456_v33  ;;  %v2677_v6 = vld [vmem:[%s2761_s16 + $0x18] sm:$0xff]  }
 0x273   : > { %v3322_v14 = vadd.f32 %v2458_v34, %v2418_v53  ;;  %v1956_v53 = vsel %vm714_vm0, %v1953_v31, %v1955_v41  ;;  %v1962_v31 = vsel %vm714_vm0, %v1959_v9, %v1961_v27 }
 0x275   : > { %v2475_v21 = vpop.f32.mrb[32].mxu1 }
 0x276   : > { %v2476_v35 = vpop.f32.mrb[33].mxu1 }
 0x277   : > { %v2477_v29 = vadd.f32 %v2476_v35, %v2475_v21  ;;  %v2478_v36 = vpop.f32.mrb[34].mxu1 }
 0x278   : > { %v2479_v38 = vpop.f32.mrb[35].mxu1 }
 0x279   : > { %v1911_v39 = vadd.f32 %v2477_v29, %v1655_v63  ;;  %v2480_v40 = vadd.f32 %v2479_v38, %v2478_v36 }
 0x27b   : > { %v1926_v43 = vadd.f32 %v3329_v30, %v1911_v39  ;;  %v1912_v46 = vadd.f32 %v2480_v40, %v1658_v60  ;;  %v1957_v60 = vrot.slane %v1158_v48, 1 }
 0x27d   : > { %v1934_v50 = vmul.f32 %v1926_v43, %v3051_v61  ;;  %v1927_v51 = vadd.f32 %v3329_v30, %v1912_v46  ;;  %v2481_v52 = vpop.f32.mrb[36].mxu1  ;;  %v1960_v20 = vsel %vm714_vm0, %v1957_v60, %v1959_v9  ;;  %v2678_v43 = vld [vmem:[%s2761_s16 + $0x20] sm:$0x1] }
 0x27e   : > { %v2482_v54 = vpop.f32.mrb[37].mxu1 }
 0x27f   : > { %v1977_v42 = vadd.f32 %v1954_v47, %v1934_v50  ;;  %v1935_v59 = vmul.f32 %v1927_v51, %v3059_v8  ;;  %v2483_v63 = vadd.f32 %v2482_v54, %v2481_v52  ;;  %v2484_v0 = vpop.f32.mrb[38].mxu1  ;;  %v1958_v8 = vsel %vm714_vm0, %v1955_v41, %v1957_v60 }
 0x280   : > { %v2485_v1 = vpop.f32.mrb[39].mxu1 }
 0x281   : > { %v1978_v3 = vadd.f32 %v1956_v53, %v1935_v59  ;;  %v1913_v7 = vadd.f32 %v2483_v63, %v1663_v13  ;;  %v2486_v61 = vadd.f32 %v2485_v1, %v2484_v0  ;;  %v1985_v56 = vmax.f32 %v1977_v42, 0.0 }
 0x283   : > { %v1986_v16 = vmax.f32 %v1978_v3, 0.0  ;;  %v1928_v2 = vadd.f32 %v3329_v30, %v1913_v7  ;;  %v1914_v25 = vadd.f32 %v2486_v61, %v1666_v45  ;;  %v1161_v45 = vunpack.c.l.bf16 %v2677_v6 }
 0x285   : > { %v2359_v4 = vpack.c.bf16 %v1986_v16, %v1985_v56  ;;  %v1936_v13 = vmul.f32 %v1928_v2, %v3064_v15  ;;  %v1929_v10 = vadd.f32 %v3329_v30, %v1914_v25  ;;  %v2487_v11 = vpop.f32.mrb[40].mxu1  ;;  %v1963_v18 = vrot.slane %v1161_v45, 1 }
 0x286   : > { %v2488_v22 = vpop.f32.mrb[41].mxu1 }
 0x287   : > { %2360 = vst [vmem:[%s3343_s17] sm:$0xff] %v2359_v4   ;;  %v1979_v33 = vadd.f32 %v1958_v8, %v1936_v13  ;;  %v1937_v23 = vmul.f32 %v1929_v10, %v3071_v12  ;;  %v2489_v34 = vadd.f32 %v2488_v22, %v2487_v11  ;;  %v2490_v62 = vpop.f32.mrb[42].mxu1  ;;  %v1162_v12 = vunpack.c.h.bf16 %v2677_v6 }
 0x288   : > { %v2491_v28 = vpop.f32.mrb[43].mxu1  ;;  %v1964_v46 = vsel %vm714_vm0, %v1961_v27, %v1963_v18 }
 0x289   : > { %v1980_v21 = vadd.f32 %v1960_v20, %v1937_v23  ;;  %v1915_v15 = vadd.f32 %v2489_v34, %v3316_v19  ;;  %v2492_v35 = vadd.f32 %v2491_v28, %v2490_v62  ;;  %v1987_v26 = vmax.f32 %v1979_v33, 0.0 }
 0x28a   : > { %v1163_v19 = vunpack.c.l.bf16 %v2678_v43  ;;  %v1965_v52 = vrot.slane %v1162_v12, 1 }
 0x28b   : > { %v1988_v29 = vmax.f32 %v1980_v21, 0.0  ;;  %v1930_v36 = vadd.f32 %v3329_v30, %v1915_v15  ;;  %v1916_v37 = vadd.f32 %v2492_v35, %v3318_v44 }
 0x28c   : > { %v1967_v58 = vrot.slane %v1163_v19, 1  ;;  %v1966_v60 = vsel %vm714_vm0, %v1963_v18, %v1965_v52 }
 0x28d   : > { %v2364_v38 = vpack.c.bf16 %v1988_v29, %v1987_v26  ;;  %v1938_v39 = vmul.f32 %v1930_v36, %v3093_v57  ;;  %v1931_v40 = vadd.f32 %v3329_v30, %v1916_v37  ;;  %v2493_v41 = vpop.f32.mrb[44].mxu1 }
 0x28e   : > { %v2494_v47 = vpop.f32.mrb[45].mxu1  ;;  %v1968_v7 = vsel %vm714_vm0, %v1965_v52, %v1967_v58 }
 0x28f   : > { %2376 = vst [vmem:[%s3343_s17 + $0x8] sm:$0xff] %v2364_v38   ;;  %v1981_v48 = vadd.f32 %v1962_v31, %v1938_v39  ;;  %v1939_v50 = vmul.f32 %v1931_v40, %v3101_v5  ;;  %v2495_v51 = vadd.f32 %v2494_v47, %v2493_v41  ;;  %v2496_v44 = vpop.f32.mrb[46].mxu1 }
 0x290   : > { %v2497_v53 = vpop.f32.mrb[47].mxu1 }
 0x291   : > { %v1982_v54 = vadd.f32 %v1964_v46, %v1939_v50  ;;  %v1917_v57 = vadd.f32 %v2495_v51, %v3320_v24  ;;  %v2498_v55 = vadd.f32 %v2497_v53, %v2496_v44  ;;  %v1989_v42 = vmax.f32 %v1981_v48, 0.0 }
 0x293   : > { %v1990_v59 = vmax.f32 %v1982_v54, 0.0  ;;  %v1932_v63 = vadd.f32 %v3329_v30, %v1917_v57  ;;  %v1918_v0 = vadd.f32 %v2498_v55, %v3322_v14 }
 0x295   : > { %v2369_v5 = vpack.c.bf16 %v1990_v59, %v1989_v42  ;;  %v1940_v1 = vmul.f32 %v1932_v63, %v3115_v32  ;;  %v1933_v3 = vadd.f32 %v3329_v30, %v1918_v0 }
 0x297   : > { %2377 = vst [vmem:[%s3343_s17 + $0x10] sm:$0xff] %v2369_v5   ;;  %v1983_v24 = vadd.f32 %v1966_v60, %v1940_v1  ;;  %v1941_v61 = vmul.f32 %v1933_v3, %v3122_v49 }
 0x299   : > { %v1984_v9 = vadd.f32 %v1968_v7, %v1941_v61  ;;  %v1991_v56 = vmax.f32 %v1983_v24, 0.0 }
 0x29b   : > { %v1992_v16 = vmax.f32 %v1984_v9, 0.0 }
 0x29d   : > { %v2374_v2 = vpack.c.bf16 %v1992_v16, %v1991_v56 }
 0x29f   : > { %2378 = vst [vmem:[%s3343_s17 + $0x18] sm:$0xff] %v2374_v2  }
 0x2a0 PF: > { %s16_s21 = sadd.s32 1, %s2685_s21  }
 0x2a1   : > { %p13_p4 = scmp.ge.s32.totalorder %s16_s21, 4  }
 0x2a3   :  { %15 = sbr.rel (!%p13_p4) target bundleno = 1 (0x1), region = 81 }

// kernel: conv_backbone_forward.13
= control target key start
LH: loop header
LB: loop body
LE: loop exit
PB: predicated region body
PF: predicated region fallthrough
CT: control target
= control target key end

     0   :  { %s2389_s30 = smov 0   ;;  %s2948_s0 = inlined_call_operand.vmem [shape: bf16[2,33,256], index: 0, kind: input, shape index: {}]   ;;  %s2949_s1 = inlined_call_operand.vmem [shape: bf16[256,256], index: 1, kind: input, shape index: {}]   ;;  %s2950_s2 = inlined_call_operand.vmem [shape: bf16[128,256], index: 2, kind: input, shape index: {}]   ;;  %s2951_s3 = inlined_call_operand.vmem [shape: f32[1,256], index: 3, kind: input, shape index: {}]   ;;  %s2952_s4 = inlined_call_operand.vmem [shape: bf16[128,128], index: 4, kind: input, shape index: {}]   ;;  %s2953_s5 = inlined_call_operand.vmem [shape: f32[1,128], index: 5, kind: input, shape index: {}]   ;;  %s2954_s6 = inlined_call_operand.vmem [shape: bf16[3,256,128], index: 6, kind: input, shape index: {}]   ;;  %s2955_s7 = inlined_call_operand.vmem [shape: f32[1,128], index: 7, kind: input, shape index: {}]   ;;  %s2956_s8 = inlined_call_operand.vmem [shape: f32[2,32,1], index: 8, kind: input, shape index: {}]   ;;  %s2957_s9 = inlined_call_operand.vmem [shape: bf16[2,32,128], index: 9, kind: output, shape index: {}]  }
   0x1 LB: > { %s1819_s10 = sadd.s32 4294967295, %s2336_s30   ;;  %p1823_p0 = scmp.ge.s32.totalorder %s2336_s30, 1  ;;  %s2336_s30 = sphi %s2389_s30, %s19_s30  }
   0x2   : > { %p297_p1 = scmp.lt.s32.totalorder %s2336_s30, 3 }
   0x4   : > { %p298_p2 = pnand %p1823_p0, %p297_p1 }
   0x5   : > { %v2193_v0 = vld [vmem:[%s2950_s2 + $0x4] ss:$8 sps:$4 sm:$0xff] (!%p298_p2)   ;;  %p338_p3 = scmp.lt.s32.totalorder (!%p298_p2), %s1819_s10, 1  ;;  %v2195_v1 = vld [vmem:[%s2950_s2] ss:$8 sps:$4 sm:$0xff] (!%p298_p2)   ;;  %v2338_v2 = vmov (!%p298_p2), 0  }
   0x6   : > { %301 = sbr.rel (%p298_p2) target bundleno = 643 (0x283), region = 56  ;;  %559 = vmatprep.mubr.bf16.mxu0 (!%p298_p2), %v2338_v2  ;;  %2191 = vset.pattern.permute.xlu0 (!%p298_p2), %v2338_v2  ;;  %v2196_v3 = vld [vmem:[%s2950_s2 + $0x14] ss:$8 sps:$4 sm:$0xff] (!%p298_p2)   ;;  %v2198_v4 = vld [vmem:[%s2950_s2 + $0x10] ss:$8 sps:$4 sm:$0xff] (!%p298_p2)   ;;  %v2248_v23 = vld [vmem:[%s2952_s4] sm:$0xff] (!%p298_p2)  }
   0x7   : > { %527 = vmatprep.subr.bf16.mxu0 (!%p298_p2), %v2193_v0  ;;  %2192 = vset.pattern.permute.xlu1 (!%p298_p2), %v2338_v2  ;;  %v2199_v5 = vld [vmem:[%s2950_s2 + $0x24] ss:$8 sps:$4 sm:$0xff] (!%p298_p2)   ;;  %v2201_v6 = vld [vmem:[%s2950_s2 + $0x20] ss:$8 sps:$4 sm:$0xff] (!%p298_p2)   ;;  %v2202_v7 = vld [vmem:[%s2950_s2 + $0x34] ss:$8 sps:$4 sm:$0xff] (!%p298_p2)  }
   0x8   : > { %528 = vmatpush1.bf16.msra.mxu0 (!%p298_p2), %v2195_v1  ;;  %v2204_v8 = vld [vmem:[%s2950_s2 + $0x30] ss:$8 sps:$4 sm:$0xff] (!%p298_p2)   ;;  %v2205_v9 = vld [vmem:[%s2950_s2 + $0x44] ss:$8 sps:$4 sm:$0xff] (!%p298_p2)   ;;  %v2207_v10 = vld [vmem:[%s2950_s2 + $0x40] ss:$8 sps:$4 sm:$0xff] (!%p298_p2)   ;;  %2137 = vmatprep.subr.bf16.mxu1 (!%p298_p2), %v2248_v23 }
   0x9   : > { %529 = vmatprep.subr.bf16.mxu0 (!%p298_p2), %v2196_v3  ;;  %v2208_v12 = vld [vmem:[%s2950_s2 + $0x54] ss:$8 sps:$4 sm:$0xff] (!%p298_p2)   ;;  %v2210_v13 = vld [vmem:[%s2950_s2 + $0x50] ss:$8 sps:$4 sm:$0xff] (!%p298_p2)   ;;  %v2211_v16 = vld [vmem:[%s2950_s2 + $0x64] ss:$8 sps:$4 sm:$0xff] (!%p298_p2)   ;;  %2138 = vmatpush3.bf16.msra.mxu1 (!%p298_p2), %v2248_v23 }
   0xa   : > { %v2213_v17 = vld [vmem:[%s2950_s2 + $0x60] ss:$8 sps:$4 sm:$0xff] (!%p298_p2)   ;;  %v2214_v21 = vld [vmem:[%s2950_s2 + $0x74] ss:$8 sps:$4 sm:$0xff] (!%p298_p2)   ;;  %v2216_v22 = vld [vmem:[%s2950_s2 + $0x70] ss:$8 sps:$4 sm:$0xff] (!%p298_p2)  }
   0xb   : > { %v2219_v24 = vld [vmem:[%s2949_s1 + $0x4] ss:$8 sps:$4 sm:$0xff] (!%p298_p2)   ;;  %vm424_vm0 = vsmask.f32 (!%p298_p2), 7424  ;;  %v2256_v28 = vld [vmem:[%s2952_s4 + $0x10] sm:$0xff] (!%p298_p2)   ;;  %v2260_v32 = vld [vmem:[%s2952_s4 + $0x18] sm:$0xff] (!%p298_p2)  }
   0xc   : > { %530 = vmatpush1.bf16.msra.mxu0 (!%p298_p2), %v2198_v4  ;;  %v2252_v27 = vld [vmem:[%s2952_s4 + $0x8] sm:$0xff] (!%p298_p2)   ;;  %v2226_v31 = vld [vmem:[%s2949_s1 + $0x14] ss:$8 sps:$4 sm:$0xff] (!%p298_p2)   ;;  %v2224_v33 = vld [vmem:[%s2949_s1 + $0x10] ss:$8 sps:$4 sm:$0xff] (!%p298_p2)   ;;  %vm859_vm1 = vcmask (!%p298_p2), 1040384  }
   0xd   : > { %s2969_s10 = smov (!%p338_p3, %s1819_s10), 1  ;;  %531 = vmatprep.subr.bf16.mxu0 %v2199_v5  ;;  %2139 = vmatprep.subr.bf16.mxu1 %v2252_v27  ;;  %v2217_v29 = vld [vmem:[%s2949_s1] ss:$8 sps:$4 sm:$0xff]   ;;  %v2229_v34 = vld [vmem:[%s2949_s1 + $0x24] ss:$8 sps:$4 sm:$0xff]   ;;  %v2273_v48 = vld [vmem:[%s2952_s4 + $0x30] sm:$0xff]  }
   0xe   : > { %s2181_s23 = smul.u32 40, %s2969_s10  ;;  %2140 = vmatpush3.bf16.msra.mxu1 %v2252_v27  ;;  %v2264_v36 = vld [vmem:[%s2952_s4 + $0x20] sm:$0xff]   ;;  %s2022_s11 = sshll.u32 %s2969_s10, 5  ;;  %v2232_v39 = vld [vmem:[%s2949_s1 + $0x34] ss:$8 sps:$4 sm:$0xff]   ;;  %v2268_v42 = vld [vmem:[%s2952_s4 + $0x28] sm:$0xff]  }
   0xf   : > { %2141 = vmatprep.subr.bf16.mxu1 %v2256_v28  ;;  %v2227_v38 = vld [vmem:[%s2949_s1 + $0x20] ss:$8 sps:$4 sm:$0xff]   ;;  %s347_s21 = scalar_lea.vmem %s2956_s8, %s2022_s11  ;;  %v2230_v44 = vld [vmem:[%s2949_s1 + $0x30] ss:$8 sps:$4 sm:$0xff]   ;;  %v2235_v45 = vld [vmem:[%s2949_s1 + $0x44] ss:$8 sps:$4 sm:$0xff]  }
  0x10   : > { %532 = vmatpush1.bf16.msra.mxu0 %v2201_v6  ;;  %s2430_s13 = scalar_lea.vmem %s2948_s0, %s2181_s23  ;;  %v354_v49 = vld [vmem:[%s347_s21] sm:$0xff]  ;;  %v356_v50 = vld [vmem:[%s347_s21 + $0x10] sm:$0xff]  ;;  %v355_v53 = vld [vmem:[%s347_s21 + $0x8] sm:$0xff]  ;;  %vm860_vm2 = vsmask.f32 256  ;;  %vm862_vm3 = vcmask 1044484  }
  0x11   : > { %533 = vmatprep.subr.bf16.mxu0 %v2202_v7  ;;  %v2436_v11 = vld [vmem:[%s2430_s13] ss:$8 sps:$4 sm:$0xff]   ;;  %v2445_v14 = vld [vmem:[%s2430_s13 + $0x10] ss:$8 sps:$4 sm:$0xff]   ;;  %v2278_v46 = vld [vmem:[%s2430_s13 + $0x4] ss:$8 sps:$4 sm:$0xff]   ;;  %825 = vperm.xlu0 %2191, %v354_v49  }
  0x12   : > { %v428_v15 = vshll.u32 %v2436_v11, 16  ;;  %v426_v18 = vshrl.u32 %v2436_v11, 16  ;;  %v433_v20 = vshll.u32 %v2445_v14, 16  ;;  %2142 = vmatpush3.bf16.msra.mxu1 %v2256_v28  ;;  %v437_v35 = vshrl.u32 %v2445_v14, 16  ;;  %v2233_v51 = vld [vmem:[%s2949_s1 + $0x40] ss:$8 sps:$4 sm:$0xff]   ;;  %2153 = vmatprep.mubr.bf16.mxu1 %v2278_v46  ;;  %vm2614_vm5 = vmand %vm859_vm1, %vm860_vm2 }
  0x13   : > { %2143 = vmatprep.subr.bf16.mxu1 %v2260_v32  ;;  %v2269_v37 = vld [vmem:[%s2430_s13 + $0x20] ss:$0 sps:$4 sm:$0x11]   ;;  %v2238_v52 = vld [vmem:[%s2949_s1 + $0x54] ss:$8 sps:$4 sm:$0xff]   ;;  %835 = vperm.xlu1 %2192, %v356_v50   ;;  %v2285_v23 = vld [vmem:[%s2954_s6 + $0xc8] sm:$0xff]  }
  0x14   : > { %534 = vmatpush1.bf16.msra.mxu0 %v2204_v8  ;;  %v430_v19 = vrot.slane %v428_v15, 1  ;;  %v435_v26 = vrot.slane %v433_v20, 1  ;;  %v441_v41 = vshll.u32 %v2269_v37, 16  ;;  %v2277_v54 = vld [vmem:[%s2952_s4 + $0x38] sm:$0xff]   ;;  %v2241_v57 = vld [vmem:[%s2949_s1 + $0x64] ss:$8 sps:$4 sm:$0xff]  }
  0x15   : > { %535 = vmatprep.subr.bf16.mxu0 %v2205_v9  ;;  %v357_v55 = vld [vmem:[%s347_s21 + $0x18] sm:$0xff]  ;;  %830 = vperm.xlu0 %2191, %v355_v53   ;;  %v2239_v58 = vld [vmem:[%s2949_s1 + $0x60] ss:$8 sps:$4 sm:$0xff]   ;;  %v2247_v62 = vld [vmem:[%s2949_s1 + $0x84] ss:$8 sps:$4 sm:$0xff]   ;;  %vm939_vm13 = vcmask 1043456  }
  0x16   : > { %v431_v25 = vor.u32 %v430_v19, %v426_v18  ;;  %2144 = vmatpush3.bf16.msra.mxu1 %v2260_v32  ;;  %v439_v40 = vor.u32 %v437_v35, %v435_v26  ;;  %v443_v43 = vrot.slane %v441_v41, 1  ;;  %v2236_v56 = vld [vmem:[%s2949_s1 + $0x50] ss:$8 sps:$4 sm:$0xff]   ;;  %v2279_v59 = vld [vmem:[%s2430_s13 + $0x14] ss:$8 sps:$4 sm:$0xff]   ;;  %v2605_v18 = vld [vmem:[%s2954_s6 + $0x100] sm:$0xff]  }
  0x17   : > { %2145 = vmatprep.subr.bf16.mxu1 %v2264_v36  ;;  %840 = vperm.xlu1 %2192, %v357_v55   ;;  %v2244_v60 = vld [vmem:[%s2949_s1 + $0x74] ss:$8 sps:$4 sm:$0xff]   ;;  %v2242_v61 = vld [vmem:[%s2949_s1 + $0x70] ss:$8 sps:$4 sm:$0xff]   ;;  %v2245_v63 = vld [vmem:[%s2949_s1 + $0x80] ss:$8 sps:$4 sm:$0xff]  }
  0x18   : > { %536 = vmatpush1.bf16.msra.mxu0 %v2207_v10  ;;  %v436_v30 = vsel %vm424_vm0, %v431_v25, %v435_v26  ;;  %v444_v47 = vsel %vm424_vm0, %v439_v40, %v443_v43  ;;  %v2251_v0 = vld [vmem:[%s2949_s1 + $0x94] ss:$8 sps:$4 sm:$0xff]   ;;  %v2249_v1 = vld [vmem:[%s2949_s1 + $0x90] ss:$8 sps:$4 sm:$0xff]   ;;  %v2253_v3 = vld [vmem:[%s2949_s1 + $0xa0] ss:$8 sps:$4 sm:$0xff]  }
  0x19   : > { %537 = vmatprep.subr.bf16.mxu0 %v2208_v12  ;;  %v2259_v4 = vld [vmem:[%s2949_s1 + $0xb4] ss:$8 sps:$4 sm:$0xff]   ;;  %v2257_v5 = vld [vmem:[%s2949_s1 + $0xb0] ss:$8 sps:$4 sm:$0xff]   ;;  %v2263_v6 = vld [vmem:[%s2949_s1 + $0xc4] ss:$8 sps:$4 sm:$0xff]  }
  0x1a   : > { %2146 = vmatpush3.bf16.msra.mxu1 %v2264_v36  ;;  %v2261_v7 = vld [vmem:[%s2949_s1 + $0xc0] ss:$8 sps:$4 sm:$0xff]   ;;  %v2267_v8 = vld [vmem:[%s2949_s1 + $0xd4] ss:$8 sps:$4 sm:$0xff]   ;;  %v2265_v9 = vld [vmem:[%s2949_s1 + $0xd0] ss:$8 sps:$4 sm:$0xff]  }
  0x1b   : > { %2147 = vmatprep.subr.bf16.mxu1 %v2268_v42  ;;  %v2272_v10 = vld [vmem:[%s2949_s1 + $0xe4] ss:$8 sps:$4 sm:$0xff]   ;;  %v2270_v12 = vld [vmem:[%s2949_s1 + $0xe0] ss:$8 sps:$4 sm:$0xff]   ;;  %v2274_v15 = vld [vmem:[%s2949_s1 + $0xf0] ss:$8 sps:$4 sm:$0xff]  }
  0x1c   : > { %538 = vmatpush1.bf16.msra.mxu0 %v2210_v13  ;;  %v2276_v13 = vld [vmem:[%s2949_s1 + $0xf4] ss:$8 sps:$4 sm:$0xff]   ;;  %vm863_vm4 = vsmask.f32 4352  ;;  %v2621_v19 = vld [vmem:[%s2954_s6 + $0x148] sm:$0xff]   ;;  %vm941_vm14 = vcmask 1047556  }
  0x1d   : > { %539 = vmatprep.subr.bf16.mxu0 %v2211_v16  ;;  %v2597_v16 = vld [vmem:[%s2954_s6 + $0x140] sm:$0xff]   ;;  %vm2624_vm6 = vmand %vm862_vm3, %vm863_vm4  ;;  %vm869_vm7 = vsmask.f32 7938  ;;  %vm871_vm8 = vsmask.f32 7954  ;;  %v2646_v25 = vld [vmem:[%s2954_s6 + $0x108] sm:$0xff]  }
  0x1e   : > { %2148 = vmatpush3.bf16.msra.mxu1 %v2268_v42  ;;  %vm865_vm9 = vmor %vm2624_vm6, %vm2614_vm5  ;;  %v2287_v26 = vld [vmem:[%s2954_s6 + $0x88] sm:$0xff]   ;;  %v2656_v27 = vld [vmem:[%s2954_s6 + $0x150] sm:$0xff]   ;;  %vm897_vm4 = vsmask.f32 4368  ;;  %s2023_s27 = sshll.u32 %s2969_s10, 4 }
  0x1f   : > { %2149 = vmatprep.subr.bf16.mxu1 %v2273_v48  ;;  %vm870_vm10 = vmand %vm859_vm1, %vm869_vm7  ;;  %v2289_v28 = vld [vmem:[%s2954_s6 + $0xd0] sm:$0xff]   ;;  %v2674_v32 = vld [vmem:[%s2954_s6 + $0x158] sm:$0xff]   ;;  %s352_s29 = scalar_lea.vmem %s2957_s9, %s2023_s27 }
  0x20   : > { %540 = vmatpush1.bf16.msra.mxu0 %v2213_v17  ;;  %v2281_v17 = vld [vmem:[%s2954_s6 + $0xc0] sm:$0xff]   ;;  %vm872_vm11 = vmand %vm862_vm3, %vm871_vm8  ;;  %v2688_v35 = vld [vmem:[%s2954_s6 + $0x118] sm:$0xff]  }
  0x21   : > { %541 = vmatprep.subr.bf16.mxu0 %v2214_v21  ;;  %v866_v21 = vld [vmem:[#allocation2] sm:$0x11]  ;;  %vm873_vm12 = vmor %vm872_vm11, %vm870_vm10  ;;  %v2295_v36 = vld [vmem:[%s2954_s6 + $0x98] sm:$0xff]  }
  0x22   : > { %2150 = vmatpush3.bf16.msra.mxu1 %v2273_v48  ;;  %vm2680_vm15 = vmand %vm939_vm13, %vm869_vm7  ;;  %v2715_v40 = vld [vmem:[%s2954_s6 + $0x120] sm:$0xff]   ;;  %v2724_v42 = vld [vmem:[%s2954_s6 + $0x168] sm:$0xff]  }
  0x23   : > { %2151 = vmatprep.subr.bf16.mxu1 %v2277_v54  ;;  %vm2694_vm1 = vmand %vm941_vm14, %vm871_vm8  ;;  %v2299_v41 = vld [vmem:[%s2954_s6 + $0xa0] sm:$0xff]   ;;  %v2301_v43 = vld [vmem:[%s2954_s6 + $0xe8] sm:$0xff]  }
  0x24   : > { %542 = vmatpush1.bf16.msra.mxu0 %v2216_v22  ;;  %v874_v22 = vld [vmem:[#allocation2 + $0x20] sm:$0x11]  ;;  %vm943_vm3 = vmor %vm2694_vm1, %vm2680_vm15  ;;  %v2751_v48 = vld [vmem:[%s2954_s6 + $0x130] sm:$0xff]  }
  0x25   : > { %750 = vmatprep.subr.bf16.mxu0 %v2219_v24  ;;  %v867_v24 = vsel %vm865_vm9, 0, %v866_v21  ;;  %v2307_v49 = vld [vmem:[%s2954_s6 + $0xb0] sm:$0xff]   ;;  %v2760_v50 = vld [vmem:[%s2954_s6 + $0x178] sm:$0xff]   ;;  %vm2807_vm7 = vmor %vm860_vm2, %vm897_vm4  ;;  %vm1545_vm2 = vcmask 1046528  }
  0x26   : > { %2152 = vmatpush3.bf16.msra.mxu1 %v2277_v54  ;;  %868 = vst [vmem:[#allocation2] sm:$0x11] %v867_v24  ;;  %v2311_v53 = vld [vmem:[%s2954_s6 + $0xb8] sm:$0xff]   ;;  %v2312_v54 = vld [vmem:[%s2954_s6 + $0x40] sm:$0xff]  }
  0x27   : > { %560 = vmatmul.mubr.bf16.vlgmr.msra.gmra.mrb[0].mxu0 %v436_v30  ;;  %2053 = vmatprep.subr.bf16.mxu1 %v2281_v17  ;;  %v2291_v30 = vld [vmem:[%s2954_s6 + $0x90] sm:$0xff]  }
  0x28   : > { %751 = vmatpush1.bf16.msra.mxu0 %v2217_v29  ;;  %569 = vmatprep.mubr.bf16.mxu0 %v2338_v2  ;;  %v2255_v2 = vld [vmem:[%s2949_s1 + $0xa4] ss:$8 sps:$4 sm:$0xff]   ;;  %v2665_v29 = vld [vmem:[%s2954_s6 + $0x110] sm:$0xff]  }
  0x29   : > { %752 = vmatprep.subr.bf16.mxu0 %v2226_v31  ;;  %2154 = vmatmul.mubr.bf16.vlgmr.msra.gmra.mrb[0].mxu1 %v2279_v59  ;;  %v875_v31 = vsel %vm873_vm12, 0, %v874_v22 }
  0x2a   : > { %876 = vst [vmem:[#allocation2 + $0x20] sm:$0x11] %v875_v31 }
  0x2c   : > { %753 = vmatpush1.bf16.msra.mxu0 %v2224_v33  ;;  %v2293_v33 = vld [vmem:[%s2954_s6 + $0xd8] sm:$0xff]  }
  0x2d   : > { %754 = vmatprep.subr.bf16.mxu0 %v2229_v34 }
  0x2f   : > { %570 = vmatmul.mubr.bf16.gmra.mrb[4].mxu0 %v444_v47  ;;  %v2305_v47 = vld [vmem:[%s2954_s6 + $0xf0] sm:$0xff]  }
  0x30   : > { %755 = vmatpush1.bf16.msra.mxu0 %v2227_v38  ;;  %782 = vmatprep.mubr.bf16.mxu0 %v2278_v46  ;;  %v2706_v38 = vld [vmem:[%s2954_s6 + $0x160] sm:$0xff]   ;;  %v2742_v46 = vld [vmem:[%s2954_s6 + $0x170] sm:$0xff]  }
  0x31   : > { %756 = vmatprep.subr.bf16.mxu0 %v2232_v39  ;;  %v2297_v39 = vld [vmem:[%s2954_s6 + $0xe0] sm:$0xff]  }
  0x34   : > { %757 = vmatpush1.bf16.msra.mxu0 %v2230_v44  ;;  %v2733_v44 = vld [vmem:[%s2954_s6 + $0x128] sm:$0xff]  }
  0x35   : > { %758 = vmatprep.subr.bf16.mxu0 %v2235_v45  ;;  %v2303_v45 = vld [vmem:[%s2954_s6 + $0xa8] sm:$0xff]  }
  0x38   : > { %759 = vmatpush1.bf16.msra.mxu0 %v2233_v51  ;;  %v2309_v51 = vld [vmem:[%s2954_s6 + $0xf8] sm:$0xff]  }
  0x39   : > { %760 = vmatprep.subr.bf16.mxu0 %v2238_v52  ;;  %v2769_v52 = vld [vmem:[%s2954_s6 + $0x138] sm:$0xff]  }
  0x3c   : > { %761 = vmatpush1.bf16.msra.mxu0 %v2236_v56 }
  0x3d   : > { %762 = vmatprep.subr.bf16.mxu0 %v2241_v57 }
  0x40   : > { %763 = vmatpush1.bf16.msra.mxu0 %v2239_v58 }
  0x41   : > { %764 = vmatprep.subr.bf16.mxu0 %v2244_v60 }
  0x44   : > { %765 = vmatpush1.bf16.msra.mxu0 %v2242_v61 }
  0x45   : > { %766 = vmatprep.subr.bf16.mxu0 %v2247_v62  ;;  %v803_v62 = vld [vmem:[%s2951_s3] sm:$0x3] }
  0x48   : > { %767 = vmatpush1.bf16.msra.mxu0 %v2245_v63 }
  0x49   : > { %768 = vmatprep.subr.bf16.mxu0 %v2251_v0 }
  0x4c   : > { %769 = vmatpush1.bf16.msra.mxu0 %v2249_v1 }
  0x4d   : > { %770 = vmatprep.subr.bf16.mxu0 %v2255_v2 }
  0x50   : > { %771 = vmatpush1.bf16.msra.mxu0 %v2253_v3 }
  0x51   : > { %772 = vmatprep.subr.bf16.mxu0 %v2259_v4 }
  0x54   : > { %773 = vmatpush1.bf16.msra.mxu0 %v2257_v5 }
  0x55   : > { %774 = vmatprep.subr.bf16.mxu0 %v2263_v6 }
  0x58   : > { %775 = vmatpush1.bf16.msra.mxu0 %v2261_v7 }
  0x59   : > { %776 = vmatprep.subr.bf16.mxu0 %v2267_v8 }
  0x5c   : > { %777 = vmatpush1.bf16.msra.mxu0 %v2265_v9 }
  0x5d   : > { %778 = vmatprep.subr.bf16.mxu0 %v2272_v10 }
  0x60   : > { %779 = vmatpush1.bf16.msra.mxu0 %v2270_v12 }
  0x61   : > { %780 = vmatprep.subr.bf16.mxu0 %v2276_v13 }
  0x64   : > { %781 = vmatpush1.bf16.msra.mxu0 %v2274_v15 }
  0x65   : > { %2109 = vmatprep.subr.bf16.mxu0 %v2597_v16 }
  0x67   : > { %783 = vmatmul.mubr.bf16.vlgmr.msra.gmra.mrb[0].mxu0 %v2436_v11  ;;  %v2283_v11 = vld [vmem:[%s2954_s6 + $0x80] sm:$0xff]  }
  0x68   : > { %792 = vmatprep.mubr.bf16.mxu0 %v2279_v59  ;;  %2110 = vmatpush3.bf16.msra.mxu0 %v2605_v18  ;;  %v805_v59 = vlaneseq }
  0x69   : > { %2054 = vmatpush3.bf16.msra.mxu1 %v2283_v11  ;;  %2111 = vmatprep.subr.bf16.mxu0 %v2621_v19 }
  0x6a   : > { %2055 = vmatprep.subr.bf16.mxu1 %v2285_v23  ;;  %v806_v60 = vshrl.u32 %v805_v59, 7 }
  0x6c   : > { %2112 = vmatpush3.bf16.msra.mxu0 %v2646_v25  ;;  %v807_v61 = vsub.s32 0, %v806_v60  ;;  %v811_v63 = vsub.s32 1, %v806_v60 }
  0x6d   : > { %2056 = vmatpush3.bf16.msra.mxu1 %v2287_v26  ;;  %2113 = vmatprep.subr.bf16.mxu0 %v2656_v27 }
  0x6e   : > { %2057 = vmatprep.subr.bf16.mxu1 %v2289_v28  ;;  %v808_v1 = vrot.slane %v803_v62, %v807_v61  ;;  %v812_v2 = vrot.slane %v803_v62, %v811_v63  ;;  %v944_v61 = vld [vmem:[#allocation2] sm:$0xff] }
  0x6f   : > { %793 = vmatmul.mubr.bf16.gmra.mrb[4].mxu0 %v2445_v14 }
  0x70   : > { %2114 = vmatpush3.bf16.msra.mxu0 %v2665_v29 }
  0x71   : > { %2058 = vmatpush3.bf16.msra.mxu1 %v2291_v30  ;;  %2115 = vmatprep.subr.bf16.mxu0 %v2674_v32 }
  0x72   : > { %2059 = vmatprep.subr.bf16.mxu1 %v2293_v33 }
  0x74   : > { %2116 = vmatpush3.bf16.msra.mxu0 %v2688_v35 }
  0x75   : > { %2060 = vmatpush3.bf16.msra.mxu1 %v2295_v36  ;;  %2117 = vmatprep.subr.bf16.mxu0 %v2706_v38 }
  0x76   : > { %2061 = vmatprep.subr.bf16.mxu1 %v2297_v39 }
  0x78   : > { %2118 = vmatpush3.bf16.msra.mxu0 %v2715_v40 }
  0x79   : > { %2062 = vmatpush3.bf16.msra.mxu1 %v2299_v41  ;;  %2119 = vmatprep.subr.bf16.mxu0 %v2724_v42 }
  0x7a   : > { %2063 = vmatprep.subr.bf16.mxu1 %v2301_v43 }
  0x7c   : > { %2120 = vmatpush3.bf16.msra.mxu0 %v2733_v44 }
  0x7d   : > { %2064 = vmatpush3.bf16.msra.mxu1 %v2303_v45  ;;  %2121 = vmatprep.subr.bf16.mxu0 %v2742_v46 }
  0x7e   : > { %2065 = vmatprep.subr.bf16.mxu1 %v2305_v47 }
  0x80   : > { %2122 = vmatpush3.bf16.msra.mxu0 %v2751_v48 }
  0x81   : > { %2066 = vmatpush3.bf16.msra.mxu1 %v2307_v49  ;;  %2123 = vmatprep.subr.bf16.mxu0 %v2760_v50 }
  0x82   : > { %2067 = vmatprep.subr.bf16.mxu1 %v2309_v51 }
  0x84   : > { %2124 = vmatpush3.bf16.msra.mxu0 %v2769_v52 }
  0x85   : > { %2068 = vmatpush3.bf16.msra.mxu1 %v2311_v53 }
  0x86   : > { %2081 = vmatprep.subr.bf16.mxu1 %v2312_v54 }
  0x90   : > { %v2790_v0 = vpop.permute.xlu0 %825 }
  0x92   : > { %v2798_v23 = vpop.permute.xlu1 %835 }
  0x94   : > { %v2792_v8 = vpop.permute.xlu0 %830 }
  0x96   : > { %v2801_v59 = vpop.permute.xlu1 %840 }
  0xfc   : > { %v2779_v55 = vpop.f32.mrb[0].mxu1 }
  0xfd   : > { %v2781_v56 = vpop.f32.mrb[1].mxu1 }
  0xfe   : > { %v2783_v57 = vpop.f32.mrb[2].mxu1 }
  0xff   : > { %v2785_v58 = vpop.f32.mrb[3].mxu1 }
 0x13a   : > { %v784_v3 = vpop.f32.mrb[0].mxu0 }
 0x13b   : > { %v815_v4 = vadd.f32 %v808_v1, %v784_v3  ;;  %v786_v5 = vpop.f32.mrb[1].mxu0 }
 0x13c   : > { %v816_v6 = vadd.f32 %v812_v2, %v786_v5  ;;  %v788_v7 = vpop.f32.mrb[2].mxu0 }
 0x13d   : > { %v843_v9 = vmul.f32 %v2790_v0, %v815_v4  ;;  %v817_v10 = vadd.f32 %v808_v1, %v788_v7  ;;  %v790_v12 = vpop.f32.mrb[3].mxu0 }
 0x13e   : > { %v844_v13 = vmul.f32 %v2790_v0, %v816_v6  ;;  %v818_v15 = vadd.f32 %v812_v2, %v790_v12 }
 0x13f   : > { %v851_v17 = vmax.f32 %v843_v9, 0.0  ;;  %v845_v11 = vmul.f32 %v2792_v8, %v817_v10 }
 0x140   : > { %v852_v21 = vmax.f32 %v844_v13, 0.0  ;;  %v846_v22 = vmul.f32 %v2792_v8, %v818_v15 }
 0x141   : > { %v853_v24 = vmax.f32 %v845_v11, 0.0 }
 0x142   : > { %v2024_v26 = vpack.c.bf16 %v852_v21, %v851_v17  ;;  %v854_v28 = vmax.f32 %v846_v22, 0.0  ;;  %v794_v30 = vpop.f32.mrb[4].mxu0 }
 0x143   : > { %v819_v31 = vadd.f32 %v808_v1, %v794_v30  ;;  %v796_v33 = vpop.f32.mrb[5].mxu0 }
 0x144   : > { %v900_v36 = vshrl.u32 %v2024_v26, 16  ;;  %v2025_v39 = vpack.c.bf16 %v854_v28, %v853_v24  ;;  %v820_v41 = vadd.f32 %v812_v2, %v796_v33  ;;  %v798_v43 = vpop.f32.mrb[6].mxu0  ;;  %v903_v53 = vshll.u32 %v2024_v26, 16 }
 0x145   : > { %v847_v45 = vmul.f32 %v2798_v23, %v819_v31  ;;  %v821_v47 = vadd.f32 %v808_v1, %v798_v43  ;;  %v800_v49 = vpop.f32.mrb[7].mxu0 }
 0x146   : > { %v902_v51 = vrot.slane %v900_v36, 7  ;;  %v908_v54 = vshrl.u32 %v2025_v39, 16  ;;  %v848_v60 = vmul.f32 %v2798_v23, %v820_v41  ;;  %v822_v3 = vadd.f32 %v812_v2, %v800_v49 }
 0x147   : > { %v855_v62 = vmax.f32 %v847_v45, 0.0  ;;  %v849_v63 = vmul.f32 %v2801_v59, %v821_v47  ;;  %v911_v6 = vshll.u32 %v2025_v39, 16  ;;  %v950_v47 = vld [vmem:[#allocation2 + $0x20] sm:$0x11] }
 0x148   : > { %v905_v4 = vor.u32 %v903_v53, %v902_v51  ;;  %v910_v5 = vrot.slane %v908_v54, 7  ;;  %v856_v7 = vmax.f32 %v848_v60, 0.0  ;;  %v850_v10 = vmul.f32 %v2801_v59, %v822_v3 }
 0x149   : > { %v857_v9 = vmax.f32 %v849_v63, 0.0  ;;  %v906_v12 = vrot.slane %v902_v51, 4 }
 0x14a   : > { %v945_v2 = vsel %vm943_vm3, %v905_v4, %v944_v61  ;;  %v913_v13 = vor.u32 %v911_v6, %v910_v5  ;;  %v2026_v15 = vpack.c.bf16 %v856_v7, %v855_v62  ;;  %v858_v17 = vmax.f32 %v850_v10, 0.0 }
 0x14b   : > { %946 = vst [vmem:[#allocation2] sm:$0xff] %v945_v2  ;;  %v915_v31 = vrot.slane %v910_v5, 4 }
 0x14c   : > { %v914_v11 = vsel %vm2807_vm7, %v906_v12, %v913_v13  ;;  %v917_v21 = vshrl.u32 %v2026_v15, 16  ;;  %v2027_v22 = vpack.c.bf16 %v858_v17, %v857_v9  ;;  %v920_v30 = vshll.u32 %v2026_v15, 16 }
 0x14d   : > { %v2819_v24 = vcombine.high %v945_v2, %v914_v11  ;;  %v2821_v26 = vcombine.low %v945_v2, %v914_v11 }
 0x14e   : > { %v919_v28 = vrot.slane %v917_v21, 7  ;;  %v926_v37 = vshrl.u32 %v2027_v22, 16  ;;  %v929_v36 = vshll.u32 %v2027_v22, 16  ;;  %v2313_v22 = vld [vmem:[%s2954_s6] sm:$0xff]  }
 0x14f   : > { %v1183_v39 = vshll.u32 %v2819_v24, 16  ;;  %v1171_v41 = vshll.u32 %v2821_v26, 16  ;;  %v1181_v9 = vshrl.u32 %v2819_v24, 16  ;;  %v1169_v1 = vshrl.u32 %v2821_v26, 16 }
 0x150   : > { %v922_v34 = vor.u32 %v920_v30, %v919_v28  ;;  %v928_v33 = vrot.slane %v926_v37, 7  ;;  %v924_v45 = vrot.slane %v919_v28, 4  ;;  %v2315_v37 = vld [vmem:[%s2954_s6 + $0x48] sm:$0xff]  }
 0x151   : > { %v1185_v63 = vrot.slane %v1183_v39, 1  ;;  %v1173_v3 = vrot.slane %v1171_v41, 1  ;;  %v2316_v39 = vld [vmem:[%s2954_s6 + $0x8] sm:$0xff]  }
 0x152   : > { %v923_v43 = vsel %vm2807_vm7, %v915_v31, %v922_v34  ;;  %v1506_v49 = vld [vmem:[#allocation2] sm:$0xee]  ;;  %v931_v51 = vor.u32 %v929_v36, %v928_v33  ;;  %v933_v53 = vrot.slane %v928_v33, 4 }
 0x153   : > { %v1997_v54 = vcombine.low %v1506_v49, %v914_v11  ;;  %v1998_v60 = vcombine.high %v1506_v49, %v914_v11  ;;  %v1186_v2 = vor.u32 %v1185_v63, %v1181_v9  ;;  %v1174_v13 = vor.u32 %v1173_v3, %v1169_v1  ;;  %v2322_v9 = vld [vmem:[%s2954_s6 + $0x60] sm:$0xff]  }
 0x154   : > { %v932_v61 = vsel %vm2807_vm7, %v924_v45, %v931_v51  ;;  %v951_v62 = vsel %vm865_vm9, %v933_v53, %v950_v47  ;;  %v2323_v1 = vld [vmem:[%s2954_s6 + $0x20] sm:$0xff]  }
 0x155   : > { %952 = vst [vmem:[#allocation2 + $0x20] sm:$0x11] %v951_v62  ;;  %v2834_v4 = vcombine.low %v923_v43, %v932_v61  ;;  %v2836_v5 = vcombine.high %v923_v43, %v932_v61  ;;  %v1546_v6 = vrot.slane %v1997_v54, 1  ;;  %v1549_v7 = vrot.slane %v1998_v60, 1  ;;  %v2317_v43 = vld [vmem:[%s2954_s6 + $0x50] sm:$0xff]  }
 0x156   : > { %v2319_v62 = vld [vmem:[%s2954_s6 + $0x10] sm:$0xff]  }
 0x157   : > { %v1550_v20 = vrot.slane %v2836_v5, 1  ;;  %v1547_v14 = vrot.slane %v2834_v4, 1  ;;  %v1188_v10 = vshll.u32 %v2836_v5, 16  ;;  %v1176_v12 = vshll.u32 %v2834_v4, 16 }
 0x158   : > { %v1200_v36 = vshrl.u32 %v2836_v5, 16  ;;  %v1192_v45 = vshrl.u32 %v2834_v4, 16 }
 0x159   : > { %v1551_v15 = vsel %vm1545_vm2, %v1549_v7, %v1550_v20  ;;  %v1548_v17 = vsel %vm1545_vm2, %v1546_v6, %v1547_v14  ;;  %v1190_v11 = vrot.slane %v1188_v10, 1  ;;  %v1178_v21 = vrot.slane %v1176_v12, 1  ;;  %v2320_v6 = vld [vmem:[%s2954_s6 + $0x58] sm:$0xff]   ;;  %v2326_v10 = vld [vmem:[%s2954_s6 + $0x70] sm:$0xff]  }
 0x15a   : > { %1688 = vmatprep.mubr.bf16.mxu0 %v1551_v15  ;;  %v2321_v7 = vld [vmem:[%s2954_s6 + $0x18] sm:$0xff]   ;;  %v2327_v12 = vld [vmem:[%s2954_s6 + $0x30] sm:$0xff]  }
 0x15b   : > { %1689 = vmatmul.mubr.bf16.vlgmr.msra.gmra.mrb[8].mxu0 %v1548_v17  ;;  %v1191_v28 = vsel %vm424_vm0, %v1186_v2, %v1190_v11  ;;  %v1179_v30 = vsel %vm424_vm0, %v1174_v13, %v1178_v21  ;;  %v1202_v51 = vor.u32 %v1200_v36, %v1190_v11  ;;  %v1194_v54 = vor.u32 %v1192_v45, %v1178_v21  ;;  %v2328_v2 = vld [vmem:[%s2954_s6 + $0x78] sm:$0xff]  }
 0x15c   : > { %1340 = vmatprep.mubr.bf16.mxu1 %v1191_v28  ;;  %v1113_v31 = vld [vmem:[#allocation2 + $0x20] sm:$0x11]  ;;  %v2329_v13 = vld [vmem:[%s2954_s6 + $0x38] sm:$0xff]  }
 0x15d   : > { %1341 = vmatmul.mubr.bf16.vlgmr.msra.gmra.mrb[4].mxu1 %v1179_v30  ;;  %v1932_v34 = vcombine.high %v1113_v31, %v1113_v31  ;;  %v1931_v33 = vcombine.low %v1113_v31, %v1113_v31  ;;  %v2015_v31 = vld [vmem:[%s2955_s7] ss:$0 sm:$0xff] }
 0x15e   : > { %2082 = vmatpush3.bf16.msra.mxu1 %v2313_v22  ;;  %v1886_v22 = vld [vmem:[%s2953_s5] ss:$0 sm:$0xff] }
 0x15f   : > { %v1204_v41 = vshll.u32 %v1932_v34, 16  ;;  %2083 = vmatprep.subr.bf16.mxu1 %v2315_v37  ;;  %v1196_v47 = vshll.u32 %v1931_v33, 16  ;;  %v1552_v49 = vrot.slane %v1931_v33, 1  ;;  %v1554_v15 = vrot.slane %v1932_v34, 1 }
 0x160   : > { %v1059_v34 = vadd.f32 %v1886_v22, %v2781_v56 }
 0x161   : > { %v1206_v53 = vrot.slane %v1204_v41, 1  ;;  %v1198_v60 = vrot.slane %v1196_v47, 1  ;;  %v1553_v61 = vsel %vm1545_vm2, %v1547_v14, %v1552_v49  ;;  %v2324_v14 = vld [vmem:[%s2954_s6 + $0x68] sm:$0xff]   ;;  %v1555_v17 = vsel %vm1545_vm2, %v1550_v20, %v1554_v15 }
 0x162   : > { %2084 = vmatpush3.bf16.msra.mxu1 %v2316_v39  ;;  %v1062_v39 = vadd.f32 %v1886_v22, %v2785_v58  ;;  %v1073_v49 = vmul.f32 %v1059_v34, %v2790_v0 }
 0x163   : > { %v1207_v63 = vsel %vm424_vm0, %v1202_v51, %v1206_v53  ;;  %2085 = vmatprep.subr.bf16.mxu1 %v2317_v43  ;;  %v1199_v3 = vsel %vm424_vm0, %v1194_v54, %v1198_v60 }
 0x164   : > { %1348 = vmatprep.mubr.bf16.mxu1 %v1207_v63 }
 0x165   : > { %1349 = vmatmul.mubr.bf16.gmra.mrb[8].mxu1 %v1199_v3 }
 0x166   : > { %2086 = vmatpush3.bf16.msra.mxu1 %v2319_v62  ;;  %1489 = vmatprep.mubr.bf16.mxu1 %v2819_v24  ;;  %v2325_v24 = vld [vmem:[%s2954_s6 + $0x28] sm:$0xff]  }
 0x167   : > { %2087 = vmatprep.subr.bf16.mxu1 %v2320_v6 }
 0x16a   : > { %2088 = vmatpush3.bf16.msra.mxu1 %v2321_v7 }
 0x16b   : > { %2089 = vmatprep.subr.bf16.mxu1 %v2322_v9 }
 0x16e   : > { %2090 = vmatpush3.bf16.msra.mxu1 %v2323_v1 }
 0x16f   : > { %2091 = vmatprep.subr.bf16.mxu1 %v2324_v14 }
 0x172   : > { %2092 = vmatpush3.bf16.msra.mxu1 %v2325_v24 }
 0x173   : > { %2093 = vmatprep.subr.bf16.mxu1 %v2326_v10 }
 0x176   : > { %2094 = vmatpush3.bf16.msra.mxu1 %v2327_v12 }
 0x177   : > { %2095 = vmatprep.subr.bf16.mxu1 %v2328_v2 }
 0x17a   : > { %2096 = vmatpush3.bf16.msra.mxu1 %v2329_v13 }
 0x17b   : > { %2157 = vmatprep.subr.bf16.mxu1 %v2597_v16 }
 0x17d   : > { %1490 = vmatmul.mubr.bf16.vlgmr.msra.gmra.mrb[12].mxu1 %v2821_v26 }
 0x17e   : > { %1497 = vmatprep.mubr.bf16.mxu1 %v2836_v5  ;;  %2165 = vmatpush3.bf16.msra.mxu1 %v2605_v18 }
 0x17f   : > { %2158 = vmatprep.subr.bf16.mxu1 %v2621_v19 }
 0x182   : > { %2166 = vmatpush3.bf16.msra.mxu1 %v2646_v25 }
 0x183   : > { %2159 = vmatprep.subr.bf16.mxu1 %v2656_v27 }
 0x185   : > { %1498 = vmatmul.mubr.bf16.gmra.mrb[16].mxu1 %v2834_v4 }
 0x186   : > { %2167 = vmatpush3.bf16.msra.mxu1 %v2665_v29  ;;  %1696 = vmatprep.mubr.bf16.mxu1 %v1555_v17  ;;  %v1070_v17 = vadd.f32 %v2783_v57, %v1886_v22 }
 0x187   : > { %2160 = vmatprep.subr.bf16.mxu1 %v2674_v32 }
 0x18a   : > { %2168 = vmatpush3.bf16.msra.mxu1 %v2688_v35 }
 0x18b   : > { %2161 = vmatprep.subr.bf16.mxu1 %v2706_v38 }
 0x18e   : > { %2169 = vmatpush3.bf16.msra.mxu1 %v2715_v40 }
 0x18f   : > { %2162 = vmatprep.subr.bf16.mxu1 %v2724_v42 }
 0x192   : > { %2170 = vmatpush3.bf16.msra.mxu1 %v2733_v44 }
 0x193   : > { %2163 = vmatprep.subr.bf16.mxu1 %v2742_v46 }
 0x196   : > { %2171 = vmatpush3.bf16.msra.mxu1 %v2751_v48 }
 0x197   : > { %2164 = vmatprep.subr.bf16.mxu1 %v2760_v50 }
 0x19a   : > { %2172 = vmatpush3.bf16.msra.mxu1 %v2769_v52 }
 0x19d   : > { %1697 = vmatmul.mubr.bf16.vlgmr.msra.gmra.mrb[20].mxu1 %v1553_v61  ;;  %v1074_v61 = vmul.f32 %v1062_v39, %v2792_v8 }
 0x22e   : > { %v2125_v16 = vpop.f32.mrb[8].mxu0 }
 0x22f   : > { %v2126_v18 = vpop.f32.mrb[9].mxu0 }
 0x230   : > { %v2127_v19 = vadd.f32 %v2126_v18, %v2125_v16  ;;  %v2069_v25 = vpop.f32.mrb[4].mxu1  ;;  %v2128_v27 = vpop.f32.mrb[10].mxu0 }
 0x231   : > { %v2070_v29 = vpop.f32.mrb[5].mxu1  ;;  %v2129_v32 = vpop.f32.mrb[11].mxu0 }
 0x232   : > { %v2071_v35 = vadd.f32 %v2070_v29, %v2069_v25  ;;  %v2130_v38 = vadd.f32 %v2129_v32, %v2128_v27  ;;  %v2072_v40 = vpop.f32.mrb[6].mxu1  ;;  %v1076_v29 = vmul.f32 %v1070_v17, %v2801_v59 }
 0x233   : > { %v2073_v42 = vpop.f32.mrb[7].mxu1 }
 0x234   : > { %v2074_v44 = vadd.f32 %v2073_v42, %v2072_v40 }
 0x238   : > { %v2075_v46 = vpop.f32.mrb[8].mxu1 }
 0x239   : > { %v2076_v26 = vpop.f32.mrb[9].mxu1 }
 0x23a   : > { %v2077_v48 = vadd.f32 %v2076_v26, %v2075_v46  ;;  %v2078_v4 = vpop.f32.mrb[10].mxu1 }
 0x23b   : > { %v2079_v50 = vpop.f32.mrb[11].mxu1 }
 0x23c   : > { %v2080_v5 = vadd.f32 %v2079_v50, %v2078_v4 }
 0x250   : > { %v2097_v52 = vpop.f32.mrb[12].mxu1 }
 0x251   : > { %v2098_v20 = vpop.f32.mrb[13].mxu1 }
 0x252   : > { %v2099_v11 = vadd.f32 %v2098_v20, %v2097_v52  ;;  %v2100_v21 = vpop.f32.mrb[14].mxu1 }
 0x253   : > { %v2101_v28 = vpop.f32.mrb[15].mxu1 }
 0x254   : > { %v1492_v30 = vadd.f32 %v2099_v11, %v2071_v35  ;;  %v2102_v37 = vadd.f32 %v2101_v28, %v2100_v21 }
 0x256   : > { %v1705_v33 = vadd.f32 %v2127_v19, %v1492_v30  ;;  %v1495_v36 = vadd.f32 %v2102_v37, %v2074_v44 }
 0x258   : > { %v1716_v41 = vadd.f32 %v2015_v31, %v1705_v33  ;;  %v1706_v43 = vadd.f32 %v2130_v38, %v1495_v36  ;;  %v2103_v45 = vpop.f32.mrb[16].mxu1 }
 0x259   : > { %v2104_v47 = vpop.f32.mrb[17].mxu1 }
 0x25a   : > { %v1720_v51 = vmul.f32 %v1716_v41, %v2790_v0  ;;  %v1717_v53 = vadd.f32 %v2015_v31, %v1706_v43  ;;  %v2105_v54 = vadd.f32 %v2104_v47, %v2103_v45  ;;  %v2106_v60 = vpop.f32.mrb[18].mxu1 }
 0x25b   : > { %v2107_v62 = vpop.f32.mrb[19].mxu1 }
 0x25c   : > { %v1724_v56 = vadd.f32 %v1720_v51, %v1073_v49  ;;  %v1721_v63 = vmul.f32 %v1717_v53, %v2792_v8  ;;  %v1500_v3 = vadd.f32 %v2105_v54, %v2077_v48  ;;  %v2108_v58 = vadd.f32 %v2107_v62, %v2106_v60 }
 0x25d   : > { %v1067_v8 = vadd.f32 %v2779_v55, %v1886_v22 }
 0x25e   : > { %v1725_v6 = vadd.f32 %v1721_v63, %v1074_v61  ;;  %v1503_v7 = vadd.f32 %v2108_v58, %v2080_v5  ;;  %v1728_v9 = vmax.f32 %v1724_v56, 0.0 }
 0x25f   : > { %v1075_v19 = vmul.f32 %v1067_v8, %v2798_v23 }
 0x260   : > { %v1729_v1 = vmax.f32 %v1725_v6, 0.0 }
 0x262   : > { %v2035_v0 = vpack.c.bf16 %v1729_v1, %v1728_v9 }
 0x264   : > { %2036 = vst [vmem:[%s352_s29] sm:$0xff] %v2035_v0  }
 0x270   : > { %v2131_v14 = vpop.f32.mrb[20].mxu1 }
 0x271   : > { %v2132_v24 = vpop.f32.mrb[21].mxu1 }
 0x272   : > { %v2133_v10 = vadd.f32 %v2132_v24, %v2131_v14  ;;  %v2134_v12 = vpop.f32.mrb[22].mxu1 }
 0x273   : > { %v2135_v2 = vpop.f32.mrb[23].mxu1 }
 0x274   : > { %v1707_v13 = vadd.f32 %v2133_v10, %v1500_v3  ;;  %v2136_v15 = vadd.f32 %v2135_v2, %v2134_v12 }
 0x276   : > { %v1718_v16 = vadd.f32 %v2015_v31, %v1707_v13  ;;  %v1708_v18 = vadd.f32 %v2136_v15, %v1503_v7 }
 0x278   : > { %v1722_v25 = vmul.f32 %v1718_v16, %v2798_v23  ;;  %v1719_v27 = vadd.f32 %v2015_v31, %v1708_v18 }
 0x27a   : > { %v1726_v32 = vadd.f32 %v1722_v25, %v1075_v19  ;;  %v1723_v35 = vmul.f32 %v1719_v27, %v2801_v59 }
 0x27c   : > { %v1727_v38 = vadd.f32 %v1723_v35, %v1076_v29  ;;  %v1730_v40 = vmax.f32 %v1726_v32, 0.0 }
 0x27e   : > { %v1731_v42 = vmax.f32 %v1727_v38, 0.0 }
 0x280   : > { %v2040_v55 = vpack.c.bf16 %v1731_v42, %v1730_v40 }
 0x282   : > { %2042 = vst [vmem:[%s352_s29 + $0x8] sm:$0xff] %v2040_v55  }
 0x283 PF: > { %s19_s30 = sadd.s32 1, %s2336_s30  }
 0x284   : > { %p16_p4 = scmp.ge.s32.totalorder %s19_s30, 4  }
 0x286   :  { %18 = sbr.rel (!%p16_p4) target bundleno = 1 (0x1), region = 91 }

// kernel: conv_backbone_forward.15
= control target key start
LH: loop header
LB: loop body
LE: loop exit
PB: predicated region body
PF: predicated region fallthrough
CT: control target
= control target key end

     0   :  { %s2040_s30 = smov 0   ;;  %s2464_s0 = inlined_call_operand.vmem [shape: bf16[2,9,256], index: 0, kind: input, shape index: {}]   ;;  %s2465_s1 = inlined_call_operand.vmem [shape: bf16[256,256], index: 1, kind: input, shape index: {}]   ;;  %s2466_s2 = inlined_call_operand.vmem [shape: bf16[128,256], index: 2, kind: input, shape index: {}]   ;;  %s2467_s3 = inlined_call_operand.vmem [shape: f32[1,256], index: 3, kind: input, shape index: {}]   ;;  %s2468_s4 = inlined_call_operand.vmem [shape: bf16[128,128], index: 4, kind: input, shape index: {}]   ;;  %s2469_s5 = inlined_call_operand.vmem [shape: f32[1,128], index: 5, kind: input, shape index: {}]   ;;  %s2470_s6 = inlined_call_operand.vmem [shape: bf16[3,256,128], index: 6, kind: input, shape index: {}]   ;;  %s2471_s7 = inlined_call_operand.vmem [shape: f32[1,128], index: 7, kind: input, shape index: {}]   ;;  %s2472_s8 = inlined_call_operand.vmem [shape: f32[2,8,1], index: 8, kind: input, shape index: {}]   ;;  %s2473_s9 = inlined_call_operand.vmem [shape: bf16[2,8,128], index: 9, kind: output, shape index: {}]  }
   0x1 LB: > { %s1546_s10 = sadd.s32 4294967295, %s1985_s30   ;;  %p1550_p0 = scmp.ge.s32.totalorder %s1985_s30, 1  ;;  %s1985_s30 = sphi %s2040_s30, %s19_s30  }
   0x2   : > { %p296_p1 = scmp.lt.s32.totalorder %s1985_s30, 3 }
   0x4   : > { %p297_p2 = pnand %p1550_p0, %p296_p1 }
   0x5   : > { %v1846_v0 = vld [vmem:[%s2465_s1 + $0x4] ss:$8 sps:$4 sm:$0xff] (!%p297_p2)   ;;  %v1848_v1 = vld [vmem:[%s2465_s1] ss:$8 sps:$4 sm:$0xff] (!%p297_p2)   ;;  %v1987_v2 = vmov (!%p297_p2), 0   ;;  %p335_p3 = scmp.lt.s32.totalorder (!%p297_p2), %s1546_s10, 1 }
   0x6   : > { %300 = sbr.rel (%p297_p2) target bundleno = 578 (0x242), region = 56  ;;  %525 = vmatprep.mubr.bf16.mxu0 (!%p297_p2), %v1987_v2  ;;  %1845 = vset.pattern.permute.xlu0 (!%p297_p2), %v1987_v2  ;;  %v1849_v3 = vld [vmem:[%s2466_s2 + $0x4] ss:$8 sps:$4 sm:$0xff] (!%p297_p2)   ;;  %v1851_v4 = vld [vmem:[%s2466_s2] ss:$8 sps:$4 sm:$0xff] (!%p297_p2)   ;;  %v1988_v45 = vmov (!%p297_p2), 0.0  }
   0x7   : > { %699 = vmatprep.subr.bf16.mxu1 (!%p297_p2), %v1846_v0  ;;  %v1852_v5 = vld [vmem:[%s2465_s1 + $0x14] ss:$8 sps:$4 sm:$0xff] (!%p297_p2)   ;;  %v1854_v6 = vld [vmem:[%s2465_s1 + $0x10] ss:$8 sps:$4 sm:$0xff] (!%p297_p2)   ;;  %493 = vmatprep.subr.bf16.mxu0 (!%p297_p2), %v1849_v3  ;;  %v1858_v9 = vld [vmem:[%s2465_s1 + $0x24] ss:$8 sps:$4 sm:$0xff] (!%p297_p2)  }
   0x8   : > { %700 = vmatpush1.bf16.msra.mxu1 (!%p297_p2), %v1848_v1  ;;  %v1855_v7 = vld [vmem:[%s2466_s2 + $0x14] ss:$8 sps:$4 sm:$0xff] (!%p297_p2)   ;;  %494 = vmatpush1.bf16.msra.mxu0 (!%p297_p2), %v1851_v4  ;;  %v1857_v8 = vld [vmem:[%s2466_s2 + $0x10] ss:$8 sps:$4 sm:$0xff] (!%p297_p2)   ;;  %v1860_v10 = vld [vmem:[%s2465_s1 + $0x20] ss:$8 sps:$4 sm:$0xff] (!%p297_p2)  }
   0x9   : > { %701 = vmatprep.subr.bf16.mxu1 (!%p297_p2), %v1852_v5  ;;  %495 = vmatprep.subr.bf16.mxu0 (!%p297_p2), %v1855_v7  ;;  %v1861_v11 = vld [vmem:[%s2466_s2 + $0x24] ss:$8 sps:$4 sm:$0xff] (!%p297_p2)   ;;  %v1864_v12 = vld [vmem:[%s2465_s1 + $0x34] ss:$8 sps:$4 sm:$0xff] (!%p297_p2)   ;;  %v1863_v13 = vld [vmem:[%s2466_s2 + $0x20] ss:$8 sps:$4 sm:$0xff] (!%p297_p2)  }
   0xa   : > { %v1867_v14 = vld [vmem:[%s2466_s2 + $0x34] ss:$8 sps:$4 sm:$0xff] (!%p297_p2)   ;;  %v1866_v15 = vld [vmem:[%s2465_s1 + $0x30] ss:$8 sps:$4 sm:$0xff] (!%p297_p2)   ;;  %v1870_v16 = vld [vmem:[%s2465_s1 + $0x44] ss:$8 sps:$4 sm:$0xff] (!%p297_p2)  }
   0xb   : > { %v1869_v17 = vld [vmem:[%s2466_s2 + $0x30] ss:$8 sps:$4 sm:$0xff] (!%p297_p2)   ;;  %v1873_v18 = vld [vmem:[%s2466_s2 + $0x44] ss:$8 sps:$4 sm:$0xff] (!%p297_p2)   ;;  %v1872_v19 = vld [vmem:[%s2465_s1 + $0x40] ss:$8 sps:$4 sm:$0xff] (!%p297_p2)  }
   0xc   : > { %702 = vmatpush1.bf16.msra.mxu1 (!%p297_p2), %v1854_v6  ;;  %496 = vmatpush1.bf16.msra.mxu0 (!%p297_p2), %v1857_v8  ;;  %v1876_v20 = vld [vmem:[%s2465_s1 + $0x54] ss:$8 sps:$4 sm:$0xff] (!%p297_p2)   ;;  %v1875_v21 = vld [vmem:[%s2466_s2 + $0x40] ss:$8 sps:$4 sm:$0xff] (!%p297_p2)   ;;  %v1878_v23 = vld [vmem:[%s2465_s1 + $0x50] ss:$8 sps:$4 sm:$0xff] (!%p297_p2)  }
   0xd   : > { %703 = vmatprep.subr.bf16.mxu1 %v1858_v9  ;;  %497 = vmatprep.subr.bf16.mxu0 %v1861_v11  ;;  %s2485_s10 = smov (!%p335_p3, %s1546_s10), 1  ;;  %v1879_v22 = vld [vmem:[%s2466_s2 + $0x54] ss:$8 sps:$4 sm:$0xff]   ;;  %v1882_v24 = vld [vmem:[%s2465_s1 + $0x64] ss:$8 sps:$4 sm:$0xff]   ;;  %vm1989_vm0 = vmmov 0  }
   0xe   : > { %s1737_s13 = sshll.u32 %s2485_s10, 4  ;;  %v1881_v25 = vld [vmem:[%s2466_s2 + $0x50] ss:$8 sps:$4 sm:$0xff]   ;;  %v1884_v26 = vld [vmem:[%s2465_s1 + $0x60] ss:$8 sps:$4 sm:$0xff]   ;;  %s1553_s11 = sshll.u32 %s2485_s10, 3 }
   0xf   : > { %s339_s22 = scalar_lea.vmem %s2464_s0, %s1737_s13  ;;  %v1885_v27 = vld [vmem:[%s2466_s2 + $0x64] ss:$8 sps:$4 sm:$0xff]   ;;  %v1888_v31 = vld [vmem:[%s2465_s1 + $0x74] ss:$8 sps:$4 sm:$0xff]   ;;  %v1887_v33 = vld [vmem:[%s2466_s2 + $0x60] ss:$8 sps:$4 sm:$0xff]   ;;  %s343_s20 = scalar_lea.vmem %s2472_s8, %s1553_s11 }
  0x10   : > { %704 = vmatpush1.bf16.msra.mxu1 %v1860_v10  ;;  %498 = vmatpush1.bf16.msra.mxu0 %v1863_v13  ;;  %v2139_v28 = vld [vmem:[%s339_s22] sm:$0xff]  ;;  %v351_v29 = vld [vmem:[%s339_s22 + $0x8] sm:$0x11]  ;;  %v1891_v34 = vld [vmem:[%s2466_s2 + $0x74] ss:$8 sps:$4 sm:$0xff]   ;;  %vm763_vm1 = vcmask 1040384  }
  0x11   : > { %705 = vmatprep.subr.bf16.mxu1 %v1864_v12  ;;  %499 = vmatprep.subr.bf16.mxu0 %v1867_v14  ;;  %v2143_v30 = vcombine.high %v2139_v28, %v2139_v28  ;;  %v1555_v32 = vcombine.low %v2139_v28, %v351_v29  ;;  %v1890_v36 = vld [vmem:[%s2465_s1 + $0x70] ss:$8 sps:$4 sm:$0xff]   ;;  %v1894_v37 = vld [vmem:[%s2465_s1 + $0x84] ss:$8 sps:$4 sm:$0xff]   ;;  %v1896_v41 = vld [vmem:[%s2465_s1 + $0x80] ss:$8 sps:$4 sm:$0xff]   ;;  %v1572_v3 = vcombine.low %v2139_v28, %v2139_v28 }
  0x12   : > { %v1893_v40 = vld [vmem:[%s2466_s2 + $0x70] ss:$8 sps:$4 sm:$0xff]   ;;  %v1898_v43 = vld [vmem:[%s2465_s1 + $0x94] ss:$8 sps:$4 sm:$0xff]   ;;  %v1900_v44 = vld [vmem:[%s2468_s4] sm:$0xff]   ;;  %vm766_vm3 = vcmask 1044484  }
  0x13   : > { %731 = vmatprep.mubr.bf16.mxu1 %v2143_v30  ;;  %v408_v35 = vshll.u32 %v1555_v32, 16  ;;  %v406_v38 = vshrl.u32 %v1555_v32, 16  ;;  %v1901_v46 = vld [vmem:[%s2465_s1 + $0x90] ss:$8 sps:$4 sm:$0xff]   ;;  %v1902_v47 = vld [vmem:[%s2465_s1 + $0xa4] ss:$8 sps:$4 sm:$0xff]  }
  0x14   : > { %706 = vmatpush1.bf16.msra.mxu1 %v1866_v15  ;;  %500 = vmatpush1.bf16.msra.mxu0 %v1869_v17  ;;  %v1904_v48 = vld [vmem:[%s2468_s4 + $0x8] sm:$0xff]   ;;  %v1906_v50 = vld [vmem:[%s2465_s1 + $0xb4] ss:$8 sps:$4 sm:$0xff]   ;;  %v349_v52 = vld [vmem:[%s343_s20] sm:$0xff]  ;;  %vm764_vm2 = vsmask.f32 256 }
  0x15   : > { %707 = vmatprep.subr.bf16.mxu1 %v1870_v16  ;;  %501 = vmatprep.subr.bf16.mxu0 %v1873_v18  ;;  %v410_v39 = vrot.slane %v408_v35, 1  ;;  %v1905_v49 = vld [vmem:[%s2465_s1 + $0xa0] ss:$8 sps:$4 sm:$0xff]   ;;  %v1908_v51 = vld [vmem:[%s2468_s4 + $0x10] sm:$0xff]   ;;  %v1910_v54 = vld [vmem:[%s2465_s1 + $0xc4] ss:$8 sps:$4 sm:$0xff]  }
  0x16   : > { %v1909_v53 = vld [vmem:[%s2465_s1 + $0xb0] ss:$8 sps:$4 sm:$0xff]   ;;  %756 = vperm.xlu0 %1845, %v349_v52   ;;  %v1913_v56 = vld [vmem:[%s2465_s1 + $0xc0] ss:$8 sps:$4 sm:$0xff]   ;;  %v1914_v57 = vld [vmem:[%s2465_s1 + $0xd4] ss:$8 sps:$4 sm:$0xff]  }
  0x17   : > { %v411_v42 = vor.u32 %v410_v39, %v406_v38  ;;  %v1912_v55 = vld [vmem:[%s2468_s4 + $0x18] sm:$0xff]   ;;  %v1916_v58 = vld [vmem:[%s2468_s4 + $0x20] sm:$0xff]   ;;  %v1920_v61 = vld [vmem:[%s2468_s4 + $0x28] sm:$0xff]   ;;  %vm767_vm4 = vsmask.f32 4352  ;;  %vm798_vm11 = vcmask 1043456  }
  0x18   : > { %708 = vmatpush1.bf16.msra.mxu1 %v1872_v19  ;;  %502 = vmatpush1.bf16.msra.mxu0 %v1875_v21  ;;  %v1917_v59 = vld [vmem:[%s2465_s1 + $0xd0] ss:$8 sps:$4 sm:$0xff]   ;;  %v1918_v60 = vld [vmem:[%s2465_s1 + $0xe4] ss:$8 sps:$4 sm:$0xff]   ;;  %v1921_v62 = vld [vmem:[%s2465_s1 + $0xe0] ss:$8 sps:$4 sm:$0xff]  }
  0x19   : > { %709 = vmatprep.subr.bf16.mxu1 %v1876_v20  ;;  %503 = vmatprep.subr.bf16.mxu0 %v1879_v22  ;;  %v1922_v63 = vld [vmem:[%s2465_s1 + $0xf4] ss:$8 sps:$4 sm:$0xff]   ;;  %v1925_v1 = vld [vmem:[%s2465_s1 + $0xf0] ss:$8 sps:$4 sm:$0xff]   ;;  %v1929_v4 = vld [vmem:[%s2470_s6 + $0x40] sm:$0xff]   ;;  %vm800_vm13 = vcmask 1047556  }
  0x1a   : > { %v1924_v0 = vld [vmem:[%s2468_s4 + $0x30] sm:$0xff]   ;;  %v1928_v2 = vld [vmem:[%s2468_s4 + $0x38] sm:$0xff]   ;;  %v1930_v5 = vld [vmem:[%s2470_s6] sm:$0xff]   ;;  %vm773_vm6 = vsmask.f32 7938  ;;  %s1554_s24 = sshll.u32 %s2485_s10, 2 }
  0x1b   : > { %v1931_v6 = vld [vmem:[%s2470_s6 + $0x48] sm:$0xff]   ;;  %v1935_v8 = vld [vmem:[%s2470_s6 + $0x50] sm:$0xff]   ;;  %v1939_v10 = vld [vmem:[%s2470_s6 + $0x58] sm:$0xff]   ;;  %vm775_vm8 = vsmask.f32 7954  ;;  %s347_s27 = scalar_lea.vmem %s2473_s9, %s1554_s24 }
  0x1c   : > { %710 = vmatpush1.bf16.msra.mxu1 %v1878_v23  ;;  %504 = vmatpush1.bf16.msra.mxu0 %v1881_v25  ;;  %v1933_v7 = vld [vmem:[%s2470_s6 + $0x8] sm:$0xff]   ;;  %v1937_v9 = vld [vmem:[%s2470_s6 + $0x10] sm:$0xff]   ;;  %v1932_v11 = vld [vmem:[%s2470_s6 + $0xc0] sm:$0xff]  }
  0x1d   : > { %711 = vmatprep.subr.bf16.mxu1 %v1882_v24  ;;  %505 = vmatprep.subr.bf16.mxu0 %v1885_v27  ;;  %v1941_v12 = vld [vmem:[%s2470_s6 + $0x18] sm:$0xff]   ;;  %v1934_v13 = vld [vmem:[%s2470_s6 + $0x80] sm:$0xff]   ;;  %vm2272_vm5 = vmand %vm763_vm1, %vm764_vm2 }
  0x1e   : > { %v770_v15 = vld [vmem:[#allocation2] sm:$0x11]  ;;  %vm2277_vm7 = vmand %vm766_vm3, %vm767_vm4  ;;  %v778_v17 = vld [vmem:[#allocation2 + $0x8] sm:$0x11] }
  0x1f   : > { %v1936_v18 = vld [vmem:[%s2470_s6 + $0xc8] sm:$0xff]   ;;  %vm769_vm9 = vmor %vm2277_vm7, %vm2272_vm5  ;;  %v1943_v20 = vld [vmem:[%s2470_s6 + $0x60] sm:$0xff]  }
  0x20   : > { %712 = vmatpush1.bf16.msra.mxu1 %v1884_v26  ;;  %506 = vmatpush1.bf16.msra.mxu0 %v1887_v33  ;;  %v1938_v19 = vld [vmem:[%s2470_s6 + $0x88] sm:$0xff]   ;;  %v771_v21 = vsel %vm769_vm9, 0, %v770_v15  ;;  %vm2301_vm10 = vmand %vm763_vm1, %vm773_vm6  ;;  %v1945_v23 = vld [vmem:[%s2470_s6 + $0x20] sm:$0xff]  }
  0x21   : > { %713 = vmatprep.subr.bf16.mxu1 %v1888_v31  ;;  %507 = vmatprep.subr.bf16.mxu0 %v1891_v34  ;;  %v1947_v24 = vld [vmem:[%s2470_s6 + $0x68] sm:$0xff]   ;;  %772 = vst [vmem:[#allocation2] sm:$0x11] %v771_v21  ;;  %vm776_vm12 = vmand %vm766_vm3, %vm775_vm8  ;;  %v1940_v25 = vld [vmem:[%s2470_s6 + $0xd0] sm:$0xff]  }
  0x22   : > { %vm777_vm14 = vmor %vm776_vm12, %vm2301_vm10  ;;  %v1942_v26 = vld [vmem:[%s2470_s6 + $0x90] sm:$0xff]   ;;  %v1949_v27 = vld [vmem:[%s2470_s6 + $0x28] sm:$0xff]  }
  0x23   : > { %v779_v28 = vsel %vm777_vm14, 0, %v778_v17  ;;  %vm2326_vm15 = vmand %vm798_vm11, %vm773_vm6  ;;  %v1951_v31 = vld [vmem:[%s2470_s6 + $0x70] sm:$0xff]   ;;  %v1944_v32 = vld [vmem:[%s2470_s6 + $0xd8] sm:$0xff]  }
  0x24   : > { %714 = vmatpush1.bf16.msra.mxu1 %v1890_v36  ;;  %508 = vmatpush1.bf16.msra.mxu0 %v1893_v40  ;;  %780 = vst [vmem:[#allocation2 + $0x8] sm:$0x11] %v779_v28  ;;  %v1946_v33 = vld [vmem:[%s2470_s6 + $0x98] sm:$0xff]   ;;  %v1953_v34 = vld [vmem:[%s2470_s6 + $0x30] sm:$0xff]   ;;  %v1948_v36 = vld [vmem:[%s2470_s6 + $0xe0] sm:$0xff]  }
  0x25   : > { %715 = vmatprep.subr.bf16.mxu1 %v1894_v37  ;;  %1814 = vmatprep.subr.bf16.mxu0 %v1988_v45  ;;  %v1955_v35 = vld [vmem:[%s2470_s6 + $0x78] sm:$0xff]   ;;  %v1950_v37 = vld [vmem:[%s2470_s6 + $0xa0] sm:$0xff]   ;;  %v1952_v39 = vld [vmem:[%s2470_s6 + $0xe8] sm:$0xff]  }
  0x26   : > { %v1957_v38 = vld [vmem:[%s2470_s6 + $0x38] sm:$0xff]   ;;  %v1954_v40 = vld [vmem:[%s2470_s6 + $0xa8] sm:$0xff]  }
  0x27   : > { %526 = vmatmul.mubr.bf16.vlgmr.msra.gmra.mrb[0].mxu0 %v411_v42  ;;  %v1958_v42 = vld [vmem:[%s2470_s6 + $0xb0] sm:$0xff]  }
  0x28   : > { %716 = vmatpush1.bf16.msra.mxu1 %v1896_v41  ;;  %1815 = vmatpush3.bf16.msra.mxu0 %v1900_v44  ;;  %v1956_v41 = vld [vmem:[%s2470_s6 + $0xf0] sm:$0xff]   ;;  %v1960_v44 = vld [vmem:[%s2470_s6 + $0xb8] sm:$0xff]   ;;  %v803_v15 = vld [vmem:[#allocation2] sm:$0xff] }
  0x29   : > { %717 = vmatprep.subr.bf16.mxu1 %v1898_v43  ;;  %1830 = vmatprep.mubr.msk.bf16.mxu0 %vm1989_vm0, %v1988_v45  ;;  %vm2331_vm0 = vmand %vm800_vm13, %vm775_vm8  ;;  %v1959_v43 = vld [vmem:[%s2470_s6 + $0xf8] sm:$0xff]  }
  0x2a   : > { %1816 = vmatprep.subr.bf16.mxu0 %v1988_v45  ;;  %vm802_vm1 = vmor %vm2331_vm0, %vm2326_vm15 }
  0x2b   : > { %v806_v17 = vld [vmem:[#allocation2 + $0x8] sm:$0x11] }
  0x2c   : > { %718 = vmatpush1.bf16.msra.mxu1 %v1901_v46  ;;  %1817 = vmatpush3.bf16.msra.mxu0 %v1904_v48 }
  0x2d   : > { %719 = vmatprep.subr.bf16.mxu1 %v1902_v47  ;;  %1818 = vmatprep.subr.bf16.mxu0 %v1988_v45 }
  0x30   : > { %720 = vmatpush1.bf16.msra.mxu1 %v1905_v49  ;;  %1819 = vmatpush3.bf16.msra.mxu0 %v1908_v51 }
  0x31   : > { %721 = vmatprep.subr.bf16.mxu1 %v1906_v50  ;;  %1820 = vmatprep.subr.bf16.mxu0 %v1988_v45  ;;  %v742_v50 = vlaneseq }
  0x33   : > { %v743_v51 = vshrl.u32 %v742_v50, 7  ;;  %v1978_v50 = vld [vmem:[%s2470_s6 + $0x138] sm:$0xff]  }
  0x34   : > { %722 = vmatpush1.bf16.msra.mxu1 %v1909_v53  ;;  %1821 = vmatpush3.bf16.msra.mxu0 %v1912_v55  ;;  %v740_v53 = vld [vmem:[%s2467_s3] sm:$0x3] }
  0x35   : > { %723 = vmatprep.subr.bf16.mxu1 %v1910_v54  ;;  %1822 = vmatprep.subr.bf16.mxu0 %v1988_v45  ;;  %v744_v52 = vsub.s32 0, %v743_v51  ;;  %v748_v54 = vsub.s32 1, %v743_v51 }
  0x37   : > { %v745_v55 = vrot.slane %v740_v53, %v744_v52 }
  0x38   : > { %724 = vmatpush1.bf16.msra.mxu1 %v1913_v56  ;;  %1823 = vmatpush3.bf16.msra.mxu0 %v1916_v58 }
  0x39   : > { %725 = vmatprep.subr.bf16.mxu1 %v1914_v57  ;;  %1824 = vmatprep.subr.bf16.mxu0 %v1988_v45  ;;  %v749_v57 = vrot.slane %v740_v53, %v748_v54 }
  0x3c   : > { %726 = vmatpush1.bf16.msra.mxu1 %v1917_v59  ;;  %1825 = vmatpush3.bf16.msra.mxu0 %v1920_v61 }
  0x3d   : > { %727 = vmatprep.subr.bf16.mxu1 %v1918_v60  ;;  %1826 = vmatprep.subr.bf16.mxu0 %v1988_v45 }
  0x40   : > { %728 = vmatpush1.bf16.msra.mxu1 %v1921_v62  ;;  %1827 = vmatpush3.bf16.msra.mxu0 %v1924_v0 }
  0x41   : > { %729 = vmatprep.subr.bf16.mxu1 %v1922_v63  ;;  %1828 = vmatprep.subr.bf16.mxu0 %v1988_v45  ;;  %v1961_v45 = vld [vmem:[%s2470_s6 + $0x140] sm:$0xff]  }
  0x44   : > { %730 = vmatpush1.bf16.msra.mxu1 %v1925_v1  ;;  %1829 = vmatpush3.bf16.msra.mxu0 %v1928_v2 }
  0x45   : > { %1770 = vmatprep.subr.bf16.mxu1 %v1929_v4  ;;  %1748 = vmatprep.subr.bf16.mxu0 %v1932_v11 }
  0x47   : > { %732 = vmatmul.mubr.bf16.vlgmr.msra.gmra.mrb[0].mxu1 %v1572_v3  ;;  %1831 = vmatmul.mubr.bf16.vlgmr.msra.gmra.mrb[4].mxu0 %v2143_v30 }
  0x48   : > { %1771 = vmatpush3.bf16.msra.mxu1 %v1930_v5  ;;  %1749 = vmatpush3.bf16.msra.mxu0 %v1934_v13 }
  0x49   : > { %1772 = vmatprep.subr.bf16.mxu1 %v1931_v6  ;;  %1750 = vmatprep.subr.bf16.mxu0 %v1936_v18 }
  0x4c   : > { %1773 = vmatpush3.bf16.msra.mxu1 %v1933_v7  ;;  %1751 = vmatpush3.bf16.msra.mxu0 %v1938_v19 }
  0x4d   : > { %1774 = vmatprep.subr.bf16.mxu1 %v1935_v8  ;;  %1752 = vmatprep.subr.bf16.mxu0 %v1940_v25 }
  0x50   : > { %1775 = vmatpush3.bf16.msra.mxu1 %v1937_v9  ;;  %1753 = vmatpush3.bf16.msra.mxu0 %v1942_v26 }
  0x51   : > { %1776 = vmatprep.subr.bf16.mxu1 %v1939_v10  ;;  %1754 = vmatprep.subr.bf16.mxu0 %v1944_v32 }
  0x54   : > { %1777 = vmatpush3.bf16.msra.mxu1 %v1941_v12  ;;  %1755 = vmatpush3.bf16.msra.mxu0 %v1946_v33 }
  0x55   : > { %1778 = vmatprep.subr.bf16.mxu1 %v1943_v20  ;;  %1756 = vmatprep.subr.bf16.mxu0 %v1948_v36  ;;  %v1965_v36 = vld [vmem:[%s2470_s6 + $0x148] sm:$0xff]  }
  0x58   : > { %1779 = vmatpush3.bf16.msra.mxu1 %v1945_v23  ;;  %1757 = vmatpush3.bf16.msra.mxu0 %v1950_v37 }
  0x59   : > { %1780 = vmatprep.subr.bf16.mxu1 %v1947_v24  ;;  %1758 = vmatprep.subr.bf16.mxu0 %v1952_v39  ;;  %v1967_v39 = vld [vmem:[%s2470_s6 + $0x150] sm:$0xff]  }
  0x5c   : > { %1781 = vmatpush3.bf16.msra.mxu1 %v1949_v27  ;;  %1759 = vmatpush3.bf16.msra.mxu0 %v1954_v40  ;;  %v1968_v40 = vld [vmem:[%s2470_s6 + $0x110] sm:$0xff]  }
  0x5d   : > { %1782 = vmatprep.subr.bf16.mxu1 %v1951_v31  ;;  %1760 = vmatprep.subr.bf16.mxu0 %v1956_v41  ;;  %v1969_v41 = vld [vmem:[%s2470_s6 + $0x158] sm:$0xff]  }
  0x60   : > { %1783 = vmatpush3.bf16.msra.mxu1 %v1953_v34  ;;  %1761 = vmatpush3.bf16.msra.mxu0 %v1958_v42  ;;  %v1970_v42 = vld [vmem:[%s2470_s6 + $0x118] sm:$0xff]  }
  0x61   : > { %1784 = vmatprep.subr.bf16.mxu1 %v1955_v35  ;;  %1762 = vmatprep.subr.bf16.mxu0 %v1959_v43  ;;  %v1962_v35 = vld [vmem:[%s2470_s6 + $0x100] sm:$0xff]  }
  0x62   : > { %v1971_v43 = vld [vmem:[%s2470_s6 + $0x160] sm:$0xff]  }
  0x64   : > { %1785 = vmatpush3.bf16.msra.mxu1 %v1957_v38  ;;  %1763 = vmatpush3.bf16.msra.mxu0 %v1960_v44  ;;  %v1966_v38 = vld [vmem:[%s2470_s6 + $0x108] sm:$0xff]   ;;  %v1972_v44 = vld [vmem:[%s2470_s6 + $0x120] sm:$0xff]  }
  0x65   : > { %1792 = vmatprep.subr.bf16.mxu0 %v1961_v45  ;;  %v1973_v45 = vld [vmem:[%s2470_s6 + $0x168] sm:$0xff]  }
  0x95   : > { %v2387_v60 = vpop.permute.xlu0 %756 }
  0xfa   : > { %v527_v46 = vpop.f32.mrb[0].mxu0 }
  0xfb   : > { %v529_v47 = vpop.f32.mrb[1].mxu0 }
  0xfc   : > { %v531_v48 = vpop.f32.mrb[2].mxu0 }
  0xfd   : > { %v532_v49 = vpop.f32.mrb[3].mxu0  ;;  %v1976_v48 = vld [vmem:[%s2470_s6 + $0x130] sm:$0xff]  }
  0xfe   : > { %v1977_v49 = vld [vmem:[%s2470_s6 + $0x178] sm:$0xff]  }
 0x11a   : > { %v733_v56 = vpop.f32.mrb[0].mxu1  ;;  %v2389_v63 = vpop.f32.mrb[4].mxu0 }
 0x11b   : > { %v734_v58 = vadd.f32 %v733_v56, %v527_v46  ;;  %v735_v59 = vpop.f32.mrb[1].mxu1  ;;  %v1832_v2 = vpop.f32.mrb[5].mxu0  ;;  %v1974_v46 = vld [vmem:[%s2470_s6 + $0x128] sm:$0xff]  }
 0x11c   : > { %v736_v61 = vadd.f32 %v735_v59, %v529_v47  ;;  %v737_v62 = vpop.f32.mrb[2].mxu1  ;;  %v917_v4 = vpop.f32.mrb[6].mxu0  ;;  %v1975_v47 = vld [vmem:[%s2470_s6 + $0x170] sm:$0xff]  }
 0x11d   : > { %v752_v0 = vadd.f32 %v745_v55, %v734_v58  ;;  %v738_v1 = vpop.f32.mrb[3].mxu1  ;;  %v1833_v6 = vpop.f32.mrb[7].mxu0 }
 0x11e   : > { %v753_v3 = vadd.f32 %v749_v57, %v736_v61 }
 0x11f   : > { %v759_v5 = vmul.f32 %v2387_v60, %v752_v0 }
 0x120   : > { %v760_v7 = vmul.f32 %v2387_v60, %v753_v3  ;;  %v1607_v3 = vld [vmem:[%s2469_s5] ss:$0 sm:$0xff] }
 0x121   : > { %v761_v8 = vmax.f32 %v759_v5, 0.0 }
 0x122   : > { %v762_v9 = vmax.f32 %v760_v7, 0.0  ;;  %v1734_v7 = vld [vmem:[%s2471_s7] ss:$0 sm:$0xff] }
 0x124   : > { %v1738_v10 = vpack.c.bf16 %v762_v9, %v761_v8  ;;  %v915_v9 = vadd.f32 %v1607_v3, %v2389_v63 }
 0x126   : > { %v789_v11 = vshrl.u32 %v1738_v10, 16  ;;  %v792_v13 = vshll.u32 %v1738_v10, 16 }
 0x128   : > { %v791_v12 = vrot.slane %v789_v11, 7 }
 0x12a   : > { %v794_v18 = vor.u32 %v792_v13, %v791_v12  ;;  %v795_v19 = vrot.slane %v791_v12, 4  ;;  %v920_v12 = vmul.f32 %v915_v9, %v2387_v60 }
 0x12c   : > { %v804_v20 = vsel %vm802_vm1, %v794_v18, %v803_v15  ;;  %v807_v21 = vsel %vm769_vm9, %v795_v19, %v806_v17 }
 0x12d   : > { %805 = vst [vmem:[#allocation2] sm:$0xff] %v804_v20  ;;  %808 = vst [vmem:[#allocation2 + $0x8] sm:$0x11] %v807_v21  ;;  %v1667_v22 = vcombine.high %v804_v20, %v804_v20  ;;  %v1666_v23 = vcombine.low %v804_v20, %v804_v20 }
 0x12f   : > { %1280 = vmatprep.mubr.bf16.mxu1 %v1667_v22 }
 0x130   : > { %1281 = vmatmul.mubr.bf16.vlgmr.msra.gmra.mrb[4].mxu1 %v1666_v23 }
 0x134   : > { %v954_v24 = vld [vmem:[#allocation2 + $0x8] sm:$0x11]  ;;  %v1288_v27 = vld [vmem:[#allocation2] sm:$0xee] }
 0x135   : > { %v1649_v25 = vcombine.high %v804_v20, %v954_v24  ;;  %v1648_v26 = vcombine.low %v804_v20, %v954_v24  ;;  %v1717_v30 = vcombine.high %v1288_v27, %v954_v24  ;;  %v1716_v51 = vcombine.low %v1288_v27, %v954_v24 }
 0x137   : > { %v1006_v28 = vshll.u32 %v1649_v25, 16  ;;  %v999_v29 = vshll.u32 %v1648_v26, 16  ;;  %v1004_v31 = vshrl.u32 %v1649_v25, 16  ;;  %v997_v16 = vshrl.u32 %v1648_v26, 16 }
 0x138   : > { %v1328_v37 = vrot.slane %v1717_v30, 1  ;;  %v1327_v52 = vrot.slane %v1716_v51, 1 }
 0x139   : > { %v1008_v32 = vrot.slane %v1006_v28, 1  ;;  %v1001_v33 = vrot.slane %v999_v29, 1 }
 0x13b   : > { %v1009_v14 = vor.u32 %v1008_v32, %v1004_v31  ;;  %v1002_v34 = vor.u32 %v1001_v33, %v997_v16 }
 0x13d   : > { %1140 = vmatprep.mubr.bf16.mxu0 %v1009_v14 }
 0x13e   : > { %1141 = vmatmul.mubr.bf16.vlgmr.msra.gmra.mrb[8].mxu0 %v1002_v34 }
 0x13f   : > { %1793 = vmatpush3.bf16.msra.mxu0 %v1962_v35  ;;  %1459 = vmatprep.mubr.bf16.mxu0 %v1328_v37 }
 0x140   : > { %1794 = vmatprep.subr.bf16.mxu0 %v1965_v36 }
 0x143   : > { %1795 = vmatpush3.bf16.msra.mxu0 %v1966_v38 }
 0x144   : > { %1796 = vmatprep.subr.bf16.mxu0 %v1967_v39 }
 0x147   : > { %1797 = vmatpush3.bf16.msra.mxu0 %v1968_v40 }
 0x148   : > { %1798 = vmatprep.subr.bf16.mxu0 %v1969_v41 }
 0x14b   : > { %1799 = vmatpush3.bf16.msra.mxu0 %v1970_v42 }
 0x14c   : > { %1800 = vmatprep.subr.bf16.mxu0 %v1971_v43 }
 0x14f   : > { %1801 = vmatpush3.bf16.msra.mxu0 %v1972_v44 }
 0x150   : > { %1802 = vmatprep.subr.bf16.mxu0 %v1973_v45 }
 0x153   : > { %1803 = vmatpush3.bf16.msra.mxu0 %v1974_v46 }
 0x154   : > { %1804 = vmatprep.subr.bf16.mxu0 %v1975_v47 }
 0x157   : > { %1805 = vmatpush3.bf16.msra.mxu0 %v1976_v48 }
 0x158   : > { %1806 = vmatprep.subr.bf16.mxu0 %v1977_v49 }
 0x15b   : > { %1807 = vmatpush3.bf16.msra.mxu0 %v1978_v50 }
 0x15e   : > { %1460 = vmatmul.mubr.bf16.vlgmr.msra.gmra.mrb[12].mxu0 %v1327_v52 }
 0x203   : > { %v1786_v53 = vpop.f32.mrb[4].mxu1 }
 0x204   : > { %v1787_v54 = vpop.f32.mrb[5].mxu1 }
 0x205   : > { %v1788_v55 = vadd.f32 %v1787_v54, %v1786_v53  ;;  %v1789_v56 = vpop.f32.mrb[6].mxu1 }
 0x206   : > { %v1790_v57 = vpop.f32.mrb[7].mxu1 }
 0x211   : > { %v1764_v58 = vpop.f32.mrb[8].mxu0 }
 0x212   : > { %v1765_v59 = vpop.f32.mrb[9].mxu0 }
 0x213   : > { %v1766_v61 = vadd.f32 %v1765_v59, %v1764_v58  ;;  %v1767_v62 = vpop.f32.mrb[10].mxu0 }
 0x214   : > { %v1768_v0 = vpop.f32.mrb[11].mxu0 }
 0x215   : > { %v1283_v1 = vadd.f32 %v1788_v55, %v1766_v61 }
 0x231   : > { %v1808_v2 = vpop.f32.mrb[12].mxu0 }
 0x232   : > { %v1809_v4 = vpop.f32.mrb[13].mxu0 }
 0x233   : > { %v1810_v5 = vadd.f32 %v1809_v4, %v1808_v2  ;;  %v1811_v6 = vpop.f32.mrb[14].mxu0 }
 0x234   : > { %v1812_v8 = vpop.f32.mrb[15].mxu0 }
 0x235   : > { %v1467_v10 = vadd.f32 %v1810_v5, %v1283_v1 }
 0x237   : > { %v1475_v11 = vadd.f32 %v1734_v7, %v1467_v10 }
 0x239   : > { %v1476_v13 = vmul.f32 %v1475_v11, %v2387_v60 }
 0x23b   : > { %v1477_v15 = vadd.f32 %v1476_v13, %v920_v12 }
 0x23d   : > { %v1478_v17 = vmax.f32 %v1477_v15, 0.0 }
 0x23f   : > { %v1479_v18 = vpack.c.bf16 %v1478_v17, %v1478_v17 }
 0x241   : > { %1480 = vst [vmem:[%s347_s27] sm:$0xf] %v1479_v18 }
 0x242 PF: > { %s19_s30 = sadd.s32 1, %s1985_s30  }
 0x243   : > { %p16_p4 = scmp.ge.s32.totalorder %s19_s30, 4  }
 0x245   :  { %18 = sbr.rel (!%p16_p4) target bundleno = 1 (0x1), region = 91 }

// kernel: conv_backbone_forward.14
= control target key start
LH: loop header
LB: loop body
LE: loop exit
PB: predicated region body
PF: predicated region fallthrough
CT: control target
= control target key end

     0   :  { %s2145_s30 = smov 0   ;;  %s2580_s0 = inlined_call_operand.vmem [shape: bf16[2,17,256], index: 0, kind: input, shape index: {}]   ;;  %s2581_s1 = inlined_call_operand.vmem [shape: bf16[256,256], index: 1, kind: input, shape index: {}]   ;;  %s2582_s2 = inlined_call_operand.vmem [shape: bf16[128,256], index: 2, kind: input, shape index: {}]   ;;  %s2583_s3 = inlined_call_operand.vmem [shape: f32[1,256], index: 3, kind: input, shape index: {}]   ;;  %s2584_s4 = inlined_call_operand.vmem [shape: bf16[128,128], index: 4, kind: input, shape index: {}]   ;;  %s2585_s5 = inlined_call_operand.vmem [shape: f32[1,128], index: 5, kind: input, shape index: {}]   ;;  %s2586_s6 = inlined_call_operand.vmem [shape: bf16[3,256,128], index: 6, kind: input, shape index: {}]   ;;  %s2587_s7 = inlined_call_operand.vmem [shape: f32[1,128], index: 7, kind: input, shape index: {}]   ;;  %s2588_s8 = inlined_call_operand.vmem [shape: f32[2,16,1], index: 8, kind: input, shape index: {}]   ;;  %s2589_s9 = inlined_call_operand.vmem [shape: bf16[2,16,128], index: 9, kind: output, shape index: {}]  }
   0x1 LB: > { %s1632_s10 = sadd.s32 4294967295, %s2090_s30   ;;  %p1636_p0 = scmp.ge.s32.totalorder %s2090_s30, 1  ;;  %s2090_s30 = sphi %s2145_s30, %s19_s30  }
   0x2   : > { %p297_p1 = scmp.lt.s32.totalorder %s2090_s30, 3 }
   0x4   : > { %p298_p2 = pnand %p1636_p0, %p297_p1 }
   0x5   : > { %v1950_v0 = vld [vmem:[%s2582_s2 + $0x4] ss:$8 sps:$4 sm:$0xff] (!%p298_p2)   ;;  %p338_p3 = scmp.lt.s32.totalorder (!%p298_p2), %s1632_s10, 1  ;;  %v1952_v1 = vld [vmem:[%s2582_s2] ss:$8 sps:$4 sm:$0xff] (!%p298_p2)   ;;  %v2092_v2 = vmov (!%p298_p2), 0  }
   0x6   : > { %301 = sbr.rel (%p298_p2) target bundleno = 613 (0x265), region = 56  ;;  %541 = vmatprep.mubr.bf16.mxu0 (!%p298_p2), %v2092_v2  ;;  %1949 = vset.pattern.permute.xlu0 (!%p298_p2), %v2092_v2  ;;  %v1953_v3 = vld [vmem:[%s2582_s2 + $0x14] ss:$8 sps:$4 sm:$0xff] (!%p298_p2)   ;;  %v1955_v4 = vld [vmem:[%s2582_s2 + $0x10] ss:$8 sps:$4 sm:$0xff] (!%p298_p2)   ;;  %v2093_v6 = vmov (!%p298_p2), 0.0  }
   0x7   : > { %509 = vmatprep.subr.bf16.mxu0 (!%p298_p2), %v1950_v0  ;;  %v1956_v5 = vld [vmem:[%s2582_s2 + $0x24] ss:$8 sps:$4 sm:$0xff] (!%p298_p2)   ;;  %1913 = vmatprep.subr.bf16.mxu1 (!%p298_p2), %v2093_v6  ;;  %vm2094_vm0 = vmmov (!%p298_p2), 0   ;;  %v1958_v7 = vld [vmem:[%s2582_s2 + $0x20] ss:$8 sps:$4 sm:$0xff] (!%p298_p2)   ;;  %v2009_v29 = vld [vmem:[%s2584_s4 + $0x10] sm:$0xff] (!%p298_p2)  }
   0x8   : > { %510 = vmatpush1.bf16.msra.mxu0 (!%p298_p2), %v1952_v1  ;;  %1929 = vmatprep.mubr.msk.bf16.mxu1 (!%p298_p2), %vm2094_vm0, %v2093_v6  ;;  %v1959_v8 = vld [vmem:[%s2582_s2 + $0x34] ss:$8 sps:$4 sm:$0xff] (!%p298_p2)   ;;  %v1961_v9 = vld [vmem:[%s2582_s2 + $0x30] ss:$8 sps:$4 sm:$0xff] (!%p298_p2)   ;;  %v1962_v10 = vld [vmem:[%s2582_s2 + $0x44] ss:$8 sps:$4 sm:$0xff] (!%p298_p2)  }
   0x9   : > { %511 = vmatprep.subr.bf16.mxu0 (!%p298_p2), %v1953_v3  ;;  %v1964_v11 = vld [vmem:[%s2582_s2 + $0x40] ss:$8 sps:$4 sm:$0xff] (!%p298_p2)   ;;  %v1965_v13 = vld [vmem:[%s2582_s2 + $0x54] ss:$8 sps:$4 sm:$0xff] (!%p298_p2)   ;;  %v1967_v14 = vld [vmem:[%s2582_s2 + $0x50] ss:$8 sps:$4 sm:$0xff] (!%p298_p2)  }
   0xa   : > { %v1968_v17 = vld [vmem:[%s2582_s2 + $0x64] ss:$8 sps:$4 sm:$0xff] (!%p298_p2)   ;;  %v1970_v18 = vld [vmem:[%s2582_s2 + $0x60] ss:$8 sps:$4 sm:$0xff] (!%p298_p2)   ;;  %v1971_v19 = vld [vmem:[%s2582_s2 + $0x74] ss:$8 sps:$4 sm:$0xff] (!%p298_p2)  }
   0xb   : > { %v2001_v23 = vld [vmem:[%s2584_s4] sm:$0xff] (!%p298_p2)   ;;  %v2005_v24 = vld [vmem:[%s2584_s4 + $0x8] sm:$0xff] (!%p298_p2)   ;;  %v1973_v25 = vld [vmem:[%s2582_s2 + $0x70] ss:$8 sps:$4 sm:$0xff] (!%p298_p2)   ;;  %vm415_vm1 = vsmask.f32 (!%p298_p2), 7424 }
   0xc   : > { %512 = vmatpush1.bf16.msra.mxu0 (!%p298_p2), %v1955_v4  ;;  %1914 = vmatpush3.bf16.msra.mxu1 (!%p298_p2), %v2001_v23  ;;  %v1976_v28 = vld [vmem:[%s2581_s1 + $0x4] ss:$8 sps:$4 sm:$0xff] (!%p298_p2)   ;;  %v1974_v30 = vld [vmem:[%s2581_s1] ss:$8 sps:$4 sm:$0xff] (!%p298_p2)   ;;  %v1982_v32 = vld [vmem:[%s2581_s1 + $0x14] ss:$8 sps:$4 sm:$0xff] (!%p298_p2)  }
   0xd   : > { %s2599_s10 = smov (!%p338_p3, %s1632_s10), 1  ;;  %513 = vmatprep.subr.bf16.mxu0 %v1956_v5  ;;  %1915 = vmatprep.subr.bf16.mxu1 %v2093_v6  ;;  %v2013_v33 = vld [vmem:[%s2584_s4 + $0x18] sm:$0xff]   ;;  %v1985_v35 = vld [vmem:[%s2581_s1 + $0x24] ss:$8 sps:$4 sm:$0xff]   ;;  %v1983_v37 = vld [vmem:[%s2581_s1 + $0x20] ss:$8 sps:$4 sm:$0xff]  }
   0xe   : > { %s1937_s23 = smul.u32 24, %s2599_s10  ;;  %v1980_v34 = vld [vmem:[%s2581_s1 + $0x10] ss:$8 sps:$4 sm:$0xff]   ;;  %s1827_s28 = sshll.u32 %s2599_s10, 4  ;;  %v2017_v36 = vld [vmem:[%s2584_s4 + $0x20] sm:$0xff]   ;;  %v2021_v41 = vld [vmem:[%s2584_s4 + $0x28] sm:$0xff]  }
   0xf   : > { %s347_s17 = scalar_lea.vmem %s2588_s8, %s1827_s28  ;;  %v1988_v38 = vld [vmem:[%s2581_s1 + $0x34] ss:$8 sps:$4 sm:$0xff]   ;;  %v1986_v39 = vld [vmem:[%s2581_s1 + $0x30] ss:$8 sps:$4 sm:$0xff]   ;;  %v1991_v40 = vld [vmem:[%s2581_s1 + $0x44] ss:$8 sps:$4 sm:$0xff]  }
  0x10   : > { %514 = vmatpush1.bf16.msra.mxu0 %v1958_v7  ;;  %s2188_s13 = scalar_lea.vmem %s2580_s0, %s1937_s23  ;;  %1916 = vmatpush3.bf16.msra.mxu1 %v2005_v24  ;;  %v354_v43 = vld [vmem:[%s347_s17] sm:$0xff]  ;;  %v2025_v44 = vld [vmem:[%s2584_s4 + $0x30] sm:$0xff]   ;;  %v355_v45 = vld [vmem:[%s347_s17 + $0x8] sm:$0xff]  ;;  %vm794_vm2 = vcmask 1040384   ;;  %vm795_vm3 = vsmask.f32 256 }
  0x11   : > { %515 = vmatprep.subr.bf16.mxu0 %v1959_v8  ;;  %v2194_v12 = vld [vmem:[%s2188_s13] ss:$8 sps:$4 sm:$0xff]   ;;  %v1979_v15 = vld [vmem:[%s2188_s13 + $0x10] ss:$0 sps:$4 sm:$0x11]   ;;  %1917 = vmatprep.subr.bf16.mxu1 %v2093_v6  ;;  %v2029_v48 = vld [vmem:[%s2584_s4 + $0x38] sm:$0xff]  }
  0x12   : > { %v419_v16 = vshll.u32 %v2194_v12, 16  ;;  %v417_v20 = vshrl.u32 %v2194_v12, 16  ;;  %v424_v22 = vshll.u32 %v1979_v15, 16  ;;  %v2033_v42 = vld [vmem:[%s2188_s13 + $0x4] ss:$8 sps:$4 sm:$0xff]   ;;  %778 = vperm.xlu0 %1949, %v354_v43   ;;  %vm797_vm4 = vcmask 1044484   ;;  %vm2368_vm6 = vmand %vm794_vm2, %vm795_vm3 }
  0x13   : > { %v1989_v46 = vld [vmem:[%s2581_s1 + $0x40] ss:$8 sps:$4 sm:$0xff]   ;;  %v1994_v47 = vld [vmem:[%s2581_s1 + $0x54] ss:$8 sps:$4 sm:$0xff]   ;;  %v1992_v49 = vld [vmem:[%s2581_s1 + $0x50] ss:$8 sps:$4 sm:$0xff]  }
  0x14   : > { %516 = vmatpush1.bf16.msra.mxu0 %v1961_v9  ;;  %v421_v21 = vrot.slane %v419_v16, 1  ;;  %v426_v27 = vrot.slane %v424_v22, 1  ;;  %1918 = vmatpush3.bf16.msra.mxu1 %v2009_v29  ;;  %v1997_v50 = vld [vmem:[%s2581_s1 + $0x64] ss:$8 sps:$4 sm:$0xff]   ;;  %v1995_v51 = vld [vmem:[%s2581_s1 + $0x60] ss:$8 sps:$4 sm:$0xff]  }
  0x15   : > { %517 = vmatprep.subr.bf16.mxu0 %v1962_v10  ;;  %1919 = vmatprep.subr.bf16.mxu1 %v2093_v6  ;;  %v2000_v52 = vld [vmem:[%s2581_s1 + $0x74] ss:$8 sps:$4 sm:$0xff]   ;;  %v1998_v53 = vld [vmem:[%s2581_s1 + $0x70] ss:$8 sps:$4 sm:$0xff]   ;;  %v2004_v54 = vld [vmem:[%s2581_s1 + $0x84] ss:$8 sps:$4 sm:$0xff]  }
  0x16   : > { %v422_v26 = vor.u32 %v421_v21, %v417_v20  ;;  %783 = vperm.xlu0 %1949, %v355_v45   ;;  %v2002_v55 = vld [vmem:[%s2581_s1 + $0x80] ss:$8 sps:$4 sm:$0xff]   ;;  %v2008_v56 = vld [vmem:[%s2581_s1 + $0x94] ss:$8 sps:$4 sm:$0xff]   ;;  %v2006_v57 = vld [vmem:[%s2581_s1 + $0x90] ss:$8 sps:$4 sm:$0xff]  }
  0x17   : > { %v2012_v58 = vld [vmem:[%s2581_s1 + $0xa4] ss:$8 sps:$4 sm:$0xff]   ;;  %v2010_v59 = vld [vmem:[%s2581_s1 + $0xa0] ss:$8 sps:$4 sm:$0xff]   ;;  %v2016_v60 = vld [vmem:[%s2581_s1 + $0xb4] ss:$8 sps:$4 sm:$0xff]  }
  0x18   : > { %518 = vmatpush1.bf16.msra.mxu0 %v1964_v11  ;;  %v427_v31 = vsel %vm415_vm1, %v422_v26, %v426_v27  ;;  %1920 = vmatpush3.bf16.msra.mxu1 %v2013_v33  ;;  %v2014_v61 = vld [vmem:[%s2581_s1 + $0xb0] ss:$8 sps:$4 sm:$0xff]   ;;  %v2020_v62 = vld [vmem:[%s2581_s1 + $0xc4] ss:$8 sps:$4 sm:$0xff]   ;;  %v2018_v63 = vld [vmem:[%s2581_s1 + $0xc0] ss:$8 sps:$4 sm:$0xff]  }
  0x19   : > { %519 = vmatprep.subr.bf16.mxu0 %v1965_v13  ;;  %1921 = vmatprep.subr.bf16.mxu1 %v2093_v6  ;;  %v2024_v0 = vld [vmem:[%s2581_s1 + $0xd4] ss:$8 sps:$4 sm:$0xff]   ;;  %v2022_v1 = vld [vmem:[%s2581_s1 + $0xd0] ss:$8 sps:$4 sm:$0xff]   ;;  %v2028_v2 = vld [vmem:[%s2581_s1 + $0xe4] ss:$8 sps:$4 sm:$0xff]  }
  0x1a   : > { %v2026_v3 = vld [vmem:[%s2581_s1 + $0xe0] ss:$8 sps:$4 sm:$0xff]   ;;  %v2032_v4 = vld [vmem:[%s2581_s1 + $0xf4] ss:$8 sps:$4 sm:$0xff]   ;;  %v2030_v5 = vld [vmem:[%s2581_s1 + $0xf0] ss:$8 sps:$4 sm:$0xff]  }
  0x1b   : > { %v2035_v7 = vld [vmem:[%s2586_s6 + $0x100] sm:$0xff]   ;;  %v2038_v10 = vld [vmem:[%s2586_s6 + $0x148] sm:$0xff]   ;;  %vm798_vm5 = vsmask.f32 4352  ;;  %vm804_vm8 = vsmask.f32 7938 }
  0x1c   : > { %520 = vmatpush1.bf16.msra.mxu0 %v1967_v14  ;;  %1922 = vmatpush3.bf16.msra.mxu1 %v2017_v36  ;;  %v2036_v8 = vld [vmem:[%s2586_s6 + $0xc0] sm:$0xff]   ;;  %v2040_v13 = vld [vmem:[%s2586_s6 + $0xc8] sm:$0xff]   ;;  %vm2379_vm7 = vmand %vm797_vm4, %vm798_vm5  ;;  %vm806_vm9 = vsmask.f32 7954  ;;  %vm844_vm14 = vcmask 1043456   ;;  %vm846_vm15 = vcmask 1047556  }
  0x1d   : > { %521 = vmatprep.subr.bf16.mxu0 %v1968_v17  ;;  %1923 = vmatprep.subr.bf16.mxu1 %v2093_v6  ;;  %v2037_v9 = vld [vmem:[%s2586_s6 + $0x80] sm:$0xff]   ;;  %vm800_vm10 = vmor %vm2379_vm7, %vm2368_vm6  ;;  %v809_v16 = vld [vmem:[#allocation2 + $0x10] sm:$0x11]  ;;  %vm822_vm5 = vsmask.f32 4368  ;;  %s1828_s26 = sshll.u32 %s2599_s10, 3 }
  0x1e   : > { %v801_v15 = vld [vmem:[#allocation2] sm:$0x11]  ;;  %v2041_v17 = vld [vmem:[%s2586_s6 + $0x88] sm:$0xff]   ;;  %vm805_vm11 = vmand %vm794_vm2, %vm804_vm8  ;;  %s352_s29 = scalar_lea.vmem %s2589_s9, %s1828_s26 }
  0x1f   : > { %v2043_v20 = vld [vmem:[%s2586_s6 + $0x110] sm:$0xff]   ;;  %vm807_vm12 = vmand %vm797_vm4, %vm806_vm9  ;;  %v2046_v24 = vld [vmem:[%s2586_s6 + $0x158] sm:$0xff]  }
  0x20   : > { %522 = vmatpush1.bf16.msra.mxu0 %v1970_v18  ;;  %1924 = vmatpush3.bf16.msra.mxu1 %v2021_v41  ;;  %v802_v18 = vsel %vm800_vm10, 0, %v801_v15  ;;  %v2044_v21 = vld [vmem:[%s2586_s6 + $0xd0] sm:$0xff]   ;;  %vm808_vm13 = vmor %vm807_vm12, %vm805_vm11  ;;  %v2048_v26 = vld [vmem:[%s2586_s6 + $0xd8] sm:$0xff]  }
  0x21   : > { %523 = vmatprep.subr.bf16.mxu0 %v1971_v19  ;;  %1925 = vmatprep.subr.bf16.mxu1 %v2093_v6  ;;  %v2042_v19 = vld [vmem:[%s2586_s6 + $0x150] sm:$0xff]   ;;  %803 = vst [vmem:[#allocation2] sm:$0x11] %v802_v18  ;;  %v810_v23 = vsel %vm808_vm13, 0, %v809_v16  ;;  %v2049_v27 = vld [vmem:[%s2586_s6 + $0x98] sm:$0xff]   ;;  %vm2424_vm0 = vmand %vm844_vm14, %vm804_vm8 }
  0x22   : > { %v2045_v22 = vld [vmem:[%s2586_s6 + $0x90] sm:$0xff]   ;;  %811 = vst [vmem:[#allocation2 + $0x10] sm:$0x11] %v810_v23  ;;  %vm2429_vm2 = vmand %vm846_vm15, %vm806_vm9  ;;  %v2053_v33 = vld [vmem:[%s2586_s6 + $0xa0] sm:$0xff]  }
  0x23   : > { %vm848_vm4 = vmor %vm2429_vm2, %vm2424_vm0  ;;  %v2056_v36 = vld [vmem:[%s2586_s6 + $0xe8] sm:$0xff]   ;;  %v2062_v41 = vld [vmem:[%s2586_s6 + $0x178] sm:$0xff]  }
  0x24   : > { %524 = vmatpush1.bf16.msra.mxu0 %v1973_v25  ;;  %1926 = vmatpush3.bf16.msra.mxu1 %v2025_v44  ;;  %v2047_v25 = vld [vmem:[%s2586_s6 + $0x118] sm:$0xff]   ;;  %vm823_vm8 = vmor %vm795_vm3, %vm822_vm5  ;;  %vm1392_vm3 = vcmask 1046528  }
  0x25   : > { %717 = vmatprep.subr.bf16.mxu0 %v1976_v28  ;;  %1927 = vmatprep.subr.bf16.mxu1 %v2093_v6  ;;  %v2034_v6 = vld [vmem:[%s2586_s6 + $0x140] sm:$0xff]   ;;  %v2064_v43 = vld [vmem:[%s2586_s6 + $0xf8] sm:$0xff]  }
  0x26   : > { %v2063_v44 = vld [vmem:[%s2586_s6 + $0x138] sm:$0xff]  }
  0x27   : > { %542 = vmatmul.mubr.bf16.vlgmr.msra.gmra.mrb[0].mxu0 %v427_v31  ;;  %v2051_v31 = vld [vmem:[%s2586_s6 + $0x120] sm:$0xff]   ;;  %v2066_v45 = vld [vmem:[%s2586_s6 + $0xb8] sm:$0xff]  }
  0x28   : > { %718 = vmatpush1.bf16.msra.mxu0 %v1974_v30  ;;  %749 = vmatprep.mubr.bf16.mxu0 %v2033_v42  ;;  %v2050_v30 = vld [vmem:[%s2586_s6 + $0x160] sm:$0xff]  }
  0x29   : > { %719 = vmatprep.subr.bf16.mxu0 %v1982_v32  ;;  %1928 = vmatpush3.bf16.msra.mxu1 %v2029_v48  ;;  %v2052_v32 = vld [vmem:[%s2586_s6 + $0xe0] sm:$0xff]  }
  0x2a   : > { %1847 = vmatprep.subr.bf16.mxu1 %v2036_v8 }
  0x2c   : > { %720 = vmatpush1.bf16.msra.mxu0 %v1980_v34  ;;  %1930 = vmatmul.mubr.bf16.vlgmr.msra.gmra.mrb[0].mxu1 %v2033_v42  ;;  %v2054_v34 = vld [vmem:[%s2586_s6 + $0x168] sm:$0xff]   ;;  %v2061_v42 = vld [vmem:[%s2586_s6 + $0xb0] sm:$0xff]  }
  0x2d   : > { %721 = vmatprep.subr.bf16.mxu0 %v1985_v35  ;;  %1848 = vmatpush3.bf16.msra.mxu1 %v2037_v9  ;;  %v2055_v35 = vld [vmem:[%s2586_s6 + $0x128] sm:$0xff]  }
  0x2e   : > { %1849 = vmatprep.subr.bf16.mxu1 %v2040_v13 }
  0x30   : > { %722 = vmatpush1.bf16.msra.mxu0 %v1983_v37  ;;  %v2058_v37 = vld [vmem:[%s2586_s6 + $0x170] sm:$0xff]  }
  0x31   : > { %723 = vmatprep.subr.bf16.mxu0 %v1988_v38  ;;  %1850 = vmatpush3.bf16.msra.mxu1 %v2041_v17  ;;  %v2057_v38 = vld [vmem:[%s2586_s6 + $0xa8] sm:$0xff]  }
  0x32   : > { %1851 = vmatprep.subr.bf16.mxu1 %v2044_v21 }
  0x34   : > { %724 = vmatpush1.bf16.msra.mxu0 %v1986_v39  ;;  %v2060_v39 = vld [vmem:[%s2586_s6 + $0xf0] sm:$0xff]  }
  0x35   : > { %725 = vmatprep.subr.bf16.mxu0 %v1991_v40  ;;  %1852 = vmatpush3.bf16.msra.mxu1 %v2045_v22  ;;  %v2059_v40 = vld [vmem:[%s2586_s6 + $0x130] sm:$0xff]  }
  0x36   : > { %1853 = vmatprep.subr.bf16.mxu1 %v2048_v26 }
  0x38   : > { %726 = vmatpush1.bf16.msra.mxu0 %v1989_v46  ;;  %v2068_v46 = vld [vmem:[%s2586_s6 + $0x40] sm:$0xff]  }
  0x39   : > { %727 = vmatprep.subr.bf16.mxu0 %v1994_v47  ;;  %1854 = vmatpush3.bf16.msra.mxu1 %v2049_v27 }
  0x3a   : > { %1855 = vmatprep.subr.bf16.mxu1 %v2052_v32 }
  0x3c   : > { %728 = vmatpush1.bf16.msra.mxu0 %v1992_v49 }
  0x3d   : > { %729 = vmatprep.subr.bf16.mxu0 %v1997_v50  ;;  %1856 = vmatpush3.bf16.msra.mxu1 %v2053_v33 }
  0x3e   : > { %1857 = vmatprep.subr.bf16.mxu1 %v2056_v36 }
  0x40   : > { %730 = vmatpush1.bf16.msra.mxu0 %v1995_v51  ;;  %v762_v51 = vlaneseq }
  0x41   : > { %731 = vmatprep.subr.bf16.mxu0 %v2000_v52  ;;  %1858 = vmatpush3.bf16.msra.mxu1 %v2057_v38 }
  0x42   : > { %1859 = vmatprep.subr.bf16.mxu1 %v2060_v39  ;;  %v763_v52 = vshrl.u32 %v762_v51, 7 }
  0x44   : > { %732 = vmatpush1.bf16.msra.mxu0 %v1998_v53  ;;  %v764_v53 = vsub.s32 0, %v763_v52 }
  0x45   : > { %733 = vmatprep.subr.bf16.mxu0 %v2004_v54  ;;  %1860 = vmatpush3.bf16.msra.mxu1 %v2061_v42  ;;  %v760_v54 = vld [vmem:[%s2583_s3] sm:$0x3] }
  0x46   : > { %1861 = vmatprep.subr.bf16.mxu1 %v2064_v43 }
  0x48   : > { %734 = vmatpush1.bf16.msra.mxu0 %v2002_v55  ;;  %v768_v55 = vsub.s32 1, %v763_v52 }
  0x49   : > { %735 = vmatprep.subr.bf16.mxu0 %v2008_v56  ;;  %1862 = vmatpush3.bf16.msra.mxu1 %v2066_v45  ;;  %v765_v56 = vrot.slane %v760_v54, %v764_v53 }
  0x4a   : > { %1869 = vmatprep.subr.bf16.mxu1 %v2068_v46 }
  0x4c   : > { %736 = vmatpush1.bf16.msra.mxu0 %v2006_v57 }
  0x4d   : > { %737 = vmatprep.subr.bf16.mxu0 %v2012_v58  ;;  %v769_v58 = vrot.slane %v760_v54, %v768_v55 }
  0x50   : > { %738 = vmatpush1.bf16.msra.mxu0 %v2010_v59 }
  0x51   : > { %739 = vmatprep.subr.bf16.mxu0 %v2016_v60 }
  0x54   : > { %740 = vmatpush1.bf16.msra.mxu0 %v2014_v61 }
  0x55   : > { %741 = vmatprep.subr.bf16.mxu0 %v2020_v62 }
  0x58   : > { %742 = vmatpush1.bf16.msra.mxu0 %v2018_v63 }
  0x59   : > { %743 = vmatprep.subr.bf16.mxu0 %v2024_v0 }
  0x5c   : > { %744 = vmatpush1.bf16.msra.mxu0 %v2022_v1 }
  0x5d   : > { %745 = vmatprep.subr.bf16.mxu0 %v2028_v2 }
  0x60   : > { %746 = vmatpush1.bf16.msra.mxu0 %v2026_v3 }
  0x61   : > { %747 = vmatprep.subr.bf16.mxu0 %v2032_v4 }
  0x64   : > { %748 = vmatpush1.bf16.msra.mxu0 %v2030_v5 }
  0x65   : > { %1891 = vmatprep.subr.bf16.mxu0 %v2034_v6 }
  0x67   : > { %750 = vmatmul.mubr.bf16.vlgmr.msra.gmra.mrb[0].mxu0 %v2194_v12  ;;  %v2039_v12 = vld [vmem:[%s2586_s6 + $0x108] sm:$0xff]  }
  0x68   : > { %1892 = vmatpush3.bf16.msra.mxu0 %v2035_v7 }
  0x69   : > { %1893 = vmatprep.subr.bf16.mxu0 %v2038_v10 }
  0x6c   : > { %1894 = vmatpush3.bf16.msra.mxu0 %v2039_v12 }
  0x6d   : > { %1895 = vmatprep.subr.bf16.mxu0 %v2042_v19 }
  0x70   : > { %1896 = vmatpush3.bf16.msra.mxu0 %v2043_v20  ;;  %v849_v20 = vld [vmem:[#allocation2] sm:$0xff] }
  0x71   : > { %1897 = vmatprep.subr.bf16.mxu0 %v2046_v24  ;;  %v853_v24 = vld [vmem:[#allocation2 + $0x10] sm:$0x11] }
  0x74   : > { %1898 = vmatpush3.bf16.msra.mxu0 %v2047_v25 }
  0x75   : > { %1899 = vmatprep.subr.bf16.mxu0 %v2050_v30 }
  0x78   : > { %1900 = vmatpush3.bf16.msra.mxu0 %v2051_v31 }
  0x79   : > { %1901 = vmatprep.subr.bf16.mxu0 %v2054_v34 }
  0x7c   : > { %1902 = vmatpush3.bf16.msra.mxu0 %v2055_v35 }
  0x7d   : > { %1903 = vmatprep.subr.bf16.mxu0 %v2058_v37 }
  0x80   : > { %1904 = vmatpush3.bf16.msra.mxu0 %v2059_v40 }
  0x81   : > { %1905 = vmatprep.subr.bf16.mxu0 %v2062_v41 }
  0x84   : > { %1906 = vmatpush3.bf16.msra.mxu0 %v2063_v44 }
  0x91   : > { %v2495_v57 = vpop.permute.xlu0 %778 }
  0x95   : > { %v2498_v3 = vpop.permute.xlu0 %783 }
  0xff   : > { %v2488_v47 = vpop.f32.mrb[0].mxu1 }
 0x100   : > { %v1931_v48 = vpop.f32.mrb[1].mxu1 }
 0x101   : > { %v2490_v49 = vpop.f32.mrb[2].mxu1 }
 0x102   : > { %v1932_v50 = vpop.f32.mrb[3].mxu1 }
 0x13a   : > { %v751_v59 = vpop.f32.mrb[0].mxu0 }
 0x13b   : > { %v772_v60 = vadd.f32 %v765_v56, %v751_v59  ;;  %v753_v61 = vpop.f32.mrb[1].mxu0 }
 0x13c   : > { %v773_v62 = vadd.f32 %v769_v58, %v753_v61  ;;  %v755_v63 = vpop.f32.mrb[2].mxu0  ;;  %v2070_v61 = vld [vmem:[%s2586_s6 + $0x48] sm:$0xff]  }
 0x13d   : > { %v786_v0 = vmul.f32 %v2495_v57, %v772_v60  ;;  %v774_v1 = vadd.f32 %v765_v56, %v755_v63  ;;  %v757_v2 = vpop.f32.mrb[3].mxu0  ;;  %v2072_v63 = vld [vmem:[%s2586_s6 + $0x50] sm:$0xff]  }
 0x13e   : > { %v787_v4 = vmul.f32 %v2495_v57, %v773_v62  ;;  %v775_v5 = vadd.f32 %v769_v58, %v757_v2  ;;  %v2069_v58 = vld [vmem:[%s2586_s6] sm:$0xff]   ;;  %v2071_v62 = vld [vmem:[%s2586_s6 + $0x8] sm:$0xff]   ;;  %v2075_v2 = vld [vmem:[%s2586_s6 + $0x18] sm:$0xff]  }
 0x13f   : > { %v790_v6 = vmax.f32 %v786_v0, 0.0  ;;  %v788_v7 = vmul.f32 %v2498_v3, %v774_v1  ;;  %v2073_v0 = vld [vmem:[%s2586_s6 + $0x10] sm:$0xff]   ;;  %v2074_v1 = vld [vmem:[%s2586_s6 + $0x58] sm:$0xff]  }
 0x140   : > { %v791_v8 = vmax.f32 %v787_v4, 0.0  ;;  %v789_v9 = vmul.f32 %v2498_v3, %v775_v5  ;;  %v2076_v4 = vld [vmem:[%s2586_s6 + $0x60] sm:$0xff]  }
 0x141   : > { %v792_v10 = vmax.f32 %v788_v7, 0.0  ;;  %v2077_v5 = vld [vmem:[%s2586_s6 + $0x20] sm:$0xff]   ;;  %v2079_v7 = vld [vmem:[%s2586_s6 + $0x28] sm:$0xff]  }
 0x142   : > { %v1829_v12 = vpack.c.bf16 %v791_v8, %v790_v6  ;;  %v793_v13 = vmax.f32 %v789_v9, 0.0  ;;  %v2078_v6 = vld [vmem:[%s2586_s6 + $0x68] sm:$0xff]   ;;  %v2080_v8 = vld [vmem:[%s2586_s6 + $0x70] sm:$0xff]  }
 0x143   : > { %v2081_v9 = vld [vmem:[%s2586_s6 + $0x30] sm:$0xff]  }
 0x144   : > { %v825_v15 = vshrl.u32 %v1829_v12, 16  ;;  %v1830_v16 = vpack.c.bf16 %v793_v13, %v792_v10  ;;  %v828_v18 = vshll.u32 %v1829_v12, 16  ;;  %v2082_v10 = vld [vmem:[%s2586_s6 + $0x78] sm:$0xff]  }
 0x145   : > { %v2083_v12 = vld [vmem:[%s2586_s6 + $0x38] sm:$0xff]  }
 0x146   : > { %v827_v17 = vrot.slane %v825_v15, 7  ;;  %v833_v19 = vshrl.u32 %v1830_v16, 16  ;;  %v836_v23 = vshll.u32 %v1830_v16, 16 }
 0x148   : > { %v830_v21 = vor.u32 %v828_v18, %v827_v17  ;;  %v835_v22 = vrot.slane %v833_v19, 7  ;;  %v831_v25 = vrot.slane %v827_v17, 4 }
 0x14a   : > { %v850_v26 = vsel %vm848_vm4, %v830_v21, %v849_v20  ;;  %v838_v27 = vor.u32 %v836_v23, %v835_v22  ;;  %v840_v30 = vrot.slane %v835_v22, 4 }
 0x14b   : > { %851 = vst [vmem:[#allocation2] sm:$0xff] %v850_v26 }
 0x14c   : > { %v839_v31 = vsel %vm823_vm8, %v831_v25, %v838_v27  ;;  %v854_v32 = vsel %vm800_vm10, %v840_v30, %v853_v24 }
 0x14d   : > { %855 = vst [vmem:[#allocation2 + $0x10] sm:$0x11] %v854_v32  ;;  %v1737_v33 = vcombine.high %v850_v26, %v839_v31  ;;  %v1736_v34 = vcombine.low %v850_v26, %v839_v31  ;;  %v1695_v32 = vld [vmem:[%s2585_s5] ss:$0 sm:$0xff] }
 0x14f   : > { %v1066_v35 = vshll.u32 %v1737_v33, 16  ;;  %v1054_v36 = vshll.u32 %v1736_v34, 16  ;;  %v1064_v44 = vshrl.u32 %v1737_v33, 16  ;;  %v1052_v11 = vshrl.u32 %v1736_v34, 16 }
 0x151   : > { %v1068_v39 = vrot.slane %v1066_v35, 1  ;;  %v1056_v40 = vrot.slane %v1054_v36, 1  ;;  %v1822_v36 = vld [vmem:[%s2587_s7] ss:$0 sm:$0xff] }
 0x152   : > { %v1353_v29 = vld [vmem:[#allocation2] sm:$0xee] }
 0x153   : > { %v1805_v37 = vcombine.high %v1353_v29, %v839_v31  ;;  %v1804_v28 = vcombine.low %v1353_v29, %v839_v31  ;;  %v1069_v51 = vor.u32 %v1068_v39, %v1064_v44  ;;  %v1057_v52 = vor.u32 %v1056_v40, %v1052_v11 }
 0x154   : > { %v1004_v38 = vld [vmem:[#allocation2 + $0x10] sm:$0x11]  ;;  %v962_v29 = vadd.f32 %v1695_v32, %v2488_v47 }
 0x155   : > { %v1739_v41 = vcombine.high %v1004_v38, %v1004_v38  ;;  %v1738_v42 = vcombine.low %v1004_v38, %v1004_v38  ;;  %v1396_v43 = vrot.slane %v1805_v37, 1  ;;  %v1393_v14 = vrot.slane %v1804_v28, 1 }
 0x156   : > { %v965_v38 = vadd.f32 %v1695_v32, %v2490_v49 }
 0x157   : > { %v1397_v45 = vrot.slane %v1739_v41, 1  ;;  %v1394_v46 = vrot.slane %v1738_v42, 1  ;;  %v1071_v48 = vshll.u32 %v1739_v41, 16  ;;  %v1059_v50 = vshll.u32 %v1738_v42, 16 }
 0x158   : > { %v968_v41 = vmul.f32 %v962_v29, %v2495_v57 }
 0x159   : > { %v1398_v53 = vsel %vm1392_vm3, %v1396_v43, %v1397_v45  ;;  %v1395_v54 = vsel %vm1392_vm3, %v1393_v14, %v1394_v46  ;;  %v1073_v55 = vrot.slane %v1071_v48, 1  ;;  %v1061_v56 = vrot.slane %v1059_v50, 1 }
 0x15a   : > { %1529 = vmatprep.mubr.bf16.mxu0 %v1398_v53  ;;  %v969_v14 = vmul.f32 %v965_v38, %v2498_v3 }
 0x15b   : > { %1530 = vmatmul.mubr.bf16.vlgmr.msra.gmra.mrb[4].mxu0 %v1395_v54  ;;  %v1074_v59 = vsel %vm415_vm1, %v1069_v51, %v1073_v55  ;;  %v1062_v60 = vsel %vm415_vm1, %v1057_v52, %v1061_v56 }
 0x15c   : > { %1205 = vmatprep.mubr.bf16.mxu1 %v1074_v59 }
 0x15d   : > { %1206 = vmatmul.mubr.bf16.vlgmr.msra.gmra.mrb[4].mxu1 %v1062_v60 }
 0x15e   : > { %1870 = vmatpush3.bf16.msra.mxu1 %v2069_v58  ;;  %1344 = vmatprep.mubr.bf16.mxu1 %v1737_v33 }
 0x15f   : > { %1871 = vmatprep.subr.bf16.mxu1 %v2070_v61 }
 0x162   : > { %1872 = vmatpush3.bf16.msra.mxu1 %v2071_v62 }
 0x163   : > { %1873 = vmatprep.subr.bf16.mxu1 %v2072_v63 }
 0x166   : > { %1874 = vmatpush3.bf16.msra.mxu1 %v2073_v0 }
 0x167   : > { %1875 = vmatprep.subr.bf16.mxu1 %v2074_v1 }
 0x16a   : > { %1876 = vmatpush3.bf16.msra.mxu1 %v2075_v2 }
 0x16b   : > { %1877 = vmatprep.subr.bf16.mxu1 %v2076_v4 }
 0x16e   : > { %1878 = vmatpush3.bf16.msra.mxu1 %v2077_v5 }
 0x16f   : > { %1879 = vmatprep.subr.bf16.mxu1 %v2078_v6 }
 0x172   : > { %1880 = vmatpush3.bf16.msra.mxu1 %v2079_v7 }
 0x173   : > { %1881 = vmatprep.subr.bf16.mxu1 %v2080_v8 }
 0x176   : > { %1882 = vmatpush3.bf16.msra.mxu1 %v2081_v9 }
 0x177   : > { %1883 = vmatprep.subr.bf16.mxu1 %v2082_v10 }
 0x17a   : > { %1884 = vmatpush3.bf16.msra.mxu1 %v2083_v12 }
 0x17d   : > { %1345 = vmatmul.mubr.bf16.vlgmr.msra.gmra.mrb[8].mxu1 %v1736_v34 }
 0x22e   : > { %v1907_v13 = vpop.f32.mrb[4].mxu0 }
 0x22f   : > { %v1908_v15 = vpop.f32.mrb[5].mxu0 }
 0x230   : > { %v1909_v16 = vadd.f32 %v1908_v15, %v1907_v13  ;;  %v1910_v17 = vpop.f32.mrb[6].mxu0  ;;  %v1863_v18 = vpop.f32.mrb[4].mxu1 }
 0x231   : > { %v1911_v19 = vpop.f32.mrb[7].mxu0  ;;  %v1864_v20 = vpop.f32.mrb[5].mxu1 }
 0x232   : > { %v1912_v21 = vadd.f32 %v1911_v19, %v1910_v17  ;;  %v1865_v22 = vadd.f32 %v1864_v20, %v1863_v18  ;;  %v1866_v23 = vpop.f32.mrb[6].mxu1 }
 0x233   : > { %v1867_v24 = vpop.f32.mrb[7].mxu1 }
 0x234   : > { %v1868_v25 = vadd.f32 %v1867_v24, %v1866_v23 }
 0x250   : > { %v1885_v26 = vpop.f32.mrb[8].mxu1 }
 0x251   : > { %v1886_v27 = vpop.f32.mrb[9].mxu1 }
 0x252   : > { %v1887_v30 = vadd.f32 %v1886_v27, %v1885_v26  ;;  %v1888_v31 = vpop.f32.mrb[10].mxu1 }
 0x253   : > { %v1889_v33 = vpop.f32.mrb[11].mxu1 }
 0x254   : > { %v1347_v34 = vadd.f32 %v1887_v30, %v1865_v22  ;;  %v1890_v35 = vadd.f32 %v1889_v33, %v1888_v31 }
 0x256   : > { %v1538_v37 = vadd.f32 %v1909_v16, %v1347_v34  ;;  %v1350_v28 = vadd.f32 %v1890_v35, %v1868_v25 }
 0x258   : > { %v1547_v39 = vadd.f32 %v1822_v36, %v1538_v37  ;;  %v1539_v40 = vadd.f32 %v1912_v21, %v1350_v28 }
 0x25a   : > { %v1549_v42 = vmul.f32 %v1547_v39, %v2495_v57  ;;  %v1548_v43 = vadd.f32 %v1822_v36, %v1539_v40 }
 0x25c   : > { %v1551_v44 = vadd.f32 %v1549_v42, %v968_v41  ;;  %v1550_v11 = vmul.f32 %v1548_v43, %v2498_v3 }
 0x25e   : > { %v1552_v45 = vadd.f32 %v1550_v11, %v969_v14  ;;  %v1553_v46 = vmax.f32 %v1551_v44, 0.0 }
 0x260   : > { %v1554_v47 = vmax.f32 %v1552_v45, 0.0 }
 0x262   : > { %v1836_v49 = vpack.c.bf16 %v1554_v47, %v1553_v46 }
 0x264   : > { %1837 = vst [vmem:[%s352_s29] sm:$0xff] %v1836_v49  }
 0x265 PF: > { %s19_s30 = sadd.s32 1, %s2090_s30  }
 0x266   : > { %p16_p4 = scmp.ge.s32.totalorder %s19_s30, 4  }
 0x268   :  { %18 = sbr.rel (!%p16_p4) target bundleno = 1 (0x1), region = 91 }

// kernel: conv_backbone_forward.16
= control target key start
LH: loop header
LB: loop body
LE: loop exit
PB: predicated region body
PF: predicated region fallthrough
CT: control target
= control target key end

     0   :  { %s2037_s30 = smov 0   ;;  %s2405_s0 = inlined_call_operand.vmem [shape: bf16[2,5,256], index: 0, kind: input, shape index: {}]   ;;  %s2406_s1 = inlined_call_operand.vmem [shape: bf16[256,256], index: 1, kind: input, shape index: {}]   ;;  %s2407_s2 = inlined_call_operand.vmem [shape: bf16[128,256], index: 2, kind: input, shape index: {}]   ;;  %s2408_s3 = inlined_call_operand.vmem [shape: f32[1,256], index: 3, kind: input, shape index: {}]   ;;  %s2409_s4 = inlined_call_operand.vmem [shape: bf16[128,128], index: 4, kind: input, shape index: {}]   ;;  %s2410_s5 = inlined_call_operand.vmem [shape: f32[1,128], index: 5, kind: input, shape index: {}]   ;;  %s2411_s6 = inlined_call_operand.vmem [shape: bf16[3,256,128], index: 6, kind: input, shape index: {}]   ;;  %s2412_s7 = inlined_call_operand.vmem [shape: f32[1,128], index: 7, kind: input, shape index: {}]   ;;  %s2413_s8 = inlined_call_operand.vmem [shape: f32[2,4,1], index: 8, kind: input, shape index: {}]   ;;  %s2414_s9 = inlined_call_operand.vmem [shape: bf16[2,4,128], index: 9, kind: output, shape index: {}]  }
   0x1 LB: > { %s1541_s10 = sadd.s32 4294967295, %s1982_s30   ;;  %p1545_p0 = scmp.ge.s32.totalorder %s1982_s30, 1  ;;  %s1982_s30 = sphi %s2037_s30, %s19_s30  }
   0x2   : > { %p296_p1 = scmp.lt.s32.totalorder %s1982_s30, 3 }
   0x4   : > { %p297_p2 = pnand %p1545_p0, %p296_p1 }
   0x5   : > { %v1840_v0 = vld [vmem:[%s2406_s1 + $0x4] ss:$8 sps:$4 sm:$0xff] (!%p297_p2)   ;;  %v1842_v1 = vld [vmem:[%s2406_s1] ss:$8 sps:$4 sm:$0xff] (!%p297_p2)   ;;  %v1984_v2 = vmov (!%p297_p2), 0   ;;  %p335_p3 = scmp.lt.s32.totalorder (!%p297_p2), %s1541_s10, 1 }
   0x6   : > { %300 = sbr.rel (%p297_p2) target bundleno = 579 (0x243), region = 56  ;;  %522 = vmatprep.mubr.bf16.mxu0 (!%p297_p2), %v1984_v2  ;;  %1839 = vset.pattern.permute.xlu0 (!%p297_p2), %v1984_v2  ;;  %v1843_v3 = vld [vmem:[%s2407_s2 + $0x4] ss:$8 sps:$4 sm:$0xff] (!%p297_p2)   ;;  %v1845_v4 = vld [vmem:[%s2407_s2] ss:$8 sps:$4 sm:$0xff] (!%p297_p2)   ;;  %v1985_v44 = vmov (!%p297_p2), 0.0  }
   0x7   : > { %695 = vmatprep.subr.bf16.mxu1 (!%p297_p2), %v1840_v0  ;;  %v1846_v5 = vld [vmem:[%s2406_s1 + $0x14] ss:$8 sps:$4 sm:$0xff] (!%p297_p2)   ;;  %v1848_v6 = vld [vmem:[%s2406_s1 + $0x10] ss:$8 sps:$4 sm:$0xff] (!%p297_p2)   ;;  %490 = vmatprep.subr.bf16.mxu0 (!%p297_p2), %v1843_v3  ;;  %v1852_v9 = vld [vmem:[%s2406_s1 + $0x24] ss:$8 sps:$4 sm:$0xff] (!%p297_p2)  }
   0x8   : > { %696 = vmatpush1.bf16.msra.mxu1 (!%p297_p2), %v1842_v1  ;;  %v1849_v7 = vld [vmem:[%s2407_s2 + $0x14] ss:$8 sps:$4 sm:$0xff] (!%p297_p2)   ;;  %491 = vmatpush1.bf16.msra.mxu0 (!%p297_p2), %v1845_v4  ;;  %v1851_v8 = vld [vmem:[%s2407_s2 + $0x10] ss:$8 sps:$4 sm:$0xff] (!%p297_p2)   ;;  %v1854_v10 = vld [vmem:[%s2406_s1 + $0x20] ss:$8 sps:$4 sm:$0xff] (!%p297_p2)  }
   0x9   : > { %697 = vmatprep.subr.bf16.mxu1 (!%p297_p2), %v1846_v5  ;;  %492 = vmatprep.subr.bf16.mxu0 (!%p297_p2), %v1849_v7  ;;  %v1855_v11 = vld [vmem:[%s2407_s2 + $0x24] ss:$8 sps:$4 sm:$0xff] (!%p297_p2)   ;;  %v1858_v12 = vld [vmem:[%s2406_s1 + $0x34] ss:$8 sps:$4 sm:$0xff] (!%p297_p2)   ;;  %v1857_v13 = vld [vmem:[%s2407_s2 + $0x20] ss:$8 sps:$4 sm:$0xff] (!%p297_p2)  }
   0xa   : > { %v1861_v14 = vld [vmem:[%s2407_s2 + $0x34] ss:$8 sps:$4 sm:$0xff] (!%p297_p2)   ;;  %v1860_v15 = vld [vmem:[%s2406_s1 + $0x30] ss:$8 sps:$4 sm:$0xff] (!%p297_p2)   ;;  %v1864_v16 = vld [vmem:[%s2406_s1 + $0x44] ss:$8 sps:$4 sm:$0xff] (!%p297_p2)  }
   0xb   : > { %v1863_v17 = vld [vmem:[%s2407_s2 + $0x30] ss:$8 sps:$4 sm:$0xff] (!%p297_p2)   ;;  %v1867_v18 = vld [vmem:[%s2407_s2 + $0x44] ss:$8 sps:$4 sm:$0xff] (!%p297_p2)   ;;  %v1866_v19 = vld [vmem:[%s2406_s1 + $0x40] ss:$8 sps:$4 sm:$0xff] (!%p297_p2)  }
   0xc   : > { %698 = vmatpush1.bf16.msra.mxu1 (!%p297_p2), %v1848_v6  ;;  %493 = vmatpush1.bf16.msra.mxu0 (!%p297_p2), %v1851_v8  ;;  %v1870_v20 = vld [vmem:[%s2406_s1 + $0x54] ss:$8 sps:$4 sm:$0xff] (!%p297_p2)   ;;  %v1869_v21 = vld [vmem:[%s2407_s2 + $0x40] ss:$8 sps:$4 sm:$0xff] (!%p297_p2)   ;;  %v1872_v23 = vld [vmem:[%s2406_s1 + $0x50] ss:$8 sps:$4 sm:$0xff] (!%p297_p2)  }
   0xd   : > { %699 = vmatprep.subr.bf16.mxu1 %v1852_v9  ;;  %494 = vmatprep.subr.bf16.mxu0 %v1855_v11  ;;  %s2416_s10 = smov (!%p335_p3, %s1541_s10), 1  ;;  %v1873_v22 = vld [vmem:[%s2407_s2 + $0x54] ss:$8 sps:$4 sm:$0xff]   ;;  %v1876_v24 = vld [vmem:[%s2406_s1 + $0x64] ss:$8 sps:$4 sm:$0xff]   ;;  %vm1986_vm0 = vmmov 0  }
   0xe   : > { %s1731_s13 = sshll.u32 %s2416_s10, 3  ;;  %v1875_v25 = vld [vmem:[%s2407_s2 + $0x50] ss:$8 sps:$4 sm:$0xff]   ;;  %v1879_v26 = vld [vmem:[%s2407_s2 + $0x64] ss:$8 sps:$4 sm:$0xff]   ;;  %s1548_s11 = sshll.u32 %s2416_s10, 2 }
   0xf   : > { %s339_s22 = scalar_lea.vmem %s2405_s0, %s1731_s13  ;;  %v1878_v28 = vld [vmem:[%s2406_s1 + $0x60] ss:$8 sps:$4 sm:$0xff]   ;;  %v1882_v31 = vld [vmem:[%s2406_s1 + $0x74] ss:$8 sps:$4 sm:$0xff]   ;;  %v1884_v35 = vld [vmem:[%s2406_s1 + $0x70] ss:$8 sps:$4 sm:$0xff]   ;;  %s343_s20 = scalar_lea.vmem %s2413_s8, %s1548_s11 }
  0x10   : > { %700 = vmatpush1.bf16.msra.mxu1 %v1854_v10  ;;  %495 = vmatpush1.bf16.msra.mxu0 %v1857_v13  ;;  %v350_v27 = vld [vmem:[%s339_s22] sm:$0x77]  ;;  %v1885_v34 = vld [vmem:[%s2407_s2 + $0x74] ss:$8 sps:$4 sm:$0xff]   ;;  %v1887_v39 = vld [vmem:[%s2407_s2 + $0x70] ss:$8 sps:$4 sm:$0xff]  }
  0x11   : > { %701 = vmatprep.subr.bf16.mxu1 %v1858_v12  ;;  %496 = vmatprep.subr.bf16.mxu0 %v1861_v14  ;;  %v2136_v29 = vcombine.low %v350_v27, %v350_v27  ;;  %v2138_v30 = vcombine.high %v350_v27, %v350_v27  ;;  %v1881_v32 = vld [vmem:[%s2407_s2 + $0x60] ss:$8 sps:$4 sm:$0xff]   ;;  %v1888_v36 = vld [vmem:[%s2406_s1 + $0x84] ss:$8 sps:$4 sm:$0xff]   ;;  %v1892_v42 = vld [vmem:[%s2406_s1 + $0x94] ss:$8 sps:$4 sm:$0xff]  }
  0x12   : > { %v1890_v40 = vld [vmem:[%s2406_s1 + $0x80] ss:$8 sps:$4 sm:$0xff]   ;;  %v1895_v45 = vld [vmem:[%s2406_s1 + $0x90] ss:$8 sps:$4 sm:$0xff]   ;;  %v1896_v46 = vld [vmem:[%s2406_s1 + $0xa4] ss:$8 sps:$4 sm:$0xff]  }
  0x13   : > { %v405_v33 = vshll.u32 %v2136_v29, 16  ;;  %727 = vmatprep.mubr.bf16.mxu1 %v2138_v30  ;;  %v403_v37 = vshrl.u32 %v2136_v29, 16  ;;  %v1894_v43 = vld [vmem:[%s2409_s4] sm:$0xff]   ;;  %v1898_v47 = vld [vmem:[%s2409_s4 + $0x8] sm:$0xff]   ;;  %v1900_v49 = vld [vmem:[%s2406_s1 + $0xb4] ss:$8 sps:$4 sm:$0xff]  }
  0x14   : > { %702 = vmatpush1.bf16.msra.mxu1 %v1860_v15  ;;  %497 = vmatpush1.bf16.msra.mxu0 %v1863_v17  ;;  %v1899_v48 = vld [vmem:[%s2406_s1 + $0xa0] ss:$8 sps:$4 sm:$0xff]   ;;  %v1902_v50 = vld [vmem:[%s2409_s4 + $0x10] sm:$0xff]   ;;  %v1904_v53 = vld [vmem:[%s2406_s1 + $0xc4] ss:$8 sps:$4 sm:$0xff]   ;;  %vm759_vm1 = vcmask 1040384  }
  0x15   : > { %703 = vmatprep.subr.bf16.mxu1 %v1864_v16  ;;  %498 = vmatprep.subr.bf16.mxu0 %v1867_v18  ;;  %v407_v38 = vrot.slane %v405_v33, 1  ;;  %v349_v51 = vld [vmem:[%s343_s20] sm:$0xf]  ;;  %v1903_v52 = vld [vmem:[%s2406_s1 + $0xb0] ss:$8 sps:$4 sm:$0xff]   ;;  %v1914_v60 = vld [vmem:[%s2409_s4 + $0x28] sm:$0xff]  }
  0x16   : > { %752 = vperm.xlu0 %1839, %v349_v51   ;;  %v1906_v54 = vld [vmem:[%s2409_s4 + $0x18] sm:$0xff]   ;;  %v1907_v55 = vld [vmem:[%s2406_s1 + $0xc0] ss:$8 sps:$4 sm:$0xff]   ;;  %v1912_v59 = vld [vmem:[%s2406_s1 + $0xe4] ss:$8 sps:$4 sm:$0xff]   ;;  %vm762_vm3 = vcmask 1044484  }
  0x17   : > { %v408_v41 = vor.u32 %v407_v38, %v403_v37  ;;  %v1908_v56 = vld [vmem:[%s2406_s1 + $0xd4] ss:$8 sps:$4 sm:$0xff]   ;;  %v1910_v57 = vld [vmem:[%s2409_s4 + $0x20] sm:$0xff]   ;;  %v1911_v58 = vld [vmem:[%s2406_s1 + $0xd0] ss:$8 sps:$4 sm:$0xff]   ;;  %vm769_vm6 = vcmask 1042434  }
  0x18   : > { %704 = vmatpush1.bf16.msra.mxu1 %v1866_v19  ;;  %499 = vmatpush1.bf16.msra.mxu0 %v1869_v21  ;;  %v1915_v61 = vld [vmem:[%s2406_s1 + $0xe0] ss:$8 sps:$4 sm:$0xff]   ;;  %v1916_v62 = vld [vmem:[%s2406_s1 + $0xf4] ss:$8 sps:$4 sm:$0xff]   ;;  %v1919_v0 = vld [vmem:[%s2406_s1 + $0xf0] ss:$8 sps:$4 sm:$0xff]  }
  0x19   : > { %705 = vmatprep.subr.bf16.mxu1 %v1870_v20  ;;  %500 = vmatprep.subr.bf16.mxu0 %v1873_v22  ;;  %v1918_v63 = vld [vmem:[%s2409_s4 + $0x30] sm:$0xff]   ;;  %v1921_v1 = vld [vmem:[%s2409_s4 + $0x38] sm:$0xff]   ;;  %v1922_v2 = vld [vmem:[%s2411_s6 + $0x40] sm:$0xff]   ;;  %vm760_vm2 = vsmask.f32 256  ;;  %vm772_vm9 = vcmask 1046534  }
  0x1a   : > { %v1923_v3 = vld [vmem:[%s2411_s6] sm:$0xff]   ;;  %v1924_v4 = vld [vmem:[%s2411_s6 + $0x48] sm:$0xff]   ;;  %vm763_vm4 = vsmask.f32 4352  ;;  %vm761_vm5 = vmand %vm759_vm1, %vm760_vm2  ;;  %vm770_vm7 = vsmask.f32 7946 }
  0x1b   : > { %v1925_v5 = vld [vmem:[%s2411_s6 + $0xc0] sm:$0xff]   ;;  %v1926_v6 = vld [vmem:[%s2411_s6 + $0x8] sm:$0xff]   ;;  %vm764_vm8 = vmand %vm762_vm3, %vm763_vm4  ;;  %vm773_vm10 = vsmask.f32 7962  ;;  %vm794_vm15 = vcmask 1042432   ;;  %vm797_vm1 = vcmask 1046532  }
  0x1c   : > { %706 = vmatpush1.bf16.msra.mxu1 %v1872_v23  ;;  %501 = vmatpush1.bf16.msra.mxu0 %v1875_v25  ;;  %v1927_v7 = vld [vmem:[%s2411_s6 + $0x80] sm:$0xff]   ;;  %vm765_vm11 = vmor %vm764_vm8, %vm761_vm5  ;;  %v1928_v10 = vld [vmem:[%s2411_s6 + $0x50] sm:$0xff]   ;;  %vm798_vm2 = vsmask.f32 6418  ;;  %s1549_s24 = sshll.u32 %s2416_s10, 1 }
  0x1d   : > { %707 = vmatprep.subr.bf16.mxu1 %v1876_v24  ;;  %502 = vmatprep.subr.bf16.mxu0 %v1879_v26  ;;  %v766_v8 = vld [vmem:[#allocation2] sm:$0x11]  ;;  %v776_v9 = vld [vmem:[#allocation2] sm:$0x44]  ;;  %v1929_v11 = vld [vmem:[%s2411_s6 + $0xc8] sm:$0xff]   ;;  %s347_s27 = scalar_lea.vmem %s2414_s9, %s1549_s24 }
  0x1e   : > { %v767_v12 = vsel %vm765_vm11, 0, %v766_v8  ;;  %vm771_vm12 = vmand %vm769_vm6, %vm770_vm7  ;;  %v1930_v13 = vld [vmem:[%s2411_s6 + $0x10] sm:$0xff]   ;;  %v1931_v14 = vld [vmem:[%s2411_s6 + $0x88] sm:$0xff]  }
  0x1f   : > { %768 = vst [vmem:[#allocation2] sm:$0x11] %v767_v12  ;;  %vm774_vm13 = vmand %vm772_vm9, %vm773_vm10  ;;  %v1932_v15 = vld [vmem:[%s2411_s6 + $0x58] sm:$0xff]   ;;  %v1933_v16 = vld [vmem:[%s2411_s6 + $0xd0] sm:$0xff]  }
  0x20   : > { %708 = vmatpush1.bf16.msra.mxu1 %v1878_v28  ;;  %503 = vmatpush1.bf16.msra.mxu0 %v1881_v32  ;;  %vm775_vm14 = vmor %vm774_vm13, %vm771_vm12  ;;  %v1934_v17 = vld [vmem:[%s2411_s6 + $0x18] sm:$0xff]   ;;  %v1935_v18 = vld [vmem:[%s2411_s6 + $0x90] sm:$0xff]  }
  0x21   : > { %709 = vmatprep.subr.bf16.mxu1 %v1882_v31  ;;  %504 = vmatprep.subr.bf16.mxu0 %v1885_v34  ;;  %v777_v19 = vsel %vm775_vm14, 0, %v776_v9  ;;  %v1936_v20 = vld [vmem:[%s2411_s6 + $0x60] sm:$0xff]   ;;  %v1937_v21 = vld [vmem:[%s2411_s6 + $0xd8] sm:$0xff]   ;;  %v1940_v24 = vld [vmem:[%s2411_s6 + $0x68] sm:$0xff]  }
  0x22   : > { %778 = vst [vmem:[#allocation2] sm:$0x44] %v777_v19  ;;  %v1938_v22 = vld [vmem:[%s2411_s6 + $0x20] sm:$0xff]   ;;  %v1939_v23 = vld [vmem:[%s2411_s6 + $0x98] sm:$0xff]   ;;  %v1942_v26 = vld [vmem:[%s2411_s6 + $0x28] sm:$0xff]  }
  0x23   : > { %v1941_v25 = vld [vmem:[%s2411_s6 + $0xe0] sm:$0xff]   ;;  %v1944_v28 = vld [vmem:[%s2411_s6 + $0x70] sm:$0xff]   ;;  %v1947_v31 = vld [vmem:[%s2411_s6 + $0xa8] sm:$0xff]  }
  0x24   : > { %710 = vmatpush1.bf16.msra.mxu1 %v1884_v35  ;;  %505 = vmatpush1.bf16.msra.mxu0 %v1887_v39  ;;  %v1943_v27 = vld [vmem:[%s2411_s6 + $0xa0] sm:$0xff]   ;;  %v1948_v32 = vld [vmem:[%s2411_s6 + $0x78] sm:$0xff]   ;;  %v1949_v33 = vld [vmem:[%s2411_s6 + $0xf0] sm:$0xff]  }
  0x25   : > { %711 = vmatprep.subr.bf16.mxu1 %v1888_v36  ;;  %1808 = vmatprep.subr.bf16.mxu0 %v1985_v44  ;;  %v1950_v34 = vld [vmem:[%s2411_s6 + $0x38] sm:$0xff]   ;;  %v1951_v35 = vld [vmem:[%s2411_s6 + $0xb0] sm:$0xff]   ;;  %v1958_v38 = vld [vmem:[%s2411_s6 + $0x140] sm:$0xff]  }
  0x26   : > { %v1954_v36 = vld [vmem:[%s2411_s6 + $0xf8] sm:$0xff]   ;;  %vm799_vm4 = vmand %vm797_vm1, %vm798_vm2 }
  0x27   : > { %523 = vmatmul.mubr.bf16.vlgmr.msra.gmra.mrb[0].mxu0 %v408_v41  ;;  %v1955_v37 = vld [vmem:[%s2411_s6 + $0xb8] sm:$0xff]  }
  0x28   : > { %712 = vmatpush1.bf16.msra.mxu1 %v1890_v40  ;;  %1809 = vmatpush3.bf16.msra.mxu0 %v1894_v43  ;;  %v738_v43 = vlaneseq }
  0x29   : > { %713 = vmatprep.subr.bf16.mxu1 %v1892_v42  ;;  %1824 = vmatprep.mubr.msk.bf16.mxu0 %vm1986_vm0, %v1985_v44  ;;  %vm795_vm0 = vsmask.f32 2306 }
  0x2a   : > { %1810 = vmatprep.subr.bf16.mxu0 %v1985_v44  ;;  %vm796_vm3 = vmand %vm794_vm15, %vm795_vm0 }
  0x2b   : > { %vm800_vm5 = vmor %vm799_vm4, %vm796_vm3 }
  0x2c   : > { %714 = vmatpush1.bf16.msra.mxu1 %v1895_v45  ;;  %1811 = vmatpush3.bf16.msra.mxu0 %v1898_v47 }
  0x2d   : > { %715 = vmatprep.subr.bf16.mxu1 %v1896_v46  ;;  %1812 = vmatprep.subr.bf16.mxu0 %v1985_v44  ;;  %v736_v46 = vld [vmem:[%s2408_s3] sm:$0x3] }
  0x30   : > { %716 = vmatpush1.bf16.msra.mxu1 %v1899_v48  ;;  %1813 = vmatpush3.bf16.msra.mxu0 %v1902_v50 }
  0x31   : > { %717 = vmatprep.subr.bf16.mxu1 %v1900_v49  ;;  %1814 = vmatprep.subr.bf16.mxu0 %v1985_v44 }
  0x34   : > { %718 = vmatpush1.bf16.msra.mxu1 %v1903_v52  ;;  %1815 = vmatpush3.bf16.msra.mxu0 %v1906_v54 }
  0x35   : > { %719 = vmatprep.subr.bf16.mxu1 %v1904_v53  ;;  %1816 = vmatprep.subr.bf16.mxu0 %v1985_v44 }
  0x38   : > { %720 = vmatpush1.bf16.msra.mxu1 %v1907_v55  ;;  %1817 = vmatpush3.bf16.msra.mxu0 %v1910_v57 }
  0x39   : > { %721 = vmatprep.subr.bf16.mxu1 %v1908_v56  ;;  %1818 = vmatprep.subr.bf16.mxu0 %v1985_v44 }
  0x3c   : > { %722 = vmatpush1.bf16.msra.mxu1 %v1911_v58  ;;  %1819 = vmatpush3.bf16.msra.mxu0 %v1914_v60 }
  0x3d   : > { %723 = vmatprep.subr.bf16.mxu1 %v1912_v59  ;;  %1820 = vmatprep.subr.bf16.mxu0 %v1985_v44 }
  0x40   : > { %724 = vmatpush1.bf16.msra.mxu1 %v1915_v61  ;;  %1821 = vmatpush3.bf16.msra.mxu0 %v1918_v63 }
  0x41   : > { %725 = vmatprep.subr.bf16.mxu1 %v1916_v62  ;;  %1822 = vmatprep.subr.bf16.mxu0 %v1985_v44  ;;  %v739_v44 = vshrl.u32 %v738_v43, 7 }
  0x43   : > { %v740_v45 = vsub.s32 0, %v739_v44  ;;  %v744_v47 = vsub.s32 1, %v739_v44 }
  0x44   : > { %726 = vmatpush1.bf16.msra.mxu1 %v1919_v0  ;;  %1823 = vmatpush3.bf16.msra.mxu0 %v1921_v1 }
  0x45   : > { %1764 = vmatprep.subr.bf16.mxu1 %v1922_v2  ;;  %1742 = vmatprep.subr.bf16.mxu0 %v1925_v5  ;;  %v741_v48 = vrot.slane %v736_v46, %v740_v45  ;;  %v745_v50 = vrot.slane %v736_v46, %v744_v47 }
  0x47   : > { %728 = vmatmul.mubr.bf16.vlgmr.msra.gmra.mrb[0].mxu1 %v2136_v29  ;;  %1825 = vmatmul.mubr.bf16.vlgmr.msra.gmra.mrb[4].mxu0 %v2138_v30  ;;  %v1945_v29 = vld [vmem:[%s2411_s6 + $0xe8] sm:$0xff]   ;;  %v1946_v30 = vld [vmem:[%s2411_s6 + $0x30] sm:$0xff]  }
  0x48   : > { %1765 = vmatpush3.bf16.msra.mxu1 %v1923_v3  ;;  %1743 = vmatpush3.bf16.msra.mxu0 %v1927_v7  ;;  %v801_v7 = vld [vmem:[#allocation2] sm:$0x77] }
  0x49   : > { %1766 = vmatprep.subr.bf16.mxu1 %v1924_v4  ;;  %1744 = vmatprep.subr.bf16.mxu0 %v1929_v11 }
  0x4c   : > { %1767 = vmatpush3.bf16.msra.mxu1 %v1926_v6  ;;  %1745 = vmatpush3.bf16.msra.mxu0 %v1931_v14 }
  0x4d   : > { %1768 = vmatprep.subr.bf16.mxu1 %v1928_v10  ;;  %1746 = vmatprep.subr.bf16.mxu0 %v1933_v16 }
  0x50   : > { %1769 = vmatpush3.bf16.msra.mxu1 %v1930_v13  ;;  %1747 = vmatpush3.bf16.msra.mxu0 %v1935_v18 }
  0x51   : > { %1770 = vmatprep.subr.bf16.mxu1 %v1932_v15  ;;  %1748 = vmatprep.subr.bf16.mxu0 %v1937_v21 }
  0x54   : > { %1771 = vmatpush3.bf16.msra.mxu1 %v1934_v17  ;;  %1749 = vmatpush3.bf16.msra.mxu0 %v1939_v23 }
  0x55   : > { %1772 = vmatprep.subr.bf16.mxu1 %v1936_v20  ;;  %1750 = vmatprep.subr.bf16.mxu0 %v1941_v25 }
  0x58   : > { %1773 = vmatpush3.bf16.msra.mxu1 %v1938_v22  ;;  %1751 = vmatpush3.bf16.msra.mxu0 %v1943_v27  ;;  %v1962_v27 = vld [vmem:[%s2411_s6 + $0x148] sm:$0xff]  }
  0x59   : > { %1774 = vmatprep.subr.bf16.mxu1 %v1940_v24  ;;  %1752 = vmatprep.subr.bf16.mxu0 %v1945_v29  ;;  %v1963_v29 = vld [vmem:[%s2411_s6 + $0x108] sm:$0xff]  }
  0x5c   : > { %1775 = vmatpush3.bf16.msra.mxu1 %v1942_v26  ;;  %1753 = vmatpush3.bf16.msra.mxu0 %v1947_v31  ;;  %v1959_v26 = vld [vmem:[%s2411_s6 + $0x100] sm:$0xff]   ;;  %v1965_v31 = vld [vmem:[%s2411_s6 + $0x110] sm:$0xff]  }
  0x5d   : > { %1776 = vmatprep.subr.bf16.mxu1 %v1944_v28  ;;  %1754 = vmatprep.subr.bf16.mxu0 %v1949_v33  ;;  %v1967_v33 = vld [vmem:[%s2411_s6 + $0x118] sm:$0xff]  }
  0x60   : > { %1777 = vmatpush3.bf16.msra.mxu1 %v1946_v30  ;;  %1755 = vmatpush3.bf16.msra.mxu0 %v1951_v35  ;;  %v1964_v30 = vld [vmem:[%s2411_s6 + $0x150] sm:$0xff]   ;;  %v1969_v35 = vld [vmem:[%s2411_s6 + $0x120] sm:$0xff]  }
  0x61   : > { %1778 = vmatprep.subr.bf16.mxu1 %v1948_v32  ;;  %1756 = vmatprep.subr.bf16.mxu0 %v1954_v36  ;;  %v1966_v32 = vld [vmem:[%s2411_s6 + $0x158] sm:$0xff]   ;;  %v1970_v36 = vld [vmem:[%s2411_s6 + $0x168] sm:$0xff]  }
  0x64   : > { %1779 = vmatpush3.bf16.msra.mxu1 %v1950_v34  ;;  %1757 = vmatpush3.bf16.msra.mxu0 %v1955_v37  ;;  %v1968_v34 = vld [vmem:[%s2411_s6 + $0x160] sm:$0xff]   ;;  %v1971_v37 = vld [vmem:[%s2411_s6 + $0x128] sm:$0xff]  }
  0x65   : > { %1786 = vmatprep.subr.bf16.mxu0 %v1958_v38  ;;  %v1972_v38 = vld [vmem:[%s2411_s6 + $0x170] sm:$0xff]  }
  0x95   : > { %v2338_v53 = vpop.permute.xlu0 %752 }
  0xfa   : > { %v524_v39 = vpop.f32.mrb[0].mxu0 }
  0xfb   : > { %v526_v40 = vpop.f32.mrb[1].mxu0 }
  0xfc   : > { %v528_v41 = vpop.f32.mrb[2].mxu0 }
  0xfd   : > { %v529_v42 = vpop.f32.mrb[3].mxu0  ;;  %v1975_v41 = vld [vmem:[%s2411_s6 + $0x138] sm:$0xff]  }
 0x11a   : > { %v729_v49 = vpop.f32.mrb[0].mxu1  ;;  %v2340_v56 = vpop.f32.mrb[4].mxu0 }
 0x11b   : > { %v730_v51 = vadd.f32 %v729_v49, %v524_v39  ;;  %v731_v52 = vpop.f32.mrb[1].mxu1  ;;  %v1826_v59 = vpop.f32.mrb[5].mxu0  ;;  %v1973_v39 = vld [vmem:[%s2411_s6 + $0x130] sm:$0xff]  }
 0x11c   : > { %v732_v54 = vadd.f32 %v731_v52, %v526_v40  ;;  %v733_v55 = vpop.f32.mrb[2].mxu1  ;;  %v912_v61 = vpop.f32.mrb[6].mxu0  ;;  %v1974_v40 = vld [vmem:[%s2411_s6 + $0x178] sm:$0xff]  }
 0x11d   : > { %v748_v57 = vadd.f32 %v741_v48, %v730_v51  ;;  %v734_v58 = vpop.f32.mrb[3].mxu1  ;;  %v1827_v63 = vpop.f32.mrb[7].mxu0 }
 0x11e   : > { %v749_v60 = vadd.f32 %v745_v50, %v732_v54  ;;  %v1601_v58 = vld [vmem:[%s2410_s5] ss:$0 sm:$0xff] }
 0x11f   : > { %v755_v62 = vmul.f32 %v2338_v53, %v748_v57 }
 0x120   : > { %v756_v0 = vmul.f32 %v2338_v53, %v749_v60 }
 0x121   : > { %v757_v1 = vmax.f32 %v755_v62, 0.0  ;;  %v1728_v62 = vld [vmem:[%s2412_s7] ss:$0 sm:$0xff] }
 0x122   : > { %v758_v2 = vmax.f32 %v756_v0, 0.0  ;;  %v910_v0 = vadd.f32 %v1601_v58, %v2340_v56 }
 0x124   : > { %v1732_v3 = vpack.c.bf16 %v758_v2, %v757_v1 }
 0x126   : > { %v787_v4 = vshrl.u32 %v1732_v3, 16  ;;  %v790_v6 = vshll.u32 %v1732_v3, 16  ;;  %v915_v3 = vmul.f32 %v910_v0, %v2338_v53 }
 0x128   : > { %v789_v5 = vrot.slane %v787_v4, 7 }
 0x12a   : > { %v792_v8 = vor.u32 %v790_v6, %v789_v5 }
 0x12c   : > { %v802_v9 = vsel %vm800_vm5, %v792_v8, %v801_v7 }
 0x12d   : > { %803 = vst [vmem:[#allocation2] sm:$0x77] %v802_v9 }
 0x134   : > { %v916_v10 = vld [vmem:[#allocation2] sm:$0x33] }
 0x135   : > { %v949_v11 = vld [vmem:[#allocation2] sm:$0x77]  ;;  %v1660_v12 = vcombine.low %v916_v10, %v916_v10  ;;  %v1661_v13 = vcombine.high %v916_v10, %v916_v10 }
 0x136   : > { %v1642_v14 = vcombine.low %v949_v11, %v949_v11  ;;  %v1643_v15 = vcombine.high %v949_v11, %v949_v11  ;;  %v1283_v16 = vld [vmem:[#allocation2] sm:$0x66] }
 0x137   : > { %1275 = vmatprep.mubr.bf16.mxu1 %v1661_v13  ;;  %v1711_v19 = vcombine.high %v1283_v16, %v1283_v16  ;;  %v1710_v42 = vcombine.low %v1283_v16, %v1283_v16 }
 0x138   : > { %v998_v17 = vshll.u32 %v1643_v15, 16  ;;  %v991_v18 = vshll.u32 %v1642_v14, 16  ;;  %1276 = vmatmul.mubr.bf16.vlgmr.msra.gmra.mrb[4].mxu1 %v1660_v12  ;;  %v996_v20 = vshrl.u32 %v1643_v15, 16  ;;  %v989_v22 = vshrl.u32 %v1642_v14, 16 }
 0x139   : > { %v1323_v28 = vrot.slane %v1711_v19, 1  ;;  %v1322_v43 = vrot.slane %v1710_v42, 1 }
 0x13a   : > { %v1000_v21 = vrot.slane %v998_v17, 1  ;;  %v993_v23 = vrot.slane %v991_v18, 1 }
 0x13c   : > { %v1001_v24 = vor.u32 %v1000_v21, %v996_v20  ;;  %v994_v25 = vor.u32 %v993_v23, %v989_v22 }
 0x13e   : > { %1132 = vmatprep.mubr.bf16.mxu0 %v1001_v24 }
 0x13f   : > { %1133 = vmatmul.mubr.bf16.vlgmr.msra.gmra.mrb[8].mxu0 %v994_v25 }
 0x140   : > { %1787 = vmatpush3.bf16.msra.mxu0 %v1959_v26  ;;  %1454 = vmatprep.mubr.bf16.mxu0 %v1323_v28 }
 0x141   : > { %1788 = vmatprep.subr.bf16.mxu0 %v1962_v27 }
 0x144   : > { %1789 = vmatpush3.bf16.msra.mxu0 %v1963_v29 }
 0x145   : > { %1790 = vmatprep.subr.bf16.mxu0 %v1964_v30 }
 0x148   : > { %1791 = vmatpush3.bf16.msra.mxu0 %v1965_v31 }
 0x149   : > { %1792 = vmatprep.subr.bf16.mxu0 %v1966_v32 }
 0x14c   : > { %1793 = vmatpush3.bf16.msra.mxu0 %v1967_v33 }
 0x14d   : > { %1794 = vmatprep.subr.bf16.mxu0 %v1968_v34 }
 0x150   : > { %1795 = vmatpush3.bf16.msra.mxu0 %v1969_v35 }
 0x151   : > { %1796 = vmatprep.subr.bf16.mxu0 %v1970_v36 }
 0x154   : > { %1797 = vmatpush3.bf16.msra.mxu0 %v1971_v37 }
 0x155   : > { %1798 = vmatprep.subr.bf16.mxu0 %v1972_v38 }
 0x158   : > { %1799 = vmatpush3.bf16.msra.mxu0 %v1973_v39 }
 0x159   : > { %1800 = vmatprep.subr.bf16.mxu0 %v1974_v40 }
 0x15c   : > { %1801 = vmatpush3.bf16.msra.mxu0 %v1975_v41 }
 0x15f   : > { %1455 = vmatmul.mubr.bf16.vlgmr.msra.gmra.mrb[12].mxu0 %v1322_v43 }
 0x20b   : > { %v1780_v44 = vpop.f32.mrb[4].mxu1 }
 0x20c   : > { %v1781_v45 = vpop.f32.mrb[5].mxu1 }
 0x20d   : > { %v1782_v46 = vadd.f32 %v1781_v45, %v1780_v44  ;;  %v1783_v47 = vpop.f32.mrb[6].mxu1 }
 0x20e   : > { %v1784_v48 = vpop.f32.mrb[7].mxu1 }
 0x212   : > { %v1758_v49 = vpop.f32.mrb[8].mxu0 }
 0x213   : > { %v1759_v50 = vpop.f32.mrb[9].mxu0 }
 0x214   : > { %v1760_v51 = vadd.f32 %v1759_v50, %v1758_v49  ;;  %v1761_v52 = vpop.f32.mrb[10].mxu0 }
 0x215   : > { %v1762_v54 = vpop.f32.mrb[11].mxu0 }
 0x216   : > { %v1278_v55 = vadd.f32 %v1782_v46, %v1760_v51 }
 0x232   : > { %v1802_v57 = vpop.f32.mrb[12].mxu0 }
 0x233   : > { %v1803_v59 = vpop.f32.mrb[13].mxu0 }
 0x234   : > { %v1804_v60 = vadd.f32 %v1803_v59, %v1802_v57  ;;  %v1805_v61 = vpop.f32.mrb[14].mxu0 }
 0x235   : > { %v1806_v63 = vpop.f32.mrb[15].mxu0 }
 0x236   : > { %v1462_v1 = vadd.f32 %v1804_v60, %v1278_v55 }
 0x238   : > { %v1470_v2 = vadd.f32 %v1728_v62, %v1462_v1 }
 0x23a   : > { %v1471_v4 = vmul.f32 %v1470_v2, %v2338_v53 }
 0x23c   : > { %v1472_v5 = vadd.f32 %v1471_v4, %v915_v3 }
 0x23e   : > { %v1473_v6 = vmax.f32 %v1472_v5, 0.0 }
 0x240   : > { %v1474_v7 = vpack.c.bf16 %v1473_v6, %v1473_v6 }
 0x242   : > { %1475 = vst [vmem:[%s347_s27] sm:$0x3] %v1474_v7 }
 0x243 PF: > { %s19_s30 = sadd.s32 1, %s1982_s30  }
 0x244   : > { %p16_p4 = scmp.ge.s32.totalorder %s19_s30, 4  }
 0x246   :  { %18 = sbr.rel (!%p16_p4) target bundleno = 1 (0x1), region = 91 }

// kernel: conv_backbone_forward.17
= control target key start
LH: loop header
LB: loop body
LE: loop exit
PB: predicated region body
PF: predicated region fallthrough
CT: control target
= control target key end

     0   :  { %14 = vsyncpa [#allocation4], 0  ;;  %s2596_s0 = inlined_call_operand.vmem [shape: bf16[2,3,256], index: 0, kind: input, shape index: {}]   ;;  %s2597_s1 = inlined_call_operand.vmem [shape: bf16[256,256], index: 1, kind: input, shape index: {}]   ;;  %s2598_s2 = inlined_call_operand.vmem [shape: bf16[128,256], index: 2, kind: input, shape index: {}]   ;;  %s2599_s3 = inlined_call_operand.vmem [shape: f32[1,256], index: 3, kind: input, shape index: {}]   ;;  %s2600_s4 = inlined_call_operand.vmem [shape: bf16[128,128], index: 4, kind: input, shape index: {}]   ;;  %s2601_s5 = inlined_call_operand.vmem [shape: f32[1,128], index: 5, kind: input, shape index: {}]   ;;  %s2602_s6 = inlined_call_operand.vmem [shape: bf16[3,256,128], index: 6, kind: input, shape index: {}]   ;;  %s2603_s7 = inlined_call_operand.vmem [shape: f32[1,128], index: 7, kind: input, shape index: {}]   ;;  %s2604_s8 = inlined_call_operand.vmem [shape: f32[2,2,1], index: 8, kind: input, shape index: {}]   ;;  %s2605_s9 = inlined_call_operand.hbm [shape: bf16[2,2,128], index: 9, kind: output, shape index: {}]  }
   0x1   :  { %16 = vsyncpa [#allocation4 + $0x1], 0  ;;  %s2148_s30 = smov 0   ;;  %s2150_s10 = smov 0  }
   0x2   :  { %s2152_s11 = smov 0   ;;  %s2154_s12 = smov 0  }
   0x3 LB: > { %s2169_s13 = sadd.s32 4294967295, %s2091_s12   ;;  %s1576_s14 = sadd.s32 4294967294, %s2091_s12   ;;  %s2091_s12 = sphi %s2154_s12, %s2613_s12   ;;  %s2087_s11 = sphi %s2152_s11, %s2612_s11   ;;  %s2083_s10 = sphi %s2150_s10, %s2611_s10   ;;  %s2079_s30 = sphi %s2148_s30, %s2610_s30  }
   0x4   : > { %s2173_s15 = sadd.s32 1, %s2091_s12   ;;  %s228_s16 = sadd.s32 1, %s2087_s11 }
   0x5   : > { %s225_s17 = ssub.s32 %s2091_s12, %s2173_s15  ;;  %p238_p0 = scmp.ne.s32.totalorder %s2087_s11, %s2083_s10 }
   0x6   : > { %p226_p1 = scmp.eq.s32.totalorder %s225_s17, 0  ;;  %p239_p2 = scmp.eq.s32.totalorder %s2169_s13, 1 }
   0x7   : > { %p244_p3 = scmp.ne.s32.totalorder %s2083_s10, %s2079_s30  ;;  %p245_p4 = scmp.eq.s32.totalorder %s1576_s14, 1 }
   0x8   : > { %s2184_s18 = scalar_select %p226_p1, %s2087_s11, %s228_s16  }
   0x9   : > { %p2186_p5 = por %p239_p2, %p238_p0  ;;  %p2190_p6 = por %p245_p4, %p244_p3 }
   0xa   : > { %2606 = sst [smem:[#allocation6_spill]] %s2184_s18  ;;  %p1579_p7 = scmp.ge.s32.totalorder %s2091_s12, 1 }
   0xb   : > { %p299_p8 = scmp.lt.s32.totalorder %s2091_s12, 3 }
   0xd   : > { %p300_p9 = pnand %p1579_p7, %p299_p8 }
   0xe   : > { %v1901_v0 = vld [vmem:[%s2597_s1 + $0x4] ss:$8 sps:$4 sm:$0xff] (!%p300_p9)   ;;  %v1903_v1 = vld [vmem:[%s2597_s1] ss:$8 sps:$4 sm:$0xff] (!%p300_p9)   ;;  %v2093_v2 = vmov (!%p300_p9), 0   ;;  %p338_p10 = scmp.lt.s32.totalorder (!%p300_p9), %s2169_s13, 1 }
   0xf   : > { %303 = sbr.rel (%p300_p9) target bundleno = 603 (0x25b), region = 56  ;;  %526 = vmatprep.mubr.bf16.mxu0 (!%p300_p9), %v2093_v2  ;;  %1900 = vset.pattern.permute.xlu0 (!%p300_p9), %v2093_v2  ;;  %v1904_v3 = vld [vmem:[%s2598_s2 + $0x4] ss:$8 sps:$4 sm:$0xff] (!%p300_p9)   ;;  %v1906_v4 = vld [vmem:[%s2598_s2] ss:$8 sps:$4 sm:$0xff] (!%p300_p9)   ;;  %v2094_v43 = vmov (!%p300_p9), 0.0  }
  0x10   : > { %698 = vmatprep.subr.bf16.mxu1 (!%p300_p9), %v1901_v0  ;;  %v1907_v5 = vld [vmem:[%s2597_s1 + $0x14] ss:$8 sps:$4 sm:$0xff] (!%p300_p9)   ;;  %v1909_v6 = vld [vmem:[%s2597_s1 + $0x10] ss:$8 sps:$4 sm:$0xff] (!%p300_p9)   ;;  %494 = vmatprep.subr.bf16.mxu0 (!%p300_p9), %v1904_v3  ;;  %v1913_v9 = vld [vmem:[%s2597_s1 + $0x24] ss:$8 sps:$4 sm:$0xff] (!%p300_p9)  }
  0x11   : > { %699 = vmatpush1.bf16.msra.mxu1 (!%p300_p9), %v1903_v1  ;;  %v1910_v7 = vld [vmem:[%s2598_s2 + $0x14] ss:$8 sps:$4 sm:$0xff] (!%p300_p9)   ;;  %495 = vmatpush1.bf16.msra.mxu0 (!%p300_p9), %v1906_v4  ;;  %v1912_v8 = vld [vmem:[%s2598_s2 + $0x10] ss:$8 sps:$4 sm:$0xff] (!%p300_p9)   ;;  %v1915_v10 = vld [vmem:[%s2597_s1 + $0x20] ss:$8 sps:$4 sm:$0xff] (!%p300_p9)  }
  0x12   : > { %700 = vmatprep.subr.bf16.mxu1 (!%p300_p9), %v1907_v5  ;;  %496 = vmatprep.subr.bf16.mxu0 (!%p300_p9), %v1910_v7  ;;  %v1916_v11 = vld [vmem:[%s2598_s2 + $0x24] ss:$8 sps:$4 sm:$0xff] (!%p300_p9)   ;;  %v1919_v12 = vld [vmem:[%s2597_s1 + $0x34] ss:$8 sps:$4 sm:$0xff] (!%p300_p9)   ;;  %v1918_v13 = vld [vmem:[%s2598_s2 + $0x20] ss:$8 sps:$4 sm:$0xff] (!%p300_p9)  }
  0x13   : > { %v1922_v14 = vld [vmem:[%s2598_s2 + $0x34] ss:$8 sps:$4 sm:$0xff] (!%p300_p9)   ;;  %v1921_v15 = vld [vmem:[%s2597_s1 + $0x30] ss:$8 sps:$4 sm:$0xff] (!%p300_p9)   ;;  %v1925_v16 = vld [vmem:[%s2597_s1 + $0x44] ss:$8 sps:$4 sm:$0xff] (!%p300_p9)  }
  0x14   : > { %v1924_v17 = vld [vmem:[%s2598_s2 + $0x30] ss:$8 sps:$4 sm:$0xff] (!%p300_p9)   ;;  %v1928_v18 = vld [vmem:[%s2598_s2 + $0x44] ss:$8 sps:$4 sm:$0xff] (!%p300_p9)   ;;  %v1927_v19 = vld [vmem:[%s2597_s1 + $0x40] ss:$8 sps:$4 sm:$0xff] (!%p300_p9)  }
  0x15   : > { %701 = vmatpush1.bf16.msra.mxu1 (!%p300_p9), %v1909_v6  ;;  %497 = vmatpush1.bf16.msra.mxu0 (!%p300_p9), %v1912_v8  ;;  %v1931_v20 = vld [vmem:[%s2597_s1 + $0x54] ss:$8 sps:$4 sm:$0xff] (!%p300_p9)   ;;  %v1930_v21 = vld [vmem:[%s2598_s2 + $0x40] ss:$8 sps:$4 sm:$0xff] (!%p300_p9)   ;;  %v1933_v23 = vld [vmem:[%s2597_s1 + $0x50] ss:$8 sps:$4 sm:$0xff] (!%p300_p9)  }
  0x16   : > { %702 = vmatprep.subr.bf16.mxu1 %v1913_v9  ;;  %498 = vmatprep.subr.bf16.mxu0 %v1916_v11  ;;  %s2249_s16 = scalar_select %p338_p10, %s2169_s13, 1  ;;  %v1934_v22 = vld [vmem:[%s2598_s2 + $0x54] ss:$8 sps:$4 sm:$0xff]   ;;  %v1937_v24 = vld [vmem:[%s2597_s1 + $0x64] ss:$8 sps:$4 sm:$0xff]   ;;  %vm2095_vm0 = vmmov 0  }
  0x17   : > { %v1936_v25 = vld [vmem:[%s2598_s2 + $0x50] ss:$8 sps:$4 sm:$0xff]   ;;  %v1939_v26 = vld [vmem:[%s2597_s1 + $0x60] ss:$8 sps:$4 sm:$0xff]   ;;  %v1940_v27 = vld [vmem:[%s2598_s2 + $0x64] ss:$8 sps:$4 sm:$0xff]  }
  0x18   : > { %s1761_s28 = sshll.u32 %s2249_s16, 2  ;;  %v1943_v29 = vld [vmem:[%s2597_s1 + $0x74] ss:$8 sps:$4 sm:$0xff]   ;;  %v1942_v32 = vld [vmem:[%s2598_s2 + $0x60] ss:$8 sps:$4 sm:$0xff]   ;;  %vm762_vm1 = vcmask 1040384  }
  0x19   : > { %703 = vmatpush1.bf16.msra.mxu1 %v1915_v10  ;;  %499 = vmatpush1.bf16.msra.mxu0 %v1918_v13  ;;  %s342_s26 = scalar_lea.vmem %s2596_s0, %s1761_s28  ;;  %v1946_v33 = vld [vmem:[%s2598_s2 + $0x74] ss:$8 sps:$4 sm:$0xff]   ;;  %v1945_v34 = vld [vmem:[%s2597_s1 + $0x70] ss:$8 sps:$4 sm:$0xff]   ;;  %v1949_v35 = vld [vmem:[%s2597_s1 + $0x84] ss:$8 sps:$4 sm:$0xff]  }
  0x1a   : > { %704 = vmatprep.subr.bf16.mxu1 %v1919_v12  ;;  %500 = vmatprep.subr.bf16.mxu0 %v1922_v14  ;;  %v2285_v28 = vld.sshfl [vmem:[%s342_s26] sm:$0x33 pattern:$0x76325410]  ;;  %v1948_v38 = vld [vmem:[%s2598_s2 + $0x70] ss:$8 sps:$4 sm:$0xff]  }
  0x1b   : > { %v409_v30 = vshll.u32 %v2285_v28, 16  ;;  %v2293_v31 = vcombine.high %v2285_v28, %v2285_v28  ;;  %v407_v36 = vshrl.u32 %v2285_v28, 16  ;;  %v1951_v39 = vld [vmem:[%s2597_s1 + $0x80] ss:$8 sps:$4 sm:$0xff]   ;;  %v1952_v41 = vld [vmem:[%s2597_s1 + $0x94] ss:$8 sps:$4 sm:$0xff]  }
  0x1c   : > { %v1954_v42 = vld [vmem:[%s2600_s4] sm:$0xff]   ;;  %s1582_s26 = sshll.u32 %s2249_s16, 1  ;;  %v1955_v44 = vld [vmem:[%s2597_s1 + $0x90] ss:$8 sps:$4 sm:$0xff]   ;;  %v1958_v46 = vld [vmem:[%s2600_s4 + $0x8] sm:$0xff]   ;;  %vm765_vm3 = vcmask 1042434  }
  0x1d   : > { %705 = vmatpush1.bf16.msra.mxu1 %v1921_v15  ;;  %501 = vmatpush1.bf16.msra.mxu0 %v1924_v17  ;;  %v411_v37 = vrot.slane %v409_v30, 1  ;;  %v1956_v45 = vld [vmem:[%s2597_s1 + $0xa4] ss:$8 sps:$4 sm:$0xff]   ;;  %s346_s18 = scalar_lea.vmem %s2604_s8, %s1582_s26  ;;  %v1959_v47 = vld [vmem:[%s2597_s1 + $0xa0] ss:$8 sps:$4 sm:$0xff]   ;;  %v1962_v49 = vld [vmem:[%s2600_s4 + $0x10] sm:$0xff]  }
  0x1e   : > { %706 = vmatprep.subr.bf16.mxu1 %v1925_v16  ;;  %502 = vmatprep.subr.bf16.mxu0 %v1928_v18  ;;  %v1960_v48 = vld [vmem:[%s2597_s1 + $0xb4] ss:$8 sps:$4 sm:$0xff]   ;;  %v348_v50 = vld [vmem:[%s346_s18] sm:$0x3]  ;;  %v1963_v51 = vld [vmem:[%s2597_s1 + $0xb0] ss:$8 sps:$4 sm:$0xff]  }
  0x1f   : > { %730 = vmatprep.mubr.bf16.mxu1 %v2293_v31  ;;  %v412_v40 = vor.u32 %v411_v37, %v407_v36  ;;  %755 = vperm.xlu0 %1900, %v348_v50   ;;  %v1964_v52 = vld [vmem:[%s2597_s1 + $0xc4] ss:$8 sps:$4 sm:$0xff]   ;;  %v1966_v53 = vld [vmem:[%s2600_s4 + $0x18] sm:$0xff]   ;;  %v1967_v54 = vld [vmem:[%s2597_s1 + $0xc0] ss:$8 sps:$4 sm:$0xff]   ;;  %vm772_vm6 = vcmask 1041409  }
  0x20   : > { %v1968_v55 = vld [vmem:[%s2597_s1 + $0xd4] ss:$8 sps:$4 sm:$0xff]   ;;  %v1970_v56 = vld [vmem:[%s2600_s4 + $0x20] sm:$0xff]   ;;  %v1971_v57 = vld [vmem:[%s2597_s1 + $0xd0] ss:$8 sps:$4 sm:$0xff]   ;;  %vm775_vm9 = vcmask 1043459  }
  0x21   : > { %707 = vmatpush1.bf16.msra.mxu1 %v1927_v19  ;;  %503 = vmatpush1.bf16.msra.mxu0 %v1930_v21  ;;  %v1972_v58 = vld [vmem:[%s2597_s1 + $0xe4] ss:$8 sps:$4 sm:$0xff]   ;;  %v1975_v60 = vld [vmem:[%s2597_s1 + $0xe0] ss:$8 sps:$4 sm:$0xff]   ;;  %v1976_v61 = vld [vmem:[%s2597_s1 + $0xf4] ss:$8 sps:$4 sm:$0xff]  }
  0x22   : > { %708 = vmatprep.subr.bf16.mxu1 %v1931_v20  ;;  %504 = vmatprep.subr.bf16.mxu0 %v1934_v22  ;;  %v1974_v59 = vld [vmem:[%s2600_s4 + $0x28] sm:$0xff]   ;;  %v1978_v62 = vld [vmem:[%s2600_s4 + $0x30] sm:$0xff]   ;;  %v1980_v0 = vld [vmem:[%s2600_s4 + $0x38] sm:$0xff]   ;;  %vm763_vm2 = vsmask.f32 256  ;;  %vm802_vm15 = vcmask 1041408  }
  0x23   : > { %v1979_v63 = vld [vmem:[%s2597_s1 + $0xf0] ss:$8 sps:$4 sm:$0xff]   ;;  %v1981_v1 = vld [vmem:[%s2602_s6 + $0x40] sm:$0xff]   ;;  %v1983_v3 = vld [vmem:[%s2602_s6 + $0x48] sm:$0xff]   ;;  %vm766_vm4 = vsmask.f32 2304 }
  0x24   : > { %v1982_v2 = vld [vmem:[%s2602_s6] sm:$0xff]   ;;  %v1985_v5 = vld [vmem:[%s2602_s6 + $0x8] sm:$0xff]   ;;  %vm764_vm5 = vmand %vm762_vm1, %vm763_vm2  ;;  %vm773_vm7 = vsmask.f32 7942  ;;  %vm776_vm10 = vsmask.f32 7950 }
  0x25   : > { %709 = vmatpush1.bf16.msra.mxu1 %v1933_v23  ;;  %505 = vmatpush1.bf16.msra.mxu0 %v1936_v25  ;;  %v1984_v4 = vld [vmem:[%s2602_s6 + $0xc0] sm:$0xff]   ;;  %vm767_vm8 = vmand %vm765_vm3, %vm766_vm4  ;;  %v1987_v9 = vld [vmem:[%s2602_s6 + $0x50] sm:$0xff]   ;;  %v2096_v50 = vmov 1983009808   ;;  %vm805_vm1 = vcmask 1043458   ;;  %s336_s17 = sand.u32 1, %s2083_s10  }
  0x26   : > { %710 = vmatprep.subr.bf16.mxu1 %v1937_v24  ;;  %506 = vmatprep.subr.bf16.mxu0 %v1940_v27  ;;  %v769_v6 = vld [vmem:[#allocation2] sm:$0x5]  ;;  %v779_v7 = vld [vmem:[#allocation2] sm:$0xa]  ;;  %vm768_vm11 = vmor %vm767_vm8, %vm764_vm5  ;;  %vm806_vm2 = vsmask.f32 3338 }
  0x27   : > { %v1986_v8 = vld [vmem:[%s2602_s6 + $0x80] sm:$0xff]   ;;  %v770_v10 = vsel %vm768_vm11, 0, %v769_v6  ;;  %vm774_vm12 = vmand %vm772_vm6, %vm773_vm7  ;;  %v1988_v11 = vld [vmem:[%s2602_s6 + $0xc8] sm:$0xff]   ;;  %s1758_s21 = sshll.u32 %s2169_s13, 4  ;;  %s337_s26 = scalar_lea.vmem [#allocation3], %s336_s17 }
  0x28   : > { %v1989_v12 = vld [vmem:[%s2602_s6 + $0x10] sm:$0xff]   ;;  %771 = vst [vmem:[#allocation2] sm:$0x5] %v770_v10  ;;  %vm777_vm13 = vmand %vm775_vm9, %vm776_vm10  ;;  %v1990_v13 = vld [vmem:[%s2602_s6 + $0x88] sm:$0xff]   ;;  %s1509_s22 = sshll.u32 %s337_s26, 4  ;;  %s2554_s23 = scalar_lea.hbm %s2605_s9, %s1758_s21  ;;  %s2556_s22 = int_to_ptr.vmem [resolvable:$true] %s1509_s22 }
  0x29   : > { %711 = vmatpush1.bf16.msra.mxu1 %v1939_v26  ;;  %507 = vmatpush1.bf16.msra.mxu0 %v1942_v32  ;;  %vm778_vm14 = vmor %vm777_vm13, %vm774_vm12  ;;  %v1991_v14 = vld [vmem:[%s2602_s6 + $0x58] sm:$0xff]   ;;  %v1992_v16 = vld [vmem:[%s2602_s6 + $0xd0] sm:$0xff]   ;;  %s1497_s18 = scalar_lea.sflag [#allocation4], %s336_s17  ;;  %s2029_s24 = scalar_lea.vmem %s2556_s22, 16 }
  0x2a   : > { %712 = vmatprep.subr.bf16.mxu1 %v1943_v29  ;;  %508 = vmatprep.subr.bf16.mxu0 %v1946_v33  ;;  %v780_v15 = vsel %vm778_vm14, 0, %v779_v7  ;;  %v1993_v17 = vld [vmem:[%s2602_s6 + $0x18] sm:$0xff]   ;;  %v1994_v18 = vld [vmem:[%s2602_s6 + $0x90] sm:$0xff]   ;;  %v1995_v19 = vld [vmem:[%s2602_s6 + $0x60] sm:$0xff]   ;;  %p2030_p11 = scmp.ne.s32.totalorder %s2556_s22, %s2029_s24  ;;  %s2097_s13 = smov [#allocation3]  }
  0x2b   : > { %781 = vst [vmem:[#allocation2] sm:$0xa] %v780_v15  ;;  %v1996_v20 = vld [vmem:[%s2602_s6 + $0xd8] sm:$0xff]   ;;  %v1997_v21 = vld [vmem:[%s2602_s6 + $0x20] sm:$0xff]   ;;  %v1999_v23 = vld [vmem:[%s2602_s6 + $0x68] sm:$0xff]   ;;  %s2033_s25 = sshll.u32 %s2097_s13, 4  ;;  %s2034_s25 = int_to_ptr.vmem [resolvable:$false] %s2033_s25 }
  0x2c   : > { %v1998_v22 = vld [vmem:[%s2602_s6 + $0x98] sm:$0xff]   ;;  %v2000_v24 = vld [vmem:[%s2602_s6 + $0xe0] sm:$0xff]   ;;  %v2001_v25 = vld [vmem:[%s2602_s6 + $0x28] sm:$0xff]   ;;  %p2031_p12 = pnand %p2030_p11, %p2186_p5  ;;  %s2035_s27 = scalar_lea.vmem %s2034_s25, 32 }
  0x2d   : > { %713 = vmatpush1.bf16.msra.mxu1 %v1945_v34  ;;  %509 = vmatpush1.bf16.msra.mxu0 %v1948_v38  ;;  %v2002_v26 = vld [vmem:[%s2602_s6 + $0xa0] sm:$0xff]   ;;  %v2003_v27 = vld [vmem:[%s2602_s6 + $0x70] sm:$0xff]   ;;  %v2007_v30 = vld [vmem:[%s2602_s6 + $0x78] sm:$0xff]   ;;  %p2036_p0 = scmp.lt.s32.totalorder %s2556_s22, %s2034_s25  ;;  %p2037_p1 = scmp.lt.s32.totalorder %s2035_s27, %s2029_s24 }
  0x2e   : > { %714 = vmatprep.subr.bf16.mxu1 %v1949_v35  ;;  %1837 = vmatprep.subr.bf16.mxu0 %v2094_v43  ;;  %v2005_v29 = vld [vmem:[%s2602_s6 + $0x30] sm:$0xff]   ;;  %v2009_v33 = vld [vmem:[%s2602_s6 + $0x38] sm:$0xff]   ;;  %v2013_v37 = vld [vmem:[%s2602_s6 + $0x140] sm:$0xff]   ;;  %p2032_p13 = pneg %p2031_p12 }
  0x2f   : > { %v2008_v32 = vld [vmem:[%s2602_s6 + $0xf0] sm:$0xff]   ;;  %v2011_v35 = vld [vmem:[%s2602_s6 + $0xf8] sm:$0xff]   ;;  %vm807_vm4 = vmand %vm805_vm1, %vm806_vm2  ;;  %p2038_p2 = por %p2037_p1, %p2036_p0 }
  0x30   : > { %527 = vmatmul.mubr.bf16.vlgmr.msra.gmra.mrb[0].mxu0 %v412_v40  ;;  %v2010_v34 = vld [vmem:[%s2602_s6 + $0xb0] sm:$0xff]   ;;  %v2012_v36 = vld [vmem:[%s2602_s6 + $0xb8] sm:$0xff]  }
  0x31   : > { %715 = vmatpush1.bf16.msra.mxu1 %v1951_v39  ;;  %1838 = vmatpush3.bf16.msra.mxu0 %v1954_v42  ;;  %v741_v42 = vlaneseq  ;;  %p2039_p3 = pnand %p2038_p2, %p2032_p13 }
  0x32   : > { %716 = vmatprep.subr.bf16.mxu1 %v1952_v41  ;;  %1853 = vmatprep.mubr.msk.bf16.mxu0 %vm2095_vm0, %v2094_v43  ;;  %vm803_vm0 = vsmask.f32 1282 }
  0x33   : > { %1839 = vmatprep.subr.bf16.mxu0 %v2094_v43  ;;  %vm804_vm3 = vmand %vm802_vm15, %vm803_vm0 }
  0x34   : > { %vm808_vm5 = vmor %vm807_vm4, %vm804_vm3 }
  0x35   : > { %717 = vmatpush1.bf16.msra.mxu1 %v1955_v44  ;;  %1840 = vmatpush3.bf16.msra.mxu0 %v1958_v46 }
  0x36   : > { %718 = vmatprep.subr.bf16.mxu1 %v1956_v45  ;;  %1841 = vmatprep.subr.bf16.mxu0 %v2094_v43  ;;  %v739_v45 = vld [vmem:[%s2599_s3] sm:$0x3] }
  0x39   : > { %719 = vmatpush1.bf16.msra.mxu1 %v1959_v47  ;;  %1842 = vmatpush3.bf16.msra.mxu0 %v1962_v49 }
  0x3a   : > { %720 = vmatprep.subr.bf16.mxu1 %v1960_v48  ;;  %1843 = vmatprep.subr.bf16.mxu0 %v2094_v43 }
  0x3d   : > { %721 = vmatpush1.bf16.msra.mxu1 %v1963_v51  ;;  %1844 = vmatpush3.bf16.msra.mxu0 %v1966_v53  ;;  %v788_v51 = vunpack.c.l.s4 %v2096_v50 }
  0x3e   : > { %722 = vmatprep.subr.bf16.mxu1 %v1964_v52  ;;  %1845 = vmatprep.subr.bf16.mxu0 %v2094_v43 }
  0x41   : > { %723 = vmatpush1.bf16.msra.mxu1 %v1967_v54  ;;  %1846 = vmatpush3.bf16.msra.mxu0 %v1970_v56 }
  0x42   : > { %724 = vmatprep.subr.bf16.mxu1 %v1968_v55  ;;  %1847 = vmatprep.subr.bf16.mxu0 %v2094_v43 }
  0x45   : > { %725 = vmatpush1.bf16.msra.mxu1 %v1971_v57  ;;  %1848 = vmatpush3.bf16.msra.mxu0 %v1974_v59 }
  0x46   : > { %726 = vmatprep.subr.bf16.mxu1 %v1972_v58  ;;  %1849 = vmatprep.subr.bf16.mxu0 %v2094_v43 }
  0x49   : > { %727 = vmatpush1.bf16.msra.mxu1 %v1975_v60  ;;  %1850 = vmatpush3.bf16.msra.mxu0 %v1978_v62  ;;  %v789_v62 = vunpack.c.0.s8 %v788_v51 }
  0x4a   : > { %728 = vmatprep.subr.bf16.mxu1 %v1976_v61  ;;  %1851 = vmatprep.subr.bf16.mxu0 %v2094_v43  ;;  %v742_v43 = vshrl.u32 %v741_v42, 7  ;;  %v2027_v42 = vld [vmem:[%s2602_s6 + $0x178] sm:$0xff]  }
  0x4c   : > { %v743_v44 = vsub.s32 0, %v742_v43  ;;  %v747_v46 = vsub.s32 1, %v742_v43 }
  0x4d   : > { %729 = vmatpush1.bf16.msra.mxu1 %v1979_v63  ;;  %1852 = vmatpush3.bf16.msra.mxu0 %v1980_v0 }
  0x4e   : > { %1793 = vmatprep.subr.bf16.mxu1 %v1981_v1  ;;  %1771 = vmatprep.subr.bf16.mxu0 %v1984_v4  ;;  %v744_v47 = vrot.slane %v739_v45, %v743_v44  ;;  %v748_v49 = vrot.slane %v739_v45, %v747_v46  ;;  %v792_v4 = vsub.s32 %v789_v62, %v742_v43  ;;  %v2028_v43 = vld [vmem:[%s2602_s6 + $0x138] sm:$0xff]  }
  0x50   : > { %731 = vmatmul.mubr.bf16.vlgmr.msra.gmra.mrb[0].mxu1 %v2285_v28  ;;  %1854 = vmatmul.mubr.bf16.vlgmr.msra.gmra.mrb[4].mxu0 %v2293_v31  ;;  %v2004_v28 = vld [vmem:[%s2602_s6 + $0xe8] sm:$0xff]  }
  0x51   : > { %1794 = vmatpush3.bf16.msra.mxu1 %v1982_v2  ;;  %1772 = vmatpush3.bf16.msra.mxu0 %v1986_v8  ;;  %v2006_v31 = vld [vmem:[%s2602_s6 + $0xa8] sm:$0xff]  }
  0x52   : > { %1795 = vmatprep.subr.bf16.mxu1 %v1983_v3  ;;  %1773 = vmatprep.subr.bf16.mxu0 %v1988_v11  ;;  %v809_v11 = vld [vmem:[#allocation2] sm:$0xf] }
  0x55   : > { %1796 = vmatpush3.bf16.msra.mxu1 %v1985_v5  ;;  %1774 = vmatpush3.bf16.msra.mxu0 %v1990_v13 }
  0x56   : > { %1797 = vmatprep.subr.bf16.mxu1 %v1987_v9  ;;  %1775 = vmatprep.subr.bf16.mxu0 %v1992_v16 }
  0x59   : > { %1798 = vmatpush3.bf16.msra.mxu1 %v1989_v12  ;;  %1776 = vmatpush3.bf16.msra.mxu0 %v1994_v18 }
  0x5a   : > { %1799 = vmatprep.subr.bf16.mxu1 %v1991_v14  ;;  %1777 = vmatprep.subr.bf16.mxu0 %v1996_v20 }
  0x5d   : > { %1800 = vmatpush3.bf16.msra.mxu1 %v1993_v17  ;;  %1778 = vmatpush3.bf16.msra.mxu0 %v1998_v22 }
  0x5e   : > { %1801 = vmatprep.subr.bf16.mxu1 %v1995_v19  ;;  %1779 = vmatprep.subr.bf16.mxu0 %v2000_v24 }
  0x61   : > { %1802 = vmatpush3.bf16.msra.mxu1 %v1997_v21  ;;  %1780 = vmatpush3.bf16.msra.mxu0 %v2002_v26 }
  0x62   : > { %1803 = vmatprep.subr.bf16.mxu1 %v1999_v23  ;;  %1781 = vmatprep.subr.bf16.mxu0 %v2004_v28 }
  0x65   : > { %1804 = vmatpush3.bf16.msra.mxu1 %v2001_v25  ;;  %1782 = vmatpush3.bf16.msra.mxu0 %v2006_v31  ;;  %v2016_v31 = vld [vmem:[%s2602_s6 + $0x108] sm:$0xff]  }
  0x66   : > { %1805 = vmatprep.subr.bf16.mxu1 %v2003_v27  ;;  %1783 = vmatprep.subr.bf16.mxu0 %v2008_v32  ;;  %v2014_v27 = vld [vmem:[%s2602_s6 + $0x100] sm:$0xff]   ;;  %v2017_v32 = vld [vmem:[%s2602_s6 + $0x150] sm:$0xff]  }
  0x69   : > { %1806 = vmatpush3.bf16.msra.mxu1 %v2005_v29  ;;  %1784 = vmatpush3.bf16.msra.mxu0 %v2010_v34  ;;  %v2015_v29 = vld [vmem:[%s2602_s6 + $0x148] sm:$0xff]   ;;  %v2019_v34 = vld [vmem:[%s2602_s6 + $0x158] sm:$0xff]  }
  0x6a   : > { %1807 = vmatprep.subr.bf16.mxu1 %v2007_v30  ;;  %1785 = vmatprep.subr.bf16.mxu0 %v2011_v35  ;;  %v2020_v35 = vld [vmem:[%s2602_s6 + $0x118] sm:$0xff]  }
  0x6d   : > { %1808 = vmatpush3.bf16.msra.mxu1 %v2009_v33  ;;  %1786 = vmatpush3.bf16.msra.mxu0 %v2012_v36  ;;  %v2018_v33 = vld [vmem:[%s2602_s6 + $0x110] sm:$0xff]   ;;  %v2021_v36 = vld [vmem:[%s2602_s6 + $0x160] sm:$0xff]  }
  0x6e   : > { %1815 = vmatprep.subr.bf16.mxu0 %v2013_v37  ;;  %v2022_v37 = vld [vmem:[%s2602_s6 + $0x120] sm:$0xff]  }
  0x9e   : > { %v2489_v54 = vpop.permute.xlu0 %755 }
 0x103   : > { %v528_v38 = vpop.f32.mrb[0].mxu0 }
 0x104   : > { %v530_v39 = vpop.f32.mrb[1].mxu0 }
 0x105   : > { %v532_v40 = vpop.f32.mrb[2].mxu0 }
 0x106   : > { %v533_v41 = vpop.f32.mrb[3].mxu0  ;;  %v2025_v40 = vld [vmem:[%s2602_s6 + $0x170] sm:$0xff]  }
 0x107   : > { %v2026_v41 = vld [vmem:[%s2602_s6 + $0x130] sm:$0xff]  }
 0x123   : > { %v732_v48 = vpop.f32.mrb[0].mxu1  ;;  %v2491_v57 = vpop.f32.mrb[4].mxu0 }
 0x124   : > { %v733_v52 = vadd.f32 %v732_v48, %v528_v38  ;;  %v734_v53 = vpop.f32.mrb[1].mxu1  ;;  %v1855_v60 = vpop.f32.mrb[5].mxu0  ;;  %v2023_v38 = vld [vmem:[%s2602_s6 + $0x168] sm:$0xff]  }
 0x125   : > { %v735_v55 = vadd.f32 %v734_v53, %v530_v39  ;;  %v736_v56 = vpop.f32.mrb[2].mxu1  ;;  %v920_v63 = vpop.f32.mrb[6].mxu0  ;;  %v2024_v39 = vld [vmem:[%s2602_s6 + $0x128] sm:$0xff]  }
 0x126   : > { %v751_v58 = vadd.f32 %v744_v47, %v733_v52  ;;  %v737_v59 = vpop.f32.mrb[3].mxu1  ;;  %v1856_v1 = vpop.f32.mrb[7].mxu0  ;;  %v1757_v63 = vld [vmem:[%s2603_s7] ss:$0 sm:$0xff] }
 0x127   : > { %v752_v61 = vadd.f32 %v748_v49, %v735_v55  ;;  %v1633_v59 = vld [vmem:[%s2601_s5] ss:$0 sm:$0xff] }
 0x128   : > { %v758_v0 = vmul.f32 %v2489_v54, %v751_v58  ;;  %v918_v1 = vadd.f32 %v1633_v59, %v2491_v57 }
 0x129   : > { %v759_v2 = vmul.f32 %v2489_v54, %v752_v61 }
 0x12a   : > { %v760_v3 = vmax.f32 %v758_v0, 0.0 }
 0x12b   : > { %v761_v5 = vmax.f32 %v759_v2, 0.0 }
 0x12d   : > { %v1632_v6 = vpack.c.bf16 %v761_v5, %v760_v3 }
 0x12f   : > { %v793_v7 = vrot.slane %v1632_v6, %v792_v4  ;;  %v923_v4 = vmul.f32 %v918_v1, %v2489_v54 }
 0x131   : > { %v795_v8 = vshrl.u32 %v793_v7, 16  ;;  %v798_v10 = vshll.u32 %v793_v7, 16 }
 0x133   : > { %v797_v9 = vrot.slane %v795_v8, 7 }
 0x135   : > { %v800_v12 = vor.u32 %v798_v10, %v797_v9 }
 0x137   : > { %v810_v13 = vsel %vm808_vm5, %v800_v12, %v809_v11 }
 0x138   : > { %811 = vst [vmem:[#allocation2] sm:$0xf] %v810_v13 }
 0x13f   : > { %v1691_v14 = vld.sshfl [vmem:[#allocation2] sm:$0x11 pattern:$0x76325410] }
 0x140   : > { %v1160_v15 = vcombine.high %v1691_v14, %v1691_v14  ;;  %v1674_v16 = vld.sshfl [vmem:[#allocation2] sm:$0x33 pattern:$0x76325410] }
 0x141   : > { %v999_v17 = vcombine.high %v1674_v16, %v1674_v16  ;;  %v1003_v18 = vshll.u32 %v1674_v16, 16  ;;  %v1740_v19 = vld.sshfl [vmem:[#allocation2] sm:$0x22 pattern:$0x76325410]  ;;  %v1001_v25 = vshrl.u32 %v1674_v16, 16 }
 0x142   : > { %1291 = vmatprep.mubr.bf16.mxu1 %v1160_v15  ;;  %v1341_v24 = vcombine.high %v1740_v19, %v1740_v19  ;;  %v1342_v44 = vrot.slane %v1740_v19, 1 }
 0x143   : > { %1292 = vmatmul.mubr.bf16.vlgmr.msra.gmra.mrb[4].mxu1 %v1691_v14  ;;  %v1010_v20 = vshll.u32 %v999_v17, 16  ;;  %v1005_v21 = vrot.slane %v1003_v18, 1  ;;  %v1008_v22 = vshrl.u32 %v999_v17, 16 }
 0x144   : > { %v1343_v30 = vrot.slane %v1341_v24, 1 }
 0x145   : > { %v1012_v23 = vrot.slane %v1010_v20, 1  ;;  %v1006_v28 = vor.u32 %v1005_v21, %v1001_v25 }
 0x147   : > { %v1013_v26 = vor.u32 %v1012_v23, %v1008_v22 }
 0x149   : > { %1144 = vmatprep.mubr.bf16.mxu0 %v1013_v26 }
 0x14a   : > { %1145 = vmatmul.mubr.bf16.vlgmr.msra.gmra.mrb[8].mxu0 %v1006_v28 }
 0x14b   : > { %1816 = vmatpush3.bf16.msra.mxu0 %v2014_v27  ;;  %1474 = vmatprep.mubr.bf16.mxu0 %v1343_v30 }
 0x14c   : > { %1817 = vmatprep.subr.bf16.mxu0 %v2015_v29 }
 0x14f   : > { %1818 = vmatpush3.bf16.msra.mxu0 %v2016_v31 }
 0x150   : > { %1819 = vmatprep.subr.bf16.mxu0 %v2017_v32 }
 0x153   : > { %1820 = vmatpush3.bf16.msra.mxu0 %v2018_v33 }
 0x154   : > { %1821 = vmatprep.subr.bf16.mxu0 %v2019_v34 }
 0x157   : > { %1822 = vmatpush3.bf16.msra.mxu0 %v2020_v35 }
 0x158   : > { %1823 = vmatprep.subr.bf16.mxu0 %v2021_v36 }
 0x15b   : > { %1824 = vmatpush3.bf16.msra.mxu0 %v2022_v37 }
 0x15c   : > { %1825 = vmatprep.subr.bf16.mxu0 %v2023_v38 }
 0x15f   : > { %1826 = vmatpush3.bf16.msra.mxu0 %v2024_v39 }
 0x160   : > { %1827 = vmatprep.subr.bf16.mxu0 %v2025_v40 }
 0x163   : > { %1828 = vmatpush3.bf16.msra.mxu0 %v2026_v41 }
 0x164   : > { %1829 = vmatprep.subr.bf16.mxu0 %v2027_v42 }
 0x167   : > { %1830 = vmatpush3.bf16.msra.mxu0 %v2028_v43 }
 0x16a   : > { %1475 = vmatmul.mubr.bf16.vlgmr.msra.gmra.mrb[12].mxu0 %v1342_v44 }
 0x216   : > { %v1809_v45 = vpop.f32.mrb[4].mxu1 }
 0x217   : > { %v1810_v46 = vpop.f32.mrb[5].mxu1 }
 0x218   : > { %v1811_v47 = vadd.f32 %v1810_v46, %v1809_v45  ;;  %v1812_v48 = vpop.f32.mrb[6].mxu1 }
 0x219   : > { %v1813_v49 = vpop.f32.mrb[7].mxu1 }
 0x21d   : > { %v1787_v50 = vpop.f32.mrb[8].mxu0 }
 0x21e   : > { %v1788_v51 = vpop.f32.mrb[9].mxu0 }
 0x21f   : > { %v1789_v52 = vadd.f32 %v1788_v51, %v1787_v50  ;;  %v1790_v53 = vpop.f32.mrb[10].mxu0 }
 0x220   : > { %v1791_v55 = vpop.f32.mrb[11].mxu0 }
 0x221   : > { %v1294_v56 = vadd.f32 %v1811_v47, %v1789_v52 }
 0x23d   : > { %v1831_v58 = vpop.f32.mrb[12].mxu0 }
 0x23e   : > { %v1832_v60 = vpop.f32.mrb[13].mxu0 }
 0x23f   : > { %v1833_v61 = vadd.f32 %v1832_v60, %v1831_v58  ;;  %v1834_v62 = vpop.f32.mrb[14].mxu0 }
 0x240   : > { %v1835_v0 = vpop.f32.mrb[15].mxu0 }
 0x241   : > { %v1482_v2 = vadd.f32 %v1833_v61, %v1294_v56 }
 0x243   : > { %v1490_v3 = vadd.f32 %v1757_v63, %v1482_v2 }
 0x245   : > { %v1491_v5 = vmul.f32 %v1490_v3, %v2489_v54 }
 0x247   : > { %v1492_v6 = vadd.f32 %v1491_v5, %v923_v4 }
 0x249   : > { %v1493_v7 = vmax.f32 %v1492_v6, 0.0 }
 0x24b   : > { %v1494_v8 = vpack.c.bf16 %v1493_v7, %v1493_v7 }
 0x24d   : > { %1495 = vst [vmem:[%s337_s26] sm:$0x1] %v1494_v8 }
 0x24e   : > { %2042 = shalt.err (!%p2039_p3)
}
 0x24f   : > { %s2043_s29 = scalar_lea.hbm %s2554_s23, 16  ;;  %s2047_s21 = scalar_lea.hbm %s2605_s9, 32 }
 0x250   : > { %p2044_p4 = scmp.ne.s32.totalorder %s2554_s23, %s2043_s29  ;;  %p2048_p9 = scmp.lt.u32.totalorder %s2554_s23, %s2605_s9 }
 0x251   : > { %p2049_p10 = scmp.lt.u32.totalorder %s2047_s21, %s2043_s29  ;;  %p2051_p12 = scmp.lt.u32.totalorder %s2043_s29, %s2554_s23 }
 0x252   : > { %p2045_p7 = pnand %p2044_p4, %p2186_p5 }
 0x253   : > { %p2050_p11 = por %p2049_p10, %p2048_p9 }
 0x254   : > { %p2046_p8 = pneg %p2045_p7 }
 0x255   : > { %p2052_p13 = por %p2051_p12, %p2050_p11 }
 0x257   : > { %p2053_p0 = pnand %p2052_p13, %p2046_p8 }
 0x259   : > { %2056 = shalt.err (!%p2053_p0)
}
 0x25a   : > { %1857 = dma.vmem_to_hbm [thread:$0]  (%p2186_p5), %s2556_s22, 16, %s2554_s23, %s1497_s18  }
 0x25b PF: > { %p1863_p1 = scmp.ge.s32.totalorder %s2091_s12, 2  ;;  %s1521_s16 = sand.u32 1, %s2079_s30  }
 0x25c   : > { %s1522_s24 = scalar_lea.sflag [#allocation4], %s1521_s16 }
 0x25d   : > { %p1860_p2 = pnand %p1863_p1, %p2190_p6 }
 0x25f   : > { %2074 = dma.done.wait (!%p1860_p2), %s1522_s24, 16  }
 0x260   : > { %2076 = vsyncadd (!%p1860_p2), %s1522_s24, 4294967280  ;;  %s2609_s13 = sld [smem:[#allocation6_spill]]  ;;  %p19_p3 = scmp.ge.s32.totalorder %s2173_s15, 4  }
 0x261   : > { %s2610_s30 = smov %s2083_s10  ;;  %s2611_s10 = smov %s2087_s11 }
 0x262   : > { %s2613_s12 = smov %s2173_s15  ;;  %21 = sbr.rel (!%p19_p3) target bundleno = 3 (0x3), region = 96 }
 0x266   : > { %s2612_s11 = smov %s2609_s13 }
 0x269   :  { %1526 = vsyncpa [#allocation4], 1 }
 0x26a   :  { %1528 = vsyncpa [#allocation4 + $0x1], 1 }

</bundles_post_ra>
